<compile_context>
chip_gen: v5e
topology: v5e:2x2
jax: 0.10.0
libtpu: 0.0.40
codegen_flags: <defaults>
</compile_context>

<pallas_src>
import functools

import jax
import jax.numpy as jnp
from jax.experimental import pallas as pl
from jax.experimental.pallas import tpu as pltpu


# ---------------------------------------------------------------------------
# Pallas kernel: fused (bf16 x bf16 -> f32) matmul + bias + activation
# ---------------------------------------------------------------------------
def _matmul_bias_act_kernel(x_ref, w_ref, b_ref, o_ref, *, act):
    acc = jnp.dot(x_ref[...], w_ref[...], preferred_element_type=jnp.float32)
    acc = acc + b_ref[...]                     # (1, N) f32 bias broadcasts over rows
    if act == "relu":
        acc = jnp.maximum(acc, 0.0)
    elif act == "sigmoid":
        acc = jax.nn.sigmoid(acc)              # epilogue stays f32 (v5e-safe)
    o_ref[...] = acc.astype(o_ref.dtype)


def _pick_tile_m(M):
    # Big tiles cut per-grid-step overhead, but keep grid >= 2 for large M so
    # the row axis can be sharded across v7x's two TensorCores.
    for cand in (2048, 1024, 512, 256, 128):
        if M % cand == 0 and (M < 2048 or M // cand >= 2):
            return cand
    return M                                   # tiny M (e.g. the batch-2 linears)


def matmul_bias_act(x, w, b, act, out_dtype):
    """x: [M, K] bf16, w: [K, N] bf16, b: [1, N] f32 -> [M, N] out_dtype."""
    M, K = x.shape
    Kw, N = w.shape
    assert K == Kw and b.shape == (1, N)
    tile_m = _pick_tile_m(M)
    grid = (M // tile_m,)
    return pl.pallas_call(
        functools.partial(_matmul_bias_act_kernel, act=act),
        out_shape=jax.ShapeDtypeStruct((M, N), out_dtype),
        grid_spec=pltpu.PrefetchScalarGridSpec(
            num_scalar_prefetch=0,
            grid=grid,
            in_specs=[
                pl.BlockSpec((tile_m, K), lambda i: (i, 0)),   # patches / acts
                pl.BlockSpec((K, N), lambda i: (0, 0)),        # resident weights
                pl.BlockSpec((1, N), lambda i: (0, 0)),        # resident bias
            ],
            out_specs=pl.BlockSpec((tile_m, N), lambda i: (i, 0)),
        ),
        compiler_params=pltpu.CompilerParams(
            dimension_semantics=("parallel",),
            vmem_limit_bytes=32 * 1024 * 1024,   # explicit budget, v7x-safe
        ),
    )(x, w, b)


# ---------------------------------------------------------------------------
# Conv / ConvTranspose layer wrappers (NHWC, minimal XLA glue)
# ---------------------------------------------------------------------------
def conv2d_s2(x, wm, b, act, out_dtype=jnp.bfloat16):
    """Conv2d(k=3, stride=2, pad=1) on NHWC input. wm: [9*Cin, Cout] bf16."""
    B, H, W, C = x.shape
    Ho, Wo = H // 2, W // 2
    xp = jnp.pad(x, ((0, 0), (1, 1), (1, 1), (0, 0)))
    taps = [xp[:, di:di + 2 * Ho - 1:2, dj:dj + 2 * Wo - 1:2, :]
            for di in range(3) for dj in range(3)]
    patches = jnp.concatenate(taps, axis=-1).reshape(B * Ho * Wo, 9 * C)
    y = matmul_bias_act(patches, wm, b, act, out_dtype)
    return y.reshape(B, Ho, Wo, wm.shape[1])


def conv_transpose2d_s2(x, wc, b, act, out_dtype):
    """ConvTranspose2d(k=3, stride=2, pad=1, out_pad=1) on NHWC input.

    Stride^2 sub-kernel decomposition: 2x2-tap patches of the undilated input
    matmul a combined [4*Cin, 4*Cout] weight; the four output parity classes
    are then interleaved spatially (one small XLA transpose of the output).
    """
    B, H, W, C = x.shape
    N = wc.shape[1] // 4
    xp = jnp.pad(x, ((0, 0), (0, 1), (0, 1), (0, 0)))        # zero row/col for edge taps
    taps = [xp[:, dr:dr + H, dc:dc + W, :] for dr in range(2) for dc in range(2)]
    patches = jnp.concatenate(taps, axis=-1).reshape(B * H * W, 4 * C)
    y = matmul_bias_act(patches, wc, b, act, out_dtype)      # [B*H*W, 4*N], cols (s, pc, n)
    y = y.reshape(B, H, W, 2, 2, N).transpose(0, 1, 3, 2, 4, 5)
    return y.reshape(B, 2 * H, 2 * W, N)


# ---------------------------------------------------------------------------
# Parameter init (torch layout) + one-time packing into kernel operands
# ---------------------------------------------------------------------------
def init_params(key, in_channels):
    def u(k, shape, fan_in):
        bound = 1.0 / (fan_in ** 0.5)
        return jax.random.uniform(k, shape, jnp.float32, -bound, bound)

    ks = jax.random.split(key, 16)
    p = {}
    p["e1_w"] = u(ks[0], (64, in_channels, 3, 3), in_channels * 9)
    p["e1_b"] = u(ks[1], (64,), in_channels * 9)
    p["e2_w"] = u(ks[2], (32, 64, 3, 3), 64 * 9)
    p["e2_b"] = u(ks[3], (32,), 64 * 9)
    p["e3_w"] = u(ks[4], (16, 32, 3, 3), 32 * 9)
    p["e3_b"] = u(ks[5], (16,), 32 * 9)
    p["lat_w"] = u(ks[6], (128, 16 * 8 * 8), 16 * 8 * 8)
    p["lat_b"] = u(ks[7], (128,), 16 * 8 * 8)
    p["dfc_w"] = u(ks[8], (16 * 8 * 8, 128), 128)
    p["dfc_b"] = u(ks[9], (16 * 8 * 8,), 128)
    p["d1_w"] = u(ks[10], (16, 32, 3, 3), 32 * 9)     # ConvTranspose: [Cin,Cout,k,k]
    p["d1_b"] = u(ks[11], (32,), 32 * 9)
    p["d2_w"] = u(ks[12], (32, 64, 3, 3), 64 * 9)
    p["d2_b"] = u(ks[13], (64,), 64 * 9)
    p["d3_w"] = u(ks[14], (64, in_channels, 3, 3), in_channels * 9)
    p["d3_b"] = u(ks[15], (in_channels,), in_channels * 9)
    return p


def pack_params(p):
    """Torch-layout params -> matmul-ready kernel operands (done once)."""
    f32, bf16 = jnp.float32, jnp.bfloat16

    def conv_w(w):          # [Cout, Cin, 3, 3] -> [9*Cin, Cout], K-order (kh, kw, cin)
        return jnp.transpose(w, (2, 3, 1, 0)).reshape(-1, w.shape[0]).astype(bf16)

    def convT_w(w):         # [Cin, Cout, 3, 3] -> [4*Cin, 4*Cout] sub-kernel layout
        cin, cout = w.shape[0], w.shape[1]
        rows = []
        for dr in range(2):                 # patch tap row offset
            for dc in range(2):             # patch tap col offset
                cols = []
                for s in range(2):          # output row parity
                    for pc in range(2):     # output col parity
                        kh, kw = s + 1 - 2 * dr, pc + 1 - 2 * dc
                        if 0 <= kh <= 2 and 0 <= kw <= 2:
                            cols.append(w[:, :, kh, kw])
                        else:
                            cols.append(jnp.zeros((cin, cout), w.dtype))
                rows.append(jnp.concatenate(cols, axis=1))
        return jnp.concatenate(rows, axis=0).astype(bf16)

    def bias(b):
        return b.reshape(1, -1).astype(f32)

    q = {}
    for name in ("e1", "e2", "e3"):
        q[name + "_w"] = conv_w(p[name + "_w"])
        q[name + "_b"] = bias(p[name + "_b"])
    for name in ("d1", "d2", "d3"):
        q[name + "_w"] = convT_w(p[name + "_w"])
        q[name + "_b"] = bias(jnp.tile(p[name + "_b"], 4))
    # Linear weights pre-transposed to [in, out]; the 16*8*8 feature axis is
    # re-ordered from torch's NCHW flatten (c,h,w) to our NHWC flatten (h,w,c).
    q["lat_w"] = (p["lat_w"].reshape(128, 16, 8, 8).transpose(2, 3, 1, 0)
                  .reshape(16 * 8 * 8, 128).astype(bf16))
    q["lat_b"] = bias(p["lat_b"])
    q["dfc_w"] = (p["dfc_w"].reshape(16, 8, 8, 128).transpose(3, 1, 2, 0)
                  .reshape(128, 16 * 8 * 8).astype(bf16))
    q["dfc_b"] = bias(p["dfc_b"].reshape(16, 8, 8).transpose(1, 2, 0).reshape(-1))
    return q


# ---------------------------------------------------------------------------
# Forward pass (matches PyTorch Autoencoder.forward)
# ---------------------------------------------------------------------------
@jax.jit
def autoencoder_forward(packed, x):
    B = x.shape[0]
    # one boundary transpose NCHW -> NHWC; feed bf16 to the MXU
    h = jnp.transpose(x, (0, 2, 3, 1)).astype(jnp.bfloat16)
    # encoder: 64 -> 32 -> 16 -> 8 spatial
    h = conv2d_s2(h, packed["e1_w"], packed["e1_b"], act="relu")
    h = conv2d_s2(h, packed["e2_w"], packed["e2_b"], act="relu")
    h = conv2d_s2(h, packed["e3_w"], packed["e3_b"], act="relu")   # [B, 8, 8, 16]
    # flatten (NHWC order; weight columns were permuted at init to match torch)
    h = h.reshape(B, 8 * 8 * 16)
    h = matmul_bias_act(h, packed["lat_w"], packed["lat_b"], "none", jnp.bfloat16)
    h = matmul_bias_act(h, packed["dfc_w"], packed["dfc_b"], "none", jnp.bfloat16)
    h = h.reshape(B, 8, 8, 16)                                     # NHWC latent map
    # decoder: 8 -> 16 -> 32 -> 64 spatial
    h = conv_transpose2d_s2(h, packed["d1_w"], packed["d1_b"], "relu", jnp.bfloat16)
    h = conv_transpose2d_s2(h, packed["d2_w"], packed["d2_b"], "relu", jnp.bfloat16)
    h = conv_transpose2d_s2(h, packed["d3_w"], packed["d3_b"], "sigmoid", jnp.float32)
    return jnp.transpose(h, (0, 3, 1, 2))                          # NHWC -> NCHW


if __name__ == "__main__":
    key = jax.random.PRNGKey(0)
    k_param, k_x = jax.random.split(key)

    in_channels = 4
    # latent Linear(16*8*8) forces encoder output of 8x8 => input must be 64x64
    x = jax.random.normal(k_x, (2, in_channels, 64, 64), dtype=jnp.float32)

    params = init_params(k_param, in_channels)
    packed = pack_params(params)

    out = autoencoder_forward(packed, x)
    out = jax.block_until_ready(out)

    assert out.shape == (2, in_channels, 64, 64), out.shape
    assert bool(jnp.all(out >= 0.0)) and bool(jnp.all(out <= 1.0))  # sigmoid range
    print("KERNEL_OK")
</pallas_src>

<mosaic_0001>
module attributes {stable_mosaic.version = 11 : i64} {
  func.func @_matmul_bias_act_kernel(%arg0: i32, %arg1: memref<1024x36xbf16, #tpu.memory_space<vmem>>, %arg2: memref<36x64xbf16, #tpu.memory_space<vmem>>, %arg3: memref<1x64xf32, #tpu.memory_space<vmem>>, %arg4: memref<1024x64xbf16, #tpu.memory_space<vmem>>) attributes {dimension_semantics = [#tpu.dimension_semantics<parallel>], iteration_bounds = array<i64: 2>, scalar_prefetch = 0 : i64, scratch_operands = 0 : i64, tpu.core_type = #tpu.core_type<tc>, window_params = [{transform_indices = @transform_0, window_bounds = array<i64: 1024, 36>}, {pipeline_mode = #tpu.pipeline_mode<synchronous>, transform_indices = @transform_1, window_bounds = array<i64: 36, 64>}, {pipeline_mode = #tpu.pipeline_mode<synchronous>, transform_indices = @transform_2, window_bounds = array<i64: 1, 64>}, {transform_indices = @transform_3, window_bounds = array<i64: 1024, 64>}]} {
    %c0 = arith.constant 0 : index
    %c0_0 = arith.constant 0 : index
    %0 = vector.load %arg1[%c0, %c0_0] : memref<1024x36xbf16, #tpu.memory_space<vmem>>, vector<1024x36xbf16>
    %c0_1 = arith.constant 0 : index
    %c0_2 = arith.constant 0 : index
    %1 = vector.load %arg2[%c0_1, %c0_2] : memref<36x64xbf16, #tpu.memory_space<vmem>>, vector<36x64xbf16>
    %cst = arith.constant dense<0.000000e+00> : vector<1024x64xf32>
    %2 = tpu.matmul %0, %1, %cst {dimension_numbers = #tpu.dot_dimension_numbers<[1], [0], [0], [1], [0, 0, 1, 1], [], []>} : vector<1024x36xbf16>, vector<36x64xbf16>, vector<1024x64xf32> -> vector<1024x64xf32>
    %c0_3 = arith.constant 0 : index
    %c0_4 = arith.constant 0 : index
    %3 = vector.load %arg3[%c0_3, %c0_4] : memref<1x64xf32, #tpu.memory_space<vmem>>, vector<1x64xf32>
    %4 = vector.broadcast %3 : vector<1x64xf32> to vector<1024x64xf32>
    %5 = arith.addf %2, %4 : vector<1024x64xf32>
    %cst_5 = arith.constant 0.000000e+00 : f32
    %6 = vector.broadcast %cst_5 : f32 to vector<1024x64xf32>
    %7 = arith.maximumf %5, %6 : vector<1024x64xf32>
    %8 = arith.truncf %7 : vector<1024x64xf32> to vector<1024x64xbf16>
    %c0_6 = arith.constant 0 : index
    %c0_7 = arith.constant 0 : index
    %9 = vector.load %arg4[%c0_6, %c0_7] : memref<1024x64xbf16, #tpu.memory_space<vmem>>, vector<1024x64xbf16>
    tpu.vector_store %arg4[%c0_6, %c0_7], %8 {strides = array<i32>} : memref<1024x64xbf16, #tpu.memory_space<vmem>>, vector<1024x64xbf16>,
    return
  }
  func.func @transform_0(%arg0: i32) -> (i32, i32) {
    %c0_i32 = arith.constant 0 : i32
    %c0_i32_0 = arith.constant 0 : i32
    return %arg0, %c0_i32 : i32, i32
  }
  func.func @transform_1(%arg0: i32) -> (i32, i32) {
    %c0_i32 = arith.constant 0 : i32
    %c0_i32_0 = arith.constant 0 : i32
    %c0_i32_1 = arith.constant 0 : i32
    return %c0_i32, %c0_i32_0 : i32, i32
  }
  func.func @transform_2(%arg0: i32) -> (i32, i32) {
    %c0_i32 = arith.constant 0 : i32
    %c0_i32_0 = arith.constant 0 : i32
    %c0_i32_1 = arith.constant 0 : i32
    return %c0_i32, %c0_i32_0 : i32, i32
  }
  func.func @transform_3(%arg0: i32) -> (i32, i32) {
    %c0_i32 = arith.constant 0 : i32
    %c0_i32_0 = arith.constant 0 : i32
    return %arg0, %c0_i32 : i32, i32
  }
}

module attributes {stable_mosaic.version = 11 : i64} {
  func.func @_matmul_bias_act_kernel(%arg0: i32, %arg1: memref<512x576xbf16, #tpu.memory_space<vmem>>, %arg2: memref<576x32xbf16, #tpu.memory_space<vmem>>, %arg3: memref<1x32xf32, #tpu.memory_space<vmem>>, %arg4: memref<512x32xbf16, #tpu.memory_space<vmem>>) attributes {dimension_semantics = [#tpu.dimension_semantics<parallel>], iteration_bounds = array<i64: 1>, scalar_prefetch = 0 : i64, scratch_operands = 0 : i64, tpu.core_type = #tpu.core_type<tc>, window_params = [{transform_indices = @transform_0, window_bounds = array<i64: 512, 576>}, {pipeline_mode = #tpu.pipeline_mode<synchronous>, transform_indices = @transform_1, window_bounds = array<i64: 576, 32>}, {pipeline_mode = #tpu.pipeline_mode<synchronous>, transform_indices = @transform_2, window_bounds = array<i64: 1, 32>}, {transform_indices = @transform_3, window_bounds = array<i64: 512, 32>}]} {
    %c0 = arith.constant 0 : index
    %c0_0 = arith.constant 0 : index
    %0 = vector.load %arg1[%c0, %c0_0] : memref<512x576xbf16, #tpu.memory_space<vmem>>, vector<512x576xbf16>
    %c0_1 = arith.constant 0 : index
    %c0_2 = arith.constant 0 : index
    %1 = vector.load %arg2[%c0_1, %c0_2] : memref<576x32xbf16, #tpu.memory_space<vmem>>, vector<576x32xbf16>
    %cst = arith.constant dense<0.000000e+00> : vector<512x32xf32>
    %2 = tpu.matmul %0, %1, %cst {dimension_numbers = #tpu.dot_dimension_numbers<[1], [0], [0], [1], [0, 0, 1, 1], [], []>} : vector<512x576xbf16>, vector<576x32xbf16>, vector<512x32xf32> -> vector<512x32xf32>
    %c0_3 = arith.constant 0 : index
    %c0_4 = arith.constant 0 : index
    %3 = vector.load %arg3[%c0_3, %c0_4] : memref<1x32xf32, #tpu.memory_space<vmem>>, vector<1x32xf32>
    %4 = vector.broadcast %3 : vector<1x32xf32> to vector<512x32xf32>
    %5 = arith.addf %2, %4 : vector<512x32xf32>
    %cst_5 = arith.constant 0.000000e+00 : f32
    %6 = vector.broadcast %cst_5 : f32 to vector<512x32xf32>
    %7 = arith.maximumf %5, %6 : vector<512x32xf32>
    %8 = arith.truncf %7 : vector<512x32xf32> to vector<512x32xbf16>
    %c0_6 = arith.constant 0 : index
    %c0_7 = arith.constant 0 : index
    %9 = vector.load %arg4[%c0_6, %c0_7] : memref<512x32xbf16, #tpu.memory_space<vmem>>, vector<512x32xbf16>
    tpu.vector_store %arg4[%c0_6, %c0_7], %8 {strides = array<i32>} : memref<512x32xbf16, #tpu.memory_space<vmem>>, vector<512x32xbf16>,
    return
  }
  func.func @transform_0(%arg0: i32) -> (i32, i32) {
    %c0_i32 = arith.constant 0 : i32
    %c0_i32_0 = arith.constant 0 : i32
    return %arg0, %c0_i32 : i32, i32
  }
  func.func @transform_1(%arg0: i32) -> (i32, i32) {
    %c0_i32 = arith.constant 0 : i32
    %c0_i32_0 = arith.constant 0 : i32
    %c0_i32_1 = arith.constant 0 : i32
    return %c0_i32, %c0_i32_0 : i32, i32
  }
  func.func @transform_2(%arg0: i32) -> (i32, i32) {
    %c0_i32 = arith.constant 0 : i32
    %c0_i32_0 = arith.constant 0 : i32
    %c0_i32_1 = arith.constant 0 : i32
    return %c0_i32, %c0_i32_0 : i32, i32
  }
  func.func @transform_3(%arg0: i32) -> (i32, i32) {
    %c0_i32 = arith.constant 0 : i32
    %c0_i32_0 = arith.constant 0 : i32
    return %arg0, %c0_i32 : i32, i32
  }
}

module attributes {stable_mosaic.version = 11 : i64} {
  func.func @_matmul_bias_act_kernel(%arg0: i32, %arg1: memref<128x288xbf16, #tpu.memory_space<vmem>>, %arg2: memref<288x16xbf16, #tpu.memory_space<vmem>>, %arg3: memref<1x16xf32, #tpu.memory_space<vmem>>, %arg4: memref<128x16xbf16, #tpu.memory_space<vmem>>) attributes {dimension_semantics = [#tpu.dimension_semantics<parallel>], iteration_bounds = array<i64: 1>, scalar_prefetch = 0 : i64, scratch_operands = 0 : i64, tpu.core_type = #tpu.core_type<tc>, window_params = [{transform_indices = @transform_0, window_bounds = array<i64: 128, 288>}, {pipeline_mode = #tpu.pipeline_mode<synchronous>, transform_indices = @transform_1, window_bounds = array<i64: 288, 16>}, {pipeline_mode = #tpu.pipeline_mode<synchronous>, transform_indices = @transform_2, window_bounds = array<i64: 1, 16>}, {transform_indices = @transform_3, window_bounds = array<i64: 128, 16>}]} {
    %c0 = arith.constant 0 : index
    %c0_0 = arith.constant 0 : index
    %0 = vector.load %arg1[%c0, %c0_0] : memref<128x288xbf16, #tpu.memory_space<vmem>>, vector<128x288xbf16>
    %c0_1 = arith.constant 0 : index
    %c0_2 = arith.constant 0 : index
    %1 = vector.load %arg2[%c0_1, %c0_2] : memref<288x16xbf16, #tpu.memory_space<vmem>>, vector<288x16xbf16>
    %cst = arith.constant dense<0.000000e+00> : vector<128x16xf32>
    %2 = tpu.matmul %0, %1, %cst {dimension_numbers = #tpu.dot_dimension_numbers<[1], [0], [0], [1], [0, 0, 1, 1], [], []>} : vector<128x288xbf16>, vector<288x16xbf16>, vector<128x16xf32> -> vector<128x16xf32>
    %c0_3 = arith.constant 0 : index
    %c0_4 = arith.constant 0 : index
    %3 = vector.load %arg3[%c0_3, %c0_4] : memref<1x16xf32, #tpu.memory_space<vmem>>, vector<1x16xf32>
    %4 = vector.broadcast %3 : vector<1x16xf32> to vector<128x16xf32>
    %5 = arith.addf %2, %4 : vector<128x16xf32>
    %cst_5 = arith.constant 0.000000e+00 : f32
    %6 = vector.broadcast %cst_5 : f32 to vector<128x16xf32>
    %7 = arith.maximumf %5, %6 : vector<128x16xf32>
    %8 = arith.truncf %7 : vector<128x16xf32> to vector<128x16xbf16>
    %c0_6 = arith.constant 0 : index
    %c0_7 = arith.constant 0 : index
    %9 = vector.load %arg4[%c0_6, %c0_7] : memref<128x16xbf16, #tpu.memory_space<vmem>>, vector<128x16xbf16>
    tpu.vector_store %arg4[%c0_6, %c0_7], %8 {strides = array<i32>} : memref<128x16xbf16, #tpu.memory_space<vmem>>, vector<128x16xbf16>,
    return
  }
  func.func @transform_0(%arg0: i32) -> (i32, i32) {
    %c0_i32 = arith.constant 0 : i32
    %c0_i32_0 = arith.constant 0 : i32
    return %arg0, %c0_i32 : i32, i32
  }
  func.func @transform_1(%arg0: i32) -> (i32, i32) {
    %c0_i32 = arith.constant 0 : i32
    %c0_i32_0 = arith.constant 0 : i32
    %c0_i32_1 = arith.constant 0 : i32
    return %c0_i32, %c0_i32_0 : i32, i32
  }
  func.func @transform_2(%arg0: i32) -> (i32, i32) {
    %c0_i32 = arith.constant 0 : i32
    %c0_i32_0 = arith.constant 0 : i32
    %c0_i32_1 = arith.constant 0 : i32
    return %c0_i32, %c0_i32_0 : i32, i32
  }
  func.func @transform_3(%arg0: i32) -> (i32, i32) {
    %c0_i32 = arith.constant 0 : i32
    %c0_i32_0 = arith.constant 0 : i32
    return %arg0, %c0_i32 : i32, i32
  }
}

module attributes {stable_mosaic.version = 11 : i64} {
  func.func @_matmul_bias_act_kernel(%arg0: i32, %arg1: memref<2x1024xbf16, #tpu.memory_space<vmem>>, %arg2: memref<1024x128xbf16, #tpu.memory_space<vmem>>, %arg3: memref<1x128xf32, #tpu.memory_space<vmem>>, %arg4: memref<2x128xbf16, #tpu.memory_space<vmem>>) attributes {dimension_semantics = [#tpu.dimension_semantics<parallel>], iteration_bounds = array<i64: 1>, scalar_prefetch = 0 : i64, scratch_operands = 0 : i64, tpu.core_type = #tpu.core_type<tc>, window_params = [{transform_indices = @transform_0, window_bounds = array<i64: 2, 1024>}, {pipeline_mode = #tpu.pipeline_mode<synchronous>, transform_indices = @transform_1, window_bounds = array<i64: 1024, 128>}, {pipeline_mode = #tpu.pipeline_mode<synchronous>, transform_indices = @transform_2, window_bounds = array<i64: 1, 128>}, {transform_indices = @transform_3, window_bounds = array<i64: 2, 128>}]} {
    %c0 = arith.constant 0 : index
    %c0_0 = arith.constant 0 : index
    %0 = vector.load %arg1[%c0, %c0_0] : memref<2x1024xbf16, #tpu.memory_space<vmem>>, vector<2x1024xbf16>
    %c0_1 = arith.constant 0 : index
    %c0_2 = arith.constant 0 : index
    %1 = vector.load %arg2[%c0_1, %c0_2] : memref<1024x128xbf16, #tpu.memory_space<vmem>>, vector<1024x128xbf16>
    %cst = arith.constant dense<0.000000e+00> : vector<2x128xf32>
    %2 = tpu.matmul %0, %1, %cst {dimension_numbers = #tpu.dot_dimension_numbers<[1], [0], [0], [1], [0, 0, 1, 1], [], []>} : vector<2x1024xbf16>, vector<1024x128xbf16>, vector<2x128xf32> -> vector<2x128xf32>
    %c0_3 = arith.constant 0 : index
    %c0_4 = arith.constant 0 : index
    %3 = vector.load %arg3[%c0_3, %c0_4] : memref<1x128xf32, #tpu.memory_space<vmem>>, vector<1x128xf32>
    %4 = vector.broadcast %3 : vector<1x128xf32> to vector<2x128xf32>
    %5 = arith.addf %2, %4 : vector<2x128xf32>
    %6 = arith.truncf %5 : vector<2x128xf32> to vector<2x128xbf16>
    %c0_5 = arith.constant 0 : index
    %c0_6 = arith.constant 0 : index
    %7 = vector.load %arg4[%c0_5, %c0_6] : memref<2x128xbf16, #tpu.memory_space<vmem>>, vector<2x128xbf16>
    tpu.vector_store %arg4[%c0_5, %c0_6], %6 {strides = array<i32>} : memref<2x128xbf16, #tpu.memory_space<vmem>>, vector<2x128xbf16>,
    return
  }
  func.func @transform_0(%arg0: i32) -> (i32, i32) {
    %c0_i32 = arith.constant 0 : i32
    %c0_i32_0 = arith.constant 0 : i32
    return %arg0, %c0_i32 : i32, i32
  }
  func.func @transform_1(%arg0: i32) -> (i32, i32) {
    %c0_i32 = arith.constant 0 : i32
    %c0_i32_0 = arith.constant 0 : i32
    %c0_i32_1 = arith.constant 0 : i32
    return %c0_i32, %c0_i32_0 : i32, i32
  }
  func.func @transform_2(%arg0: i32) -> (i32, i32) {
    %c0_i32 = arith.constant 0 : i32
    %c0_i32_0 = arith.constant 0 : i32
    %c0_i32_1 = arith.constant 0 : i32
    return %c0_i32, %c0_i32_0 : i32, i32
  }
  func.func @transform_3(%arg0: i32) -> (i32, i32) {
    %c0_i32 = arith.constant 0 : i32
    %c0_i32_0 = arith.constant 0 : i32
    return %arg0, %c0_i32 : i32, i32
  }
}

module attributes {stable_mosaic.version = 11 : i64} {
  func.func @_matmul_bias_act_kernel(%arg0: i32, %arg1: memref<2x128xbf16, #tpu.memory_space<vmem>>, %arg2: memref<128x1024xbf16, #tpu.memory_space<vmem>>, %arg3: memref<1x1024xf32, #tpu.memory_space<vmem>>, %arg4: memref<2x1024xbf16, #tpu.memory_space<vmem>>) attributes {dimension_semantics = [#tpu.dimension_semantics<parallel>], iteration_bounds = array<i64: 1>, scalar_prefetch = 0 : i64, scratch_operands = 0 : i64, tpu.core_type = #tpu.core_type<tc>, window_params = [{transform_indices = @transform_0, window_bounds = array<i64: 2, 128>}, {pipeline_mode = #tpu.pipeline_mode<synchronous>, transform_indices = @transform_1, window_bounds = array<i64: 128, 1024>}, {pipeline_mode = #tpu.pipeline_mode<synchronous>, transform_indices = @transform_2, window_bounds = array<i64: 1, 1024>}, {transform_indices = @transform_3, window_bounds = array<i64: 2, 1024>}]} {
    %c0 = arith.constant 0 : index
    %c0_0 = arith.constant 0 : index
    %0 = vector.load %arg1[%c0, %c0_0] : memref<2x128xbf16, #tpu.memory_space<vmem>>, vector<2x128xbf16>
    %c0_1 = arith.constant 0 : index
    %c0_2 = arith.constant 0 : index
    %1 = vector.load %arg2[%c0_1, %c0_2] : memref<128x1024xbf16, #tpu.memory_space<vmem>>, vector<128x1024xbf16>
    %cst = arith.constant dense<0.000000e+00> : vector<2x1024xf32>
    %2 = tpu.matmul %0, %1, %cst {dimension_numbers = #tpu.dot_dimension_numbers<[1], [0], [0], [1], [0, 0, 1, 1], [], []>} : vector<2x128xbf16>, vector<128x1024xbf16>, vector<2x1024xf32> -> vector<2x1024xf32>
    %c0_3 = arith.constant 0 : index
    %c0_4 = arith.constant 0 : index
    %3 = vector.load %arg3[%c0_3, %c0_4] : memref<1x1024xf32, #tpu.memory_space<vmem>>, vector<1x1024xf32>
    %4 = vector.broadcast %3 : vector<1x1024xf32> to vector<2x1024xf32>
    %5 = arith.addf %2, %4 : vector<2x1024xf32>
    %6 = arith.truncf %5 : vector<2x1024xf32> to vector<2x1024xbf16>
    %c0_5 = arith.constant 0 : index
    %c0_6 = arith.constant 0 : index
    %7 = vector.load %arg4[%c0_5, %c0_6] : memref<2x1024xbf16, #tpu.memory_space<vmem>>, vector<2x1024xbf16>
    tpu.vector_store %arg4[%c0_5, %c0_6], %6 {strides = array<i32>} : memref<2x1024xbf16, #tpu.memory_space<vmem>>, vector<2x1024xbf16>,
    return
  }
  func.func @transform_0(%arg0: i32) -> (i32, i32) {
    %c0_i32 = arith.constant 0 : i32
    %c0_i32_0 = arith.constant 0 : i32
    return %arg0, %c0_i32 : i32, i32
  }
  func.func @transform_1(%arg0: i32) -> (i32, i32) {
    %c0_i32 = arith.constant 0 : i32
    %c0_i32_0 = arith.constant 0 : i32
    %c0_i32_1 = arith.constant 0 : i32
    return %c0_i32, %c0_i32_0 : i32, i32
  }
  func.func @transform_2(%arg0: i32) -> (i32, i32) {
    %c0_i32 = arith.constant 0 : i32
    %c0_i32_0 = arith.constant 0 : i32
    %c0_i32_1 = arith.constant 0 : i32
    return %c0_i32, %c0_i32_0 : i32, i32
  }
  func.func @transform_3(%arg0: i32) -> (i32, i32) {
    %c0_i32 = arith.constant 0 : i32
    %c0_i32_0 = arith.constant 0 : i32
    return %arg0, %c0_i32 : i32, i32
  }
}

module attributes {stable_mosaic.version = 11 : i64} {
  func.func @_matmul_bias_act_kernel(%arg0: i32, %arg1: memref<128x64xbf16, #tpu.memory_space<vmem>>, %arg2: memref<64x128xbf16, #tpu.memory_space<vmem>>, %arg3: memref<1x128xf32, #tpu.memory_space<vmem>>, %arg4: memref<128x128xbf16, #tpu.memory_space<vmem>>) attributes {dimension_semantics = [#tpu.dimension_semantics<parallel>], iteration_bounds = array<i64: 1>, scalar_prefetch = 0 : i64, scratch_operands = 0 : i64, tpu.core_type = #tpu.core_type<tc>, window_params = [{transform_indices = @transform_0, window_bounds = array<i64: 128, 64>}, {pipeline_mode = #tpu.pipeline_mode<synchronous>, transform_indices = @transform_1, window_bounds = array<i64: 64, 128>}, {pipeline_mode = #tpu.pipeline_mode<synchronous>, transform_indices = @transform_2, window_bounds = array<i64: 1, 128>}, {transform_indices = @transform_3, window_bounds = array<i64: 128, 128>}]} {
    %c0 = arith.constant 0 : index
    %c0_0 = arith.constant 0 : index
    %0 = vector.load %arg1[%c0, %c0_0] : memref<128x64xbf16, #tpu.memory_space<vmem>>, vector<128x64xbf16>
    %c0_1 = arith.constant 0 : index
    %c0_2 = arith.constant 0 : index
    %1 = vector.load %arg2[%c0_1, %c0_2] : memref<64x128xbf16, #tpu.memory_space<vmem>>, vector<64x128xbf16>
    %cst = arith.constant dense<0.000000e+00> : vector<128x128xf32>
    %2 = tpu.matmul %0, %1, %cst {dimension_numbers = #tpu.dot_dimension_numbers<[1], [0], [0], [1], [0, 0, 1, 1], [], []>} : vector<128x64xbf16>, vector<64x128xbf16>, vector<128x128xf32> -> vector<128x128xf32>
    %c0_3 = arith.constant 0 : index
    %c0_4 = arith.constant 0 : index
    %3 = vector.load %arg3[%c0_3, %c0_4] : memref<1x128xf32, #tpu.memory_space<vmem>>, vector<1x128xf32>
    %4 = vector.broadcast %3 : vector<1x128xf32> to vector<128x128xf32>
    %5 = arith.addf %2, %4 : vector<128x128xf32>
    %cst_5 = arith.constant 0.000000e+00 : f32
    %6 = vector.broadcast %cst_5 : f32 to vector<128x128xf32>
    %7 = arith.maximumf %5, %6 : vector<128x128xf32>
    %8 = arith.truncf %7 : vector<128x128xf32> to vector<128x128xbf16>
    %c0_6 = arith.constant 0 : index
    %c0_7 = arith.constant 0 : index
    %9 = vector.load %arg4[%c0_6, %c0_7] : memref<128x128xbf16, #tpu.memory_space<vmem>>, vector<128x128xbf16>
    tpu.vector_store %arg4[%c0_6, %c0_7], %8 {strides = array<i32>} : memref<128x128xbf16, #tpu.memory_space<vmem>>, vector<128x128xbf16>,
    return
  }
  func.func @transform_0(%arg0: i32) -> (i32, i32) {
    %c0_i32 = arith.constant 0 : i32
    %c0_i32_0 = arith.constant 0 : i32
    return %arg0, %c0_i32 : i32, i32
  }
  func.func @transform_1(%arg0: i32) -> (i32, i32) {
    %c0_i32 = arith.constant 0 : i32
    %c0_i32_0 = arith.constant 0 : i32
    %c0_i32_1 = arith.constant 0 : i32
    return %c0_i32, %c0_i32_0 : i32, i32
  }
  func.func @transform_2(%arg0: i32) -> (i32, i32) {
    %c0_i32 = arith.constant 0 : i32
    %c0_i32_0 = arith.constant 0 : i32
    %c0_i32_1 = arith.constant 0 : i32
    return %c0_i32, %c0_i32_0 : i32, i32
  }
  func.func @transform_3(%arg0: i32) -> (i32, i32) {
    %c0_i32 = arith.constant 0 : i32
    %c0_i32_0 = arith.constant 0 : i32
    return %arg0, %c0_i32 : i32, i32
  }
}

module attributes {stable_mosaic.version = 11 : i64} {
  func.func @_matmul_bias_act_kernel(%arg0: i32, %arg1: memref<512x128xbf16, #tpu.memory_space<vmem>>, %arg2: memref<128x256xbf16, #tpu.memory_space<vmem>>, %arg3: memref<1x256xf32, #tpu.memory_space<vmem>>, %arg4: memref<512x256xbf16, #tpu.memory_space<vmem>>) attributes {dimension_semantics = [#tpu.dimension_semantics<parallel>], iteration_bounds = array<i64: 1>, scalar_prefetch = 0 : i64, scratch_operands = 0 : i64, tpu.core_type = #tpu.core_type<tc>, window_params = [{transform_indices = @transform_0, window_bounds = array<i64: 512, 128>}, {pipeline_mode = #tpu.pipeline_mode<synchronous>, transform_indices = @transform_1, window_bounds = array<i64: 128, 256>}, {pipeline_mode = #tpu.pipeline_mode<synchronous>, transform_indices = @transform_2, window_bounds = array<i64: 1, 256>}, {transform_indices = @transform_3, window_bounds = array<i64: 512, 256>}]} {
    %c0 = arith.constant 0 : index
    %c0_0 = arith.constant 0 : index
    %0 = vector.load %arg1[%c0, %c0_0] : memref<512x128xbf16, #tpu.memory_space<vmem>>, vector<512x128xbf16>
    %c0_1 = arith.constant 0 : index
    %c0_2 = arith.constant 0 : index
    %1 = vector.load %arg2[%c0_1, %c0_2] : memref<128x256xbf16, #tpu.memory_space<vmem>>, vector<128x256xbf16>
    %cst = arith.constant dense<0.000000e+00> : vector<512x256xf32>
    %2 = tpu.matmul %0, %1, %cst {dimension_numbers = #tpu.dot_dimension_numbers<[1], [0], [0], [1], [0, 0, 1, 1], [], []>} : vector<512x128xbf16>, vector<128x256xbf16>, vector<512x256xf32> -> vector<512x256xf32>
    %c0_3 = arith.constant 0 : index
    %c0_4 = arith.constant 0 : index
    %3 = vector.load %arg3[%c0_3, %c0_4] : memref<1x256xf32, #tpu.memory_space<vmem>>, vector<1x256xf32>
    %4 = vector.broadcast %3 : vector<1x256xf32> to vector<512x256xf32>
    %5 = arith.addf %2, %4 : vector<512x256xf32>
    %cst_5 = arith.constant 0.000000e+00 : f32
    %6 = vector.broadcast %cst_5 : f32 to vector<512x256xf32>
    %7 = arith.maximumf %5, %6 : vector<512x256xf32>
    %8 = arith.truncf %7 : vector<512x256xf32> to vector<512x256xbf16>
    %c0_6 = arith.constant 0 : index
    %c0_7 = arith.constant 0 : index
    %9 = vector.load %arg4[%c0_6, %c0_7] : memref<512x256xbf16, #tpu.memory_space<vmem>>, vector<512x256xbf16>
    tpu.vector_store %arg4[%c0_6, %c0_7], %8 {strides = array<i32>} : memref<512x256xbf16, #tpu.memory_space<vmem>>, vector<512x256xbf16>,
    return
  }
  func.func @transform_0(%arg0: i32) -> (i32, i32) {
    %c0_i32 = arith.constant 0 : i32
    %c0_i32_0 = arith.constant 0 : i32
    return %arg0, %c0_i32 : i32, i32
  }
  func.func @transform_1(%arg0: i32) -> (i32, i32) {
    %c0_i32 = arith.constant 0 : i32
    %c0_i32_0 = arith.constant 0 : i32
    %c0_i32_1 = arith.constant 0 : i32
    return %c0_i32, %c0_i32_0 : i32, i32
  }
  func.func @transform_2(%arg0: i32) -> (i32, i32) {
    %c0_i32 = arith.constant 0 : i32
    %c0_i32_0 = arith.constant 0 : i32
    %c0_i32_1 = arith.constant 0 : i32
    return %c0_i32, %c0_i32_0 : i32, i32
  }
  func.func @transform_3(%arg0: i32) -> (i32, i32) {
    %c0_i32 = arith.constant 0 : i32
    %c0_i32_0 = arith.constant 0 : i32
    return %arg0, %c0_i32 : i32, i32
  }
}

module attributes {stable_mosaic.version = 11 : i64} {
  func.func @_matmul_bias_act_kernel(%arg0: i32, %arg1: memref<1024x256xbf16, #tpu.memory_space<vmem>>, %arg2: memref<256x16xbf16, #tpu.memory_space<vmem>>, %arg3: memref<1x16xf32, #tpu.memory_space<vmem>>, %arg4: memref<1024x16xf32, #tpu.memory_space<vmem>>) attributes {dimension_semantics = [#tpu.dimension_semantics<parallel>], iteration_bounds = array<i64: 2>, scalar_prefetch = 0 : i64, scratch_operands = 0 : i64, tpu.core_type = #tpu.core_type<tc>, window_params = [{transform_indices = @transform_0, window_bounds = array<i64: 1024, 256>}, {pipeline_mode = #tpu.pipeline_mode<synchronous>, transform_indices = @transform_1, window_bounds = array<i64: 256, 16>}, {pipeline_mode = #tpu.pipeline_mode<synchronous>, transform_indices = @transform_2, window_bounds = array<i64: 1, 16>}, {transform_indices = @transform_3, window_bounds = array<i64: 1024, 16>}]} {
    %c0 = arith.constant 0 : index
    %c0_0 = arith.constant 0 : index
    %0 = vector.load %arg1[%c0, %c0_0] : memref<1024x256xbf16, #tpu.memory_space<vmem>>, vector<1024x256xbf16>
    %c0_1 = arith.constant 0 : index
    %c0_2 = arith.constant 0 : index
    %1 = vector.load %arg2[%c0_1, %c0_2] : memref<256x16xbf16, #tpu.memory_space<vmem>>, vector<256x16xbf16>
    %cst = arith.constant dense<0.000000e+00> : vector<1024x16xf32>
    %2 = tpu.matmul %0, %1, %cst {dimension_numbers = #tpu.dot_dimension_numbers<[1], [0], [0], [1], [0, 0, 1, 1], [], []>} : vector<1024x256xbf16>, vector<256x16xbf16>, vector<1024x16xf32> -> vector<1024x16xf32>
    %c0_3 = arith.constant 0 : index
    %c0_4 = arith.constant 0 : index
    %3 = vector.load %arg3[%c0_3, %c0_4] : memref<1x16xf32, #tpu.memory_space<vmem>>, vector<1x16xf32>
    %4 = vector.broadcast %3 : vector<1x16xf32> to vector<1024x16xf32>
    %5 = arith.addf %2, %4 : vector<1024x16xf32>
    %6 = arith.negf %5 : vector<1024x16xf32>
    %7 = math.exp %6 : vector<1024x16xf32>
    %cst_5 = arith.constant 1.000000e+00 : f32
    %8 = vector.broadcast %cst_5 : f32 to vector<1024x16xf32>
    %9 = arith.addf %8, %7 : vector<1024x16xf32>
    %10 = arith.divf %8, %9 : vector<1024x16xf32>
    %c0_6 = arith.constant 0 : index
    %c0_7 = arith.constant 0 : index
    %11 = vector.load %arg4[%c0_6, %c0_7] : memref<1024x16xf32, #tpu.memory_space<vmem>>, vector<1024x16xf32>
    tpu.vector_store %arg4[%c0_6, %c0_7], %10 {strides = array<i32>} : memref<1024x16xf32, #tpu.memory_space<vmem>>, vector<1024x16xf32>,
    return
  }
  func.func @transform_0(%arg0: i32) -> (i32, i32) {
    %c0_i32 = arith.constant 0 : i32
    %c0_i32_0 = arith.constant 0 : i32
    return %arg0, %c0_i32 : i32, i32
  }
  func.func @transform_1(%arg0: i32) -> (i32, i32) {
    %c0_i32 = arith.constant 0 : i32
    %c0_i32_0 = arith.constant 0 : i32
    %c0_i32_1 = arith.constant 0 : i32
    return %c0_i32, %c0_i32_0 : i32, i32
  }
  func.func @transform_2(%arg0: i32) -> (i32, i32) {
    %c0_i32 = arith.constant 0 : i32
    %c0_i32_0 = arith.constant 0 : i32
    %c0_i32_1 = arith.constant 0 : i32
    return %c0_i32, %c0_i32_0 : i32, i32
  }
  func.func @transform_3(%arg0: i32) -> (i32, i32) {
    %c0_i32 = arith.constant 0 : i32
    %c0_i32_0 = arith.constant 0 : i32
    return %arg0, %c0_i32 : i32, i32
  }
}

</mosaic_0001>

<bundles_post_ra>
// kernel: autoencoder_forward.8
= control target key start
LH: loop header
LB: loop body
LE: loop exit
PB: predicated region body
PF: predicated region fallthrough
CT: control target
= control target key end

     0   :  { %s2066_s12 = smov 0   ;;  %s2625_s0 = inlined_call_operand.vmem [shape: bf16[2048,36], index: 0, kind: input, shape index: {}]   ;;  %s2626_s1 = inlined_call_operand.vmem [shape: bf16[36,64], index: 1, kind: input, shape index: {}]   ;;  %s2627_s2 = inlined_call_operand.vmem [shape: f32[1,64], index: 2, kind: input, shape index: {}]   ;;  %s2628_s3 = inlined_call_operand.vmem [shape: bf16[2048,64], index: 3, kind: output, shape index: {}]  }
   0x1 LB: > { %s1614_s13 = sadd.s32 4294967295, %s2044_s12   ;;  %p1618_p0 = scmp.ge.s32.totalorder %s2044_s12, 1  ;;  %s2044_s12 = sphi %s2066_s12, %s13_s12  }
   0x2   : > { %p138_p1 = scmp.lt.s32.totalorder %s2044_s12, 3 }
   0x4   : > { %p139_p2 = pnand %p1618_p0, %p138_p1 }
   0x5   : > { %s1619_s16 = sshll.u32 (!%p139_p2), %s1614_s13, 7 }
   0x6   : > { %142 = sbr.rel (%p139_p2) target bundleno = 417 (0x1a1), region = 32  ;;  %p163_p3 = scmp.lt.s32.totalorder (!%p139_p2), %s1619_s16, 255 }
   0xb   : > { %v307_v0 = vld [vmem:[%s2626_s1 + $0x10] sm:$0x3]  ;;  %vm840_vm0 = vcmask 1041408   ;;  %s2630_s16 = smov (!%p163_p3, %s1619_s16), 255  ;;  %v2018_v4 = vld [vmem:[%s2626_s1 + $0x8] sm:$0xff]  ;;  %v2017_v5 = vld [vmem:[%s2626_s1] sm:$0xff] }
   0xc   : > { %v641_v1 = vunpack.c.l.b16 %v307_v0  ;;  %s1620_s19 = sshll.u32 %s2630_s16, 2  ;;  %vm647_vm1 = vcmask 293888   ;;  %v2160_v38 = vld [vmem:[%s2627_s2] ss:$0 sm:$0xff]  ;;  %vm1429_vm2 = vcmask 519168  }
   0xd   : > { %s2091_s24 = scalar_lea.vmem %s2625_s0, %s1620_s19  ;;  %s2175_s29 = scalar_lea.vmem %s2628_s3, %s1620_s19 }
   0xe   : > { %v644_v2 = vpack.c.b16 %v641_v1, %v641_v1  ;;  %v1953_v6 = vld [vmem:[%s2091_s24] sm:$0xff]  ;;  %v1954_v10 = vld [vmem:[%s2091_s24 + $0x8] sm:$0xff]  ;;  %v1955_v14 = vld [vmem:[%s2091_s24 + $0x10] sm:$0xff] }
   0xf   : > { %v1969_v7 = vld [vmem:[%s2091_s24 + $0x80] sm:$0xff]  ;;  %v1970_v11 = vld [vmem:[%s2091_s24 + $0x88] sm:$0xff]  ;;  %v1971_v15 = vld [vmem:[%s2091_s24 + $0x90] sm:$0xff] }
  0x10   : > { %v842_v3 = vsel %vm840_vm0, %v644_v2, 0  ;;  %v1985_v8 = vld [vmem:[%s2091_s24 + $0x100] sm:$0xff]  ;;  %v1986_v12 = vld [vmem:[%s2091_s24 + $0x108] sm:$0xff]  ;;  %v1987_v16 = vld [vmem:[%s2091_s24 + $0x110] sm:$0xff] }
  0x11   : > { %849 = vmatpush.bf16.msra.mxu0 %v842_v3  ;;  %2019 = vmatpush.bf16.msra.mxu1 %v842_v3  ;;  %v2001_v9 = vld [vmem:[%s2091_s24 + $0x180] sm:$0xff]  ;;  %v2002_v13 = vld [vmem:[%s2091_s24 + $0x188] sm:$0xff]  ;;  %v2003_v17 = vld [vmem:[%s2091_s24 + $0x190] sm:$0xff] }
  0x12   : > { %2020 = vmatpush.bf16.msra.mxu2 %v842_v3  ;;  %2021 = vmatpush.bf16.msra.mxu3 %v842_v3  ;;  %v1956_v18 = vld [vmem:[%s2091_s24 + $0x18] sm:$0xff]  ;;  %v1957_v22 = vld [vmem:[%s2091_s24 + $0x20] sm:$0xff]  ;;  %v1958_v26 = vld [vmem:[%s2091_s24 + $0x28] sm:$0xff] }
  0x13   : > { %v1972_v19 = vld [vmem:[%s2091_s24 + $0x98] sm:$0xff]  ;;  %v1973_v23 = vld [vmem:[%s2091_s24 + $0xa0] sm:$0xff]  ;;  %v1974_v27 = vld [vmem:[%s2091_s24 + $0xa8] sm:$0xff] }
  0x14   : > { %v1988_v20 = vld [vmem:[%s2091_s24 + $0x118] sm:$0xff]  ;;  %v1989_v24 = vld [vmem:[%s2091_s24 + $0x120] sm:$0xff]  ;;  %v1990_v28 = vld [vmem:[%s2091_s24 + $0x128] sm:$0xff] }
  0x15   : > { %850 = vmatpush.bf16.msra.mxu0 %v2018_v4  ;;  %2022 = vmatpush.bf16.msra.mxu1 %v2018_v4  ;;  %v2004_v21 = vld [vmem:[%s2091_s24 + $0x198] sm:$0xff]  ;;  %v2005_v25 = vld [vmem:[%s2091_s24 + $0x1a0] sm:$0xff]  ;;  %v2006_v29 = vld [vmem:[%s2091_s24 + $0x1a8] sm:$0xff] }
  0x16   : > { %2023 = vmatpush.bf16.msra.mxu2 %v2018_v4  ;;  %2024 = vmatpush.bf16.msra.mxu3 %v2018_v4  ;;  %v1959_v30 = vld [vmem:[%s2091_s24 + $0x30] sm:$0xff]  ;;  %v1960_v34 = vld [vmem:[%s2091_s24 + $0x38] sm:$0xff]  ;;  %v1961_v39 = vld [vmem:[%s2091_s24 + $0x40] sm:$0xff] }
  0x17   : > { %v1975_v31 = vld [vmem:[%s2091_s24 + $0xb0] sm:$0xff]  ;;  %v1976_v35 = vld [vmem:[%s2091_s24 + $0xb8] sm:$0xff]  ;;  %v1977_v40 = vld [vmem:[%s2091_s24 + $0xc0] sm:$0xff] }
  0x18   : > { %v1991_v32 = vld [vmem:[%s2091_s24 + $0x130] sm:$0xff]  ;;  %v1992_v36 = vld [vmem:[%s2091_s24 + $0x138] sm:$0xff]  ;;  %v1993_v43 = vld [vmem:[%s2091_s24 + $0x140] sm:$0xff] }
  0x19   : > { %851 = vmatpush.bf16.msra.mxu0 %v2017_v5  ;;  %2025 = vmatpush.bf16.msra.mxu1 %v2017_v5  ;;  %v2007_v33 = vld [vmem:[%s2091_s24 + $0x1b0] sm:$0xff]  ;;  %v2008_v37 = vld [vmem:[%s2091_s24 + $0x1b8] sm:$0xff]  ;;  %v2009_v44 = vld [vmem:[%s2091_s24 + $0x1c0] sm:$0xff] }
  0x1a   : > { %2026 = vmatpush.bf16.msra.mxu2 %v2017_v5  ;;  %2027 = vmatpush.bf16.msra.mxu3 %v2017_v5  ;;  %v1962_v5 = vld [vmem:[%s2091_s24 + $0x48] sm:$0xff] }
  0x1c   : > { %1887 = vmatmul.msk.bf16.vlgmr.msra.gmra.mxu0 %vm647_vm1, %v1953_v6  ;;  %1903 = vmatmul.msk.bf16.vlgmr.msra.gmra.mxu1 %vm647_vm1, %v1969_v7  ;;  %v1978_v6 = vld [vmem:[%s2091_s24 + $0xc8] sm:$0xff] }
  0x1d   : > { %1919 = vmatmul.msk.bf16.vlgmr.msra.gmra.mxu2 %vm647_vm1, %v1985_v8  ;;  %1935 = vmatmul.msk.bf16.vlgmr.msra.gmra.mxu3 %vm647_vm1, %v2001_v9 }
  0x2c   : > { %1888 = vmatmul.msk.bf16.gmra.mxu0 %vm647_vm1, %v1954_v10  ;;  %1904 = vmatmul.msk.bf16.gmra.mxu1 %vm647_vm1, %v1970_v11  ;;  %v1994_v11 = vld [vmem:[%s2091_s24 + $0x148] sm:$0xff] }
  0x2d   : > { %1920 = vmatmul.msk.bf16.gmra.mxu2 %vm647_vm1, %v1986_v12  ;;  %1936 = vmatmul.msk.bf16.gmra.mxu3 %vm647_vm1, %v2002_v13  ;;  %v2010_v12 = vld [vmem:[%s2091_s24 + $0x1c8] sm:$0xff] }
  0x3c   : > { %1889 = vmatmul.msk.bf16.gmra.mxu0 %vm647_vm1, %v1955_v14  ;;  %1905 = vmatmul.msk.bf16.gmra.mxu1 %vm647_vm1, %v1971_v15 }
  0x3d   : > { %1921 = vmatmul.msk.bf16.gmra.mxu2 %vm647_vm1, %v1987_v16  ;;  %1937 = vmatmul.msk.bf16.gmra.mxu3 %vm647_vm1, %v2003_v17 }
  0x4c   : > { %1890 = vmatmul.msk.bf16.gmra.mxu0 %vm647_vm1, %v1956_v18  ;;  %1906 = vmatmul.msk.bf16.gmra.mxu1 %vm647_vm1, %v1972_v19 }
  0x4d   : > { %1922 = vmatmul.msk.bf16.gmra.mxu2 %vm647_vm1, %v1988_v20  ;;  %1938 = vmatmul.msk.bf16.gmra.mxu3 %vm647_vm1, %v2004_v21 }
  0x5c   : > { %1891 = vmatmul.msk.bf16.gmra.mxu0 %vm647_vm1, %v1957_v22  ;;  %1907 = vmatmul.msk.bf16.gmra.mxu1 %vm647_vm1, %v1973_v23 }
  0x5d   : > { %1923 = vmatmul.msk.bf16.gmra.mxu2 %vm647_vm1, %v1989_v24  ;;  %1939 = vmatmul.msk.bf16.gmra.mxu3 %vm647_vm1, %v2005_v25 }
  0x6c   : > { %1892 = vmatmul.msk.bf16.gmra.mxu0 %vm647_vm1, %v1958_v26  ;;  %1908 = vmatmul.msk.bf16.gmra.mxu1 %vm647_vm1, %v1974_v27 }
  0x6d   : > { %1924 = vmatmul.msk.bf16.gmra.mxu2 %vm647_vm1, %v1990_v28  ;;  %1940 = vmatmul.msk.bf16.gmra.mxu3 %vm647_vm1, %v2006_v29 }
  0x7c   : > { %1893 = vmatmul.msk.bf16.gmra.mxu0 %vm647_vm1, %v1959_v30  ;;  %1909 = vmatmul.msk.bf16.gmra.mxu1 %vm647_vm1, %v1975_v31 }
  0x7d   : > { %1925 = vmatmul.msk.bf16.gmra.mxu2 %vm647_vm1, %v1991_v32  ;;  %1941 = vmatmul.msk.bf16.gmra.mxu3 %vm647_vm1, %v2007_v33 }
  0x8c   : > { %1894 = vmatmul.msk.bf16.gmra.mxu0 %vm647_vm1, %v1960_v34  ;;  %1910 = vmatmul.msk.bf16.gmra.mxu1 %vm647_vm1, %v1976_v35 }
  0x8d   : > { %1926 = vmatmul.msk.bf16.gmra.mxu2 %vm647_vm1, %v1992_v36  ;;  %1942 = vmatmul.msk.bf16.gmra.mxu3 %vm647_vm1, %v2008_v37 }
  0x99   : > { %v853_v41 = vpop.f32.mrf.mxu0  ;;  %v933_v42 = vpop.f32.mrf.mxu1 }
  0x9a   : > { %v854_v45 = vadd.f32 %v2160_v38, %v853_v41  ;;  %v934_v46 = vadd.f32 %v2160_v38, %v933_v42  ;;  %v1963_v42 = vld [vmem:[%s2091_s24 + $0x50] sm:$0xff] }
  0x9c   : > { %v1173_v47 = vmax.f32 %v854_v45, 0.0  ;;  %v1205_v48 = vmax.f32 %v934_v46, 0.0  ;;  %1895 = vmatmul.msk.bf16.gmra.mxu0 %vm647_vm1, %v1961_v39  ;;  %1911 = vmatmul.msk.bf16.gmra.mxu1 %vm647_vm1, %v1977_v40 }
  0x9d   : > { %1927 = vmatmul.msk.bf16.gmra.mxu2 %vm647_vm1, %v1993_v43  ;;  %1943 = vmatmul.msk.bf16.gmra.mxu3 %vm647_vm1, %v2009_v44  ;;  %v1979_v43 = vld [vmem:[%s2091_s24 + $0xd0] sm:$0xff] }
  0x9e   : > { %v1301_v49 = vpack.c.bf16 %v1173_v47, %v1173_v47  ;;  %v1333_v50 = vpack.c.bf16 %v1205_v48, %v1205_v48  ;;  %v1995_v48 = vld [vmem:[%s2091_s24 + $0x150] sm:$0xff] }
  0xa0   : > { %1430 = vst.msk [vmem:[%s2175_s29] sm:$0xf] %vm1429_vm2, %v1301_v49  ;;  %v1013_v51 = vpop.f32.mrf.mxu2  ;;  %v1093_v52 = vpop.f32.mrf.mxu3  ;;  %v2011_v49 = vld [vmem:[%s2091_s24 + $0x1d0] sm:$0xff] }
  0xa1   : > { %1462 = vst.msk [vmem:[%s2175_s29 + $0x80] sm:$0xf] %vm1429_vm2, %v1333_v50  ;;  %v1014_v53 = vadd.f32 %v2160_v38, %v1013_v51  ;;  %v1094_v54 = vadd.f32 %v2160_v38, %v1093_v52  ;;  %v855_v55 = vpop.f32.mrf.mxu0  ;;  %v935_v56 = vpop.f32.mrf.mxu1 }
  0xa2   : > { %v856_v57 = vadd.f32 %v2160_v38, %v855_v55  ;;  %v936_v58 = vadd.f32 %v2160_v38, %v935_v56 }
  0xa3   : > { %v1237_v59 = vmax.f32 %v1014_v53, 0.0  ;;  %v1269_v60 = vmax.f32 %v1094_v54, 0.0 }
  0xa4   : > { %v1174_v61 = vmax.f32 %v856_v57, 0.0  ;;  %v1206_v62 = vmax.f32 %v936_v58, 0.0 }
  0xa5   : > { %v1365_v63 = vpack.c.bf16 %v1237_v59, %v1237_v59  ;;  %v1397_v0 = vpack.c.bf16 %v1269_v60, %v1269_v60 }
  0xa6   : > { %v1302_v1 = vpack.c.bf16 %v1174_v61, %v1174_v61  ;;  %v1334_v2 = vpack.c.bf16 %v1206_v62, %v1206_v62 }
  0xa7   : > { %1494 = vst.msk [vmem:[%s2175_s29 + $0x100] sm:$0xf] %vm1429_vm2, %v1365_v63 }
  0xa8   : > { %1526 = vst.msk [vmem:[%s2175_s29 + $0x180] sm:$0xf] %vm1429_vm2, %v1397_v0  ;;  %v1015_v3 = vpop.f32.mrf.mxu2  ;;  %v1095_v4 = vpop.f32.mrf.mxu3 }
  0xa9   : > { %1431 = vst.msk [vmem:[%s2175_s29 + $0x4] sm:$0xf] %vm1429_vm2, %v1302_v1  ;;  %v1016_v7 = vadd.f32 %v2160_v38, %v1015_v3  ;;  %v1096_v8 = vadd.f32 %v2160_v38, %v1095_v4  ;;  %v858_v9 = vpop.f32.mrf.mxu0  ;;  %v938_v10 = vpop.f32.mrf.mxu1 }
  0xaa   : > { %1463 = vst.msk [vmem:[%s2175_s29 + $0x84] sm:$0xf] %vm1429_vm2, %v1334_v2  ;;  %v859_v13 = vadd.f32 %v2160_v38, %v858_v9  ;;  %v939_v14 = vadd.f32 %v2160_v38, %v938_v10 }
  0xab   : > { %v1238_v15 = vmax.f32 %v1016_v7, 0.0  ;;  %v1270_v16 = vmax.f32 %v1096_v8, 0.0 }
  0xac   : > { %v1175_v17 = vmax.f32 %v859_v13, 0.0  ;;  %v1207_v18 = vmax.f32 %v939_v14, 0.0  ;;  %1896 = vmatmul.msk.bf16.gmra.mxu0 %vm647_vm1, %v1962_v5  ;;  %1912 = vmatmul.msk.bf16.gmra.mxu1 %vm647_vm1, %v1978_v6  ;;  %v1964_v14 = vld [vmem:[%s2091_s24 + $0x58] sm:$0xff] }
  0xad   : > { %v1366_v19 = vpack.c.bf16 %v1238_v15, %v1238_v15  ;;  %v1398_v20 = vpack.c.bf16 %v1270_v16, %v1270_v16  ;;  %1928 = vmatmul.msk.bf16.gmra.mxu2 %vm647_vm1, %v1994_v11  ;;  %1944 = vmatmul.msk.bf16.gmra.mxu3 %vm647_vm1, %v2010_v12  ;;  %v1980_v15 = vld [vmem:[%s2091_s24 + $0xd8] sm:$0xff] }
  0xae   : > { %v1303_v21 = vpack.c.bf16 %v1175_v17, %v1175_v17  ;;  %v1335_v22 = vpack.c.bf16 %v1207_v18, %v1207_v18 }
  0xaf   : > { %1495 = vst.msk [vmem:[%s2175_s29 + $0x104] sm:$0xf] %vm1429_vm2, %v1366_v19 }
  0xb0   : > { %1527 = vst.msk [vmem:[%s2175_s29 + $0x184] sm:$0xf] %vm1429_vm2, %v1398_v20  ;;  %v1018_v23 = vpop.f32.mrf.mxu2  ;;  %v1098_v24 = vpop.f32.mrf.mxu3  ;;  %v1996_v20 = vld [vmem:[%s2091_s24 + $0x158] sm:$0xff] }
  0xb1   : > { %1432 = vst.msk [vmem:[%s2175_s29 + $0x8] sm:$0xf] %vm1429_vm2, %v1303_v21  ;;  %v1019_v25 = vadd.f32 %v2160_v38, %v1018_v23  ;;  %v1099_v26 = vadd.f32 %v2160_v38, %v1098_v24  ;;  %v860_v27 = vpop.f32.mrf.mxu0  ;;  %v940_v28 = vpop.f32.mrf.mxu1  ;;  %v2012_v21 = vld [vmem:[%s2091_s24 + $0x1d8] sm:$0xff] }
  0xb2   : > { %1464 = vst.msk [vmem:[%s2175_s29 + $0x88] sm:$0xf] %vm1429_vm2, %v1335_v22  ;;  %v861_v29 = vadd.f32 %v2160_v38, %v860_v27  ;;  %v941_v30 = vadd.f32 %v2160_v38, %v940_v28 }
  0xb3   : > { %v1239_v31 = vmax.f32 %v1019_v25, 0.0  ;;  %v1271_v32 = vmax.f32 %v1099_v26, 0.0 }
  0xb4   : > { %v1176_v33 = vmax.f32 %v861_v29, 0.0  ;;  %v1208_v34 = vmax.f32 %v941_v30, 0.0 }
  0xb5   : > { %v1367_v35 = vpack.c.bf16 %v1239_v31, %v1239_v31  ;;  %v1399_v36 = vpack.c.bf16 %v1271_v32, %v1271_v32 }
  0xb6   : > { %v1304_v37 = vpack.c.bf16 %v1176_v33, %v1176_v33  ;;  %v1336_v39 = vpack.c.bf16 %v1208_v34, %v1208_v34 }
  0xb7   : > { %1496 = vst.msk [vmem:[%s2175_s29 + $0x108] sm:$0xf] %vm1429_vm2, %v1367_v35 }
  0xb8   : > { %1528 = vst.msk [vmem:[%s2175_s29 + $0x188] sm:$0xf] %vm1429_vm2, %v1399_v36  ;;  %v1020_v40 = vpop.f32.mrf.mxu2  ;;  %v1100_v41 = vpop.f32.mrf.mxu3 }
  0xb9   : > { %1433 = vst.msk [vmem:[%s2175_s29 + $0xc] sm:$0xf] %vm1429_vm2, %v1304_v37  ;;  %v1021_v44 = vadd.f32 %v2160_v38, %v1020_v40  ;;  %v1101_v45 = vadd.f32 %v2160_v38, %v1100_v41  ;;  %v863_v46 = vpop.f32.mrf.mxu0  ;;  %v943_v47 = vpop.f32.mrf.mxu1 }
  0xba   : > { %1465 = vst.msk [vmem:[%s2175_s29 + $0x8c] sm:$0xf] %vm1429_vm2, %v1336_v39  ;;  %v864_v50 = vadd.f32 %v2160_v38, %v863_v46  ;;  %v944_v51 = vadd.f32 %v2160_v38, %v943_v47 }
  0xbb   : > { %v1240_v52 = vmax.f32 %v1021_v44, 0.0  ;;  %v1272_v53 = vmax.f32 %v1101_v45, 0.0 }
  0xbc   : > { %v1177_v54 = vmax.f32 %v864_v50, 0.0  ;;  %v1209_v55 = vmax.f32 %v944_v51, 0.0  ;;  %1897 = vmatmul.msk.bf16.gmra.mxu0 %vm647_vm1, %v1963_v42  ;;  %1913 = vmatmul.msk.bf16.gmra.mxu1 %vm647_vm1, %v1979_v43  ;;  %v1965_v51 = vld [vmem:[%s2091_s24 + $0x60] sm:$0xff] }
  0xbd   : > { %v1368_v56 = vpack.c.bf16 %v1240_v52, %v1240_v52  ;;  %v1400_v57 = vpack.c.bf16 %v1272_v53, %v1272_v53  ;;  %1929 = vmatmul.msk.bf16.gmra.mxu2 %vm647_vm1, %v1995_v48  ;;  %1945 = vmatmul.msk.bf16.gmra.mxu3 %vm647_vm1, %v2011_v49  ;;  %v1981_v52 = vld [vmem:[%s2091_s24 + $0xe0] sm:$0xff] }
  0xbe   : > { %v1305_v58 = vpack.c.bf16 %v1177_v54, %v1177_v54  ;;  %v1337_v59 = vpack.c.bf16 %v1209_v55, %v1209_v55 }
  0xbf   : > { %1497 = vst.msk [vmem:[%s2175_s29 + $0x10c] sm:$0xf] %vm1429_vm2, %v1368_v56 }
  0xc0   : > { %1529 = vst.msk [vmem:[%s2175_s29 + $0x18c] sm:$0xf] %vm1429_vm2, %v1400_v57  ;;  %v1023_v60 = vpop.f32.mrf.mxu2  ;;  %v1103_v61 = vpop.f32.mrf.mxu3  ;;  %v1997_v57 = vld [vmem:[%s2091_s24 + $0x160] sm:$0xff] }
  0xc1   : > { %1434 = vst.msk [vmem:[%s2175_s29 + $0x10] sm:$0xf] %vm1429_vm2, %v1305_v58  ;;  %v1024_v62 = vadd.f32 %v2160_v38, %v1023_v60  ;;  %v1104_v63 = vadd.f32 %v2160_v38, %v1103_v61  ;;  %v865_v0 = vpop.f32.mrf.mxu0  ;;  %v945_v1 = vpop.f32.mrf.mxu1  ;;  %v2013_v58 = vld [vmem:[%s2091_s24 + $0x1e0] sm:$0xff] }
  0xc2   : > { %1466 = vst.msk [vmem:[%s2175_s29 + $0x90] sm:$0xf] %vm1429_vm2, %v1337_v59  ;;  %v866_v2 = vadd.f32 %v2160_v38, %v865_v0  ;;  %v946_v3 = vadd.f32 %v2160_v38, %v945_v1 }
  0xc3   : > { %v1241_v4 = vmax.f32 %v1024_v62, 0.0  ;;  %v1273_v5 = vmax.f32 %v1104_v63, 0.0 }
  0xc4   : > { %v1178_v6 = vmax.f32 %v866_v2, 0.0  ;;  %v1210_v7 = vmax.f32 %v946_v3, 0.0 }
  0xc5   : > { %v1369_v8 = vpack.c.bf16 %v1241_v4, %v1241_v4  ;;  %v1401_v9 = vpack.c.bf16 %v1273_v5, %v1273_v5 }
  0xc6   : > { %v1306_v10 = vpack.c.bf16 %v1178_v6, %v1178_v6  ;;  %v1338_v11 = vpack.c.bf16 %v1210_v7, %v1210_v7 }
  0xc7   : > { %1498 = vst.msk [vmem:[%s2175_s29 + $0x110] sm:$0xf] %vm1429_vm2, %v1369_v8 }
  0xc8   : > { %1530 = vst.msk [vmem:[%s2175_s29 + $0x190] sm:$0xf] %vm1429_vm2, %v1401_v9  ;;  %v1025_v12 = vpop.f32.mrf.mxu2  ;;  %v1105_v13 = vpop.f32.mrf.mxu3 }
  0xc9   : > { %1435 = vst.msk [vmem:[%s2175_s29 + $0x14] sm:$0xf] %vm1429_vm2, %v1306_v10  ;;  %v1026_v16 = vadd.f32 %v2160_v38, %v1025_v12  ;;  %v1106_v17 = vadd.f32 %v2160_v38, %v1105_v13  ;;  %v868_v18 = vpop.f32.mrf.mxu0  ;;  %v948_v19 = vpop.f32.mrf.mxu1 }
  0xca   : > { %1467 = vst.msk [vmem:[%s2175_s29 + $0x94] sm:$0xf] %vm1429_vm2, %v1338_v11  ;;  %v869_v22 = vadd.f32 %v2160_v38, %v868_v18  ;;  %v949_v23 = vadd.f32 %v2160_v38, %v948_v19 }
  0xcb   : > { %v1242_v24 = vmax.f32 %v1026_v16, 0.0  ;;  %v1274_v25 = vmax.f32 %v1106_v17, 0.0 }
  0xcc   : > { %v1179_v26 = vmax.f32 %v869_v22, 0.0  ;;  %v1211_v27 = vmax.f32 %v949_v23, 0.0  ;;  %1898 = vmatmul.msk.bf16.gmra.mxu0 %vm647_vm1, %v1964_v14  ;;  %1914 = vmatmul.msk.bf16.gmra.mxu1 %vm647_vm1, %v1980_v15  ;;  %v1966_v23 = vld [vmem:[%s2091_s24 + $0x68] sm:$0xff] }
  0xcd   : > { %v1370_v28 = vpack.c.bf16 %v1242_v24, %v1242_v24  ;;  %v1402_v29 = vpack.c.bf16 %v1274_v25, %v1274_v25  ;;  %1930 = vmatmul.msk.bf16.gmra.mxu2 %vm647_vm1, %v1996_v20  ;;  %1946 = vmatmul.msk.bf16.gmra.mxu3 %vm647_vm1, %v2012_v21  ;;  %v1982_v24 = vld [vmem:[%s2091_s24 + $0xe8] sm:$0xff] }
  0xce   : > { %v1307_v30 = vpack.c.bf16 %v1179_v26, %v1179_v26  ;;  %v1339_v31 = vpack.c.bf16 %v1211_v27, %v1211_v27 }
  0xcf   : > { %1499 = vst.msk [vmem:[%s2175_s29 + $0x114] sm:$0xf] %vm1429_vm2, %v1370_v28 }
  0xd0   : > { %1531 = vst.msk [vmem:[%s2175_s29 + $0x194] sm:$0xf] %vm1429_vm2, %v1402_v29  ;;  %v1028_v32 = vpop.f32.mrf.mxu2  ;;  %v1108_v33 = vpop.f32.mrf.mxu3  ;;  %v1998_v29 = vld [vmem:[%s2091_s24 + $0x168] sm:$0xff] }
  0xd1   : > { %1436 = vst.msk [vmem:[%s2175_s29 + $0x18] sm:$0xf] %vm1429_vm2, %v1307_v30  ;;  %v1029_v34 = vadd.f32 %v2160_v38, %v1028_v32  ;;  %v1109_v35 = vadd.f32 %v2160_v38, %v1108_v33  ;;  %v870_v36 = vpop.f32.mrf.mxu0  ;;  %v950_v37 = vpop.f32.mrf.mxu1  ;;  %v2014_v30 = vld [vmem:[%s2091_s24 + $0x1e8] sm:$0xff] }
  0xd2   : > { %1468 = vst.msk [vmem:[%s2175_s29 + $0x98] sm:$0xf] %vm1429_vm2, %v1339_v31  ;;  %v871_v39 = vadd.f32 %v2160_v38, %v870_v36  ;;  %v951_v40 = vadd.f32 %v2160_v38, %v950_v37 }
  0xd3   : > { %v1243_v41 = vmax.f32 %v1029_v34, 0.0  ;;  %v1275_v42 = vmax.f32 %v1109_v35, 0.0 }
  0xd4   : > { %v1180_v43 = vmax.f32 %v871_v39, 0.0  ;;  %v1212_v44 = vmax.f32 %v951_v40, 0.0 }
  0xd5   : > { %v1371_v45 = vpack.c.bf16 %v1243_v41, %v1243_v41  ;;  %v1403_v46 = vpack.c.bf16 %v1275_v42, %v1275_v42 }
  0xd6   : > { %v1308_v47 = vpack.c.bf16 %v1180_v43, %v1180_v43  ;;  %v1340_v48 = vpack.c.bf16 %v1212_v44, %v1212_v44 }
  0xd7   : > { %1500 = vst.msk [vmem:[%s2175_s29 + $0x118] sm:$0xf] %vm1429_vm2, %v1371_v45 }
  0xd8   : > { %1532 = vst.msk [vmem:[%s2175_s29 + $0x198] sm:$0xf] %vm1429_vm2, %v1403_v46  ;;  %v1030_v49 = vpop.f32.mrf.mxu2  ;;  %v1110_v50 = vpop.f32.mrf.mxu3 }
  0xd9   : > { %1437 = vst.msk [vmem:[%s2175_s29 + $0x1c] sm:$0xf] %vm1429_vm2, %v1308_v47  ;;  %v1031_v53 = vadd.f32 %v2160_v38, %v1030_v49  ;;  %v1111_v54 = vadd.f32 %v2160_v38, %v1110_v50  ;;  %v873_v55 = vpop.f32.mrf.mxu0  ;;  %v953_v56 = vpop.f32.mrf.mxu1 }
  0xda   : > { %1469 = vst.msk [vmem:[%s2175_s29 + $0x9c] sm:$0xf] %vm1429_vm2, %v1340_v48  ;;  %v874_v59 = vadd.f32 %v2160_v38, %v873_v55  ;;  %v954_v60 = vadd.f32 %v2160_v38, %v953_v56 }
  0xdb   : > { %v1244_v61 = vmax.f32 %v1031_v53, 0.0  ;;  %v1276_v62 = vmax.f32 %v1111_v54, 0.0 }
  0xdc   : > { %v1181_v63 = vmax.f32 %v874_v59, 0.0  ;;  %v1213_v0 = vmax.f32 %v954_v60, 0.0  ;;  %1899 = vmatmul.msk.bf16.gmra.mxu0 %vm647_vm1, %v1965_v51  ;;  %1915 = vmatmul.msk.bf16.gmra.mxu1 %vm647_vm1, %v1981_v52  ;;  %v1967_v60 = vld [vmem:[%s2091_s24 + $0x70] sm:$0xff] }
  0xdd   : > { %v1372_v1 = vpack.c.bf16 %v1244_v61, %v1244_v61  ;;  %v1404_v2 = vpack.c.bf16 %v1276_v62, %v1276_v62  ;;  %1931 = vmatmul.msk.bf16.gmra.mxu2 %vm647_vm1, %v1997_v57  ;;  %1947 = vmatmul.msk.bf16.gmra.mxu3 %vm647_vm1, %v2013_v58  ;;  %v1983_v61 = vld [vmem:[%s2091_s24 + $0xf0] sm:$0xff] }
  0xde   : > { %v1309_v3 = vpack.c.bf16 %v1181_v63, %v1181_v63  ;;  %v1341_v4 = vpack.c.bf16 %v1213_v0, %v1213_v0 }
  0xdf   : > { %1501 = vst.msk [vmem:[%s2175_s29 + $0x11c] sm:$0xf] %vm1429_vm2, %v1372_v1 }
  0xe0   : > { %1533 = vst.msk [vmem:[%s2175_s29 + $0x19c] sm:$0xf] %vm1429_vm2, %v1404_v2  ;;  %v1033_v5 = vpop.f32.mrf.mxu2  ;;  %v1113_v6 = vpop.f32.mrf.mxu3  ;;  %v1999_v2 = vld [vmem:[%s2091_s24 + $0x170] sm:$0xff] }
  0xe1   : > { %1438 = vst.msk [vmem:[%s2175_s29 + $0x20] sm:$0xf] %vm1429_vm2, %v1309_v3  ;;  %v1034_v7 = vadd.f32 %v2160_v38, %v1033_v5  ;;  %v1114_v8 = vadd.f32 %v2160_v38, %v1113_v6  ;;  %v875_v9 = vpop.f32.mrf.mxu0  ;;  %v955_v10 = vpop.f32.mrf.mxu1  ;;  %v2015_v3 = vld [vmem:[%s2091_s24 + $0x1f0] sm:$0xff] }
  0xe2   : > { %1470 = vst.msk [vmem:[%s2175_s29 + $0xa0] sm:$0xf] %vm1429_vm2, %v1341_v4  ;;  %v876_v11 = vadd.f32 %v2160_v38, %v875_v9  ;;  %v956_v12 = vadd.f32 %v2160_v38, %v955_v10 }
  0xe3   : > { %v1245_v13 = vmax.f32 %v1034_v7, 0.0  ;;  %v1277_v14 = vmax.f32 %v1114_v8, 0.0 }
  0xe4   : > { %v1182_v15 = vmax.f32 %v876_v11, 0.0  ;;  %v1214_v16 = vmax.f32 %v956_v12, 0.0 }
  0xe5   : > { %v1373_v17 = vpack.c.bf16 %v1245_v13, %v1245_v13  ;;  %v1405_v18 = vpack.c.bf16 %v1277_v14, %v1277_v14 }
  0xe6   : > { %v1310_v19 = vpack.c.bf16 %v1182_v15, %v1182_v15  ;;  %v1342_v20 = vpack.c.bf16 %v1214_v16, %v1214_v16 }
  0xe7   : > { %1502 = vst.msk [vmem:[%s2175_s29 + $0x120] sm:$0xf] %vm1429_vm2, %v1373_v17 }
  0xe8   : > { %1534 = vst.msk [vmem:[%s2175_s29 + $0x1a0] sm:$0xf] %vm1429_vm2, %v1405_v18  ;;  %v1035_v21 = vpop.f32.mrf.mxu2  ;;  %v1115_v22 = vpop.f32.mrf.mxu3 }
  0xe9   : > { %1439 = vst.msk [vmem:[%s2175_s29 + $0x24] sm:$0xf] %vm1429_vm2, %v1310_v19  ;;  %v1036_v25 = vadd.f32 %v2160_v38, %v1035_v21  ;;  %v1116_v26 = vadd.f32 %v2160_v38, %v1115_v22  ;;  %v878_v27 = vpop.f32.mrf.mxu0  ;;  %v958_v28 = vpop.f32.mrf.mxu1 }
  0xea   : > { %1471 = vst.msk [vmem:[%s2175_s29 + $0xa4] sm:$0xf] %vm1429_vm2, %v1342_v20  ;;  %v879_v31 = vadd.f32 %v2160_v38, %v878_v27  ;;  %v959_v32 = vadd.f32 %v2160_v38, %v958_v28 }
  0xeb   : > { %v1246_v33 = vmax.f32 %v1036_v25, 0.0  ;;  %v1278_v34 = vmax.f32 %v1116_v26, 0.0 }
  0xec   : > { %v1183_v35 = vmax.f32 %v879_v31, 0.0  ;;  %v1215_v36 = vmax.f32 %v959_v32, 0.0  ;;  %1900 = vmatmul.msk.bf16.gmra.mxu0 %vm647_vm1, %v1966_v23  ;;  %1916 = vmatmul.msk.bf16.gmra.mxu1 %vm647_vm1, %v1982_v24  ;;  %v1968_v32 = vld [vmem:[%s2091_s24 + $0x78] sm:$0xff] }
  0xed   : > { %v1374_v37 = vpack.c.bf16 %v1246_v33, %v1246_v33  ;;  %v1406_v39 = vpack.c.bf16 %v1278_v34, %v1278_v34  ;;  %1932 = vmatmul.msk.bf16.gmra.mxu2 %vm647_vm1, %v1998_v29  ;;  %1948 = vmatmul.msk.bf16.gmra.mxu3 %vm647_vm1, %v2014_v30  ;;  %v1984_v33 = vld [vmem:[%s2091_s24 + $0xf8] sm:$0xff] }
  0xee   : > { %v1311_v40 = vpack.c.bf16 %v1183_v35, %v1183_v35  ;;  %v1343_v41 = vpack.c.bf16 %v1215_v36, %v1215_v36 }
  0xef   : > { %1503 = vst.msk [vmem:[%s2175_s29 + $0x124] sm:$0xf] %vm1429_vm2, %v1374_v37 }
  0xf0   : > { %1535 = vst.msk [vmem:[%s2175_s29 + $0x1a4] sm:$0xf] %vm1429_vm2, %v1406_v39  ;;  %v1038_v42 = vpop.f32.mrf.mxu2  ;;  %v1118_v43 = vpop.f32.mrf.mxu3  ;;  %v2000_v39 = vld [vmem:[%s2091_s24 + $0x178] sm:$0xff] }
  0xf1   : > { %1440 = vst.msk [vmem:[%s2175_s29 + $0x28] sm:$0xf] %vm1429_vm2, %v1311_v40  ;;  %v1039_v44 = vadd.f32 %v2160_v38, %v1038_v42  ;;  %v1119_v45 = vadd.f32 %v2160_v38, %v1118_v43  ;;  %v880_v46 = vpop.f32.mrf.mxu0  ;;  %v960_v47 = vpop.f32.mrf.mxu1  ;;  %v2016_v40 = vld [vmem:[%s2091_s24 + $0x1f8] sm:$0xff] }
  0xf2   : > { %1472 = vst.msk [vmem:[%s2175_s29 + $0xa8] sm:$0xf] %vm1429_vm2, %v1343_v41  ;;  %v881_v48 = vadd.f32 %v2160_v38, %v880_v46  ;;  %v961_v49 = vadd.f32 %v2160_v38, %v960_v47 }
  0xf3   : > { %v1247_v50 = vmax.f32 %v1039_v44, 0.0  ;;  %v1279_v51 = vmax.f32 %v1119_v45, 0.0 }
  0xf4   : > { %v1184_v52 = vmax.f32 %v881_v48, 0.0  ;;  %v1216_v53 = vmax.f32 %v961_v49, 0.0 }
  0xf5   : > { %v1375_v54 = vpack.c.bf16 %v1247_v50, %v1247_v50  ;;  %v1407_v55 = vpack.c.bf16 %v1279_v51, %v1279_v51 }
  0xf6   : > { %v1312_v56 = vpack.c.bf16 %v1184_v52, %v1184_v52  ;;  %v1344_v57 = vpack.c.bf16 %v1216_v53, %v1216_v53 }
  0xf7   : > { %1504 = vst.msk [vmem:[%s2175_s29 + $0x128] sm:$0xf] %vm1429_vm2, %v1375_v54 }
  0xf8   : > { %1536 = vst.msk [vmem:[%s2175_s29 + $0x1a8] sm:$0xf] %vm1429_vm2, %v1407_v55  ;;  %v1040_v58 = vpop.f32.mrf.mxu2  ;;  %v1120_v59 = vpop.f32.mrf.mxu3 }
  0xf9   : > { %1441 = vst.msk [vmem:[%s2175_s29 + $0x2c] sm:$0xf] %vm1429_vm2, %v1312_v56  ;;  %v1041_v62 = vadd.f32 %v2160_v38, %v1040_v58  ;;  %v1121_v63 = vadd.f32 %v2160_v38, %v1120_v59  ;;  %v883_v0 = vpop.f32.mrf.mxu0  ;;  %v963_v1 = vpop.f32.mrf.mxu1 }
  0xfa   : > { %1473 = vst.msk [vmem:[%s2175_s29 + $0xac] sm:$0xf] %vm1429_vm2, %v1344_v57  ;;  %v884_v4 = vadd.f32 %v2160_v38, %v883_v0  ;;  %v964_v5 = vadd.f32 %v2160_v38, %v963_v1 }
  0xfb   : > { %v1248_v6 = vmax.f32 %v1041_v62, 0.0  ;;  %v1280_v7 = vmax.f32 %v1121_v63, 0.0 }
  0xfc   : > { %v1185_v8 = vmax.f32 %v884_v4, 0.0  ;;  %v1217_v9 = vmax.f32 %v964_v5, 0.0  ;;  %1901 = vmatmul.msk.bf16.gmra.mxu0 %vm647_vm1, %v1967_v60  ;;  %1917 = vmatmul.msk.bf16.gmra.mxu1 %vm647_vm1, %v1983_v61 }
  0xfd   : > { %v1376_v10 = vpack.c.bf16 %v1248_v6, %v1248_v6  ;;  %v1408_v11 = vpack.c.bf16 %v1280_v7, %v1280_v7  ;;  %1933 = vmatmul.msk.bf16.gmra.mxu2 %vm647_vm1, %v1999_v2  ;;  %1949 = vmatmul.msk.bf16.gmra.mxu3 %vm647_vm1, %v2015_v3 }
  0xfe   : > { %v1313_v12 = vpack.c.bf16 %v1185_v8, %v1185_v8  ;;  %v1345_v13 = vpack.c.bf16 %v1217_v9, %v1217_v9 }
  0xff   : > { %1505 = vst.msk [vmem:[%s2175_s29 + $0x12c] sm:$0xf] %vm1429_vm2, %v1376_v10 }
 0x100   : > { %1537 = vst.msk [vmem:[%s2175_s29 + $0x1ac] sm:$0xf] %vm1429_vm2, %v1408_v11  ;;  %v1043_v14 = vpop.f32.mrf.mxu2  ;;  %v1123_v15 = vpop.f32.mrf.mxu3 }
 0x101   : > { %1442 = vst.msk [vmem:[%s2175_s29 + $0x30] sm:$0xf] %vm1429_vm2, %v1313_v12  ;;  %v1044_v16 = vadd.f32 %v2160_v38, %v1043_v14  ;;  %v1124_v17 = vadd.f32 %v2160_v38, %v1123_v15  ;;  %v885_v18 = vpop.f32.mrf.mxu0  ;;  %v965_v19 = vpop.f32.mrf.mxu1 }
 0x102   : > { %1474 = vst.msk [vmem:[%s2175_s29 + $0xb0] sm:$0xf] %vm1429_vm2, %v1345_v13  ;;  %v886_v20 = vadd.f32 %v2160_v38, %v885_v18  ;;  %v966_v21 = vadd.f32 %v2160_v38, %v965_v19 }
 0x103   : > { %v1249_v22 = vmax.f32 %v1044_v16, 0.0  ;;  %v1281_v23 = vmax.f32 %v1124_v17, 0.0 }
 0x104   : > { %v1186_v24 = vmax.f32 %v886_v20, 0.0  ;;  %v1218_v25 = vmax.f32 %v966_v21, 0.0 }
 0x105   : > { %v1377_v26 = vpack.c.bf16 %v1249_v22, %v1249_v22  ;;  %v1409_v27 = vpack.c.bf16 %v1281_v23, %v1281_v23 }
 0x106   : > { %v1314_v28 = vpack.c.bf16 %v1186_v24, %v1186_v24  ;;  %v1346_v29 = vpack.c.bf16 %v1218_v25, %v1218_v25 }
 0x107   : > { %1506 = vst.msk [vmem:[%s2175_s29 + $0x130] sm:$0xf] %vm1429_vm2, %v1377_v26 }
 0x108   : > { %1538 = vst.msk [vmem:[%s2175_s29 + $0x1b0] sm:$0xf] %vm1429_vm2, %v1409_v27  ;;  %v1045_v30 = vpop.f32.mrf.mxu2  ;;  %v1125_v31 = vpop.f32.mrf.mxu3 }
 0x109   : > { %1443 = vst.msk [vmem:[%s2175_s29 + $0x34] sm:$0xf] %vm1429_vm2, %v1314_v28  ;;  %v1046_v34 = vadd.f32 %v2160_v38, %v1045_v30  ;;  %v1126_v35 = vadd.f32 %v2160_v38, %v1125_v31  ;;  %v888_v36 = vpop.f32.mrf.mxu0  ;;  %v968_v37 = vpop.f32.mrf.mxu1 }
 0x10a   : > { %1475 = vst.msk [vmem:[%s2175_s29 + $0xb4] sm:$0xf] %vm1429_vm2, %v1346_v29  ;;  %v889_v41 = vadd.f32 %v2160_v38, %v888_v36  ;;  %v969_v42 = vadd.f32 %v2160_v38, %v968_v37 }
 0x10b   : > { %v1250_v43 = vmax.f32 %v1046_v34, 0.0  ;;  %v1282_v44 = vmax.f32 %v1126_v35, 0.0 }
 0x10c   : > { %v1187_v45 = vmax.f32 %v889_v41, 0.0  ;;  %v1219_v46 = vmax.f32 %v969_v42, 0.0  ;;  %1902 = vmatmul.msk.bf16.gmra.mxu0 %vm647_vm1, %v1968_v32  ;;  %1918 = vmatmul.msk.bf16.gmra.mxu1 %vm647_vm1, %v1984_v33 }
 0x10d   : > { %v1378_v47 = vpack.c.bf16 %v1250_v43, %v1250_v43  ;;  %v1410_v48 = vpack.c.bf16 %v1282_v44, %v1282_v44  ;;  %1934 = vmatmul.msk.bf16.gmra.mxu2 %vm647_vm1, %v2000_v39  ;;  %1950 = vmatmul.msk.bf16.gmra.mxu3 %vm647_vm1, %v2016_v40 }
 0x10e   : > { %v1315_v49 = vpack.c.bf16 %v1187_v45, %v1187_v45  ;;  %v1347_v50 = vpack.c.bf16 %v1219_v46, %v1219_v46 }
 0x10f   : > { %1507 = vst.msk [vmem:[%s2175_s29 + $0x134] sm:$0xf] %vm1429_vm2, %v1378_v47 }
 0x110   : > { %1539 = vst.msk [vmem:[%s2175_s29 + $0x1b4] sm:$0xf] %vm1429_vm2, %v1410_v48  ;;  %v1048_v51 = vpop.f32.mrf.mxu2  ;;  %v1128_v52 = vpop.f32.mrf.mxu3 }
 0x111   : > { %1444 = vst.msk [vmem:[%s2175_s29 + $0x38] sm:$0xf] %vm1429_vm2, %v1315_v49  ;;  %v1049_v53 = vadd.f32 %v2160_v38, %v1048_v51  ;;  %v1129_v54 = vadd.f32 %v2160_v38, %v1128_v52  ;;  %v890_v55 = vpop.f32.mrf.mxu0  ;;  %v970_v56 = vpop.f32.mrf.mxu1 }
 0x112   : > { %1476 = vst.msk [vmem:[%s2175_s29 + $0xb8] sm:$0xf] %vm1429_vm2, %v1347_v50  ;;  %v891_v57 = vadd.f32 %v2160_v38, %v890_v55  ;;  %v971_v58 = vadd.f32 %v2160_v38, %v970_v56 }
 0x113   : > { %v1251_v59 = vmax.f32 %v1049_v53, 0.0  ;;  %v1283_v60 = vmax.f32 %v1129_v54, 0.0 }
 0x114   : > { %v1188_v61 = vmax.f32 %v891_v57, 0.0  ;;  %v1220_v62 = vmax.f32 %v971_v58, 0.0 }
 0x115   : > { %v1379_v63 = vpack.c.bf16 %v1251_v59, %v1251_v59  ;;  %v1411_v0 = vpack.c.bf16 %v1283_v60, %v1283_v60 }
 0x116   : > { %v1316_v1 = vpack.c.bf16 %v1188_v61, %v1188_v61  ;;  %v1348_v2 = vpack.c.bf16 %v1220_v62, %v1220_v62 }
 0x117   : > { %1508 = vst.msk [vmem:[%s2175_s29 + $0x138] sm:$0xf] %vm1429_vm2, %v1379_v63 }
 0x118   : > { %1540 = vst.msk [vmem:[%s2175_s29 + $0x1b8] sm:$0xf] %vm1429_vm2, %v1411_v0  ;;  %v1050_v3 = vpop.f32.mrf.mxu2  ;;  %v1130_v4 = vpop.f32.mrf.mxu3 }
 0x119   : > { %1445 = vst.msk [vmem:[%s2175_s29 + $0x3c] sm:$0xf] %vm1429_vm2, %v1316_v1  ;;  %v1051_v5 = vadd.f32 %v2160_v38, %v1050_v3  ;;  %v1131_v6 = vadd.f32 %v2160_v38, %v1130_v4  ;;  %v893_v7 = vpop.f32.mrf.mxu0  ;;  %v973_v8 = vpop.f32.mrf.mxu1 }
 0x11a   : > { %1477 = vst.msk [vmem:[%s2175_s29 + $0xbc] sm:$0xf] %vm1429_vm2, %v1348_v2  ;;  %v894_v9 = vadd.f32 %v2160_v38, %v893_v7  ;;  %v974_v10 = vadd.f32 %v2160_v38, %v973_v8 }
 0x11b   : > { %v1252_v11 = vmax.f32 %v1051_v5, 0.0  ;;  %v1284_v12 = vmax.f32 %v1131_v6, 0.0 }
 0x11c   : > { %v1189_v13 = vmax.f32 %v894_v9, 0.0  ;;  %v1221_v14 = vmax.f32 %v974_v10, 0.0 }
 0x11d   : > { %v1380_v15 = vpack.c.bf16 %v1252_v11, %v1252_v11  ;;  %v1412_v16 = vpack.c.bf16 %v1284_v12, %v1284_v12 }
 0x11e   : > { %v1317_v17 = vpack.c.bf16 %v1189_v13, %v1189_v13  ;;  %v1349_v18 = vpack.c.bf16 %v1221_v14, %v1221_v14 }
 0x11f   : > { %1509 = vst.msk [vmem:[%s2175_s29 + $0x13c] sm:$0xf] %vm1429_vm2, %v1380_v15 }
 0x120   : > { %1541 = vst.msk [vmem:[%s2175_s29 + $0x1bc] sm:$0xf] %vm1429_vm2, %v1412_v16  ;;  %v1053_v19 = vpop.f32.mrf.mxu2  ;;  %v1133_v20 = vpop.f32.mrf.mxu3 }
 0x121   : > { %1446 = vst.msk [vmem:[%s2175_s29 + $0x40] sm:$0xf] %vm1429_vm2, %v1317_v17  ;;  %v1054_v21 = vadd.f32 %v2160_v38, %v1053_v19  ;;  %v1134_v22 = vadd.f32 %v2160_v38, %v1133_v20  ;;  %v895_v23 = vpop.f32.mrf.mxu0  ;;  %v975_v24 = vpop.f32.mrf.mxu1 }
 0x122   : > { %1478 = vst.msk [vmem:[%s2175_s29 + $0xc0] sm:$0xf] %vm1429_vm2, %v1349_v18  ;;  %v896_v25 = vadd.f32 %v2160_v38, %v895_v23  ;;  %v976_v26 = vadd.f32 %v2160_v38, %v975_v24 }
 0x123   : > { %v1253_v27 = vmax.f32 %v1054_v21, 0.0  ;;  %v1285_v28 = vmax.f32 %v1134_v22, 0.0 }
 0x124   : > { %v1190_v29 = vmax.f32 %v896_v25, 0.0  ;;  %v1222_v30 = vmax.f32 %v976_v26, 0.0 }
 0x125   : > { %v1381_v31 = vpack.c.bf16 %v1253_v27, %v1253_v27  ;;  %v1413_v32 = vpack.c.bf16 %v1285_v28, %v1285_v28 }
 0x126   : > { %v1318_v33 = vpack.c.bf16 %v1190_v29, %v1190_v29  ;;  %v1350_v34 = vpack.c.bf16 %v1222_v30, %v1222_v30 }
 0x127   : > { %1510 = vst.msk [vmem:[%s2175_s29 + $0x140] sm:$0xf] %vm1429_vm2, %v1381_v31 }
 0x128   : > { %1542 = vst.msk [vmem:[%s2175_s29 + $0x1c0] sm:$0xf] %vm1429_vm2, %v1413_v32  ;;  %v1055_v35 = vpop.f32.mrf.mxu2  ;;  %v1135_v36 = vpop.f32.mrf.mxu3 }
 0x129   : > { %1447 = vst.msk [vmem:[%s2175_s29 + $0x44] sm:$0xf] %vm1429_vm2, %v1318_v33  ;;  %v1056_v37 = vadd.f32 %v2160_v38, %v1055_v35  ;;  %v1136_v39 = vadd.f32 %v2160_v38, %v1135_v36  ;;  %v898_v40 = vpop.f32.mrf.mxu0  ;;  %v978_v41 = vpop.f32.mrf.mxu1 }
 0x12a   : > { %1479 = vst.msk [vmem:[%s2175_s29 + $0xc4] sm:$0xf] %vm1429_vm2, %v1350_v34  ;;  %v899_v42 = vadd.f32 %v2160_v38, %v898_v40  ;;  %v979_v43 = vadd.f32 %v2160_v38, %v978_v41 }
 0x12b   : > { %v1254_v44 = vmax.f32 %v1056_v37, 0.0  ;;  %v1286_v45 = vmax.f32 %v1136_v39, 0.0 }
 0x12c   : > { %v1191_v46 = vmax.f32 %v899_v42, 0.0  ;;  %v1223_v47 = vmax.f32 %v979_v43, 0.0 }
 0x12d   : > { %v1382_v48 = vpack.c.bf16 %v1254_v44, %v1254_v44  ;;  %v1414_v49 = vpack.c.bf16 %v1286_v45, %v1286_v45 }
 0x12e   : > { %v1319_v50 = vpack.c.bf16 %v1191_v46, %v1191_v46  ;;  %v1351_v51 = vpack.c.bf16 %v1223_v47, %v1223_v47 }
 0x12f   : > { %1511 = vst.msk [vmem:[%s2175_s29 + $0x144] sm:$0xf] %vm1429_vm2, %v1382_v48 }
 0x130   : > { %1543 = vst.msk [vmem:[%s2175_s29 + $0x1c4] sm:$0xf] %vm1429_vm2, %v1414_v49  ;;  %v1058_v52 = vpop.f32.mrf.mxu2  ;;  %v1138_v53 = vpop.f32.mrf.mxu3 }
 0x131   : > { %1448 = vst.msk [vmem:[%s2175_s29 + $0x48] sm:$0xf] %vm1429_vm2, %v1319_v50  ;;  %v1059_v54 = vadd.f32 %v2160_v38, %v1058_v52  ;;  %v1139_v55 = vadd.f32 %v2160_v38, %v1138_v53  ;;  %v900_v56 = vpop.f32.mrf.mxu0  ;;  %v980_v57 = vpop.f32.mrf.mxu1 }
 0x132   : > { %1480 = vst.msk [vmem:[%s2175_s29 + $0xc8] sm:$0xf] %vm1429_vm2, %v1351_v51  ;;  %v901_v58 = vadd.f32 %v2160_v38, %v900_v56  ;;  %v981_v59 = vadd.f32 %v2160_v38, %v980_v57 }
 0x133   : > { %v1255_v60 = vmax.f32 %v1059_v54, 0.0  ;;  %v1287_v61 = vmax.f32 %v1139_v55, 0.0 }
 0x134   : > { %v1192_v62 = vmax.f32 %v901_v58, 0.0  ;;  %v1224_v63 = vmax.f32 %v981_v59, 0.0 }
 0x135   : > { %v1383_v0 = vpack.c.bf16 %v1255_v60, %v1255_v60  ;;  %v1415_v1 = vpack.c.bf16 %v1287_v61, %v1287_v61 }
 0x136   : > { %v1320_v2 = vpack.c.bf16 %v1192_v62, %v1192_v62  ;;  %v1352_v3 = vpack.c.bf16 %v1224_v63, %v1224_v63 }
 0x137   : > { %1512 = vst.msk [vmem:[%s2175_s29 + $0x148] sm:$0xf] %vm1429_vm2, %v1383_v0 }
 0x138   : > { %1544 = vst.msk [vmem:[%s2175_s29 + $0x1c8] sm:$0xf] %vm1429_vm2, %v1415_v1  ;;  %v1060_v4 = vpop.f32.mrf.mxu2  ;;  %v1140_v5 = vpop.f32.mrf.mxu3 }
 0x139   : > { %1449 = vst.msk [vmem:[%s2175_s29 + $0x4c] sm:$0xf] %vm1429_vm2, %v1320_v2  ;;  %v1061_v6 = vadd.f32 %v2160_v38, %v1060_v4  ;;  %v1141_v7 = vadd.f32 %v2160_v38, %v1140_v5  ;;  %v903_v8 = vpop.f32.mrf.mxu0  ;;  %v983_v9 = vpop.f32.mrf.mxu1 }
 0x13a   : > { %1481 = vst.msk [vmem:[%s2175_s29 + $0xcc] sm:$0xf] %vm1429_vm2, %v1352_v3  ;;  %v904_v10 = vadd.f32 %v2160_v38, %v903_v8  ;;  %v984_v11 = vadd.f32 %v2160_v38, %v983_v9 }
 0x13b   : > { %v1256_v12 = vmax.f32 %v1061_v6, 0.0  ;;  %v1288_v13 = vmax.f32 %v1141_v7, 0.0 }
 0x13c   : > { %v1193_v14 = vmax.f32 %v904_v10, 0.0  ;;  %v1225_v15 = vmax.f32 %v984_v11, 0.0 }
 0x13d   : > { %v1384_v16 = vpack.c.bf16 %v1256_v12, %v1256_v12  ;;  %v1416_v17 = vpack.c.bf16 %v1288_v13, %v1288_v13 }
 0x13e   : > { %v1321_v18 = vpack.c.bf16 %v1193_v14, %v1193_v14  ;;  %v1353_v19 = vpack.c.bf16 %v1225_v15, %v1225_v15 }
 0x13f   : > { %1513 = vst.msk [vmem:[%s2175_s29 + $0x14c] sm:$0xf] %vm1429_vm2, %v1384_v16 }
 0x140   : > { %1545 = vst.msk [vmem:[%s2175_s29 + $0x1cc] sm:$0xf] %vm1429_vm2, %v1416_v17  ;;  %v1063_v20 = vpop.f32.mrf.mxu2  ;;  %v1143_v21 = vpop.f32.mrf.mxu3 }
 0x141   : > { %1450 = vst.msk [vmem:[%s2175_s29 + $0x50] sm:$0xf] %vm1429_vm2, %v1321_v18  ;;  %v1064_v22 = vadd.f32 %v2160_v38, %v1063_v20  ;;  %v1144_v23 = vadd.f32 %v2160_v38, %v1143_v21  ;;  %v905_v24 = vpop.f32.mrf.mxu0  ;;  %v985_v25 = vpop.f32.mrf.mxu1 }
 0x142   : > { %1482 = vst.msk [vmem:[%s2175_s29 + $0xd0] sm:$0xf] %vm1429_vm2, %v1353_v19  ;;  %v906_v26 = vadd.f32 %v2160_v38, %v905_v24  ;;  %v986_v27 = vadd.f32 %v2160_v38, %v985_v25 }
 0x143   : > { %v1257_v28 = vmax.f32 %v1064_v22, 0.0  ;;  %v1289_v29 = vmax.f32 %v1144_v23, 0.0 }
 0x144   : > { %v1194_v30 = vmax.f32 %v906_v26, 0.0  ;;  %v1226_v31 = vmax.f32 %v986_v27, 0.0 }
 0x145   : > { %v1385_v32 = vpack.c.bf16 %v1257_v28, %v1257_v28  ;;  %v1417_v33 = vpack.c.bf16 %v1289_v29, %v1289_v29 }
 0x146   : > { %v1322_v34 = vpack.c.bf16 %v1194_v30, %v1194_v30  ;;  %v1354_v35 = vpack.c.bf16 %v1226_v31, %v1226_v31 }
 0x147   : > { %1514 = vst.msk [vmem:[%s2175_s29 + $0x150] sm:$0xf] %vm1429_vm2, %v1385_v32 }
 0x148   : > { %1546 = vst.msk [vmem:[%s2175_s29 + $0x1d0] sm:$0xf] %vm1429_vm2, %v1417_v33  ;;  %v1065_v36 = vpop.f32.mrf.mxu2  ;;  %v1145_v37 = vpop.f32.mrf.mxu3 }
 0x149   : > { %1451 = vst.msk [vmem:[%s2175_s29 + $0x54] sm:$0xf] %vm1429_vm2, %v1322_v34  ;;  %v1066_v39 = vadd.f32 %v2160_v38, %v1065_v36  ;;  %v1146_v40 = vadd.f32 %v2160_v38, %v1145_v37  ;;  %v908_v41 = vpop.f32.mrf.mxu0  ;;  %v988_v42 = vpop.f32.mrf.mxu1 }
 0x14a   : > { %1483 = vst.msk [vmem:[%s2175_s29 + $0xd4] sm:$0xf] %vm1429_vm2, %v1354_v35  ;;  %v909_v43 = vadd.f32 %v2160_v38, %v908_v41  ;;  %v989_v44 = vadd.f32 %v2160_v38, %v988_v42  ;;  %v2504_v38 = vld [vmem:[%s2627_s2] ss:$0 sm:$0xff] }
 0x14b   : > { %v1258_v45 = vmax.f32 %v1066_v39, 0.0  ;;  %v1290_v46 = vmax.f32 %v1146_v40, 0.0 }
 0x14c   : > { %v1195_v47 = vmax.f32 %v909_v43, 0.0  ;;  %v1227_v48 = vmax.f32 %v989_v44, 0.0 }
 0x14d   : > { %v1386_v49 = vpack.c.bf16 %v1258_v45, %v1258_v45  ;;  %v1418_v50 = vpack.c.bf16 %v1290_v46, %v1290_v46 }
 0x14e   : > { %v1323_v51 = vpack.c.bf16 %v1195_v47, %v1195_v47  ;;  %v1355_v52 = vpack.c.bf16 %v1227_v48, %v1227_v48 }
 0x14f   : > { %1515 = vst.msk [vmem:[%s2175_s29 + $0x154] sm:$0xf] %vm1429_vm2, %v1386_v49 }
 0x150   : > { %1547 = vst.msk [vmem:[%s2175_s29 + $0x1d4] sm:$0xf] %vm1429_vm2, %v1418_v50  ;;  %v1068_v53 = vpop.f32.mrf.mxu2  ;;  %v1148_v54 = vpop.f32.mrf.mxu3 }
 0x151   : > { %1452 = vst.msk [vmem:[%s2175_s29 + $0x58] sm:$0xf] %vm1429_vm2, %v1323_v51  ;;  %v1069_v55 = vadd.f32 %v2504_v38, %v1068_v53  ;;  %v1149_v56 = vadd.f32 %v2504_v38, %v1148_v54  ;;  %v910_v57 = vpop.f32.mrf.mxu0  ;;  %v990_v58 = vpop.f32.mrf.mxu1 }
 0x152   : > { %1484 = vst.msk [vmem:[%s2175_s29 + $0xd8] sm:$0xf] %vm1429_vm2, %v1355_v52  ;;  %v911_v59 = vadd.f32 %v2504_v38, %v910_v57  ;;  %v991_v60 = vadd.f32 %v2504_v38, %v990_v58 }
 0x153   : > { %v1259_v61 = vmax.f32 %v1069_v55, 0.0  ;;  %v1291_v62 = vmax.f32 %v1149_v56, 0.0 }
 0x154   : > { %v1196_v63 = vmax.f32 %v911_v59, 0.0  ;;  %v1228_v0 = vmax.f32 %v991_v60, 0.0 }
 0x155   : > { %v1387_v1 = vpack.c.bf16 %v1259_v61, %v1259_v61  ;;  %v1419_v2 = vpack.c.bf16 %v1291_v62, %v1291_v62 }
 0x156   : > { %v1324_v3 = vpack.c.bf16 %v1196_v63, %v1196_v63  ;;  %v1356_v4 = vpack.c.bf16 %v1228_v0, %v1228_v0 }
 0x157   : > { %1516 = vst.msk [vmem:[%s2175_s29 + $0x158] sm:$0xf] %vm1429_vm2, %v1387_v1 }
 0x158   : > { %1548 = vst.msk [vmem:[%s2175_s29 + $0x1d8] sm:$0xf] %vm1429_vm2, %v1419_v2  ;;  %v1070_v5 = vpop.f32.mrf.mxu2  ;;  %v1150_v6 = vpop.f32.mrf.mxu3 }
 0x159   : > { %1453 = vst.msk [vmem:[%s2175_s29 + $0x5c] sm:$0xf] %vm1429_vm2, %v1324_v3  ;;  %v1071_v7 = vadd.f32 %v2504_v38, %v1070_v5  ;;  %v1151_v8 = vadd.f32 %v2504_v38, %v1150_v6  ;;  %v913_v9 = vpop.f32.mrf.mxu0  ;;  %v993_v10 = vpop.f32.mrf.mxu1 }
 0x15a   : > { %1485 = vst.msk [vmem:[%s2175_s29 + $0xdc] sm:$0xf] %vm1429_vm2, %v1356_v4  ;;  %v914_v11 = vadd.f32 %v2504_v38, %v913_v9  ;;  %v994_v12 = vadd.f32 %v2504_v38, %v993_v10 }
 0x15b   : > { %v1260_v13 = vmax.f32 %v1071_v7, 0.0  ;;  %v1292_v14 = vmax.f32 %v1151_v8, 0.0 }
 0x15c   : > { %v1197_v15 = vmax.f32 %v914_v11, 0.0  ;;  %v1229_v16 = vmax.f32 %v994_v12, 0.0 }
 0x15d   : > { %v1388_v17 = vpack.c.bf16 %v1260_v13, %v1260_v13  ;;  %v1420_v18 = vpack.c.bf16 %v1292_v14, %v1292_v14 }
 0x15e   : > { %v1325_v19 = vpack.c.bf16 %v1197_v15, %v1197_v15  ;;  %v1357_v20 = vpack.c.bf16 %v1229_v16, %v1229_v16 }
 0x15f   : > { %1517 = vst.msk [vmem:[%s2175_s29 + $0x15c] sm:$0xf] %vm1429_vm2, %v1388_v17 }
 0x160   : > { %1549 = vst.msk [vmem:[%s2175_s29 + $0x1dc] sm:$0xf] %vm1429_vm2, %v1420_v18  ;;  %v1073_v21 = vpop.f32.mrf.mxu2  ;;  %v1153_v22 = vpop.f32.mrf.mxu3 }
 0x161   : > { %1454 = vst.msk [vmem:[%s2175_s29 + $0x60] sm:$0xf] %vm1429_vm2, %v1325_v19  ;;  %v1074_v23 = vadd.f32 %v2504_v38, %v1073_v21  ;;  %v1154_v24 = vadd.f32 %v2504_v38, %v1153_v22  ;;  %v915_v25 = vpop.f32.mrf.mxu0  ;;  %v995_v26 = vpop.f32.mrf.mxu1 }
 0x162   : > { %1486 = vst.msk [vmem:[%s2175_s29 + $0xe0] sm:$0xf] %vm1429_vm2, %v1357_v20  ;;  %v916_v27 = vadd.f32 %v2504_v38, %v915_v25  ;;  %v996_v28 = vadd.f32 %v2504_v38, %v995_v26 }
 0x163   : > { %v1261_v29 = vmax.f32 %v1074_v23, 0.0  ;;  %v1293_v30 = vmax.f32 %v1154_v24, 0.0 }
 0x164   : > { %v1198_v31 = vmax.f32 %v916_v27, 0.0  ;;  %v1230_v32 = vmax.f32 %v996_v28, 0.0 }
 0x165   : > { %v1389_v33 = vpack.c.bf16 %v1261_v29, %v1261_v29  ;;  %v1421_v34 = vpack.c.bf16 %v1293_v30, %v1293_v30 }
 0x166   : > { %v1326_v35 = vpack.c.bf16 %v1198_v31, %v1198_v31  ;;  %v1358_v36 = vpack.c.bf16 %v1230_v32, %v1230_v32 }
 0x167   : > { %1518 = vst.msk [vmem:[%s2175_s29 + $0x160] sm:$0xf] %vm1429_vm2, %v1389_v33 }
 0x168   : > { %1550 = vst.msk [vmem:[%s2175_s29 + $0x1e0] sm:$0xf] %vm1429_vm2, %v1421_v34  ;;  %v1075_v37 = vpop.f32.mrf.mxu2  ;;  %v1155_v39 = vpop.f32.mrf.mxu3 }
 0x169   : > { %1455 = vst.msk [vmem:[%s2175_s29 + $0x64] sm:$0xf] %vm1429_vm2, %v1326_v35  ;;  %v1076_v40 = vadd.f32 %v2504_v38, %v1075_v37  ;;  %v1156_v41 = vadd.f32 %v2504_v38, %v1155_v39  ;;  %v918_v42 = vpop.f32.mrf.mxu0  ;;  %v998_v43 = vpop.f32.mrf.mxu1 }
 0x16a   : > { %1487 = vst.msk [vmem:[%s2175_s29 + $0xe4] sm:$0xf] %vm1429_vm2, %v1358_v36  ;;  %v919_v44 = vadd.f32 %v2504_v38, %v918_v42  ;;  %v999_v45 = vadd.f32 %v2504_v38, %v998_v43 }
 0x16b   : > { %v1262_v46 = vmax.f32 %v1076_v40, 0.0  ;;  %v1294_v47 = vmax.f32 %v1156_v41, 0.0 }
 0x16c   : > { %v1199_v48 = vmax.f32 %v919_v44, 0.0  ;;  %v1231_v49 = vmax.f32 %v999_v45, 0.0 }
 0x16d   : > { %v1390_v50 = vpack.c.bf16 %v1262_v46, %v1262_v46  ;;  %v1422_v51 = vpack.c.bf16 %v1294_v47, %v1294_v47 }
 0x16e   : > { %v1327_v52 = vpack.c.bf16 %v1199_v48, %v1199_v48  ;;  %v1359_v53 = vpack.c.bf16 %v1231_v49, %v1231_v49 }
 0x16f   : > { %1519 = vst.msk [vmem:[%s2175_s29 + $0x164] sm:$0xf] %vm1429_vm2, %v1390_v50 }
 0x170   : > { %1551 = vst.msk [vmem:[%s2175_s29 + $0x1e4] sm:$0xf] %vm1429_vm2, %v1422_v51  ;;  %v1078_v54 = vpop.f32.mrf.mxu2  ;;  %v1158_v55 = vpop.f32.mrf.mxu3 }
 0x171   : > { %1456 = vst.msk [vmem:[%s2175_s29 + $0x68] sm:$0xf] %vm1429_vm2, %v1327_v52  ;;  %v1079_v56 = vadd.f32 %v2504_v38, %v1078_v54  ;;  %v1159_v57 = vadd.f32 %v2504_v38, %v1158_v55  ;;  %v920_v58 = vpop.f32.mrf.mxu0  ;;  %v1000_v59 = vpop.f32.mrf.mxu1 }
 0x172   : > { %1488 = vst.msk [vmem:[%s2175_s29 + $0xe8] sm:$0xf] %vm1429_vm2, %v1359_v53  ;;  %v921_v60 = vadd.f32 %v2504_v38, %v920_v58  ;;  %v1001_v61 = vadd.f32 %v2504_v38, %v1000_v59 }
 0x173   : > { %v1263_v62 = vmax.f32 %v1079_v56, 0.0  ;;  %v1295_v63 = vmax.f32 %v1159_v57, 0.0 }
 0x174   : > { %v1200_v0 = vmax.f32 %v921_v60, 0.0  ;;  %v1232_v1 = vmax.f32 %v1001_v61, 0.0 }
 0x175   : > { %v1391_v2 = vpack.c.bf16 %v1263_v62, %v1263_v62  ;;  %v1423_v3 = vpack.c.bf16 %v1295_v63, %v1295_v63 }
 0x176   : > { %v1328_v4 = vpack.c.bf16 %v1200_v0, %v1200_v0  ;;  %v1360_v5 = vpack.c.bf16 %v1232_v1, %v1232_v1 }
 0x177   : > { %1520 = vst.msk [vmem:[%s2175_s29 + $0x168] sm:$0xf] %vm1429_vm2, %v1391_v2 }
 0x178   : > { %1552 = vst.msk [vmem:[%s2175_s29 + $0x1e8] sm:$0xf] %vm1429_vm2, %v1423_v3  ;;  %v1080_v6 = vpop.f32.mrf.mxu2  ;;  %v1160_v7 = vpop.f32.mrf.mxu3 }
 0x179   : > { %1457 = vst.msk [vmem:[%s2175_s29 + $0x6c] sm:$0xf] %vm1429_vm2, %v1328_v4  ;;  %v1081_v8 = vadd.f32 %v2504_v38, %v1080_v6  ;;  %v1161_v9 = vadd.f32 %v2504_v38, %v1160_v7  ;;  %v923_v10 = vpop.f32.mrf.mxu0  ;;  %v1003_v11 = vpop.f32.mrf.mxu1 }
 0x17a   : > { %1489 = vst.msk [vmem:[%s2175_s29 + $0xec] sm:$0xf] %vm1429_vm2, %v1360_v5  ;;  %v924_v12 = vadd.f32 %v2504_v38, %v923_v10  ;;  %v1004_v13 = vadd.f32 %v2504_v38, %v1003_v11 }
 0x17b   : > { %v1264_v14 = vmax.f32 %v1081_v8, 0.0  ;;  %v1296_v15 = vmax.f32 %v1161_v9, 0.0 }
 0x17c   : > { %v1201_v16 = vmax.f32 %v924_v12, 0.0  ;;  %v1233_v17 = vmax.f32 %v1004_v13, 0.0 }
 0x17d   : > { %v1392_v18 = vpack.c.bf16 %v1264_v14, %v1264_v14  ;;  %v1424_v19 = vpack.c.bf16 %v1296_v15, %v1296_v15 }
 0x17e   : > { %v1329_v20 = vpack.c.bf16 %v1201_v16, %v1201_v16  ;;  %v1361_v21 = vpack.c.bf16 %v1233_v17, %v1233_v17 }
 0x17f   : > { %1521 = vst.msk [vmem:[%s2175_s29 + $0x16c] sm:$0xf] %vm1429_vm2, %v1392_v18 }
 0x180   : > { %1553 = vst.msk [vmem:[%s2175_s29 + $0x1ec] sm:$0xf] %vm1429_vm2, %v1424_v19  ;;  %v1083_v22 = vpop.f32.mrf.mxu2  ;;  %v1163_v23 = vpop.f32.mrf.mxu3 }
 0x181   : > { %1458 = vst.msk [vmem:[%s2175_s29 + $0x70] sm:$0xf] %vm1429_vm2, %v1329_v20  ;;  %v1084_v24 = vadd.f32 %v2504_v38, %v1083_v22  ;;  %v1164_v25 = vadd.f32 %v2504_v38, %v1163_v23  ;;  %v925_v26 = vpop.f32.mrf.mxu0  ;;  %v1005_v27 = vpop.f32.mrf.mxu1 }
 0x182   : > { %1490 = vst.msk [vmem:[%s2175_s29 + $0xf0] sm:$0xf] %vm1429_vm2, %v1361_v21  ;;  %v926_v28 = vadd.f32 %v2504_v38, %v925_v26  ;;  %v1006_v29 = vadd.f32 %v2504_v38, %v1005_v27 }
 0x183   : > { %v1265_v30 = vmax.f32 %v1084_v24, 0.0  ;;  %v1297_v31 = vmax.f32 %v1164_v25, 0.0 }
 0x184   : > { %v1202_v32 = vmax.f32 %v926_v28, 0.0  ;;  %v1234_v33 = vmax.f32 %v1006_v29, 0.0 }
 0x185   : > { %v1393_v34 = vpack.c.bf16 %v1265_v30, %v1265_v30  ;;  %v1425_v35 = vpack.c.bf16 %v1297_v31, %v1297_v31 }
 0x186   : > { %v1330_v36 = vpack.c.bf16 %v1202_v32, %v1202_v32  ;;  %v1362_v37 = vpack.c.bf16 %v1234_v33, %v1234_v33 }
 0x187   : > { %1522 = vst.msk [vmem:[%s2175_s29 + $0x170] sm:$0xf] %vm1429_vm2, %v1393_v34 }
 0x188   : > { %1554 = vst.msk [vmem:[%s2175_s29 + $0x1f0] sm:$0xf] %vm1429_vm2, %v1425_v35  ;;  %v1085_v39 = vpop.f32.mrf.mxu2  ;;  %v1165_v40 = vpop.f32.mrf.mxu3 }
 0x189   : > { %1459 = vst.msk [vmem:[%s2175_s29 + $0x74] sm:$0xf] %vm1429_vm2, %v1330_v36  ;;  %v1086_v41 = vadd.f32 %v2504_v38, %v1085_v39  ;;  %v1166_v42 = vadd.f32 %v2504_v38, %v1165_v40  ;;  %v928_v43 = vpop.f32.mrf.mxu0  ;;  %v1008_v44 = vpop.f32.mrf.mxu1 }
 0x18a   : > { %1491 = vst.msk [vmem:[%s2175_s29 + $0xf4] sm:$0xf] %vm1429_vm2, %v1362_v37  ;;  %v929_v45 = vadd.f32 %v2504_v38, %v928_v43  ;;  %v1009_v46 = vadd.f32 %v2504_v38, %v1008_v44 }
 0x18b   : > { %v1266_v47 = vmax.f32 %v1086_v41, 0.0  ;;  %v1298_v48 = vmax.f32 %v1166_v42, 0.0 }
 0x18c   : > { %v1203_v49 = vmax.f32 %v929_v45, 0.0  ;;  %v1235_v50 = vmax.f32 %v1009_v46, 0.0 }
 0x18d   : > { %v1394_v51 = vpack.c.bf16 %v1266_v47, %v1266_v47  ;;  %v1426_v52 = vpack.c.bf16 %v1298_v48, %v1298_v48 }
 0x18e   : > { %v1331_v53 = vpack.c.bf16 %v1203_v49, %v1203_v49  ;;  %v1363_v54 = vpack.c.bf16 %v1235_v50, %v1235_v50 }
 0x18f   : > { %1523 = vst.msk [vmem:[%s2175_s29 + $0x174] sm:$0xf] %vm1429_vm2, %v1394_v51 }
 0x190   : > { %1555 = vst.msk [vmem:[%s2175_s29 + $0x1f4] sm:$0xf] %vm1429_vm2, %v1426_v52  ;;  %v1088_v55 = vpop.f32.mrf.mxu2  ;;  %v1168_v56 = vpop.f32.mrf.mxu3 }
 0x191   : > { %1460 = vst.msk [vmem:[%s2175_s29 + $0x78] sm:$0xf] %vm1429_vm2, %v1331_v53  ;;  %v1089_v57 = vadd.f32 %v2504_v38, %v1088_v55  ;;  %v1169_v58 = vadd.f32 %v2504_v38, %v1168_v56  ;;  %v930_v59 = vpop.f32.mrf.mxu0  ;;  %v1010_v60 = vpop.f32.mrf.mxu1 }
 0x192   : > { %1492 = vst.msk [vmem:[%s2175_s29 + $0xf8] sm:$0xf] %vm1429_vm2, %v1363_v54  ;;  %v931_v61 = vadd.f32 %v2504_v38, %v930_v59  ;;  %v1011_v62 = vadd.f32 %v2504_v38, %v1010_v60 }
 0x193   : > { %v1267_v63 = vmax.f32 %v1089_v57, 0.0  ;;  %v1299_v0 = vmax.f32 %v1169_v58, 0.0 }
 0x194   : > { %v1204_v1 = vmax.f32 %v931_v61, 0.0  ;;  %v1236_v2 = vmax.f32 %v1011_v62, 0.0 }
 0x195   : > { %v1395_v3 = vpack.c.bf16 %v1267_v63, %v1267_v63  ;;  %v1427_v4 = vpack.c.bf16 %v1299_v0, %v1299_v0 }
 0x196   : > { %v1332_v5 = vpack.c.bf16 %v1204_v1, %v1204_v1  ;;  %v1364_v6 = vpack.c.bf16 %v1236_v2, %v1236_v2 }
 0x197   : > { %1524 = vst.msk [vmem:[%s2175_s29 + $0x178] sm:$0xf] %vm1429_vm2, %v1395_v3 }
 0x198   : > { %1556 = vst.msk [vmem:[%s2175_s29 + $0x1f8] sm:$0xf] %vm1429_vm2, %v1427_v4  ;;  %v1090_v7 = vpop.f32.mrf.mxu2  ;;  %v1170_v8 = vpop.f32.mrf.mxu3 }
 0x199   : > { %1461 = vst.msk [vmem:[%s2175_s29 + $0x7c] sm:$0xf] %vm1429_vm2, %v1332_v5  ;;  %v1091_v9 = vadd.f32 %v2504_v38, %v1090_v7  ;;  %v1171_v10 = vadd.f32 %v2504_v38, %v1170_v8 }
 0x19a   : > { %1493 = vst.msk [vmem:[%s2175_s29 + $0xfc] sm:$0xf] %vm1429_vm2, %v1364_v6 }
 0x19b   : > { %v1268_v11 = vmax.f32 %v1091_v9, 0.0  ;;  %v1300_v12 = vmax.f32 %v1171_v10, 0.0 }
 0x19d   : > { %v1396_v13 = vpack.c.bf16 %v1268_v11, %v1268_v11  ;;  %v1428_v14 = vpack.c.bf16 %v1300_v12, %v1300_v12 }
 0x19f   : > { %1525 = vst.msk [vmem:[%s2175_s29 + $0x17c] sm:$0xf] %vm1429_vm2, %v1396_v13 }
 0x1a0   : > { %1557 = vst.msk [vmem:[%s2175_s29 + $0x1fc] sm:$0xf] %vm1429_vm2, %v1428_v14 }
 0x1a1 PF: > { %s13_s12 = sadd.s32 1, %s2044_s12  }
 0x1a2   : > { %p10_p4 = scmp.ge.s32.totalorder %s13_s12, 4  }
 0x1a4   :  { %12 = sbr.rel (!%p10_p4) target bundleno = 1 (0x1), region = 62 }

// kernel: autoencoder_forward.9
= control target key start
LH: loop header
LB: loop body
LE: loop exit
PB: predicated region body
PF: predicated region fallthrough
CT: control target
= control target key end

     0   :  { %vm1299_vm0 = vcmask 523264   ;;  %vm2369_vm1 = vcmask 257024   ;;  %s5124_s1 = inlined_call_operand.vmem [shape: bf16[576,32], index: 1, kind: input, shape index: {}]   ;;  %s5125_s2 = inlined_call_operand.vmem [shape: f32[1,32], index: 2, kind: input, shape index: {}]   ;;  %s5126_s0 = inlined_call_operand.vmem [shape: bf16[512,576], index: 0, kind: input, shape index: {}]   ;;  %s5127_s3 = inlined_call_operand.vmem [shape: bf16[512,32], index: 3, kind: output, shape index: {}]  }
   0x1   :  { %v3421_v0 = vld [vmem:[%s5124_s1 + $0x38] sm:$0xff]  ;;  %v3420_v1 = vld [vmem:[%s5124_s1 + $0x30] sm:$0xff]  ;;  %v3419_v2 = vld [vmem:[%s5124_s1 + $0x28] sm:$0xff] }
   0x2   :  { %3450 = vmatpush.bf16.msra.mxu1 %v3421_v0  ;;  %3451 = vmatpush.bf16.msra.mxu2 %v3421_v0  ;;  %v3418_v3 = vld [vmem:[%s5124_s1 + $0x20] sm:$0xff]  ;;  %v3417_v4 = vld [vmem:[%s5124_s1 + $0x18] sm:$0xff]  ;;  %v3416_v5 = vld [vmem:[%s5124_s1 + $0x10] sm:$0xff] }
   0x3   :  { %3452 = vmatpush.bf16.msra.mxu3 %v3421_v0  ;;  %1396 = vmatpush.bf16.msra.mxu0 %v3421_v0  ;;  %v3415_v6 = vld [vmem:[%s5124_s1 + $0x8] sm:$0xff]  ;;  %v3414_v7 = vld [vmem:[%s5124_s1] sm:$0xff]  ;;  %v3296_v9 = vld [vmem:[%s5126_s0 + $0x150] sm:$0xf0] }
   0x4   :  { %v2600_v8 = vld [vmem:[%s5126_s0 + $0x140] sm:$0xf]  ;;  %v3336_v11 = vld [vmem:[%s5126_s0 + $0x290] sm:$0xf0]  ;;  %v3437_v16 = vld [vmem:[%s5124_s1 + $0xb8] sm:$0xff] }
   0x5   :  { %v2760_v10 = vld [vmem:[%s5126_s0 + $0x280] sm:$0xf]  ;;  %v3376_v13 = vld [vmem:[%s5126_s0 + $0x3d0] sm:$0xf0]  ;;  %v3445_v17 = vld [vmem:[%s5124_s1 + $0xf8] sm:$0xff]  ;;  %v2601_v18 = vor.u32 %v3296_v9, %v2600_v8 }
   0x6   :  { %3453 = vmatpush.bf16.msra.mxu1 %v3420_v1  ;;  %3454 = vmatpush.bf16.msra.mxu2 %v3420_v1  ;;  %v2920_v12 = vld [vmem:[%s5126_s0 + $0x3c0] sm:$0xf]  ;;  %v3256_v15 = vld [vmem:[%s5126_s0 + $0x10] sm:$0xf0]  ;;  %v2761_v19 = vor.u32 %v3336_v11, %v2760_v10  ;;  %v3429_v22 = vld [vmem:[%s5124_s1 + $0x78] sm:$0xff] }
   0x7   :  { %3455 = vmatpush.bf16.msra.mxu3 %v3420_v1  ;;  %1397 = vmatpush.bf16.msra.mxu0 %v3420_v1  ;;  %v2440_v14 = vld [vmem:[%s5126_s0] sm:$0xf]  ;;  %v2921_v20 = vor.u32 %v3376_v13, %v2920_v12  ;;  %v3449_v23 = vld [vmem:[%s5124_s1 + $0x118] sm:$0xff]  ;;  %v3436_v24 = vld [vmem:[%s5124_s1 + $0xb0] sm:$0xff] }
   0x8   :  { %v2441_v21 = vor.u32 %v3256_v15, %v2440_v14  ;;  %v3444_v25 = vld [vmem:[%s5124_s1 + $0xf0] sm:$0xff]  ;;  %v3435_v28 = vld [vmem:[%s5124_s1 + $0xa8] sm:$0xff]  ;;  %v3301_v32 = vld [vmem:[%s5126_s0 + $0x178] sm:$0xf0] }
   0x9   :  { %v3428_v26 = vld [vmem:[%s5124_s1 + $0x70] sm:$0xff]  ;;  %v3443_v29 = vld [vmem:[%s5124_s1 + $0xe8] sm:$0xff]  ;;  %v3341_v34 = vld [vmem:[%s5126_s0 + $0x2b8] sm:$0xf0] }
   0xa   :  { %3456 = vmatpush.bf16.msra.mxu1 %v3419_v2  ;;  %3457 = vmatpush.bf16.msra.mxu2 %v3419_v2  ;;  %v3448_v27 = vld [vmem:[%s5124_s1 + $0x110] sm:$0xff]  ;;  %v3427_v30 = vld [vmem:[%s5124_s1 + $0x68] sm:$0xff]  ;;  %v3381_v36 = vld [vmem:[%s5126_s0 + $0x3f8] sm:$0xf0] }
   0xb   :  { %3458 = vmatpush.bf16.msra.mxu3 %v3419_v2  ;;  %1398 = vmatpush.bf16.msra.mxu0 %v3419_v2  ;;  %v2620_v31 = vld [vmem:[%s5126_s0 + $0x168] sm:$0xf]  ;;  %v3261_v38 = vld [vmem:[%s5126_s0 + $0x38] sm:$0xf0]  ;;  %v3434_v43 = vld [vmem:[%s5124_s1 + $0xa0] sm:$0xff] }
   0xc   :  { %v2780_v33 = vld [vmem:[%s5126_s0 + $0x2a8] sm:$0xf]  ;;  %v2621_v39 = vor.u32 %v3301_v32, %v2620_v31  ;;  %v3442_v44 = vld [vmem:[%s5124_s1 + $0xe0] sm:$0xff]  ;;  %v2640_v46 = vld [vmem:[%s5126_s0 + $0x190] sm:$0xf] }
   0xd   :  { %v2940_v35 = vld [vmem:[%s5126_s0 + $0x3e8] sm:$0xf]  ;;  %v2781_v40 = vor.u32 %v3341_v34, %v2780_v33  ;;  %v3426_v45 = vld [vmem:[%s5124_s1 + $0x60] sm:$0xff]  ;;  %v2800_v48 = vld [vmem:[%s5126_s0 + $0x2d0] sm:$0xf] }
   0xe   :  { %3459 = vmatpush.bf16.msra.mxu1 %v3418_v3  ;;  %3460 = vmatpush.bf16.msra.mxu2 %v3418_v3  ;;  %v2460_v37 = vld [vmem:[%s5126_s0 + $0x28] sm:$0xf]  ;;  %v2941_v41 = vor.u32 %v3381_v36, %v2940_v35  ;;  %v3306_v47 = vld [vmem:[%s5126_s0 + $0x1a0] sm:$0xf0]  ;;  %v2960_v50 = vld [vmem:[%s5126_s0 + $0x410] sm:$0xf] }
   0xf   :  { %3461 = vmatpush.bf16.msra.mxu3 %v3418_v3  ;;  %1399 = vmatpush.bf16.msra.mxu0 %v3418_v3  ;;  %v2461_v42 = vor.u32 %v3261_v38, %v2460_v37  ;;  %v3346_v49 = vld [vmem:[%s5126_s0 + $0x2e0] sm:$0xf0]  ;;  %v2480_v52 = vld [vmem:[%s5126_s0 + $0x50] sm:$0xf]  ;;  %v2641_v54 = vor.u32 %v3306_v47, %v2640_v46  ;;  %v3433_v58 = vld [vmem:[%s5124_s1 + $0x98] sm:$0xff] }
  0x10   :  { %v3386_v51 = vld [vmem:[%s5126_s0 + $0x420] sm:$0xf0]  ;;  %v2801_v55 = vor.u32 %v3346_v49, %v2800_v48  ;;  %v3441_v59 = vld [vmem:[%s5124_s1 + $0xd8] sm:$0xff]  ;;  %v3447_v61 = vld [vmem:[%s5124_s1 + $0x108] sm:$0xff] }
  0x11   :  { %v3266_v53 = vld [vmem:[%s5126_s0 + $0x60] sm:$0xf0]  ;;  %v2961_v56 = vor.u32 %v3386_v51, %v2960_v50  ;;  %v3425_v60 = vld [vmem:[%s5124_s1 + $0x58] sm:$0xff]  ;;  %v3311_v63 = vld [vmem:[%s5126_s0 + $0x1c8] sm:$0xf0] }
  0x12   :  { %3462 = vmatpush.bf16.msra.mxu1 %v3417_v4  ;;  %3463 = vmatpush.bf16.msra.mxu2 %v3417_v4  ;;  %v2481_v57 = vor.u32 %v3266_v53, %v2480_v52  ;;  %v2660_v62 = vld [vmem:[%s5126_s0 + $0x1b8] sm:$0xf]  ;;  %v3351_v1 = vld [vmem:[%s5126_s0 + $0x308] sm:$0xf0]  ;;  %v3432_v10 = vld [vmem:[%s5124_s1 + $0x90] sm:$0xff] }
  0x13   :  { %3464 = vmatpush.bf16.msra.mxu3 %v3417_v4  ;;  %1400 = vmatpush.bf16.msra.mxu0 %v3417_v4  ;;  %v2820_v0 = vld [vmem:[%s5126_s0 + $0x2f8] sm:$0xf]  ;;  %v3391_v3 = vld [vmem:[%s5126_s0 + $0x448] sm:$0xf0]  ;;  %v3440_v11 = vld [vmem:[%s5124_s1 + $0xd0] sm:$0xff] }
  0x14   :  { %v2980_v2 = vld [vmem:[%s5126_s0 + $0x438] sm:$0xf]  ;;  %v3424_v12 = vld [vmem:[%s5124_s1 + $0x50] sm:$0xff]  ;;  %v2680_v13 = vld [vmem:[%s5126_s0 + $0x1e0] sm:$0xf] }
  0x15   :  { %v2500_v4 = vld [vmem:[%s5126_s0 + $0x78] sm:$0xf]  ;;  %v2981_v8 = vor.u32 %v3391_v3, %v2980_v2  ;;  %v3316_v14 = vld [vmem:[%s5126_s0 + $0x1f0] sm:$0xf0]  ;;  %v2840_v15 = vld [vmem:[%s5126_s0 + $0x320] sm:$0xf] }
  0x16   :  { %3465 = vmatpush.bf16.msra.mxu1 %v3416_v5  ;;  %3466 = vmatpush.bf16.msra.mxu2 %v3416_v5  ;;  %v2860_v31 = vld [vmem:[%s5126_s0 + $0x348] sm:$0xf]  ;;  %v3361_v32 = vld [vmem:[%s5126_s0 + $0x358] sm:$0xf0]  ;;  %v2880_v46 = vld [vmem:[%s5126_s0 + $0x370] sm:$0xf] }
  0x17   :  { %3467 = vmatpush.bf16.msra.mxu3 %v3416_v5  ;;  %1401 = vmatpush.bf16.msra.mxu0 %v3416_v5  ;;  %v3271_v5 = vld [vmem:[%s5126_s0 + $0x88] sm:$0xf0]  ;;  %v3020_v33 = vld [vmem:[%s5126_s0 + $0x488] sm:$0xf]  ;;  %v3401_v34 = vld [vmem:[%s5126_s0 + $0x498] sm:$0xf0]  ;;  %v2861_v38 = vor.u32 %v3361_v32, %v2860_v31 }
  0x18   :  { %v2501_v9 = vor.u32 %v3271_v5, %v2500_v4  ;;  %v2540_v35 = vld [vmem:[%s5126_s0 + $0xc8] sm:$0xf]  ;;  %v3281_v36 = vld [vmem:[%s5126_s0 + $0xd8] sm:$0xf0]  ;;  %v3366_v47 = vld [vmem:[%s5126_s0 + $0x380] sm:$0xf0] }
  0x19   :  { %v3040_v48 = vld [vmem:[%s5126_s0 + $0x4b0] sm:$0xf]  ;;  %v3406_v49 = vld [vmem:[%s5126_s0 + $0x4c0] sm:$0xf0]  ;;  %v2881_v53 = vor.u32 %v3366_v47, %v2880_v46  ;;  %v2442_v5 = vld [vmem:[%s5126_s0 + $0x14] sm:$0xf0] }
  0x1a   :  { %3468 = vmatpush.bf16.msra.mxu1 %v3415_v6  ;;  %3469 = vmatpush.bf16.msra.mxu2 %v3415_v6  ;;  %v2560_v50 = vld [vmem:[%s5126_s0 + $0xf0] sm:$0xf]  ;;  %v3286_v51 = vld [vmem:[%s5126_s0 + $0x100] sm:$0xf0]  ;;  %v3265_v46 = vld [vmem:[%s5126_s0 + $0x5c] sm:$0xf] }
  0x1b   :  { %3470 = vmatpush.bf16.msra.mxu3 %v3415_v6  ;;  %1402 = vmatpush.bf16.msra.mxu0 %v3415_v6  ;;  %v2661_v6 = vor.u32 %v3311_v63, %v2660_v62  ;;  %v2580_v62 = vld [vmem:[%s5126_s0 + $0x118] sm:$0xf]  ;;  %v3291_v63 = vld [vmem:[%s5126_s0 + $0x128] sm:$0xf0]  ;;  %v3254_v4 = vld [vmem:[%s5126_s0 + $0x4] sm:$0xf] }
  0x1c   :  { %v2581_v3 = vor.u32 %v3291_v63, %v2580_v62  ;;  %v2490_v47 = vld [vmem:[%s5126_s0 + $0x6c] sm:$0xf0]  ;;  %v3269_v62 = vld [vmem:[%s5126_s0 + $0x7c] sm:$0xf] }
  0x1d   :  { %v2502_v63 = vld [vmem:[%s5126_s0 + $0x8c] sm:$0xf0] }
  0x1e   :  { %3471 = vmatpush.bf16.msra.mxu1 %v3414_v7  ;;  %3472 = vmatpush.bf16.msra.mxu2 %v3414_v7 }
  0x1f   :  { %3473 = vmatpush.bf16.msra.mxu3 %v3414_v7  ;;  %1403 = vmatpush.bf16.msra.mxu0 %v3414_v7  ;;  %v2821_v7 = vor.u32 %v3351_v1, %v2820_v0 }
  0x21   :  { %1444 = vmatmul.bf16.vlgmr.msra.gmra.mxu1 %v2601_v18  ;;  %1484 = vmatmul.bf16.vlgmr.msra.gmra.mxu2 %v2761_v19  ;;  %v3396_v18 = vld [vmem:[%s5126_s0 + $0x470] sm:$0xf0]  ;;  %v2520_v19 = vld [vmem:[%s5126_s0 + $0xa0] sm:$0xf] }
  0x22   :  { %1734 = vmatpush.bf16.msrb.mxu2 %v3437_v16  ;;  %1524 = vmatmul.bf16.vlgmr.msra.gmra.mxu3 %v2921_v20  ;;  %v3356_v16 = vld [vmem:[%s5126_s0 + $0x330] sm:$0xf0] }
  0x23   :  { %1903 = vmatpush.bf16.msrb.mxu3 %v3445_v17  ;;  %1404 = vmatmul.bf16.vlgmr.msra.gmra.mxu0 %v2441_v21  ;;  %v3000_v17 = vld [vmem:[%s5126_s0 + $0x460] sm:$0xf]  ;;  %v3276_v20 = vld [vmem:[%s5126_s0 + $0xb0] sm:$0xf0]  ;;  %v2681_v21 = vor.u32 %v3316_v14, %v2680_v13 }
  0x24   :  { %1565 = vmatpush.bf16.msrb.mxu1 %v3429_v22  ;;  %2076 = vmatpush.bf16.msrb.mxu0 %v3449_v23  ;;  %v2841_v22 = vor.u32 %v3356_v16, %v2840_v15  ;;  %v3001_v23 = vor.u32 %v3396_v18, %v3000_v17 }
  0x26   :  { %1735 = vmatpush.bf16.msrb.mxu2 %v3436_v24  ;;  %v2521_v24 = vor.u32 %v3276_v20, %v2520_v19 }
  0x27   :  { %1904 = vmatpush.bf16.msrb.mxu3 %v3444_v25  ;;  %v3431_v25 = vld [vmem:[%s5124_s1 + $0x88] sm:$0xff] }
  0x28   :  { %1566 = vmatpush.bf16.msrb.mxu1 %v3428_v26  ;;  %2077 = vmatpush.bf16.msrb.mxu0 %v3448_v27  ;;  %v3439_v26 = vld [vmem:[%s5124_s1 + $0xc8] sm:$0xff] }
  0x29   :  { %v3423_v27 = vld [vmem:[%s5124_s1 + $0x48] sm:$0xff] }
  0x2a   :  { %1736 = vmatpush.bf16.msrb.mxu2 %v3435_v28  ;;  %v3446_v28 = vld [vmem:[%s5124_s1 + $0x100] sm:$0xff] }
  0x2b   :  { %1905 = vmatpush.bf16.msrb.mxu3 %v3443_v29  ;;  %v2700_v29 = vld [vmem:[%s5126_s0 + $0x208] sm:$0xf] }
  0x2c   :  { %1567 = vmatpush.bf16.msrb.mxu1 %v3427_v30  ;;  %2078 = vmatpush.bf16.msrb.mxu0 %v3447_v61  ;;  %v3321_v30 = vld [vmem:[%s5126_s0 + $0x218] sm:$0xf0]  ;;  %v3411_v61 = vld [vmem:[%s5126_s0 + $0x4e8] sm:$0xf0] }
  0x2d   :  { %v2701_v37 = vor.u32 %v3321_v30, %v2700_v29  ;;  %v3263_v29 = vld [vmem:[%s5126_s0 + $0x48] sm:$0xf0] }
  0x2e   :  { %1737 = vmatpush.bf16.msrb.mxu2 %v3434_v43  ;;  %v3422_v43 = vld [vmem:[%s5124_s1 + $0x40] sm:$0xff] }
  0x2f   :  { %1906 = vmatpush.bf16.msrb.mxu3 %v3442_v44  ;;  %v2720_v44 = vld [vmem:[%s5126_s0 + $0x230] sm:$0xf] }
  0x30   :  { %1568 = vmatpush.bf16.msrb.mxu1 %v3426_v45  ;;  %2079 = vmatpush.bf16.msrb.mxu0 %v3446_v28  ;;  %v3326_v45 = vld [vmem:[%s5126_s0 + $0x240] sm:$0xf0]  ;;  %v2476_v28 = vld [vmem:[%s5126_s0 + $0x38] sm:$0xf] }
  0x31   :  { %1449 = vmatmul.bf16.gmra.mxu1 %v2621_v39  ;;  %1489 = vmatmul.bf16.gmra.mxu2 %v2781_v40  ;;  %v3021_v39 = vor.u32 %v3401_v34, %v3020_v33  ;;  %v2541_v40 = vor.u32 %v3281_v36, %v2540_v35  ;;  %v2721_v52 = vor.u32 %v3326_v45, %v2720_v44  ;;  %v2488_v44 = vld [vmem:[%s5126_s0 + $0x58] sm:$0xf]  ;;  %v3267_v45 = vld [vmem:[%s5126_s0 + $0x68] sm:$0xf0] }
  0x32   :  { %1529 = vmatmul.bf16.gmra.mxu3 %v2941_v41  ;;  %1738 = vmatpush.bf16.msrb.mxu2 %v3433_v58  ;;  %v3430_v41 = vld [vmem:[%s5124_s1 + $0x80] sm:$0xff]  ;;  %v2900_v58 = vld [vmem:[%s5126_s0 + $0x398] sm:$0xf]  ;;  %v2477_v36 = vor.u32 %v3263_v29, %v2476_v28  ;;  %v3275_v28 = vld [vmem:[%s5126_s0 + $0xac] sm:$0xf] }
  0x33   :  { %1409 = vmatmul.bf16.gmra.mxu0 %v2461_v42  ;;  %1907 = vmatpush.bf16.msrb.mxu3 %v3441_v59  ;;  %v3438_v42 = vld [vmem:[%s5124_s1 + $0xc0] sm:$0xff]  ;;  %v3371_v59 = vld [vmem:[%s5126_s0 + $0x3a8] sm:$0xf0] }
  0x34   :  { %1569 = vmatpush.bf16.msrb.mxu1 %v3425_v60  ;;  %v3060_v60 = vld [vmem:[%s5126_s0 + $0x4d8] sm:$0xf]  ;;  %v2901_v1 = vor.u32 %v3371_v59, %v2900_v58  ;;  %v2530_v29 = vld [vmem:[%s5126_s0 + $0xbc] sm:$0xf0] }
  0x35   :  { %v3061_v2 = vor.u32 %v3411_v61, %v3060_v60 }
  0x36   :  { %1739 = vmatpush.bf16.msrb.mxu2 %v3432_v10  ;;  %v2456_v10 = vld [vmem:[%s5126_s0 + $0x10] sm:$0xf] }
  0x37   :  { %1908 = vmatpush.bf16.msrb.mxu3 %v3440_v11  ;;  %v3258_v11 = vld [vmem:[%s5126_s0 + $0x20] sm:$0xf0] }
  0x38   :  { %1570 = vmatpush.bf16.msrb.mxu1 %v3424_v12  ;;  %v2445_v12 = vor.u32 %v3254_v4, %v2442_v5  ;;  %v2457_v16 = vor.u32 %v3258_v11, %v2456_v10  ;;  %v2516_v4 = vld [vmem:[%s5126_s0 + $0x88] sm:$0xf]  ;;  %v3273_v5 = vld [vmem:[%s5126_s0 + $0x98] sm:$0xf0] }
  0x3a   :  { %1740 = vmatpush.bf16.msrb.mxu2 %v3431_v25  ;;  %v3262_v25 = vld [vmem:[%s5126_s0 + $0x40] sm:$0xf0] }
  0x3b   :  { %1909 = vmatpush.bf16.msrb.mxu3 %v3439_v26  ;;  %v3260_v26 = vld [vmem:[%s5126_s0 + $0x34] sm:$0xf] }
  0x3c   :  { %1571 = vmatpush.bf16.msrb.mxu1 %v3423_v27  ;;  %v2470_v27 = vld [vmem:[%s5126_s0 + $0x44] sm:$0xf0] }
  0x3d   :  { %v2473_v35 = vor.u32 %v3260_v26, %v2470_v27  ;;  %v2528_v26 = vld [vmem:[%s5126_s0 + $0xa8] sm:$0xf]  ;;  %v3277_v27 = vld [vmem:[%s5126_s0 + $0xb8] sm:$0xf0] }
  0x3e   :  { %1741 = vmatpush.bf16.msrb.mxu2 %v3430_v41 }
  0x3f   :  { %1910 = vmatpush.bf16.msrb.mxu3 %v3438_v42  ;;  %v3264_v42 = vld [vmem:[%s5126_s0 + $0x54] sm:$0xf] }
  0x40   :  { %1572 = vmatpush.bf16.msrb.mxu1 %v3422_v43  ;;  %v2482_v43 = vld [vmem:[%s5126_s0 + $0x64] sm:$0xf0] }
  0x41   :  { %1454 = vmatmul.bf16.gmra.mxu1 %v2641_v54  ;;  %1494 = vmatmul.bf16.gmra.mxu2 %v2801_v55  ;;  %v3041_v54 = vor.u32 %v3406_v49, %v3040_v48  ;;  %v2561_v55 = vor.u32 %v3286_v51, %v2560_v50  ;;  %v2496_v48 = vld [vmem:[%s5126_s0 + $0x60] sm:$0xf]  ;;  %v3268_v49 = vld [vmem:[%s5126_s0 + $0x70] sm:$0xf0] }
  0x42   :  { %1534 = vmatmul.bf16.gmra.mxu3 %v2961_v56  ;;  %v2740_v56 = vld [vmem:[%s5126_s0 + $0x258] sm:$0xf] }
  0x43   :  { %1414 = vmatmul.bf16.gmra.mxu0 %v2481_v57  ;;  %v3331_v57 = vld [vmem:[%s5126_s0 + $0x268] sm:$0xf0] }
  0x44   :  { %v2741_v0 = vor.u32 %v3331_v57, %v2740_v56  ;;  %v2497_v56 = vor.u32 %v3268_v49, %v2496_v48 }
  0x51   :  { %1459 = vmatmul.bf16.gmra.mxu1 %v2661_v6  ;;  %1499 = vmatmul.bf16.gmra.mxu2 %v2821_v7  ;;  %v2448_v6 = vld [vmem:[%s5126_s0 + $0x8] sm:$0xf]  ;;  %v3257_v7 = vld [vmem:[%s5126_s0 + $0x18] sm:$0xf0] }
  0x52   :  { %1539 = vmatmul.bf16.gmra.mxu3 %v2981_v8  ;;  %v3255_v8 = vld [vmem:[%s5126_s0 + $0xc] sm:$0xf]  ;;  %v2449_v13 = vor.u32 %v3257_v7, %v2448_v6 }
  0x53   :  { %1419 = vmatmul.bf16.gmra.mxu0 %v2501_v9  ;;  %v2450_v9 = vld [vmem:[%s5126_s0 + $0x1c] sm:$0xf0] }
  0x54   :  { %v2453_v15 = vor.u32 %v3255_v8, %v2450_v9  ;;  %v2505_v8 = vor.u32 %v3269_v62, %v2502_v63  ;;  %v2548_v62 = vld [vmem:[%s5126_s0 + $0xd0] sm:$0xf]  ;;  %v3282_v63 = vld [vmem:[%s5126_s0 + $0xe0] sm:$0xf0] }
  0x61   :  { %1464 = vmatmul.bf16.gmra.mxu1 %v2681_v21  ;;  %1504 = vmatmul.bf16.gmra.mxu2 %v2841_v22  ;;  %v3259_v22 = vld [vmem:[%s5126_s0 + $0x2c] sm:$0xf] }
  0x62   :  { %1544 = vmatmul.bf16.gmra.mxu3 %v3001_v23  ;;  %v2462_v23 = vld [vmem:[%s5126_s0 + $0x3c] sm:$0xf0] }
  0x63   :  { %1424 = vmatmul.bf16.gmra.mxu0 %v2521_v24  ;;  %v2468_v24 = vld [vmem:[%s5126_s0 + $0x30] sm:$0xf]  ;;  %v2465_v32 = vor.u32 %v3259_v22, %v2462_v23 }
  0x64   :  { %v2469_v33 = vor.u32 %v3262_v25, %v2468_v24  ;;  %v3274_v24 = vld [vmem:[%s5126_s0 + $0xa4] sm:$0xf]  ;;  %v2522_v25 = vld [vmem:[%s5126_s0 + $0xb4] sm:$0xf0] }
  0x71   :  { %1469 = vmatmul.bf16.gmra.mxu1 %v2701_v37  ;;  %1509 = vmatmul.bf16.gmra.mxu2 %v2861_v38 }
  0x72   :  { %1549 = vmatmul.bf16.gmra.mxu3 %v3021_v39 }
  0x73   :  { %1429 = vmatmul.bf16.gmra.mxu0 %v2541_v40 }
  0x81   :  { %1474 = vmatmul.bf16.gmra.mxu1 %v2721_v52  ;;  %1514 = vmatmul.bf16.gmra.mxu2 %v2881_v53  ;;  %v2485_v52 = vor.u32 %v3264_v42, %v2482_v43  ;;  %v2489_v53 = vor.u32 %v3267_v45, %v2488_v44  ;;  %v2525_v42 = vor.u32 %v3274_v24, %v2522_v25 }
  0x82   :  { %1554 = vmatmul.bf16.gmra.mxu3 %v3041_v54  ;;  %v2529_v43 = vor.u32 %v3277_v27, %v2528_v26  ;;  %v2533_v45 = vor.u32 %v3275_v28, %v2530_v29 }
  0x83   :  { %1434 = vmatmul.bf16.gmra.mxu0 %v2561_v55  ;;  %v2493_v55 = vor.u32 %v3265_v46, %v2490_v47 }
  0x91   :  { %1479 = vmatmul.bf16.gmra.mxu1 %v2741_v0  ;;  %1519 = vmatmul.bf16.gmra.mxu2 %v2901_v1  ;;  %v2508_v0 = vld [vmem:[%s5126_s0 + $0x80] sm:$0xf]  ;;  %v3272_v1 = vld [vmem:[%s5126_s0 + $0x90] sm:$0xf0] }
  0x92   :  { %1559 = vmatmul.bf16.gmra.mxu3 %v3061_v2  ;;  %v3270_v2 = vld [vmem:[%s5126_s0 + $0x84] sm:$0xf]  ;;  %v2509_v9 = vor.u32 %v3272_v1, %v2508_v0  ;;  %v3280_v0 = vld [vmem:[%s5126_s0 + $0xd4] sm:$0xf]  ;;  %v2550_v1 = vld [vmem:[%s5126_s0 + $0xe4] sm:$0xf0] }
  0x93   :  { %1439 = vmatmul.bf16.gmra.mxu0 %v2581_v3  ;;  %v2510_v3 = vld [vmem:[%s5126_s0 + $0x94] sm:$0xf0] }
  0x94   :  { %v2513_v11 = vor.u32 %v3270_v2, %v2510_v3  ;;  %v2556_v2 = vld [vmem:[%s5126_s0 + $0xd8] sm:$0xf]  ;;  %v3283_v3 = vld [vmem:[%s5126_s0 + $0xe8] sm:$0xf0] }
  0x95   :  { %v2557_v24 = vor.u32 %v3283_v3, %v2556_v2 }
  0x9e   :  { %v3821_v14 = vpop.f32.mrf.mxu1 }
  0xa0   :  { %v3823_v17 = vpop.f32.mrf.mxu0 }
  0xa1   :  { %1573 = vmatmul.bf16.vlgmr.msrb.gmra.mxu1 %v2445_v12  ;;  %1742 = vmatmul.bf16.vlgmr.msrb.gmra.mxu2 %v2449_v13  ;;  %v2517_v12 = vor.u32 %v3273_v5, %v2516_v4 }
  0xa2   :  { %1911 = vmatmul.bf16.vlgmr.msrb.gmra.mxu3 %v2453_v15 }
  0xa3   :  { %3222 = vmatmul.msk.bf16.vlgmr.msrb.gmra.mxu0 %vm1299_vm0, %v2457_v16 }
  0xa4   :  { %v3826_v18 = vpop.f32.mrf.mxu2 }
  0xa5   :  { %v3828_v19 = vpop.f32.mrf.mxu3 }
  0xa6   :  { %5128 = vst [vmem:[#allocation2_spill] sm:$0xff] %v3828_v19  ;;  %v3830_v20 = vpop.f32.mrf.mxu1 }
  0xa8   :  { %v3832_v21 = vpop.f32.mrf.mxu0 }
  0xac   :  { %v3858_v30 = vpop.f32.mrf.mxu2 }
  0xad   :  { %v3860_v31 = vpop.f32.mrf.mxu3 }
  0xae   :  { %5129 = vst [vmem:[#allocation3_spill] sm:$0xff] %v3860_v31  ;;  %v3862_v34 = vpop.f32.mrf.mxu1  ;;  %v4152_v31 = vld [vmem:[%s5125_s2] ss:$0 sm:$0xff] }
  0xb0   :  { %v3864_v37 = vpop.f32.mrf.mxu0 }
  0xb1   :  { %1578 = vmatmul.bf16.gmra.mxu1 %v2465_v32  ;;  %1747 = vmatmul.bf16.gmra.mxu2 %v2469_v33  ;;  %v2536_v32 = vld [vmem:[%s5126_s0 + $0xb0] sm:$0xf]  ;;  %v3278_v33 = vld [vmem:[%s5126_s0 + $0xc0] sm:$0xf0] }
  0xb2   :  { %1916 = vmatmul.bf16.gmra.mxu3 %v2473_v35  ;;  %v2537_v46 = vor.u32 %v3278_v33, %v2536_v32  ;;  %v3284_v32 = vld [vmem:[%s5126_s0 + $0xf4] sm:$0xf]  ;;  %v2562_v33 = vld [vmem:[%s5126_s0 + $0x104] sm:$0xf0] }
  0xb3   :  { %3223 = vmatmul.msk.bf16.gmra.mxu0 %vm1299_vm0, %v2477_v36 }
  0xb4   :  { %v3867_v38 = vpop.f32.mrf.mxu2 }
  0xb5   :  { %v3869_v39 = vpop.f32.mrf.mxu3 }
  0xb6   :  { %5130 = vst [vmem:[#allocation4_spill] sm:$0xff] %v3869_v39  ;;  %v3871_v40 = vpop.f32.mrf.mxu1 }
  0xb8   :  { %v3873_v41 = vpop.f32.mrf.mxu0 }
  0xbc   :  { %v3899_v50 = vpop.f32.mrf.mxu2 }
  0xbd   :  { %v3901_v51 = vpop.f32.mrf.mxu3 }
  0xbe   :  { %5131 = vst [vmem:[#allocation5_spill] sm:$0xff] %v3901_v51  ;;  %v3903_v54 = vpop.f32.mrf.mxu1 }
  0xc0   :  { %v3905_v57 = vpop.f32.mrf.mxu0 }
  0xc1   :  { %1583 = vmatmul.bf16.gmra.mxu1 %v2485_v52  ;;  %1752 = vmatmul.bf16.gmra.mxu2 %v2489_v53 }
  0xc2   :  { %1921 = vmatmul.bf16.gmra.mxu3 %v2493_v55  ;;  %v3279_v55 = vld [vmem:[%s5126_s0 + $0xcc] sm:$0xf] }
  0xc3   :  { %3224 = vmatmul.msk.bf16.gmra.mxu0 %vm1299_vm0, %v2497_v56  ;;  %v2542_v56 = vld [vmem:[%s5126_s0 + $0xdc] sm:$0xf0] }
  0xc4   :  { %v3908_v58 = vpop.f32.mrf.mxu2 }
  0xc5   :  { %v3910_v59 = vpop.f32.mrf.mxu3 }
  0xc6   :  { %5132 = vst [vmem:[#allocation6_spill] sm:$0xff] %v3910_v59  ;;  %v3912_v60 = vpop.f32.mrf.mxu1 }
  0xc8   :  { %v3914_v61 = vpop.f32.mrf.mxu0 }
  0xcc   :  { %v3940_v6 = vpop.f32.mrf.mxu2 }
  0xcd   :  { %v3942_v7 = vpop.f32.mrf.mxu3 }
  0xce   :  { %5133 = vst [vmem:[#allocation7_spill] sm:$0xff] %v3942_v7  ;;  %v3944_v10 = vpop.f32.mrf.mxu1 }
  0xd0   :  { %v3946_v13 = vpop.f32.mrf.mxu0 }
  0xd1   :  { %1588 = vmatmul.bf16.gmra.mxu1 %v2505_v8  ;;  %1757 = vmatmul.bf16.gmra.mxu2 %v2509_v9  ;;  %v2545_v8 = vor.u32 %v3279_v55, %v2542_v56  ;;  %v2549_v9 = vor.u32 %v3282_v63, %v2548_v62  ;;  %v2576_v55 = vld [vmem:[%s5126_s0 + $0x100] sm:$0xf]  ;;  %v3288_v56 = vld [vmem:[%s5126_s0 + $0x110] sm:$0xf0] }
  0xd2   :  { %1926 = vmatmul.bf16.gmra.mxu3 %v2513_v11 }
  0xd3   :  { %3225 = vmatmul.msk.bf16.gmra.mxu0 %vm1299_vm0, %v2517_v12  ;;  %v2553_v12 = vor.u32 %v3280_v0, %v2550_v1  ;;  %v2565_v0 = vor.u32 %v3284_v32, %v2562_v33  ;;  %v3289_v32 = vld [vmem:[%s5126_s0 + $0x11c] sm:$0xf]  ;;  %v2582_v33 = vld [vmem:[%s5126_s0 + $0x12c] sm:$0xf0] }
  0xd4   :  { %v3949_v15 = vpop.f32.mrf.mxu2 }
  0xd5   :  { %v3951_v16 = vpop.f32.mrf.mxu3 }
  0xd6   :  { %5134 = vst [vmem:[#allocation8_spill] sm:$0xff] %v3951_v16  ;;  %v3953_v22 = vpop.f32.mrf.mxu1 }
  0xd8   :  { %v3955_v23 = vpop.f32.mrf.mxu0 }
  0xdc   :  { %v3981_v35 = vpop.f32.mrf.mxu2 }
  0xdd   :  { %v3983_v36 = vpop.f32.mrf.mxu3 }
  0xde   :  { %5135 = vst [vmem:[#allocation9_spill] sm:$0xff] %v3983_v36  ;;  %v3985_v44 = vpop.f32.mrf.mxu1 }
  0xe0   :  { %v3987_v47 = vpop.f32.mrf.mxu0 }
  0xe1   :  { %1593 = vmatmul.bf16.gmra.mxu1 %v2525_v42  ;;  %1762 = vmatmul.bf16.gmra.mxu2 %v2529_v43  ;;  %v2568_v42 = vld [vmem:[%s5126_s0 + $0xf8] sm:$0xf]  ;;  %v3287_v43 = vld [vmem:[%s5126_s0 + $0x108] sm:$0xf0] }
  0xe2   :  { %1931 = vmatmul.bf16.gmra.mxu3 %v2533_v45  ;;  %v3285_v45 = vld [vmem:[%s5126_s0 + $0xfc] sm:$0xf]  ;;  %v2569_v1 = vor.u32 %v3287_v43, %v2568_v42  ;;  %v2588_v42 = vld [vmem:[%s5126_s0 + $0x120] sm:$0xf]  ;;  %v3292_v43 = vld [vmem:[%s5126_s0 + $0x130] sm:$0xf0] }
  0xe3   :  { %3226 = vmatmul.msk.bf16.gmra.mxu0 %vm1299_vm0, %v2537_v46  ;;  %v2570_v46 = vld [vmem:[%s5126_s0 + $0x10c] sm:$0xf0] }
  0xe4   :  { %v3990_v48 = vpop.f32.mrf.mxu2  ;;  %v2573_v3 = vor.u32 %v3285_v45, %v2570_v46  ;;  %v3290_v45 = vld [vmem:[%s5126_s0 + $0x124] sm:$0xf]  ;;  %v2590_v46 = vld [vmem:[%s5126_s0 + $0x134] sm:$0xf0] }
  0xe5   :  { %v3992_v49 = vpop.f32.mrf.mxu3 }
  0xe6   :  { %5136 = vst [vmem:[#allocation10_spill] sm:$0xff] %v3992_v49  ;;  %v3994_v52 = vpop.f32.mrf.mxu1 }
  0xe8   :  { %v3996_v53 = vpop.f32.mrf.mxu0 }
  0xec   :  { %v4022_v4 = vpop.f32.mrf.mxu2 }
  0xed   :  { %5137 = vst [vmem:[#allocation11_spill] sm:$0xff] %v4022_v4  ;;  %v4024_v5 = vpop.f32.mrf.mxu3 }
  0xee   :  { %5138 = vst [vmem:[#allocation12_spill] sm:$0xff] %v4024_v5  ;;  %v4026_v11 = vpop.f32.mrf.mxu1  ;;  %v2593_v5 = vor.u32 %v3290_v45, %v2590_v46  ;;  %v2616_v45 = vld [vmem:[%s5126_s0 + $0x150] sm:$0xf]  ;;  %v3298_v46 = vld [vmem:[%s5126_s0 + $0x160] sm:$0xf0] }
  0xef   :  { %v2617_v39 = vor.u32 %v3298_v46, %v2616_v45  ;;  %v1408_v45 = vadd.f32 %v4152_v31, %v3832_v21  ;;  %v2630_v21 = vld [vmem:[%s5126_s0 + $0x184] sm:$0xf0] }
  0xf0   :  { %v4028_v25 = vpop.f32.mrf.mxu0 }
  0xf1   :  { %1598 = vmatmul.bf16.gmra.mxu1 %v2545_v8  ;;  %1767 = vmatmul.bf16.gmra.mxu2 %v2549_v9  ;;  %v2577_v8 = vor.u32 %v3288_v56, %v2576_v55  ;;  %v2596_v55 = vld [vmem:[%s5126_s0 + $0x128] sm:$0xf]  ;;  %v3293_v56 = vld [vmem:[%s5126_s0 + $0x138] sm:$0xf0] }
  0xf2   :  { %1936 = vmatmul.bf16.gmra.mxu3 %v2553_v12  ;;  %v2597_v49 = vor.u32 %v3293_v56, %v2596_v55 }
  0xf3   :  { %3227 = vmatmul.msk.bf16.gmra.mxu0 %vm1299_vm0, %v2557_v24 }
  0xf4   :  { %v4031_v26 = vpop.f32.mrf.mxu2 }
  0xf5   :  { %5139 = vst [vmem:[#allocation13_spill] sm:$0xff] %v4031_v26  ;;  %v4033_v27 = vpop.f32.mrf.mxu3 }
  0xf6   :  { %5140 = vst [vmem:[#allocation14_spill] sm:$0xff] %v4033_v27  ;;  %v4035_v28 = vpop.f32.mrf.mxu1 }
  0xf8   :  { %v4037_v29 = vpop.f32.mrf.mxu0 }
  0xfc   :  { %v4063_v62 = vpop.f32.mrf.mxu2 }
  0xfd   :  { %5141 = vst [vmem:[#allocation15_spill] sm:$0xff] %v4063_v62  ;;  %v4065_v63 = vpop.f32.mrf.mxu3 }
  0xfe   :  { %5142 = vst [vmem:[#allocation16_spill] sm:$0xff] %v4065_v63  ;;  %v4067_v2 = vpop.f32.mrf.mxu1 }
 0x100   :  { %v4069_v9 = vpop.f32.mrf.mxu0 }
 0x101   :  { %1603 = vmatmul.bf16.gmra.mxu1 %v2565_v0  ;;  %1772 = vmatmul.bf16.gmra.mxu2 %v2569_v1 }
 0x102   :  { %1941 = vmatmul.bf16.gmra.mxu3 %v2573_v3  ;;  %v2585_v3 = vor.u32 %v3289_v32, %v2582_v33  ;;  %v3294_v32 = vld [vmem:[%s5126_s0 + $0x144] sm:$0xf]  ;;  %v2602_v33 = vld [vmem:[%s5126_s0 + $0x154] sm:$0xf0] }
 0x103   :  { %3228 = vmatmul.msk.bf16.gmra.mxu0 %vm1299_vm0, %v2577_v8  ;;  %v2589_v8 = vor.u32 %v3292_v43, %v2588_v42  ;;  %v3295_v42 = vld [vmem:[%s5126_s0 + $0x14c] sm:$0xf]  ;;  %v2610_v43 = vld [vmem:[%s5126_s0 + $0x15c] sm:$0xf0] }
 0x104   :  { %v4072_v12 = vpop.f32.mrf.mxu2  ;;  %v2613_v51 = vor.u32 %v3295_v42, %v2610_v43 }
 0x105   :  { %5143 = vst [vmem:[#allocation17_spill] sm:$0xff] %v4072_v12  ;;  %v4074_v24 = vpop.f32.mrf.mxu3 }
 0x106   :  { %5144 = vst [vmem:[#allocation18_spill] sm:$0xff] %v4074_v24  ;;  %v4076_v27 = vpop.f32.mrf.mxu1 }
 0x108   :  { %v4078_v63 = vpop.f32.mrf.mxu0 }
 0x10c   :  { %v4104_v0 = vpop.f32.mrf.mxu2 }
 0x10d   :  { %5145 = vst [vmem:[#allocation19_spill] sm:$0xff] %v4104_v0  ;;  %v4106_v1 = vpop.f32.mrf.mxu3 }
 0x10e   :  { %5146 = vst [vmem:[#allocation20_spill] sm:$0xff] %v4106_v1  ;;  %v4108_v24 = vpop.f32.mrf.mxu1 }
 0x110   :  { %v4110_v36 = vpop.f32.mrf.mxu0 }
 0x111   :  { %1608 = vmatmul.bf16.gmra.mxu1 %v2585_v3  ;;  %1777 = vmatmul.bf16.gmra.mxu2 %v2589_v8  ;;  %v2605_v3 = vor.u32 %v3294_v32, %v2602_v33 }
 0x112   :  { %1946 = vmatmul.bf16.gmra.mxu3 %v2593_v5  ;;  %v3297_v5 = vld [vmem:[%s5126_s0 + $0x158] sm:$0xf0] }
 0x113   :  { %3229 = vmatmul.msk.bf16.gmra.mxu0 %vm1299_vm0, %v2597_v49  ;;  %v2608_v49 = vld [vmem:[%s5126_s0 + $0x148] sm:$0xf] }
 0x114   :  { %v4113_v16 = vpop.f32.mrf.mxu2  ;;  %v2609_v8 = vor.u32 %v3297_v5, %v2608_v49 }
 0x115   :  { %5147 = vst [vmem:[#allocation21_spill] sm:$0xff] %v4113_v16  ;;  %v4115_v7 = vpop.f32.mrf.mxu3  ;;  %v1406_v16 = vadd.f32 %v4152_v31, %v3823_v17  ;;  %v3299_v17 = vld [vmem:[%s5126_s0 + $0x16c] sm:$0xf] }
 0x116   :  { %5148 = vst [vmem:[#allocation22_spill] sm:$0xff] %v4115_v7  ;;  %v4117_v59 = vpop.f32.mrf.mxu1 }
 0x118   :  { %v4119_v1 = vpop.f32.mrf.mxu0 }
 0x11c   :  { %v4145_v55 = vpop.f32.mrf.mxu2 }
 0x11d   :  { %5149 = vst [vmem:[#allocation23_spill] sm:$0xff] %v4145_v55  ;;  %v4147_v56 = vpop.f32.mrf.mxu3 }
 0x11e   :  { %5150 = vst [vmem:[#allocation24_spill] sm:$0xff] %v4147_v56  ;;  %v1574_v7 = vpop.f32.mrf.mxu1 }
 0x11f   :  { %v1575_v56 = vadd.f32 %v1574_v7, %v1406_v16  ;;  %v3302_v7 = vld [vmem:[%s5126_s0 + $0x180] sm:$0xf0] }
 0x120   :  { %v2081_v19 = vpop.f32.mrf.mxu0 }
 0x121   :  { %1613 = vmatmul.bf16.gmra.mxu1 %v2605_v3  ;;  %1782 = vmatmul.bf16.gmra.mxu2 %v2609_v8  ;;  %v2636_v3 = vld [vmem:[%s5126_s0 + $0x178] sm:$0xf]  ;;  %v3303_v8 = vld [vmem:[%s5126_s0 + $0x188] sm:$0xf0] }
 0x122   :  { %1951 = vmatmul.bf16.gmra.mxu3 %v2613_v51  ;;  %v2622_v51 = vld [vmem:[%s5126_s0 + $0x17c] sm:$0xf0]  ;;  %v2637_v26 = vor.u32 %v3303_v8, %v2636_v3 }
 0x123   :  { %3230 = vmatmul.msk.bf16.gmra.mxu0 %vm1299_vm0, %v2617_v39  ;;  %v2628_v39 = vld [vmem:[%s5126_s0 + $0x170] sm:$0xf]  ;;  %v2625_v55 = vor.u32 %v3299_v17, %v2622_v51 }
 0x124   :  { %v1743_v32 = vpop.f32.mrf.mxu2  ;;  %v2629_v0 = vor.u32 %v3302_v7, %v2628_v39 }
 0x125   :  { %v1744_v33 = vadd.f32 %v1743_v32, %v1575_v56  ;;  %v1912_v49 = vpop.f32.mrf.mxu3 }
 0x126   :  { %v1576_v5 = vpop.f32.mrf.mxu1 }
 0x127   :  { %v1913_v42 = vadd.f32 %v1912_v49, %v1744_v33  ;;  %v1577_v56 = vadd.f32 %v1576_v5, %v1408_v45 }
 0x128   :  { %v2083_v43 = vpop.f32.mrf.mxu0 }
 0x129   :  { %v2082_v46 = vadd.f32 %v2081_v19, %v1913_v42  ;;  %v3300_v19 = vld [vmem:[%s5126_s0 + $0x174] sm:$0xf] }
 0x12a   :  { %v2633_v62 = vor.u32 %v3300_v19, %v2630_v21 }
 0x12b   :  { %v2241_v16 = vmax.f32 %v2082_v46, 0.0  ;;  %v1411_v46 = vadd.f32 %v4152_v31, %v3864_v37 }
 0x12c   :  { %v1745_v32 = vpop.f32.mrf.mxu2 }
 0x12d   :  { %v2305_v33 = vpack.c.bf16 %v2241_v16, %v2241_v16  ;;  %v1746_v49 = vadd.f32 %v1745_v32, %v1577_v56  ;;  %v1914_v42 = vpop.f32.mrf.mxu3  ;;  %v2656_v32 = vld [vmem:[%s5126_s0 + $0x1a0] sm:$0xf] }
 0x12e   :  { %v1579_v12 = vpop.f32.mrf.mxu1 }
 0x12f   :  { %2370 = vst.msk [vmem:[%s5127_s3] sm:$0xf] %vm2369_vm1, %v2305_v33  ;;  %v1915_v5 = vadd.f32 %v1914_v42, %v1746_v49  ;;  %v1580_v51 = vadd.f32 %v1579_v12, %v1411_v46  ;;  %v2648_v12 = vld [vmem:[%s5126_s0 + $0x198] sm:$0xf]  ;;  %v3308_v33 = vld [vmem:[%s5126_s0 + $0x1b0] sm:$0xf0] }
 0x130   :  { %v2086_v45 = vpop.f32.mrf.mxu0 }
 0x131   :  { %v2084_v4 = vadd.f32 %v2083_v43, %v1915_v5  ;;  %1618 = vmatmul.bf16.gmra.mxu1 %v2625_v55  ;;  %1787 = vmatmul.bf16.gmra.mxu2 %v2629_v0  ;;  %v1413_v0 = vadd.f32 %v4152_v31, %v3873_v41  ;;  %v3307_v55 = vld [vmem:[%s5126_s0 + $0x1a8] sm:$0xf0]  ;;  %v3305_v41 = vld [vmem:[%s5126_s0 + $0x19c] sm:$0xf]  ;;  %v2650_v43 = vld [vmem:[%s5126_s0 + $0x1ac] sm:$0xf0] }
 0x132   :  { %1956 = vmatmul.bf16.gmra.mxu3 %v2633_v62 }
 0x133   :  { %3231 = vmatmul.msk.bf16.gmra.mxu0 %vm1299_vm0, %v2637_v26  ;;  %v2242_v17 = vmax.f32 %v2084_v4, 0.0  ;;  %v3304_v4 = vld [vmem:[%s5126_s0 + $0x194] sm:$0xf]  ;;  %v2642_v26 = vld [vmem:[%s5126_s0 + $0x1a4] sm:$0xf0] }
 0x134   :  { %v1748_v39 = vpop.f32.mrf.mxu2  ;;  %v2645_v46 = vor.u32 %v3304_v4, %v2642_v26 }
 0x135   :  { %v2306_v7 = vpack.c.bf16 %v2242_v17, %v2242_v17  ;;  %v1749_v19 = vadd.f32 %v1748_v39, %v1580_v51  ;;  %v1917_v21 = vpop.f32.mrf.mxu3  ;;  %v2649_v17 = vor.u32 %v3307_v55, %v2648_v12  ;;  %v2653_v39 = vor.u32 %v3305_v41, %v2650_v43 }
 0x136   :  { %v1581_v16 = vpop.f32.mrf.mxu1 }
 0x137   :  { %2371 = vst.msk [vmem:[%s5127_s3 + $0x4] sm:$0xf] %vm2369_vm1, %v2306_v7  ;;  %v1918_v56 = vadd.f32 %v1917_v21, %v1749_v19  ;;  %v1582_v8 = vadd.f32 %v1581_v16, %v1413_v0  ;;  %v2657_v7 = vor.u32 %v3308_v33, %v2656_v32  ;;  %v1416_v16 = vadd.f32 %v4152_v31, %v3905_v57  ;;  %v2662_v32 = vld [vmem:[%s5126_s0 + $0x1cc] sm:$0xf0]  ;;  %v2668_v33 = vld [vmem:[%s5126_s0 + $0x1c0] sm:$0xf] }
 0x138   :  { %v2088_v37 = vpop.f32.mrf.mxu0 }
 0x139   :  { %v2087_v62 = vadd.f32 %v2086_v45, %v1918_v56 }
 0x13b   :  { %v2243_v3 = vmax.f32 %v2087_v62, 0.0 }
 0x13c   :  { %v1750_v49 = vpop.f32.mrf.mxu2 }
 0x13d   :  { %v2307_v42 = vpack.c.bf16 %v2243_v3, %v2243_v3  ;;  %v1751_v5 = vadd.f32 %v1750_v49, %v1582_v8  ;;  %v1919_v45 = vpop.f32.mrf.mxu3  ;;  %v3309_v8 = vld [vmem:[%s5126_s0 + $0x1bc] sm:$0xf]  ;;  %v3312_v49 = vld [vmem:[%s5126_s0 + $0x1d0] sm:$0xf0] }
 0x13e   :  { %v1584_v51 = vpop.f32.mrf.mxu1 }
 0x13f   :  { %2372 = vst.msk [vmem:[%s5127_s3 + $0x8] sm:$0xf] %vm2369_vm1, %v2307_v42  ;;  %v1920_v19 = vadd.f32 %v1919_v45, %v1751_v5  ;;  %v1585_v62 = vadd.f32 %v1584_v51, %v1416_v16  ;;  %v2670_v42 = vld [vmem:[%s5126_s0 + $0x1d4] sm:$0xf0]  ;;  %v2669_v16 = vor.u32 %v3312_v49, %v2668_v33 }
 0x140   :  { %v2091_v21 = vpop.f32.mrf.mxu0 }
 0x141   :  { %v2089_v56 = vadd.f32 %v2088_v37, %v1920_v19  ;;  %1623 = vmatmul.bf16.gmra.mxu1 %v2645_v46  ;;  %1792 = vmatmul.bf16.gmra.mxu2 %v2649_v17  ;;  %v1418_v37 = vadd.f32 %v4152_v31, %v3914_v61  ;;  %v3310_v61 = vld [vmem:[%s5126_s0 + $0x1c4] sm:$0xf]  ;;  %v2676_v46 = vld [vmem:[%s5126_s0 + $0x1c8] sm:$0xf]  ;;  %v3313_v17 = vld [vmem:[%s5126_s0 + $0x1d8] sm:$0xf0] }
 0x142   :  { %1961 = vmatmul.bf16.gmra.mxu3 %v2653_v39 }
 0x143   :  { %3232 = vmatmul.msk.bf16.gmra.mxu0 %vm1299_vm0, %v2657_v7  ;;  %v2244_v0 = vmax.f32 %v2089_v56, 0.0 }
 0x144   :  { %v1753_v4 = vpop.f32.mrf.mxu2 }
 0x145   :  { %v2308_v26 = vpack.c.bf16 %v2244_v0, %v2244_v0  ;;  %v1754_v12 = vadd.f32 %v1753_v4, %v1585_v62  ;;  %v1922_v55 = vpop.f32.mrf.mxu3  ;;  %v2673_v0 = vor.u32 %v3310_v61, %v2670_v42  ;;  %v2677_v62 = vor.u32 %v3313_v17, %v2676_v46  ;;  %v3314_v42 = vld [vmem:[%s5126_s0 + $0x1e4] sm:$0xf]  ;;  %v3317_v46 = vld [vmem:[%s5126_s0 + $0x1f8] sm:$0xf0]  ;;  %v2690_v17 = vld [vmem:[%s5126_s0 + $0x1fc] sm:$0xf0] }
 0x146   :  { %v1586_v41 = vpop.f32.mrf.mxu1 }
 0x147   :  { %2373 = vst.msk [vmem:[%s5127_s3 + $0xc] sm:$0xf] %vm2369_vm1, %v2308_v26  ;;  %v1923_v43 = vadd.f32 %v1922_v55, %v1754_v12  ;;  %v1587_v45 = vadd.f32 %v1586_v41, %v1418_v37  ;;  %v1421_v12 = vadd.f32 %v4152_v31, %v3946_v13 }
 0x148   :  { %v2093_v57 = vpop.f32.mrf.mxu0 }
 0x149   :  { %v2092_v3 = vadd.f32 %v2091_v21, %v1923_v43  ;;  %v2665_v21 = vor.u32 %v3309_v8, %v2662_v32 }
 0x14b   :  { %v2245_v5 = vmax.f32 %v2092_v3, 0.0 }
 0x14c   :  { %v1755_v51 = vpop.f32.mrf.mxu2 }
 0x14d   :  { %v2309_v39 = vpack.c.bf16 %v2245_v5, %v2245_v5  ;;  %v1756_v7 = vadd.f32 %v1755_v51, %v1587_v45  ;;  %v1924_v19 = vpop.f32.mrf.mxu3  ;;  %v2682_v5 = vld [vmem:[%s5126_s0 + $0x1f4] sm:$0xf0]  ;;  %v2688_v45 = vld [vmem:[%s5126_s0 + $0x1e8] sm:$0xf] }
 0x14e   :  { %v1589_v56 = vpop.f32.mrf.mxu1 }
 0x14f   :  { %2374 = vst.msk [vmem:[%s5127_s3 + $0x10] sm:$0xf] %vm2369_vm1, %v2309_v39  ;;  %v1925_v4 = vadd.f32 %v1924_v19, %v1756_v7  ;;  %v1590_v43 = vadd.f32 %v1589_v56, %v1421_v12  ;;  %v2696_v7 = vld [vmem:[%s5126_s0 + $0x1f0] sm:$0xf]  ;;  %v3318_v19 = vld [vmem:[%s5126_s0 + $0x200] sm:$0xf0] }
 0x150   :  { %v2096_v26 = vpop.f32.mrf.mxu0 }
 0x151   :  { %v2094_v55 = vadd.f32 %v2093_v57, %v1925_v4  ;;  %1628 = vmatmul.bf16.gmra.mxu1 %v2665_v21  ;;  %1797 = vmatmul.bf16.gmra.mxu2 %v2669_v16  ;;  %v1423_v57 = vadd.f32 %v4152_v31, %v3955_v23  ;;  %v3315_v23 = vld [vmem:[%s5126_s0 + $0x1ec] sm:$0xf]  ;;  %v2689_v4 = vor.u32 %v3317_v46, %v2688_v45 }
 0x152   :  { %1966 = vmatmul.bf16.gmra.mxu3 %v2673_v0  ;;  %v2693_v12 = vor.u32 %v3315_v23, %v2690_v17  ;;  %v3319_v46 = vld [vmem:[%s5126_s0 + $0x20c] sm:$0xf]  ;;  %v2702_v23 = vld [vmem:[%s5126_s0 + $0x21c] sm:$0xf0]  ;;  %v2708_v17 = vld [vmem:[%s5126_s0 + $0x210] sm:$0xf] }
 0x153   :  { %3233 = vmatmul.msk.bf16.gmra.mxu0 %vm1299_vm0, %v2677_v62  ;;  %v2246_v41 = vmax.f32 %v2094_v55, 0.0  ;;  %v2685_v62 = vor.u32 %v3314_v42, %v2682_v5  ;;  %v2697_v55 = vor.u32 %v3318_v19, %v2696_v7 }
 0x154   :  { %v1758_v37 = vpop.f32.mrf.mxu2 }
 0x155   :  { %v2310_v3 = vpack.c.bf16 %v2246_v41, %v2246_v41  ;;  %v1759_v8 = vadd.f32 %v1758_v37, %v1590_v43  ;;  %v1927_v32 = vpop.f32.mrf.mxu3  ;;  %v1426_v37 = vadd.f32 %v4152_v31, %v3987_v47 }
 0x156   :  { %v1591_v33 = vpop.f32.mrf.mxu1 }
 0x157   :  { %2375 = vst.msk [vmem:[%s5127_s3 + $0x14] sm:$0xf] %vm2369_vm1, %v2310_v3  ;;  %v1928_v49 = vadd.f32 %v1927_v32, %v1759_v8  ;;  %v1592_v39 = vadd.f32 %v1591_v33, %v1423_v57 }
 0x158   :  { %v2098_v13 = vpop.f32.mrf.mxu0 }
 0x159   :  { %v2097_v61 = vadd.f32 %v2096_v26, %v1928_v49 }
 0x15b   :  { %v2247_v51 = vmax.f32 %v2097_v61, 0.0 }
 0x15c   :  { %v1760_v21 = vpop.f32.mrf.mxu2 }
 0x15d   :  { %v2311_v16 = vpack.c.bf16 %v2247_v51, %v2247_v51  ;;  %v1761_v56 = vadd.f32 %v1760_v21, %v1592_v39  ;;  %v1929_v0 = vpop.f32.mrf.mxu3  ;;  %v3322_v51 = vld [vmem:[%s5126_s0 + $0x220] sm:$0xf0]  ;;  %v2710_v39 = vld [vmem:[%s5126_s0 + $0x224] sm:$0xf0]  ;;  %v2716_v21 = vld [vmem:[%s5126_s0 + $0x218] sm:$0xf] }
 0x15e   :  { %v1594_v26 = vpop.f32.mrf.mxu1 }
 0x15f   :  { %2376 = vst.msk [vmem:[%s5127_s3 + $0x18] sm:$0xf] %vm2369_vm1, %v2311_v16  ;;  %v1930_v41 = vadd.f32 %v1929_v0, %v1761_v56  ;;  %v1595_v32 = vadd.f32 %v1594_v26, %v1426_v37  ;;  %v3323_v16 = vld [vmem:[%s5126_s0 + $0x228] sm:$0xf0]  ;;  %v2705_v26 = vor.u32 %v3319_v46, %v2702_v23  ;;  %v3324_v23 = vld [vmem:[%s5126_s0 + $0x234] sm:$0xf] }
 0x160   :  { %v2101_v43 = vpop.f32.mrf.mxu0 }
 0x161   :  { %v2099_v3 = vadd.f32 %v2098_v13, %v1930_v41  ;;  %1633 = vmatmul.bf16.gmra.mxu1 %v2685_v62  ;;  %1802 = vmatmul.bf16.gmra.mxu2 %v2689_v4  ;;  %v1428_v13 = vadd.f32 %v4152_v31, %v3996_v53  ;;  %v3320_v53 = vld [vmem:[%s5126_s0 + $0x214] sm:$0xf] }
 0x162   :  { %1971 = vmatmul.bf16.gmra.mxu3 %v2693_v12  ;;  %v2709_v12 = vor.u32 %v3322_v51, %v2708_v17  ;;  %v2713_v41 = vor.u32 %v3320_v53, %v2710_v39  ;;  %v2722_v17 = vld [vmem:[%s5126_s0 + $0x244] sm:$0xf0]  ;;  %v2728_v51 = vld [vmem:[%s5126_s0 + $0x238] sm:$0xf]  ;;  %v3327_v53 = vld [vmem:[%s5126_s0 + $0x248] sm:$0xf0] }
 0x163   :  { %3234 = vmatmul.msk.bf16.gmra.mxu0 %vm1299_vm0, %v2697_v55  ;;  %v2248_v8 = vmax.f32 %v2099_v3, 0.0  ;;  %v2730_v39 = vld [vmem:[%s5126_s0 + $0x24c] sm:$0xf0] }
 0x164   :  { %v1763_v33 = vpop.f32.mrf.mxu2 }
 0x165   :  { %v2312_v49 = vpack.c.bf16 %v2248_v8, %v2248_v8  ;;  %v1764_v57 = vadd.f32 %v1763_v33, %v1595_v32  ;;  %v1932_v61 = vpop.f32.mrf.mxu3  ;;  %v1431_v8 = vadd.f32 %v4152_v31, %v4028_v25 }
 0x166   :  { %v1596_v42 = vpop.f32.mrf.mxu1 }
 0x167   :  { %2377 = vst.msk [vmem:[%s5127_s3 + $0x1c] sm:$0xf] %vm2369_vm1, %v2312_v49  ;;  %v1933_v5 = vadd.f32 %v1932_v61, %v1764_v57  ;;  %v1597_v19 = vadd.f32 %v1596_v42, %v1428_v13 }
 0x168   :  { %v2103_v47 = vpop.f32.mrf.mxu0 }
 0x169   :  { %v2102_v45 = vadd.f32 %v2101_v43, %v1933_v5  ;;  %v2717_v43 = vor.u32 %v3323_v16, %v2716_v21  ;;  %v2736_v21 = vld [vmem:[%s5126_s0 + $0x240] sm:$0xf]  ;;  %v3328_v16 = vld [vmem:[%s5126_s0 + $0x250] sm:$0xf0] }
 0x16b   :  { %v2249_v7 = vmax.f32 %v2102_v45, 0.0 }
 0x16c   :  { %v1765_v56 = vpop.f32.mrf.mxu2 }
 0x16d   :  { %v2313_v0 = vpack.c.bf16 %v2249_v7, %v2249_v7  ;;  %v1766_v62 = vadd.f32 %v1765_v56, %v1597_v19  ;;  %v1934_v4 = vpop.f32.mrf.mxu3 }
 0x16e   :  { %v1599_v55 = vpop.f32.mrf.mxu1 }
 0x16f   :  { %2378 = vst.msk [vmem:[%s5127_s3 + $0x20] sm:$0xf] %vm2369_vm1, %v2313_v0  ;;  %v1935_v37 = vadd.f32 %v1934_v4, %v1766_v62  ;;  %v1600_v49 = vadd.f32 %v1599_v55, %v1431_v8  ;;  %v1436_v8 = vadd.f32 %v4152_v31, %v4069_v9 }
 0x170   :  { %v2106_v3 = vpop.f32.mrf.mxu0 }
 0x171   :  { %v2104_v32 = vadd.f32 %v2103_v47, %v1935_v37  ;;  %1638 = vmatmul.bf16.gmra.mxu1 %v2705_v26  ;;  %1807 = vmatmul.bf16.gmra.mxu2 %v2709_v12  ;;  %v1433_v47 = vadd.f32 %v4152_v31, %v4037_v29  ;;  %v3325_v29 = vld [vmem:[%s5126_s0 + $0x23c] sm:$0xf]  ;;  %v2725_v26 = vor.u32 %v3324_v23, %v2722_v17  ;;  %v2742_v23 = vld [vmem:[%s5126_s0 + $0x26c] sm:$0xf0]  ;;  %v2748_v17 = vld [vmem:[%s5126_s0 + $0x260] sm:$0xf] }
 0x172   :  { %1976 = vmatmul.bf16.gmra.mxu3 %v2713_v41  ;;  %v2729_v12 = vor.u32 %v3327_v53, %v2728_v51  ;;  %v2733_v41 = vor.u32 %v3325_v29, %v2730_v39  ;;  %v3332_v51 = vld [vmem:[%s5126_s0 + $0x270] sm:$0xf0]  ;;  %v2750_v53 = vld [vmem:[%s5126_s0 + $0x274] sm:$0xf0] }
 0x173   :  { %3235 = vmatmul.msk.bf16.gmra.mxu0 %vm1299_vm0, %v2717_v43  ;;  %v2250_v33 = vmax.f32 %v2104_v32, 0.0  ;;  %v2737_v43 = vor.u32 %v3328_v16, %v2736_v21 }
 0x174   :  { %v1768_v57 = vpop.f32.mrf.mxu2 }
 0x175   :  { %v2314_v61 = vpack.c.bf16 %v2250_v33, %v2250_v33  ;;  %v1769_v42 = vadd.f32 %v1768_v57, %v1600_v49  ;;  %v1937_v5 = vpop.f32.mrf.mxu3 }
 0x176   :  { %v1601_v13 = vpop.f32.mrf.mxu1 }
 0x177   :  { %2379 = vst.msk [vmem:[%s5127_s3 + $0x24] sm:$0xf] %vm2369_vm1, %v2314_v61  ;;  %v1938_v45 = vadd.f32 %v1937_v5, %v1769_v42  ;;  %v1602_v19 = vadd.f32 %v1601_v13, %v1433_v47 }
 0x178   :  { %v2108_v25 = vpop.f32.mrf.mxu0 }
 0x179   :  { %v2107_v46 = vadd.f32 %v2106_v3, %v1938_v45 }
 0x17b   :  { %v2251_v7 = vmax.f32 %v2107_v46, 0.0  ;;  %v3329_v46 = vld [vmem:[%s5126_s0 + $0x25c] sm:$0xf] }
 0x17c   :  { %v1770_v56 = vpop.f32.mrf.mxu2 }
 0x17d   :  { %v2315_v0 = vpack.c.bf16 %v2251_v7, %v2251_v7  ;;  %v1771_v62 = vadd.f32 %v1770_v56, %v1602_v19  ;;  %v1939_v4 = vpop.f32.mrf.mxu3  ;;  %v2756_v7 = vld [vmem:[%s5126_s0 + $0x268] sm:$0xf]  ;;  %v3333_v19 = vld [vmem:[%s5126_s0 + $0x278] sm:$0xf0] }
 0x17e   :  { %v1604_v55 = vpop.f32.mrf.mxu1 }
 0x17f   :  { %2380 = vst.msk [vmem:[%s5127_s3 + $0x28] sm:$0xf] %vm2369_vm1, %v2315_v0  ;;  %v1940_v37 = vadd.f32 %v1939_v4, %v1771_v62  ;;  %v1605_v49 = vadd.f32 %v1604_v55, %v1436_v8  ;;  %v2745_v62 = vor.u32 %v3329_v46, %v2742_v23  ;;  %v2749_v4 = vor.u32 %v3332_v51, %v2748_v17  ;;  %v3337_v46 = vld [vmem:[%s5126_s0 + $0x298] sm:$0xf0]  ;;  %v2770_v23 = vld [vmem:[%s5126_s0 + $0x29c] sm:$0xf0] }
 0x180   :  { %v2111_v3 = vpop.f32.mrf.mxu0  ;;  %v2757_v55 = vor.u32 %v3333_v19, %v2756_v7 }
 0x181   :  { %v2109_v32 = vadd.f32 %v2108_v25, %v1940_v37  ;;  %1643 = vmatmul.bf16.gmra.mxu1 %v2725_v26  ;;  %1812 = vmatmul.bf16.gmra.mxu2 %v2729_v12  ;;  %v1438_v25 = vadd.f32 %v4152_v31, %v4078_v63  ;;  %v3330_v63 = vld [vmem:[%s5126_s0 + $0x264] sm:$0xf]  ;;  %v1441_v37 = vadd.f32 %v4152_v31, %v4110_v36 }
 0x182   :  { %1981 = vmatmul.bf16.gmra.mxu3 %v2733_v41  ;;  %v2753_v12 = vor.u32 %v3330_v63, %v2750_v53  ;;  %v2776_v63 = vld [vmem:[%s5126_s0 + $0x290] sm:$0xf]  ;;  %v3338_v53 = vld [vmem:[%s5126_s0 + $0x2a0] sm:$0xf0] }
 0x183   :  { %3236 = vmatmul.msk.bf16.gmra.mxu0 %vm1299_vm0, %v2737_v43  ;;  %v2252_v33 = vmax.f32 %v2109_v32, 0.0 }
 0x184   :  { %v1773_v57 = vpop.f32.mrf.mxu2 }
 0x185   :  { %v2316_v61 = vpack.c.bf16 %v2252_v33, %v2252_v33  ;;  %v1774_v42 = vadd.f32 %v1773_v57, %v1605_v49  ;;  %v1942_v5 = vpop.f32.mrf.mxu3 }
 0x186   :  { %v1606_v13 = vpop.f32.mrf.mxu1 }
 0x187   :  { %2381 = vst.msk [vmem:[%s5127_s3 + $0x2c] sm:$0xf] %vm2369_vm1, %v2316_v61  ;;  %v1943_v45 = vadd.f32 %v1942_v5, %v1774_v42  ;;  %v1607_v39 = vadd.f32 %v1606_v13, %v1438_v25  ;;  %v1443_v13 = vadd.f32 %v4152_v31, %v4119_v1  ;;  %v2762_v25 = vld [vmem:[%s5126_s0 + $0x294] sm:$0xf0]  ;;  %v3335_v1 = vld [vmem:[%s5126_s0 + $0x28c] sm:$0xf] }
 0x188   :  { %v2113_v9 = vpop.f32.mrf.mxu0 }
 0x189   :  { %v2112_v47 = vadd.f32 %v2111_v3, %v1943_v45 }
 0x18b   :  { %v2253_v29 = vmax.f32 %v2112_v47, 0.0  ;;  %v2768_v47 = vld [vmem:[%s5126_s0 + $0x288] sm:$0xf] }
 0x18c   :  { %v1775_v21 = vpop.f32.mrf.mxu2 }
 0x18d   :  { %v2317_v16 = vpack.c.bf16 %v2253_v29, %v2253_v29  ;;  %v1776_v56 = vadd.f32 %v1775_v21, %v1607_v39  ;;  %v1944_v0 = vpop.f32.mrf.mxu3 }
 0x18e   :  { %v1609_v26 = vpop.f32.mrf.mxu1 }
 0x18f   :  { %2382 = vst.msk [vmem:[%s5127_s3 + $0x30] sm:$0xf] %vm2369_vm1, %v2317_v16  ;;  %v1945_v41 = vadd.f32 %v1944_v0, %v1776_v56  ;;  %v1610_v32 = vadd.f32 %v1609_v26, %v1441_v37  ;;  %v2769_v16 = vor.u32 %v3337_v46, %v2768_v47  ;;  %v2773_v0 = vor.u32 %v3335_v1, %v2770_v23  ;;  %v2796_v47 = vld [vmem:[%s5126_s0 + $0x2b8] sm:$0xf]  ;;  %v3343_v46 = vld [vmem:[%s5126_s0 + $0x2c8] sm:$0xf0] }
 0x190   :  { %v2116_v43 = vpop.f32.mrf.mxu0 }
 0x191   :  { %v2114_v3 = vadd.f32 %v2113_v9, %v1945_v41  ;;  %1648 = vmatmul.bf16.gmra.mxu1 %v2745_v62  ;;  %1817 = vmatmul.bf16.gmra.mxu2 %v2749_v4  ;;  %v3334_v9 = vld [vmem:[%s5126_s0 + $0x284] sm:$0xf]  ;;  %v2777_v62 = vor.u32 %v3338_v53, %v2776_v63 }
 0x192   :  { %1986 = vmatmul.bf16.gmra.mxu3 %v2753_v12  ;;  %v2765_v21 = vor.u32 %v3334_v9, %v2762_v25  ;;  %v1446_v12 = vadd.f32 %v4152_v31, %v3821_v14 }
 0x193   :  { %3237 = vmatmul.msk.bf16.gmra.mxu0 %vm1299_vm0, %v2757_v55  ;;  %v2254_v8 = vmax.f32 %v2114_v3, 0.0 }
 0x194   :  { %v1778_v33 = vpop.f32.mrf.mxu2 }
 0x195   :  { %v2318_v49 = vpack.c.bf16 %v2254_v8, %v2254_v8  ;;  %v1779_v57 = vadd.f32 %v1778_v33, %v1610_v32  ;;  %v1947_v61 = vpop.f32.mrf.mxu3 }
 0x196   :  { %v1611_v42 = vpop.f32.mrf.mxu1 }
 0x197   :  { %2383 = vst.msk [vmem:[%s5127_s3 + $0x34] sm:$0xf] %vm2369_vm1, %v2318_v49  ;;  %v1948_v5 = vadd.f32 %v1947_v61, %v1779_v57  ;;  %v1612_v51 = vadd.f32 %v1611_v42, %v1443_v13  ;;  %v1448_v57 = vadd.f32 %v4152_v31, %v3830_v20  ;;  %v3339_v42 = vld [vmem:[%s5126_s0 + $0x2ac] sm:$0xf]  ;;  %v3342_v13 = vld [vmem:[%s5126_s0 + $0x2c0] sm:$0xf0] }
 0x198   :  { %v2118_v36 = vpop.f32.mrf.mxu0  ;;  %v3340_v20 = vld [vmem:[%s5126_s0 + $0x2b4] sm:$0xf] }
 0x199   :  { %v2117_v45 = vadd.f32 %v2116_v43, %v1948_v5  ;;  %v2782_v5 = vld [vmem:[%s5126_s0 + $0x2bc] sm:$0xf0] }
 0x19a   :  { %v2785_v63 = vor.u32 %v3339_v42, %v2782_v5  ;;  %v2816_v42 = vld [vmem:[%s5126_s0 + $0x2e0] sm:$0xf]  ;;  %v3348_v5 = vld [vmem:[%s5126_s0 + $0x2f0] sm:$0xf0] }
 0x19b   :  { %v2255_v17 = vmax.f32 %v2117_v45, 0.0  ;;  %v2790_v45 = vld [vmem:[%s5126_s0 + $0x2c4] sm:$0xf0] }
 0x19c   :  { %v1780_v29 = vpop.f32.mrf.mxu2 }
 0x19d   :  { %v2319_v39 = vpack.c.bf16 %v2255_v17, %v2255_v17  ;;  %v1781_v7 = vadd.f32 %v1780_v29, %v1612_v51  ;;  %v1949_v19 = vpop.f32.mrf.mxu3 }
 0x19e   :  { %v1614_v56 = vpop.f32.mrf.mxu1 }
 0x19f   :  { %2384 = vst.msk [vmem:[%s5127_s3 + $0x38] sm:$0xf] %vm2369_vm1, %v2319_v39  ;;  %v1950_v4 = vadd.f32 %v1949_v19, %v1781_v7  ;;  %v1615_v43 = vadd.f32 %v1614_v56, %v1446_v12  ;;  %v2793_v39 = vor.u32 %v3340_v20, %v2790_v45  ;;  %v2797_v7 = vor.u32 %v3343_v46, %v2796_v47 }
 0x1a0   :  { %v2121_v26 = vpop.f32.mrf.mxu0 }
 0x1a1   :  { %v2119_v55 = vadd.f32 %v2118_v36, %v1950_v4  ;;  %1653 = vmatmul.bf16.gmra.mxu1 %v2765_v21  ;;  %1822 = vmatmul.bf16.gmra.mxu2 %v2769_v16  ;;  %v2788_v36 = vld [vmem:[%s5126_s0 + $0x2b0] sm:$0xf]  ;;  %v1451_v16 = vadd.f32 %v4152_v31, %v3862_v34 }
 0x1a2   :  { %1991 = vmatmul.bf16.gmra.mxu3 %v2773_v0  ;;  %v2789_v53 = vor.u32 %v3342_v13, %v2788_v36 }
 0x1a3   :  { %3238 = vmatmul.msk.bf16.gmra.mxu0 %vm1299_vm0, %v2777_v62  ;;  %v2256_v41 = vmax.f32 %v2119_v55, 0.0 }
 0x1a4   :  { %v1783_v37 = vpop.f32.mrf.mxu2 }
 0x1a5   :  { %v2320_v3 = vpack.c.bf16 %v2256_v41, %v2256_v41  ;;  %v1784_v8 = vadd.f32 %v1783_v37, %v1615_v43  ;;  %v1952_v32 = vpop.f32.mrf.mxu3  ;;  %v1453_v37 = vadd.f32 %v4152_v31, %v3871_v40  ;;  %v3345_v40 = vld [vmem:[%s5126_s0 + $0x2dc] sm:$0xf] }
 0x1a6   :  { %v1616_v33 = vpop.f32.mrf.mxu1 }
 0x1a7   :  { %2385 = vst.msk [vmem:[%s5127_s3 + $0x3c] sm:$0xf] %vm2369_vm1, %v2320_v3  ;;  %v1953_v49 = vadd.f32 %v1952_v32, %v1784_v8  ;;  %v1617_v25 = vadd.f32 %v1616_v33, %v1448_v57  ;;  %v3344_v8 = vld [vmem:[%s5126_s0 + $0x2d4] sm:$0xf]  ;;  %v2802_v32 = vld [vmem:[%s5126_s0 + $0x2e4] sm:$0xf0] }
 0x1a8   :  { %v2123_v14 = vpop.f32.mrf.mxu0  ;;  %v2808_v33 = vld [vmem:[%s5126_s0 + $0x2d8] sm:$0xf] }
 0x1a9   :  { %v2122_v61 = vadd.f32 %v2121_v26, %v1953_v49  ;;  %v3347_v49 = vld [vmem:[%s5126_s0 + $0x2e8] sm:$0xf0] }
 0x1ab   :  { %v2257_v9 = vmax.f32 %v2122_v61, 0.0 }
 0x1ac   :  { %v1785_v1 = vpop.f32.mrf.mxu2 }
 0x1ad   :  { %v2321_v23 = vpack.c.bf16 %v2257_v9, %v2257_v9  ;;  %v1786_v17 = vadd.f32 %v1785_v1, %v1617_v25  ;;  %v1954_v51 = vpop.f32.mrf.mxu3  ;;  %v2805_v9 = vor.u32 %v3344_v8, %v2802_v32  ;;  %v2809_v25 = vor.u32 %v3347_v49, %v2808_v33 }
 0x1ae   :  { %v1619_v29 = vpop.f32.mrf.mxu1  ;;  %v2817_v1 = vor.u32 %v3348_v5, %v2816_v42 }
 0x1af   :  { %2386 = vst.msk [vmem:[%s5127_s3 + $0x40] sm:$0xf] %vm2369_vm1, %v2321_v23  ;;  %v1955_v19 = vadd.f32 %v1954_v51, %v1786_v17  ;;  %v1620_v62 = vadd.f32 %v1619_v29, %v1451_v16  ;;  %v1456_v51 = vadd.f32 %v4152_v31, %v3903_v54 }
 0x1b0   :  { %v2126_v21 = vpop.f32.mrf.mxu0 }
 0x1b1   :  { %v2124_v56 = vadd.f32 %v2123_v14, %v1955_v19  ;;  %1658 = vmatmul.bf16.gmra.mxu1 %v2785_v63  ;;  %1827 = vmatmul.bf16.gmra.mxu2 %v2789_v53  ;;  %v2810_v14 = vld [vmem:[%s5126_s0 + $0x2ec] sm:$0xf0] }
 0x1b2   :  { %1996 = vmatmul.bf16.gmra.mxu3 %v2793_v39  ;;  %v2813_v46 = vor.u32 %v3345_v40, %v2810_v14 }
 0x1b3   :  { %3239 = vmatmul.msk.bf16.gmra.mxu0 %vm1299_vm0, %v2797_v7  ;;  %v2258_v0 = vmax.f32 %v2124_v56, 0.0 }
 0x1b4   :  { %v1788_v4 = vpop.f32.mrf.mxu2 }
 0x1b5   :  { %v2322_v26 = vpack.c.bf16 %v2258_v0, %v2258_v0  ;;  %v1789_v12 = vadd.f32 %v1788_v4, %v1620_v62  ;;  %v1957_v55 = vpop.f32.mrf.mxu3  ;;  %v1458_v0 = vadd.f32 %v4152_v31, %v3912_v60  ;;  %v3349_v4 = vld [vmem:[%s5126_s0 + $0x2fc] sm:$0xf]  ;;  %v3350_v60 = vld [vmem:[%s5126_s0 + $0x304] sm:$0xf] }
 0x1b6   :  { %v1621_v41 = vpop.f32.mrf.mxu1 }
 0x1b7   :  { %2387 = vst.msk [vmem:[%s5127_s3 + $0x44] sm:$0xf] %vm2369_vm1, %v2322_v26  ;;  %v1958_v43 = vadd.f32 %v1957_v55, %v1789_v12  ;;  %v1622_v61 = vadd.f32 %v1621_v41, %v1453_v37  ;;  %v2822_v26 = vld [vmem:[%s5126_s0 + $0x30c] sm:$0xf0]  ;;  %v2828_v12 = vld [vmem:[%s5126_s0 + $0x300] sm:$0xf] }
 0x1b8   :  { %v2128_v34 = vpop.f32.mrf.mxu0  ;;  %v3352_v55 = vld [vmem:[%s5126_s0 + $0x310] sm:$0xf0]  ;;  %v2830_v41 = vld [vmem:[%s5126_s0 + $0x314] sm:$0xf0]  ;;  %v2836_v37 = vld [vmem:[%s5126_s0 + $0x308] sm:$0xf]  ;;  %v2825_v40 = vor.u32 %v3349_v4, %v2822_v26 }
 0x1b9   :  { %v2127_v3 = vadd.f32 %v2126_v21, %v1958_v43  ;;  %v2829_v14 = vor.u32 %v3352_v55, %v2828_v12 }
 0x1bb   :  { %v2259_v57 = vmax.f32 %v2127_v3, 0.0  ;;  %v3353_v3 = vld [vmem:[%s5126_s0 + $0x318] sm:$0xf0] }
 0x1bc   :  { %v1790_v36 = vpop.f32.mrf.mxu2  ;;  %v2837_v42 = vor.u32 %v3353_v3, %v2836_v37  ;;  %v1466_v3 = vadd.f32 %v4152_v31, %v3985_v44 }
 0x1bd   :  { %v2323_v13 = vpack.c.bf16 %v2259_v57, %v2259_v57  ;;  %v1791_v20 = vadd.f32 %v1790_v36, %v1622_v61  ;;  %v1959_v45 = vpop.f32.mrf.mxu3  ;;  %v2833_v61 = vor.u32 %v3350_v60, %v2830_v41 }
 0x1be   :  { %v1624_v47 = vpop.f32.mrf.mxu1 }
 0x1bf   :  { %2388 = vst.msk [vmem:[%s5127_s3 + $0x48] sm:$0xf] %vm2369_vm1, %v2323_v13  ;;  %v1960_v23 = vadd.f32 %v1959_v45, %v1791_v20  ;;  %v1625_v29 = vadd.f32 %v1624_v47, %v1456_v51  ;;  %v1461_v13 = vadd.f32 %v4152_v31, %v3944_v10  ;;  %v1463_v51 = vadd.f32 %v4152_v31, %v3953_v22  ;;  %v3355_v22 = vld [vmem:[%s5126_s0 + $0x32c] sm:$0xf] }
 0x1c0   :  { %v2131_v17 = vpop.f32.mrf.mxu0 }
 0x1c1   :  { %v2129_v63 = vadd.f32 %v2128_v34, %v1960_v23  ;;  %1663 = vmatmul.bf16.gmra.mxu1 %v2805_v9  ;;  %1832 = vmatmul.bf16.gmra.mxu2 %v2809_v25 }
 0x1c2   :  { %2001 = vmatmul.bf16.gmra.mxu3 %v2813_v46 }
 0x1c3   :  { %3240 = vmatmul.msk.bf16.gmra.mxu0 %vm1299_vm0, %v2817_v1  ;;  %v2260_v53 = vmax.f32 %v2129_v63, 0.0 }
 0x1c4   :  { %v1793_v39 = vpop.f32.mrf.mxu2 }
 0x1c5   :  { %v2324_v7 = vpack.c.bf16 %v2260_v53, %v2260_v53  ;;  %v1794_v19 = vadd.f32 %v1793_v39, %v1625_v29  ;;  %v1962_v21 = vpop.f32.mrf.mxu3  ;;  %v3354_v53 = vld [vmem:[%s5126_s0 + $0x324] sm:$0xf]  ;;  %v2842_v29 = vld [vmem:[%s5126_s0 + $0x334] sm:$0xf0]  ;;  %v2848_v39 = vld [vmem:[%s5126_s0 + $0x328] sm:$0xf] }
 0x1c6   :  { %v1626_v16 = vpop.f32.mrf.mxu1  ;;  %v2845_v12 = vor.u32 %v3354_v53, %v2842_v29 }
 0x1c7   :  { %2389 = vst.msk [vmem:[%s5127_s3 + $0x4c] sm:$0xf] %vm2369_vm1, %v2324_v7  ;;  %v1963_v56 = vadd.f32 %v1962_v21, %v1794_v19  ;;  %v1627_v34 = vadd.f32 %v1626_v16, %v1458_v0  ;;  %v3357_v7 = vld [vmem:[%s5126_s0 + $0x338] sm:$0xf0]  ;;  %v2850_v19 = vld [vmem:[%s5126_s0 + $0x33c] sm:$0xf0] }
 0x1c8   :  { %v2133_v54 = vpop.f32.mrf.mxu0  ;;  %v2849_v55 = vor.u32 %v3357_v7, %v2848_v39  ;;  %v2853_v41 = vor.u32 %v3355_v22, %v2850_v19 }
 0x1c9   :  { %v2132_v62 = vadd.f32 %v2131_v17, %v1963_v56  ;;  %v2856_v56 = vld [vmem:[%s5126_s0 + $0x330] sm:$0xf] }
 0x1cb   :  { %v2261_v43 = vmax.f32 %v2132_v62, 0.0 }
 0x1cc   :  { %v1795_v8 = vpop.f32.mrf.mxu2 }
 0x1cd   :  { %v2325_v32 = vpack.c.bf16 %v2261_v43, %v2261_v43  ;;  %v1796_v33 = vadd.f32 %v1795_v8, %v1627_v34  ;;  %v1964_v49 = vpop.f32.mrf.mxu3 }
 0x1ce   :  { %v1629_v57 = vpop.f32.mrf.mxu1 }
 0x1cf   :  { %2390 = vst.msk [vmem:[%s5127_s3 + $0x50] sm:$0xf] %vm2369_vm1, %v2325_v32  ;;  %v1965_v5 = vadd.f32 %v1964_v49, %v1796_v33  ;;  %v1630_v9 = vadd.f32 %v1629_v57, %v1461_v13  ;;  %v3359_v13 = vld [vmem:[%s5126_s0 + $0x34c] sm:$0xf] }
 0x1d0   :  { %v2136_v36 = vpop.f32.mrf.mxu0 }
 0x1d1   :  { %v2134_v20 = vadd.f32 %v2133_v54, %v1965_v5  ;;  %1668 = vmatmul.bf16.gmra.mxu1 %v2825_v40  ;;  %1837 = vmatmul.bf16.gmra.mxu2 %v2829_v14  ;;  %v3358_v54 = vld [vmem:[%s5126_s0 + $0x340] sm:$0xf0]  ;;  %v1468_v5 = vadd.f32 %v4152_v31, %v3994_v52  ;;  %v3360_v31 = vld [vmem:[%s5126_s0 + $0x354] sm:$0xf]  ;;  %v2870_v52 = vld [vmem:[%s5126_s0 + $0x364] sm:$0xf0] }
 0x1d2   :  { %2006 = vmatmul.bf16.gmra.mxu3 %v2833_v61  ;;  %v2857_v43 = vor.u32 %v3358_v54, %v2856_v56  ;;  %v2873_v39 = vor.u32 %v3360_v31, %v2870_v52 }
 0x1d3   :  { %3241 = vmatmul.msk.bf16.gmra.mxu0 %vm1299_vm0, %v2837_v42  ;;  %v2262_v45 = vmax.f32 %v2134_v20, 0.0  ;;  %v2862_v20 = vld [vmem:[%s5126_s0 + $0x35c] sm:$0xf0] }
 0x1d4   :  { %v1798_v25 = vpop.f32.mrf.mxu2 }
 0x1d5   :  { %v2326_v47 = vpack.c.bf16 %v2262_v45, %v2262_v45  ;;  %v1799_v46 = vadd.f32 %v1798_v25, %v1630_v9  ;;  %v1967_v1 = vpop.f32.mrf.mxu3  ;;  %v2868_v45 = vld [vmem:[%s5126_s0 + $0x350] sm:$0xf]  ;;  %v3362_v9 = vld [vmem:[%s5126_s0 + $0x360] sm:$0xf0] }
 0x1d6   :  { %v1631_v23 = vpop.f32.mrf.mxu1  ;;  %v2869_v53 = vor.u32 %v3362_v9, %v2868_v45 }
 0x1d7   :  { %2391 = vst.msk [vmem:[%s5127_s3 + $0x54] sm:$0xf] %vm2369_vm1, %v2326_v47  ;;  %v1968_v17 = vadd.f32 %v1967_v1, %v1799_v46  ;;  %v1632_v16 = vadd.f32 %v1631_v23, %v1463_v51  ;;  %v2876_v46 = vld [vmem:[%s5126_s0 + $0x358] sm:$0xf]  ;;  %v3363_v1 = vld [vmem:[%s5126_s0 + $0x368] sm:$0xf0] }
 0x1d8   :  { %v2138_v10 = vpop.f32.mrf.mxu0  ;;  %v2877_v7 = vor.u32 %v3363_v1, %v2876_v46 }
 0x1d9   :  { %v2137_v63 = vadd.f32 %v2136_v36, %v1968_v17 }
 0x1db   :  { %v2263_v21 = vmax.f32 %v2137_v63, 0.0  ;;  %v2865_v63 = vor.u32 %v3359_v13, %v2862_v20 }
 0x1dc   :  { %v1800_v0 = vpop.f32.mrf.mxu2 }
 0x1dd   :  { %v2327_v62 = vpack.c.bf16 %v2263_v21, %v2263_v21  ;;  %v1801_v4 = vadd.f32 %v1800_v0, %v1632_v16  ;;  %v1969_v26 = vpop.f32.mrf.mxu3  ;;  %v4634_v21 = vld [vmem:[%s5125_s2] ss:$0 sm:$0xff] }
 0x1de   :  { %v1634_v60 = vpop.f32.mrf.mxu1  ;;  %v1471_v16 = vadd.f32 %v4634_v21, %v4026_v11  ;;  %v1476_v52 = vadd.f32 %v4634_v21, %v4067_v2 }
 0x1df   :  { %2392 = vst.msk [vmem:[%s5127_s3 + $0x58] sm:$0xf] %vm2369_vm1, %v2327_v62  ;;  %v1970_v34 = vadd.f32 %v1969_v26, %v1801_v4  ;;  %v1635_v33 = vadd.f32 %v1634_v60, %v1466_v3  ;;  %v2888_v3 = vld [vmem:[%s5126_s0 + $0x378] sm:$0xf] }
 0x1e0   :  { %v2141_v37 = vpop.f32.mrf.mxu0 }
 0x1e1   :  { %v2139_v8 = vadd.f32 %v2138_v10, %v1970_v34  ;;  %1673 = vmatmul.bf16.gmra.mxu1 %v2845_v12  ;;  %1842 = vmatmul.bf16.gmra.mxu2 %v2849_v55  ;;  %v3364_v34 = vld [vmem:[%s5126_s0 + $0x374] sm:$0xf] }
 0x1e2   :  { %2011 = vmatmul.bf16.gmra.mxu3 %v2853_v41  ;;  %v1473_v41 = vadd.f32 %v4634_v21, %v4035_v28  ;;  %v3365_v28 = vld [vmem:[%s5126_s0 + $0x37c] sm:$0xf] }
 0x1e3   :  { %3242 = vmatmul.msk.bf16.gmra.mxu0 %vm1299_vm0, %v2857_v43  ;;  %v2264_v32 = vmax.f32 %v2139_v8, 0.0  ;;  %v3367_v8 = vld [vmem:[%s5126_s0 + $0x388] sm:$0xf0] }
 0x1e4   :  { %v1803_v49 = vpop.f32.mrf.mxu2 }
 0x1e5   :  { %v2328_v40 = vpack.c.bf16 %v2264_v32, %v2264_v32  ;;  %v1804_v14 = vadd.f32 %v1803_v49, %v1635_v33  ;;  %v1972_v57 = vpop.f32.mrf.mxu3  ;;  %v2890_v32 = vld [vmem:[%s5126_s0 + $0x38c] sm:$0xf0] }
 0x1e6   :  { %v1636_v61 = vpop.f32.mrf.mxu1  ;;  %v2893_v20 = vor.u32 %v3365_v28, %v2890_v32 }
 0x1e7   :  { %2393 = vst.msk [vmem:[%s5127_s3 + $0x5c] sm:$0xf] %vm2369_vm1, %v2328_v40  ;;  %v1973_v42 = vadd.f32 %v1972_v57, %v1804_v14  ;;  %v1637_v47 = vadd.f32 %v1636_v61, %v1468_v5  ;;  %v2896_v40 = vld [vmem:[%s5126_s0 + $0x380] sm:$0xf]  ;;  %v3368_v14 = vld [vmem:[%s5126_s0 + $0x390] sm:$0xf0] }
 0x1e8   :  { %v2143_v44 = vpop.f32.mrf.mxu0  ;;  %v2897_v45 = vor.u32 %v3368_v14, %v2896_v40 }
 0x1e9   :  { %v2142_v36 = vadd.f32 %v2141_v37, %v1973_v42  ;;  %v2882_v37 = vld [vmem:[%s5126_s0 + $0x384] sm:$0xf0] }
 0x1ea   :  { %v2885_v5 = vor.u32 %v3364_v34, %v2882_v37 }
 0x1eb   :  { %v2265_v25 = vmax.f32 %v2142_v36, 0.0  ;;  %v2889_v36 = vor.u32 %v3367_v8, %v2888_v3  ;;  %v1481_v8 = vadd.f32 %v4634_v21, %v4108_v24 }
 0x1ec   :  { %v1805_v23 = vpop.f32.mrf.mxu2 }
 0x1ed   :  { %v2329_v17 = vpack.c.bf16 %v2265_v25, %v2265_v25  ;;  %v1806_v10 = vadd.f32 %v1805_v23, %v1637_v47  ;;  %v1974_v51 = vpop.f32.mrf.mxu3 }
 0x1ee   :  { %v1639_v29 = vpop.f32.mrf.mxu1 }
 0x1ef   :  { %2394 = vst.msk [vmem:[%s5127_s3 + $0x60] sm:$0xf] %vm2369_vm1, %v2329_v17  ;;  %v1975_v22 = vadd.f32 %v1974_v51, %v1806_v10  ;;  %v1640_v0 = vadd.f32 %v1639_v29, %v1471_v16  ;;  %v2910_v16 = vld [vmem:[%s5126_s0 + $0x3b4] sm:$0xf0] }
 0x1f0   :  { %v2146_v19 = vpop.f32.mrf.mxu0 }
 0x1f1   :  { %v2144_v56 = vadd.f32 %v2143_v44, %v1975_v22  ;;  %1678 = vmatmul.bf16.gmra.mxu1 %v2865_v63  ;;  %1847 = vmatmul.bf16.gmra.mxu2 %v2869_v53  ;;  %v1478_v53 = vadd.f32 %v4634_v21, %v4076_v27  ;;  %v2908_v22 = vld [vmem:[%s5126_s0 + $0x3a0] sm:$0xf]  ;;  %v3370_v27 = vld [vmem:[%s5126_s0 + $0x3a4] sm:$0xf] }
 0x1f2   :  { %2016 = vmatmul.bf16.gmra.mxu3 %v2873_v39  ;;  %v3369_v39 = vld [vmem:[%s5126_s0 + $0x39c] sm:$0xf] }
 0x1f3   :  { %3243 = vmatmul.msk.bf16.gmra.mxu0 %vm1299_vm0, %v2877_v7  ;;  %v2266_v54 = vmax.f32 %v2144_v56, 0.0  ;;  %v2902_v7 = vld [vmem:[%s5126_s0 + $0x3ac] sm:$0xf0] }
 0x1f4   :  { %v1808_v62 = vpop.f32.mrf.mxu2 }
 0x1f5   :  { %v2330_v4 = vpack.c.bf16 %v2266_v54, %v2266_v54  ;;  %v1809_v26 = vadd.f32 %v1808_v62, %v1640_v0  ;;  %v1977_v12 = vpop.f32.mrf.mxu3  ;;  %v2916_v0 = vld [vmem:[%s5126_s0 + $0x3a8] sm:$0xf]  ;;  %v3373_v62 = vld [vmem:[%s5126_s0 + $0x3b8] sm:$0xf0] }
 0x1f6   :  { %v1641_v55 = vpop.f32.mrf.mxu1  ;;  %v2917_v34 = vor.u32 %v3373_v62, %v2916_v0 }
 0x1f7   :  { %2395 = vst.msk [vmem:[%s5127_s3 + $0x64] sm:$0xf] %vm2369_vm1, %v2330_v4  ;;  %v1978_v60 = vadd.f32 %v1977_v12, %v1809_v26  ;;  %v1642_v49 = vadd.f32 %v1641_v55, %v1473_v41 }
 0x1f8   :  { %v2148_v11 = vpop.f32.mrf.mxu0 }
 0x1f9   :  { %v2147_v43 = vadd.f32 %v2146_v19, %v1978_v60  ;;  %v3372_v19 = vld [vmem:[%s5126_s0 + $0x3b0] sm:$0xf0]  ;;  %v2905_v60 = vor.u32 %v3369_v39, %v2902_v7  ;;  %v1486_v7 = vadd.f32 %v4634_v21, %v3826_v18 }
 0x1fb   :  { %v2267_v33 = vmax.f32 %v2147_v43, 0.0  ;;  %v2913_v43 = vor.u32 %v3370_v27, %v2910_v16 }
 0x1fc   :  { %v1810_v57 = vpop.f32.mrf.mxu2 }
 0x1fd   :  { %v2331_v61 = vpack.c.bf16 %v2267_v33, %v2267_v33  ;;  %v1811_v42 = vadd.f32 %v1810_v57, %v1642_v49  ;;  %v1979_v44 = vpop.f32.mrf.mxu3 }
 0x1fe   :  { %v1644_v13 = vpop.f32.mrf.mxu1 }
 0x1ff   :  { %2396 = vst.msk [vmem:[%s5127_s3 + $0x68] sm:$0xf] %vm2369_vm1, %v2331_v61  ;;  %v1980_v9 = vadd.f32 %v1979_v44, %v1811_v42  ;;  %v1645_v46 = vadd.f32 %v1644_v13, %v1476_v52  ;;  %v1483_v44 = vadd.f32 %v4634_v21, %v4117_v59  ;;  %v2922_v13 = vld [vmem:[%s5126_s0 + $0x3d4] sm:$0xf0]  ;;  %v3375_v59 = vld [vmem:[%s5126_s0 + $0x3cc] sm:$0xf] }
 0x200   :  { %v2151_v31 = vpop.f32.mrf.mxu0 }
 0x201   :  { %v2149_v25 = vadd.f32 %v2148_v11, %v1980_v9  ;;  %1683 = vmatmul.bf16.gmra.mxu1 %v2885_v5  ;;  %1852 = vmatmul.bf16.gmra.mxu2 %v2889_v36  ;;  %v2909_v11 = vor.u32 %v3372_v19, %v2908_v22  ;;  %v3374_v36 = vld [vmem:[%s5126_s0 + $0x3c4] sm:$0xf]  ;;  %v2930_v9 = vld [vmem:[%s5126_s0 + $0x3dc] sm:$0xf0] }
 0x202   :  { %2021 = vmatmul.bf16.gmra.mxu3 %v2893_v20  ;;  %v2928_v20 = vld [vmem:[%s5126_s0 + $0x3c8] sm:$0xf] }
 0x203   :  { %3244 = vmatmul.msk.bf16.gmra.mxu0 %vm1299_vm0, %v2897_v45  ;;  %v2268_v47 = vmax.f32 %v2149_v25, 0.0  ;;  %v3377_v45 = vld [vmem:[%s5126_s0 + $0x3d8] sm:$0xf0]  ;;  %v2936_v25 = vld [vmem:[%s5126_s0 + $0x3d0] sm:$0xf] }
 0x204   :  { %v1813_v1 = vpop.f32.mrf.mxu2 }
 0x205   :  { %v2332_v23 = vpack.c.bf16 %v2268_v47, %v2268_v47  ;;  %v1814_v17 = vadd.f32 %v1813_v1, %v1645_v46  ;;  %v1982_v10 = vpop.f32.mrf.mxu3  ;;  %v3378_v47 = vld [vmem:[%s5126_s0 + $0x3e0] sm:$0xf0] }
 0x206   :  { %v1646_v51 = vpop.f32.mrf.mxu1 }
 0x207   :  { %2397 = vst.msk [vmem:[%s5127_s3 + $0x6c] sm:$0xf] %vm2369_vm1, %v2332_v23  ;;  %v1983_v63 = vadd.f32 %v1982_v10, %v1814_v17  ;;  %v1647_v54 = vadd.f32 %v1646_v51, %v1478_v53  ;;  %v2925_v10 = vor.u32 %v3374_v36, %v2922_v13  ;;  %v2929_v51 = vor.u32 %v3377_v45, %v2928_v20 }
 0x208   :  { %v2153_v2 = vpop.f32.mrf.mxu0  ;;  %v2937_v53 = vor.u32 %v3378_v47, %v2936_v25  ;;  %v1493_v47 = vadd.f32 %v4634_v21, %v3899_v50  ;;  %v3385_v50 = vld [vmem:[%s5126_s0 + $0x41c] sm:$0xf] }
 0x209   :  { %v2152_v29 = vadd.f32 %v2151_v31, %v1983_v63 }
 0x20b   :  { %v2269_v56 = vmax.f32 %v2152_v29, 0.0 }
 0x20c   :  { %v1815_v4 = vpop.f32.mrf.mxu2 }
 0x20d   :  { %v2333_v26 = vpack.c.bf16 %v2269_v56, %v2269_v56  ;;  %v1816_v12 = vadd.f32 %v1815_v4, %v1647_v54  ;;  %v1984_v55 = vpop.f32.mrf.mxu3 }
 0x20e   :  { %v1649_v41 = vpop.f32.mrf.mxu1 }
 0x20f   :  { %2398 = vst.msk [vmem:[%s5127_s3 + $0x70] sm:$0xf] %vm2369_vm1, %v2333_v26  ;;  %v1985_v37 = vadd.f32 %v1984_v55, %v1816_v12  ;;  %v1650_v33 = vadd.f32 %v1649_v41, %v1481_v8  ;;  %v1488_v26 = vadd.f32 %v4634_v21, %v3858_v30  ;;  %v3379_v55 = vld [vmem:[%s5126_s0 + $0x3ec] sm:$0xf]  ;;  %v3382_v41 = vld [vmem:[%s5126_s0 + $0x400] sm:$0xf0] }
 0x210   :  { %v2156_v3 = vpop.f32.mrf.mxu0  ;;  %v3380_v30 = vld [vmem:[%s5126_s0 + $0x3f4] sm:$0xf]  ;;  %v3383_v8 = vld [vmem:[%s5126_s0 + $0x408] sm:$0xf0] }
 0x211   :  { %v2154_v28 = vadd.f32 %v2153_v2, %v1985_v37  ;;  %1688 = vmatmul.bf16.gmra.mxu1 %v2905_v60  ;;  %1857 = vmatmul.bf16.gmra.mxu2 %v2909_v11  ;;  %v2933_v2 = vor.u32 %v3375_v59, %v2930_v9  ;;  %v2942_v60 = vld [vmem:[%s5126_s0 + $0x3fc] sm:$0xf0]  ;;  %v2948_v11 = vld [vmem:[%s5126_s0 + $0x3f0] sm:$0xf] }
 0x212   :  { %2026 = vmatmul.bf16.gmra.mxu3 %v2913_v43  ;;  %v2950_v43 = vld [vmem:[%s5126_s0 + $0x404] sm:$0xf0] }
 0x213   :  { %3245 = vmatmul.msk.bf16.gmra.mxu0 %vm1299_vm0, %v2917_v34  ;;  %v2270_v32 = vmax.f32 %v2154_v28, 0.0 }
 0x214   :  { %v1818_v49 = vpop.f32.mrf.mxu2 }
 0x215   :  { %v2334_v40 = vpack.c.bf16 %v2270_v32, %v2270_v32  ;;  %v1819_v14 = vadd.f32 %v1818_v49, %v1650_v33  ;;  %v1987_v57 = vpop.f32.mrf.mxu3 }
 0x216   :  { %v1651_v61 = vpop.f32.mrf.mxu1 }
 0x217   :  { %2399 = vst.msk [vmem:[%s5127_s3 + $0x74] sm:$0xf] %vm2369_vm1, %v2334_v40  ;;  %v1988_v42 = vadd.f32 %v1987_v57, %v1819_v14  ;;  %v1652_v52 = vadd.f32 %v1651_v61, %v1483_v44  ;;  %v2945_v40 = vor.u32 %v3379_v55, %v2942_v60  ;;  %v2949_v14 = vor.u32 %v3382_v41, %v2948_v11 }
 0x218   :  { %v2158_v24 = vpop.f32.mrf.mxu0  ;;  %v2953_v61 = vor.u32 %v3380_v30, %v2950_v43 }
 0x219   :  { %v2157_v5 = vadd.f32 %v2156_v3, %v1988_v42  ;;  %v2956_v3 = vld [vmem:[%s5126_s0 + $0x3f8] sm:$0xf] }
 0x21a   :  { %v2957_v42 = vor.u32 %v3383_v8, %v2956_v3  ;;  %v3389_v8 = vld [vmem:[%s5126_s0 + $0x43c] sm:$0xf] }
 0x21b   :  { %v2271_v31 = vmax.f32 %v2157_v5, 0.0  ;;  %v1491_v5 = vadd.f32 %v4634_v21, %v3867_v38 }
 0x21c   :  { %v1820_v46 = vpop.f32.mrf.mxu2 }
 0x21d   :  { %v2335_v1 = vpack.c.bf16 %v2271_v31, %v2271_v31  ;;  %v1821_v23 = vadd.f32 %v1820_v46, %v1652_v52  ;;  %v1989_v17 = vpop.f32.mrf.mxu3 }
 0x21e   :  { %v1654_v63 = vpop.f32.mrf.mxu1 }
 0x21f   :  { %2400 = vst.msk [vmem:[%s5127_s3 + $0x78] sm:$0xf] %vm2369_vm1, %v2335_v1  ;;  %v1990_v29 = vadd.f32 %v1989_v17, %v1821_v23  ;;  %v1655_v27 = vadd.f32 %v1654_v63, %v1486_v7  ;;  %v3384_v1 = vld [vmem:[%s5126_s0 + $0x414] sm:$0xf]  ;;  %v2962_v23 = vld [vmem:[%s5126_s0 + $0x424] sm:$0xf0] }
 0x220   :  { %v2161_v39 = vpop.f32.mrf.mxu0  ;;  %v2968_v17 = vld [vmem:[%s5126_s0 + $0x418] sm:$0xf] }
 0x221   :  { %v2159_v22 = vadd.f32 %v2158_v24, %v1990_v29  ;;  %1693 = vmatmul.bf16.gmra.mxu1 %v2925_v10  ;;  %1862 = vmatmul.bf16.gmra.mxu2 %v2929_v51  ;;  %v3387_v10 = vld [vmem:[%s5126_s0 + $0x428] sm:$0xf0]  ;;  %v2970_v51 = vld [vmem:[%s5126_s0 + $0x42c] sm:$0xf0]  ;;  %v3388_v29 = vld [vmem:[%s5126_s0 + $0x430] sm:$0xf0] }
 0x222   :  { %2031 = vmatmul.bf16.gmra.mxu3 %v2933_v2 }
 0x223   :  { %3246 = vmatmul.msk.bf16.gmra.mxu0 %vm1299_vm0, %v2937_v53  ;;  %v2272_v19 = vmax.f32 %v2159_v22, 0.0  ;;  %v2976_v53 = vld [vmem:[%s5126_s0 + $0x420] sm:$0xf] }
 0x224   :  { %v1823_v16 = vpop.f32.mrf.mxu2 }
 0x225   :  { %v2336_v56 = vpack.c.bf16 %v2272_v19, %v2272_v19  ;;  %v1824_v54 = vadd.f32 %v1823_v16, %v1655_v27  ;;  %v1992_v0 = vpop.f32.mrf.mxu3  ;;  %v2965_v27 = vor.u32 %v3384_v1, %v2962_v23  ;;  %v2969_v16 = vor.u32 %v3387_v10, %v2968_v17 }
 0x226   :  { %v1656_v62 = vpop.f32.mrf.mxu1 }
 0x227   :  { %2401 = vst.msk [vmem:[%s5127_s3 + $0x7c] sm:$0xf] %vm2369_vm1, %v2336_v56  ;;  %v1993_v4 = vadd.f32 %v1992_v0, %v1824_v54  ;;  %v1657_v37 = vadd.f32 %v1656_v62, %v1488_v26  ;;  %v2973_v54 = vor.u32 %v3385_v50, %v2970_v51  ;;  %v2977_v0 = vor.u32 %v3388_v29, %v2976_v53  ;;  %v3002_v53 = vld [vmem:[%s5126_s0 + $0x474] sm:$0xf0]  ;;  %v3008_v29 = vld [vmem:[%s5126_s0 + $0x468] sm:$0xf] }
 0x228   :  { %v2163_v18 = vpop.f32.mrf.mxu0  ;;  %v1503_v51 = vadd.f32 %v4634_v21, %v3981_v35  ;;  %v3395_v35 = vld [vmem:[%s5126_s0 + $0x46c] sm:$0xf] }
 0x229   :  { %v2162_v12 = vadd.f32 %v2161_v39, %v1993_v4 }
 0x22b   :  { %v2273_v34 = vmax.f32 %v2162_v12, 0.0 }
 0x22c   :  { %v1825_v28 = vpop.f32.mrf.mxu2 }
 0x22d   :  { %v2337_v32 = vpack.c.bf16 %v2273_v34, %v2273_v34  ;;  %v1826_v33 = vadd.f32 %v1825_v28, %v1657_v37  ;;  %v1994_v49 = vpop.f32.mrf.mxu3  ;;  %v1498_v37 = vadd.f32 %v4634_v21, %v3940_v6  ;;  %v2982_v28 = vld [vmem:[%s5126_s0 + $0x44c] sm:$0xf0]  ;;  %v3390_v6 = vld [vmem:[%s5126_s0 + $0x444] sm:$0xf] }
 0x22e   :  { %v1659_v57 = vpop.f32.mrf.mxu1 }
 0x22f   :  { %2402 = vst.msk [vmem:[%s5127_s3 + $0x80] sm:$0xf] %vm2369_vm1, %v2337_v32  ;;  %v1995_v24 = vadd.f32 %v1994_v49, %v1826_v33  ;;  %v1660_v20 = vadd.f32 %v1659_v57, %v1491_v5  ;;  %v2988_v32 = vld [vmem:[%s5126_s0 + $0x440] sm:$0xf]  ;;  %v3392_v33 = vld [vmem:[%s5126_s0 + $0x450] sm:$0xf0] }
 0x230   :  { %v2166_v44 = vpop.f32.mrf.mxu0  ;;  %v2990_v49 = vld [vmem:[%s5126_s0 + $0x454] sm:$0xf0]  ;;  %v2996_v57 = vld [vmem:[%s5126_s0 + $0x448] sm:$0xf] }
 0x231   :  { %v2164_v36 = vadd.f32 %v2163_v18, %v1995_v24  ;;  %1698 = vmatmul.bf16.gmra.mxu1 %v2945_v40  ;;  %1867 = vmatmul.bf16.gmra.mxu2 %v2949_v14  ;;  %v1496_v18 = vadd.f32 %v4634_v21, %v3908_v58 }
 0x232   :  { %2036 = vmatmul.bf16.gmra.mxu3 %v2953_v61  ;;  %v3393_v61 = vld [vmem:[%s5126_s0 + $0x458] sm:$0xf0] }
 0x233   :  { %3247 = vmatmul.msk.bf16.gmra.mxu0 %vm1299_vm0, %v2957_v42  ;;  %v2274_v13 = vmax.f32 %v2164_v36, 0.0  ;;  %v2985_v36 = vor.u32 %v3389_v8, %v2982_v28 }
 0x234   :  { %v1828_v45 = vpop.f32.mrf.mxu2 }
 0x235   :  { %v2338_v59 = vpack.c.bf16 %v2274_v13, %v2274_v13  ;;  %v1829_v9 = vadd.f32 %v1828_v45, %v1660_v20  ;;  %v1997_v31 = vpop.f32.mrf.mxu3  ;;  %v2989_v13 = vor.u32 %v3392_v33, %v2988_v32  ;;  %v2993_v45 = vor.u32 %v3390_v6, %v2990_v49  ;;  %v5151_v33 = vld [vmem:[#allocation11_spill] sm:$0xff] }
 0x236   :  { %v1661_v52 = vpop.f32.mrf.mxu1  ;;  %v1508_v6 = vadd.f32 %v4634_v21, %v5151_v33 }
 0x237   :  { %2403 = vst.msk [vmem:[%s5127_s3 + $0x84] sm:$0xf] %vm2369_vm1, %v2338_v59  ;;  %v1998_v25 = vadd.f32 %v1997_v31, %v1829_v9  ;;  %v1662_v2 = vadd.f32 %v1661_v52, %v1493_v47  ;;  %v2997_v59 = vor.u32 %v3393_v61, %v2996_v57  ;;  %v1501_v52 = vadd.f32 %v4634_v21, %v3949_v15  ;;  %v3028_v57 = vld [vmem:[%s5126_s0 + $0x490] sm:$0xf]  ;;  %v3402_v61 = vld [vmem:[%s5126_s0 + $0x4a0] sm:$0xf0] }
 0x238   :  { %v2168_v38 = vpop.f32.mrf.mxu0 }
 0x239   :  { %v2167_v46 = vadd.f32 %v2166_v44, %v1998_v25 }
 0x23b   :  { %v2275_v63 = vmax.f32 %v2167_v46, 0.0 }
 0x23c   :  { %v1830_v39 = vpop.f32.mrf.mxu2 }
 0x23d   :  { %v2339_v7 = vpack.c.bf16 %v2275_v63, %v2275_v63  ;;  %v1831_v22 = vadd.f32 %v1830_v39, %v1662_v2  ;;  %v1999_v19 = vpop.f32.mrf.mxu3  ;;  %v3394_v2 = vld [vmem:[%s5126_s0 + $0x464] sm:$0xf]  ;;  %v3397_v39 = vld [vmem:[%s5126_s0 + $0x478] sm:$0xf0] }
 0x23e   :  { %v1664_v56 = vpop.f32.mrf.mxu1 }
 0x23f   :  { %2404 = vst.msk [vmem:[%s5127_s3 + $0x88] sm:$0xf] %vm2369_vm1, %v2339_v7  ;;  %v2000_v62 = vadd.f32 %v1999_v19, %v1831_v22  ;;  %v1665_v55 = vadd.f32 %v1664_v56, %v1496_v18  ;;  %v3010_v7 = vld [vmem:[%s5126_s0 + $0x47c] sm:$0xf0]  ;;  %v3009_v18 = vor.u32 %v3397_v39, %v3008_v29 }
 0x240   :  { %v2171_v4 = vpop.f32.mrf.mxu0 }
 0x241   :  { %v2169_v26 = vadd.f32 %v2168_v38, %v2000_v62  ;;  %1703 = vmatmul.bf16.gmra.mxu1 %v2965_v27  ;;  %1872 = vmatmul.bf16.gmra.mxu2 %v2969_v16  ;;  %v3016_v27 = vld [vmem:[%s5126_s0 + $0x470] sm:$0xf]  ;;  %v3398_v16 = vld [vmem:[%s5126_s0 + $0x480] sm:$0xf0] }
 0x242   :  { %2041 = vmatmul.bf16.gmra.mxu3 %v2973_v54 }
 0x243   :  { %3248 = vmatmul.msk.bf16.gmra.mxu0 %vm1299_vm0, %v2977_v0  ;;  %v2276_v12 = vmax.f32 %v2169_v26, 0.0 }
 0x244   :  { %v1833_v60 = vpop.f32.mrf.mxu2 }
 0x245   :  { %v2340_v11 = vpack.c.bf16 %v2276_v12, %v2276_v12  ;;  %v1834_v41 = vadd.f32 %v1833_v60, %v1665_v55  ;;  %v2002_v30 = vpop.f32.mrf.mxu3  ;;  %v3013_v12 = vor.u32 %v3395_v35, %v3010_v7  ;;  %v3017_v55 = vor.u32 %v3398_v16, %v3016_v27  ;;  %v5153_v7 = vld [vmem:[#allocation15_spill] sm:$0xff]  ;;  %v3404_v27 = vld [vmem:[%s5126_s0 + $0x4b4] sm:$0xf] }
 0x246   :  { %v1666_v43 = vpop.f32.mrf.mxu1  ;;  %v3042_v16 = vld [vmem:[%s5126_s0 + $0x4c4] sm:$0xf0] }
 0x247   :  { %2405 = vst.msk [vmem:[%s5127_s3 + $0x8c] sm:$0xf] %vm2369_vm1, %v2340_v11  ;;  %v2003_v34 = vadd.f32 %v2002_v30, %v1834_v41  ;;  %v1667_v14 = vadd.f32 %v1666_v43, %v1498_v37  ;;  %v1506_v41 = vadd.f32 %v4634_v21, %v3990_v48 }
 0x248   :  { %v2173_v58 = vpop.f32.mrf.mxu0 }
 0x249   :  { %v2172_v3 = vadd.f32 %v2171_v4, %v2003_v34  ;;  %v3005_v4 = vor.u32 %v3394_v2, %v3002_v53 }
 0x24b   :  { %v2277_v40 = vmax.f32 %v2172_v3, 0.0 }
 0x24c   :  { %v1835_v42 = vpop.f32.mrf.mxu2 }
 0x24d   :  { %v2341_v24 = vpack.c.bf16 %v2277_v40, %v2277_v40  ;;  %v1836_v44 = vadd.f32 %v1835_v42, %v1667_v14  ;;  %v2004_v5 = vpop.f32.mrf.mxu3  ;;  %v3399_v40 = vld [vmem:[%s5126_s0 + $0x48c] sm:$0xf]  ;;  %v3022_v14 = vld [vmem:[%s5126_s0 + $0x49c] sm:$0xf0]  ;;  %v3400_v42 = vld [vmem:[%s5126_s0 + $0x494] sm:$0xf] }
 0x24e   :  { %v1669_v20 = vpop.f32.mrf.mxu1 }
 0x24f   :  { %2406 = vst.msk [vmem:[%s5127_s3 + $0x90] sm:$0xf] %vm2369_vm1, %v2341_v24  ;;  %v2005_v9 = vadd.f32 %v2004_v5, %v1836_v44  ;;  %v1670_v47 = vadd.f32 %v1669_v20, %v1501_v52  ;;  %v3030_v24 = vld [vmem:[%s5126_s0 + $0x4a4] sm:$0xf0]  ;;  %v3029_v52 = vor.u32 %v3402_v61, %v3028_v57 }
 0x250   :  { %v2176_v31 = vpop.f32.mrf.mxu0 }
 0x251   :  { %v2174_v25 = vadd.f32 %v2173_v58, %v2005_v9  ;;  %1708 = vmatmul.bf16.gmra.mxu1 %v2985_v36  ;;  %1877 = vmatmul.bf16.gmra.mxu2 %v2989_v13  ;;  %v3036_v36 = vld [vmem:[%s5126_s0 + $0x498] sm:$0xf]  ;;  %v3403_v13 = vld [vmem:[%s5126_s0 + $0x4a8] sm:$0xf0] }
 0x252   :  { %2046 = vmatmul.bf16.gmra.mxu3 %v2993_v45 }
 0x253   :  { %3249 = vmatmul.msk.bf16.gmra.mxu0 %vm1299_vm0, %v2997_v59  ;;  %v2278_v38 = vmax.f32 %v2174_v25, 0.0 }
 0x254   :  { %v1838_v46 = vpop.f32.mrf.mxu2 }
 0x255   :  { %v2342_v1 = vpack.c.bf16 %v2278_v38, %v2278_v38  ;;  %v1839_v23 = vadd.f32 %v1838_v46, %v1670_v47  ;;  %v2007_v17 = vpop.f32.mrf.mxu3  ;;  %v3033_v38 = vor.u32 %v3400_v42, %v3030_v24  ;;  %v3037_v47 = vor.u32 %v3403_v13, %v3036_v36  ;;  %v3409_v13 = vld [vmem:[%s5126_s0 + $0x4dc] sm:$0xf] }
 0x256   :  { %v1671_v10 = vpop.f32.mrf.mxu1 }
 0x257   :  { %2407 = vst.msk [vmem:[%s5127_s3 + $0x94] sm:$0xf] %vm2369_vm1, %v2342_v1  ;;  %v2008_v50 = vadd.f32 %v2007_v17, %v1839_v23  ;;  %v1672_v19 = vadd.f32 %v1671_v10, %v1503_v51  ;;  %v5152_v23 = vld [vmem:[#allocation13_spill] sm:$0xff] }
 0x258   :  { %v2178_v15 = vpop.f32.mrf.mxu0  ;;  %v1511_v17 = vadd.f32 %v4634_v21, %v5152_v23 }
 0x259   :  { %v2177_v63 = vadd.f32 %v2176_v31, %v2008_v50  ;;  %v3025_v31 = vor.u32 %v3399_v40, %v3022_v14 }
 0x25b   :  { %v2279_v22 = vmax.f32 %v2177_v63, 0.0 }
 0x25c   :  { %v1840_v56 = vpop.f32.mrf.mxu2 }
 0x25d   :  { %v2343_v54 = vpack.c.bf16 %v2279_v22, %v2279_v22  ;;  %v1841_v0 = vadd.f32 %v1840_v56, %v1672_v19  ;;  %v2009_v62 = vpop.f32.mrf.mxu3  ;;  %v1513_v22 = vadd.f32 %v4634_v21, %v5153_v7  ;;  %v3048_v56 = vld [vmem:[%s5126_s0 + $0x4b8] sm:$0xf] }
 0x25e   :  { %v1674_v26 = vpop.f32.mrf.mxu1 }
 0x25f   :  { %2408 = vst.msk [vmem:[%s5127_s3 + $0x98] sm:$0xf] %vm2369_vm1, %v2343_v54  ;;  %v2010_v60 = vadd.f32 %v2009_v62, %v1841_v0  ;;  %v1675_v34 = vadd.f32 %v1674_v26, %v1506_v41  ;;  %v3407_v54 = vld [vmem:[%s5126_s0 + $0x4c8] sm:$0xf0]  ;;  %v3405_v0 = vld [vmem:[%s5126_s0 + $0x4bc] sm:$0xf] }
 0x260   :  { %v2181_v11 = vpop.f32.mrf.mxu0  ;;  %v3050_v62 = vld [vmem:[%s5126_s0 + $0x4cc] sm:$0xf0]  ;;  %v3056_v26 = vld [vmem:[%s5126_s0 + $0x4c0] sm:$0xf] }
 0x261   :  { %v2179_v30 = vadd.f32 %v2178_v15, %v2010_v60  ;;  %1713 = vmatmul.bf16.gmra.mxu1 %v3005_v4  ;;  %1882 = vmatmul.bf16.gmra.mxu2 %v3009_v18 }
 0x262   :  { %2051 = vmatmul.bf16.gmra.mxu3 %v3013_v12  ;;  %v3408_v12 = vld [vmem:[%s5126_s0 + $0x4d0] sm:$0xf0] }
 0x263   :  { %3250 = vmatmul.msk.bf16.gmra.mxu0 %vm1299_vm0, %v3017_v55  ;;  %v2280_v43 = vmax.f32 %v2179_v30, 0.0  ;;  %v3045_v30 = vor.u32 %v3404_v27, %v3042_v16 }
 0x264   :  { %v1843_v58 = vpop.f32.mrf.mxu2 }
 0x265   :  { %v2344_v37 = vpack.c.bf16 %v2280_v43, %v2280_v43  ;;  %v1844_v3 = vadd.f32 %v1843_v58, %v1675_v34  ;;  %v2012_v8 = vpop.f32.mrf.mxu3  ;;  %v3049_v43 = vor.u32 %v3407_v54, %v3048_v56  ;;  %v3053_v58 = vor.u32 %v3405_v0, %v3050_v62 }
 0x266   :  { %v1676_v28 = vpop.f32.mrf.mxu1 }
 0x267   :  { %2409 = vst.msk [vmem:[%s5127_s3 + $0x9c] sm:$0xf] %vm2369_vm1, %v2344_v37  ;;  %v2013_v32 = vadd.f32 %v2012_v8, %v1844_v3  ;;  %v1677_v5 = vadd.f32 %v1676_v28, %v1508_v6  ;;  %v3057_v37 = vor.u32 %v3408_v12, %v3056_v26  ;;  %v5154_v28 = vld [vmem:[#allocation17_spill] sm:$0xff] }
 0x268   :  { %v2183_v48 = vpop.f32.mrf.mxu0 }
 0x269   :  { %v2182_v49 = vadd.f32 %v2181_v11, %v2013_v32  ;;  %v1516_v32 = vadd.f32 %v4634_v21, %v5154_v28 }
 0x26b   :  { %v2281_v44 = vmax.f32 %v2182_v49, 0.0 }
 0x26c   :  { %v1845_v20 = vpop.f32.mrf.mxu2 }
 0x26d   :  { %v2345_v45 = vpack.c.bf16 %v2281_v44, %v2281_v44  ;;  %v1846_v59 = vadd.f32 %v1845_v20, %v1677_v5  ;;  %v2014_v9 = vpop.f32.mrf.mxu3  ;;  %v5155_v44 = vld [vmem:[#allocation19_spill] sm:$0xff]  ;;  %v3062_v20 = vld [vmem:[%s5126_s0 + $0x4ec] sm:$0xf0] }
 0x26e   :  { %v1679_v25 = vpop.f32.mrf.mxu1  ;;  %v1518_v5 = vadd.f32 %v4634_v21, %v5155_v44 }
 0x26f   :  { %2410 = vst.msk [vmem:[%s5127_s3 + $0xa0] sm:$0xf] %vm2369_vm1, %v2345_v45  ;;  %v2015_v46 = vadd.f32 %v2014_v9, %v1846_v59  ;;  %v1680_v15 = vadd.f32 %v1679_v25, %v1511_v17  ;;  %v3068_v45 = vld [vmem:[%s5126_s0 + $0x4e0] sm:$0xf]  ;;  %v3412_v59 = vld [vmem:[%s5126_s0 + $0x4f0] sm:$0xf0] }
 0x270   :  { %v2186_v1 = vpop.f32.mrf.mxu0  ;;  %v3410_v9 = vld [vmem:[%s5126_s0 + $0x4e4] sm:$0xf] }
 0x271   :  { %v2184_v10 = vadd.f32 %v2183_v48, %v2015_v46  ;;  %1718 = vmatmul.bf16.gmra.mxu1 %v3025_v31  ;;  %1887 = vmatmul.bf16.gmra.mxu2 %v3029_v52  ;;  %v3070_v31 = vld [vmem:[%s5126_s0 + $0x4f4] sm:$0xf0] }
 0x272   :  { %2056 = vmatmul.bf16.gmra.mxu3 %v3033_v38  ;;  %v3076_v38 = vld [vmem:[%s5126_s0 + $0x4e8] sm:$0xf] }
 0x273   :  { %3251 = vmatmul.msk.bf16.gmra.mxu0 %vm1299_vm0, %v3037_v47  ;;  %v2282_v50 = vmax.f32 %v2184_v10, 0.0  ;;  %v3413_v47 = vld [vmem:[%s5126_s0 + $0x4f8] sm:$0xf0]  ;;  %v3065_v10 = vor.u32 %v3409_v13, %v3062_v20 }
 0x274   :  { %v1848_v51 = vpop.f32.mrf.mxu2 }
 0x275   :  { %v2346_v63 = vpack.c.bf16 %v2282_v50, %v2282_v50  ;;  %v1849_v2 = vadd.f32 %v1848_v51, %v1680_v15  ;;  %v2017_v53 = vpop.f32.mrf.mxu3  ;;  %v3069_v50 = vor.u32 %v3412_v59, %v3068_v45  ;;  %v3073_v51 = vor.u32 %v3410_v9, %v3070_v31 }
 0x276   :  { %v1681_v29 = vpop.f32.mrf.mxu1 }
 0x277   :  { %2411 = vst.msk [vmem:[%s5127_s3 + $0xa4] sm:$0xf] %vm2369_vm1, %v2346_v63  ;;  %v2018_v39 = vadd.f32 %v2017_v53, %v1849_v2  ;;  %v1682_v18 = vadd.f32 %v1681_v29, %v1513_v22  ;;  %v3077_v63 = vor.u32 %v3413_v47, %v3076_v38  ;;  %v5156_v29 = vld [vmem:[#allocation21_spill] sm:$0xff] }
 0x278   :  { %v2188_v35 = vpop.f32.mrf.mxu0 }
 0x279   :  { %v2187_v19 = vadd.f32 %v2186_v1, %v2018_v39  ;;  %v1521_v39 = vadd.f32 %v4634_v21, %v5156_v29 }
 0x27b   :  { %v2283_v4 = vmax.f32 %v2187_v19, 0.0 }
 0x27c   :  { %v1850_v55 = vpop.f32.mrf.mxu2 }
 0x27d   :  { %v2347_v60 = vpack.c.bf16 %v2283_v4, %v2283_v4  ;;  %v1851_v11 = vadd.f32 %v1850_v55, %v1682_v18  ;;  %v2019_v41 = vpop.f32.mrf.mxu3  ;;  %v5157_v4 = vld [vmem:[#allocation23_spill] sm:$0xff] }
 0x27e   :  { %v1684_v34 = vpop.f32.mrf.mxu1  ;;  %v1523_v18 = vadd.f32 %v4634_v21, %v5157_v4 }
 0x27f   :  { %2412 = vst.msk [vmem:[%s5127_s3 + $0xa8] sm:$0xf] %vm2369_vm1, %v2347_v60  ;;  %v2020_v3 = vadd.f32 %v2019_v41, %v1851_v11  ;;  %v1685_v6 = vadd.f32 %v1684_v34, %v1516_v32 }
 0x280   :  { %v2191_v8 = vpop.f32.mrf.mxu0 }
 0x281   :  { %v2189_v48 = vadd.f32 %v2188_v35, %v2020_v3  ;;  %1723 = vmatmul.bf16.gmra.mxu1 %v3045_v30  ;;  %1892 = vmatmul.bf16.gmra.mxu2 %v3049_v43 }
 0x282   :  { %2061 = vmatmul.bf16.gmra.mxu3 %v3053_v58 }
 0x283   :  { %3252 = vmatmul.msk.bf16.gmra.mxu0 %vm1299_vm0, %v3057_v37  ;;  %v2284_v33 = vmax.f32 %v2189_v48, 0.0  ;;  %v5158_v37 = vld [vmem:[#allocation2_spill] sm:$0xff] }
 0x284   :  { %v1853_v49 = vpop.f32.mrf.mxu2  ;;  %v1526_v3 = vadd.f32 %v4634_v21, %v5158_v37 }
 0x285   :  { %v2348_v40 = vpack.c.bf16 %v2284_v33, %v2284_v33  ;;  %v1854_v14 = vadd.f32 %v1853_v49, %v1685_v6  ;;  %v2022_v57 = vpop.f32.mrf.mxu3 }
 0x286   :  { %v1686_v61 = vpop.f32.mrf.mxu1 }
 0x287   :  { %2413 = vst.msk [vmem:[%s5127_s3 + $0xac] sm:$0xf] %vm2369_vm1, %v2348_v40  ;;  %v2023_v42 = vadd.f32 %v2022_v57, %v1854_v14  ;;  %v1687_v25 = vadd.f32 %v1686_v61, %v1518_v5  ;;  %v5159_v61 = vld [vmem:[#allocation3_spill] sm:$0xff] }
 0x288   :  { %v2193_v24 = vpop.f32.mrf.mxu0 }
 0x289   :  { %v2192_v36 = vadd.f32 %v2191_v8, %v2023_v42  ;;  %v1528_v42 = vadd.f32 %v4634_v21, %v5159_v61 }
 0x28b   :  { %v2285_v52 = vmax.f32 %v2192_v36, 0.0 }
 0x28c   :  { %v1855_v46 = vpop.f32.mrf.mxu2 }
 0x28d   :  { %v2349_v1 = vpack.c.bf16 %v2285_v52, %v2285_v52  ;;  %v1856_v23 = vadd.f32 %v1855_v46, %v1687_v25  ;;  %v2024_v17 = vpop.f32.mrf.mxu3  ;;  %v5160_v52 = vld [vmem:[#allocation4_spill] sm:$0xff] }
 0x28e   :  { %v1689_v15 = vpop.f32.mrf.mxu1  ;;  %v1531_v25 = vadd.f32 %v4634_v21, %v5160_v52 }
 0x28f   :  { %2414 = vst.msk [vmem:[%s5127_s3 + $0xb0] sm:$0xf] %vm2369_vm1, %v2349_v1  ;;  %v2025_v2 = vadd.f32 %v2024_v17, %v1856_v23  ;;  %v1690_v22 = vadd.f32 %v1689_v15, %v1521_v39 }
 0x290   :  { %v2196_v53 = vpop.f32.mrf.mxu0 }
 0x291   :  { %v2194_v35 = vadd.f32 %v2193_v24, %v2025_v2  ;;  %1728 = vmatmul.bf16.gmra.mxu1 %v3065_v10  ;;  %1897 = vmatmul.bf16.gmra.mxu2 %v3069_v50 }
 0x292   :  { %2066 = vmatmul.bf16.gmra.mxu3 %v3073_v51 }
 0x293   :  { %3253 = vmatmul.msk.bf16.gmra.mxu0 %vm1299_vm0, %v3077_v63  ;;  %v2286_v7 = vmax.f32 %v2194_v35, 0.0  ;;  %v5161_v63 = vld [vmem:[#allocation5_spill] sm:$0xff] }
 0x294   :  { %v1858_v19 = vpop.f32.mrf.mxu2  ;;  %v1533_v2 = vadd.f32 %v4634_v21, %v5161_v63 }
 0x295   :  { %v2350_v27 = vpack.c.bf16 %v2286_v7, %v2286_v7  ;;  %v1859_v16 = vadd.f32 %v1858_v19, %v1690_v22  ;;  %v2027_v56 = vpop.f32.mrf.mxu3 }
 0x296   :  { %v1691_v54 = vpop.f32.mrf.mxu1 }
 0x297   :  { %2415 = vst.msk [vmem:[%s5127_s3 + $0xb4] sm:$0xf] %vm2369_vm1, %v2350_v27  ;;  %v2028_v0 = vadd.f32 %v2027_v56, %v1859_v16  ;;  %v1692_v55 = vadd.f32 %v1691_v54, %v1523_v18  ;;  %v5162_v54 = vld [vmem:[#allocation6_spill] sm:$0xff] }
 0x298   :  { %v2198_v62 = vpop.f32.mrf.mxu0 }
 0x299   :  { %v2197_v26 = vadd.f32 %v2196_v53, %v2028_v0  ;;  %v1536_v0 = vadd.f32 %v4634_v21, %v5162_v54 }
 0x29b   :  { %v2287_v12 = vmax.f32 %v2197_v26, 0.0 }
 0x29c   :  { %v1860_v60 = vpop.f32.mrf.mxu2 }
 0x29d   :  { %v2351_v11 = vpack.c.bf16 %v2287_v12, %v2287_v12  ;;  %v1861_v41 = vadd.f32 %v1860_v60, %v1692_v55  ;;  %v2029_v30 = vpop.f32.mrf.mxu3 }
 0x29e   :  { %v1694_v43 = vpop.f32.mrf.mxu1 }
 0x29f   :  { %2416 = vst.msk [vmem:[%s5127_s3 + $0xb8] sm:$0xf] %vm2369_vm1, %v2351_v11  ;;  %v2030_v34 = vadd.f32 %v2029_v30, %v1861_v41  ;;  %v1695_v32 = vadd.f32 %v1694_v43, %v1526_v3  ;;  %v5163_v43 = vld [vmem:[#allocation7_spill] sm:$0xff] }
 0x2a0   :  { %v2201_v58 = vpop.f32.mrf.mxu0 }
 0x2a1   :  { %v2199_v8 = vadd.f32 %v2198_v62, %v2030_v34  ;;  %v1538_v34 = vadd.f32 %v4634_v21, %v5163_v43 }
 0x2a3   :  { %v2288_v28 = vmax.f32 %v2199_v8, 0.0 }
 0x2a4   :  { %v1863_v48 = vpop.f32.mrf.mxu2 }
 0x2a5   :  { %v2352_v33 = vpack.c.bf16 %v2288_v28, %v2288_v28  ;;  %v1864_v6 = vadd.f32 %v1863_v48, %v1695_v32  ;;  %v2032_v49 = vpop.f32.mrf.mxu3 }
 0x2a6   :  { %v1696_v40 = vpop.f32.mrf.mxu1 }
 0x2a7   :  { %2417 = vst.msk [vmem:[%s5127_s3 + $0xbc] sm:$0xf] %vm2369_vm1, %v2352_v33  ;;  %v2033_v14 = vadd.f32 %v2032_v49, %v1864_v6  ;;  %v1697_v5 = vadd.f32 %v1696_v40, %v1528_v42  ;;  %v5164_v40 = vld [vmem:[#allocation8_spill] sm:$0xff] }
 0x2a8   :  { %v2203_v57 = vpop.f32.mrf.mxu0 }
 0x2a9   :  { %v2202_v24 = vadd.f32 %v2201_v58, %v2033_v14  ;;  %v1541_v14 = vadd.f32 %v4634_v21, %v5164_v40  ;;  %v5165_v21 = vld [vmem:[#allocation9_spill] sm:$0xff] }
 0x2ab   :  { %v2289_v44 = vmax.f32 %v2202_v24, 0.0 }
 0x2ac   :  { %v1865_v36 = vpop.f32.mrf.mxu2 }
 0x2ad   :  { %v2353_v13 = vpack.c.bf16 %v2289_v44, %v2289_v44  ;;  %v1866_v20 = vadd.f32 %v1865_v36, %v1697_v5  ;;  %v2034_v45 = vpop.f32.mrf.mxu3 }
 0x2ae   :  { %v1699_v59 = vpop.f32.mrf.mxu1 }
 0x2af   :  { %2418 = vst.msk [vmem:[%s5127_s3 + $0xc0] sm:$0xf] %vm2369_vm1, %v2353_v13  ;;  %v2035_v9 = vadd.f32 %v2034_v45, %v1866_v20  ;;  %v1700_v46 = vadd.f32 %v1699_v59, %v1531_v25  ;;  %v5064_v59 = vld [vmem:[%s5125_s2] ss:$0 sm:$0xff] }
 0x2b0   :  { %v2206_v31 = vpop.f32.mrf.mxu0 }
 0x2b1   :  { %v2204_v38 = vadd.f32 %v2203_v57, %v2035_v9  ;;  %v1543_v9 = vadd.f32 %v5064_v59, %v5165_v21 }
 0x2b3   :  { %v2290_v47 = vmax.f32 %v2204_v38, 0.0 }
 0x2b4   :  { %v1868_v1 = vpop.f32.mrf.mxu2 }
 0x2b5   :  { %v2354_v23 = vpack.c.bf16 %v2290_v47, %v2290_v47  ;;  %v1869_v17 = vadd.f32 %v1868_v1, %v1700_v46  ;;  %v2037_v10 = vpop.f32.mrf.mxu3 }
 0x2b6   :  { %v1701_v50 = vpop.f32.mrf.mxu1 }
 0x2b7   :  { %2419 = vst.msk [vmem:[%s5127_s3 + $0xc4] sm:$0xf] %vm2369_vm1, %v2354_v23  ;;  %v2038_v15 = vadd.f32 %v2037_v10, %v1869_v17  ;;  %v1702_v39 = vadd.f32 %v1701_v50, %v1533_v2  ;;  %v5166_v50 = vld [vmem:[#allocation10_spill] sm:$0xff] }
 0x2b8   :  { %v2208_v51 = vpop.f32.mrf.mxu0 }
 0x2b9   :  { %v2207_v53 = vadd.f32 %v2206_v31, %v2038_v15  ;;  %v1546_v15 = vadd.f32 %v5064_v59, %v5166_v50 }
 0x2bb   :  { %v2291_v29 = vmax.f32 %v2207_v53, 0.0 }
 0x2bc   :  { %v1870_v35 = vpop.f32.mrf.mxu2 }
 0x2bd   :  { %v2355_v7 = vpack.c.bf16 %v2291_v29, %v2291_v29  ;;  %v1871_v22 = vadd.f32 %v1870_v35, %v1702_v39  ;;  %v2039_v19 = vpop.f32.mrf.mxu3 }
 0x2be   :  { %v1704_v27 = vpop.f32.mrf.mxu1 }
 0x2bf   :  { %2420 = vst.msk [vmem:[%s5127_s3 + $0xc8] sm:$0xf] %vm2369_vm1, %v2355_v7  ;;  %v2040_v16 = vadd.f32 %v2039_v19, %v1871_v22  ;;  %v1705_v18 = vadd.f32 %v1704_v27, %v1536_v0  ;;  %v5167_v27 = vld [vmem:[#allocation12_spill] sm:$0xff] }
 0x2c0   :  { %v2211_v56 = vpop.f32.mrf.mxu0 }
 0x2c1   :  { %v2209_v62 = vadd.f32 %v2208_v51, %v2040_v16  ;;  %v1548_v16 = vadd.f32 %v5064_v59, %v5167_v27 }
 0x2c3   :  { %v2292_v4 = vmax.f32 %v2209_v62, 0.0 }
 0x2c4   :  { %v1873_v26 = vpop.f32.mrf.mxu2 }
 0x2c5   :  { %v2356_v12 = vpack.c.bf16 %v2292_v4, %v2292_v4  ;;  %v1874_v55 = vadd.f32 %v1873_v26, %v1705_v18  ;;  %v2042_v60 = vpop.f32.mrf.mxu3 }
 0x2c6   :  { %v1706_v11 = vpop.f32.mrf.mxu1 }
 0x2c7   :  { %2421 = vst.msk [vmem:[%s5127_s3 + $0xcc] sm:$0xf] %vm2369_vm1, %v2356_v12  ;;  %v2043_v41 = vadd.f32 %v2042_v60, %v1874_v55  ;;  %v1707_v3 = vadd.f32 %v1706_v11, %v1538_v34  ;;  %v5168_v11 = vld [vmem:[#allocation14_spill] sm:$0xff] }
 0x2c8   :  { %v2213_v30 = vpop.f32.mrf.mxu0 }
 0x2c9   :  { %v2212_v58 = vadd.f32 %v2211_v56, %v2043_v41  ;;  %v1551_v41 = vadd.f32 %v5064_v59, %v5168_v11 }
 0x2cb   :  { %v2293_v37 = vmax.f32 %v2212_v58, 0.0 }
 0x2cc   :  { %v1875_v8 = vpop.f32.mrf.mxu2 }
 0x2cd   :  { %v2357_v28 = vpack.c.bf16 %v2293_v37, %v2293_v37  ;;  %v1876_v32 = vadd.f32 %v1875_v8, %v1707_v3  ;;  %v2044_v48 = vpop.f32.mrf.mxu3 }
 0x2ce   :  { %v1709_v33 = vpop.f32.mrf.mxu1 }
 0x2cf   :  { %2422 = vst.msk [vmem:[%s5127_s3 + $0xd0] sm:$0xf] %vm2369_vm1, %v2357_v28  ;;  %v2045_v6 = vadd.f32 %v2044_v48, %v1876_v32  ;;  %v1710_v42 = vadd.f32 %v1709_v33, %v1541_v14  ;;  %v5169_v33 = vld [vmem:[#allocation16_spill] sm:$0xff] }
 0x2d0   :  { %v2216_v49 = vpop.f32.mrf.mxu0 }
 0x2d1   :  { %v2214_v57 = vadd.f32 %v2213_v30, %v2045_v6  ;;  %v1553_v6 = vadd.f32 %v5064_v59, %v5169_v33 }
 0x2d3   :  { %v2294_v61 = vmax.f32 %v2214_v57, 0.0 }
 0x2d4   :  { %v1878_v24 = vpop.f32.mrf.mxu2 }
 0x2d5   :  { %v2358_v44 = vpack.c.bf16 %v2294_v61, %v2294_v61  ;;  %v1879_v5 = vadd.f32 %v1878_v24, %v1710_v42  ;;  %v2047_v36 = vpop.f32.mrf.mxu3 }
 0x2d6   :  { %v1711_v13 = vpop.f32.mrf.mxu1 }
 0x2d7   :  { %2423 = vst.msk [vmem:[%s5127_s3 + $0xd4] sm:$0xf] %vm2369_vm1, %v2358_v44  ;;  %v2048_v20 = vadd.f32 %v2047_v36, %v1879_v5  ;;  %v1712_v25 = vadd.f32 %v1711_v13, %v1543_v9  ;;  %v5170_v36 = vld [vmem:[#allocation18_spill] sm:$0xff] }
 0x2d8   :  { %v2218_v45 = vpop.f32.mrf.mxu0  ;;  %v1556_v13 = vadd.f32 %v5064_v59, %v5170_v36 }
 0x2d9   :  { %v2217_v31 = vadd.f32 %v2216_v49, %v2048_v20 }
 0x2db   :  { %v2295_v52 = vmax.f32 %v2217_v31, 0.0 }
 0x2dc   :  { %v1880_v38 = vpop.f32.mrf.mxu2 }
 0x2dd   :  { %v2359_v47 = vpack.c.bf16 %v2295_v52, %v2295_v52  ;;  %v1881_v46 = vadd.f32 %v1880_v38, %v1712_v25  ;;  %v2049_v1 = vpop.f32.mrf.mxu3 }
 0x2de   :  { %v1714_v23 = vpop.f32.mrf.mxu1 }
 0x2df   :  { %2424 = vst.msk [vmem:[%s5127_s3 + $0xd8] sm:$0xf] %vm2369_vm1, %v2359_v47  ;;  %v2050_v17 = vadd.f32 %v2049_v1, %v1881_v46  ;;  %v1715_v2 = vadd.f32 %v1714_v23, %v1546_v15  ;;  %v5171_v1 = vld [vmem:[#allocation20_spill] sm:$0xff] }
 0x2e0   :  { %v2221_v10 = vpop.f32.mrf.mxu0  ;;  %v1558_v23 = vadd.f32 %v5064_v59, %v5171_v1 }
 0x2e1   :  { %v2219_v51 = vadd.f32 %v2218_v45, %v2050_v17 }
 0x2e3   :  { %v2296_v63 = vmax.f32 %v2219_v51, 0.0 }
 0x2e4   :  { %v1883_v53 = vpop.f32.mrf.mxu2 }
 0x2e5   :  { %v2360_v29 = vpack.c.bf16 %v2296_v63, %v2296_v63  ;;  %v1884_v39 = vadd.f32 %v1883_v53, %v1715_v2  ;;  %v2052_v35 = vpop.f32.mrf.mxu3 }
 0x2e6   :  { %v1716_v7 = vpop.f32.mrf.mxu1 }
 0x2e7   :  { %2425 = vst.msk [vmem:[%s5127_s3 + $0xdc] sm:$0xf] %vm2369_vm1, %v2360_v29  ;;  %v2053_v22 = vadd.f32 %v2052_v35, %v1884_v39  ;;  %v1717_v0 = vadd.f32 %v1716_v7, %v1548_v16  ;;  %v5172_v35 = vld [vmem:[#allocation22_spill] sm:$0xff] }
 0x2e8   :  { %v2223_v19 = vpop.f32.mrf.mxu0  ;;  %v1561_v7 = vadd.f32 %v5064_v59, %v5172_v35 }
 0x2e9   :  { %v2222_v56 = vadd.f32 %v2221_v10, %v2053_v22 }
 0x2eb   :  { %v2297_v54 = vmax.f32 %v2222_v56, 0.0 }
 0x2ec   :  { %v1885_v62 = vpop.f32.mrf.mxu2 }
 0x2ed   :  { %v2361_v4 = vpack.c.bf16 %v2297_v54, %v2297_v54  ;;  %v1886_v18 = vadd.f32 %v1885_v62, %v1717_v0  ;;  %v2054_v26 = vpop.f32.mrf.mxu3 }
 0x2ee   :  { %v1719_v12 = vpop.f32.mrf.mxu1 }
 0x2ef   :  { %2426 = vst.msk [vmem:[%s5127_s3 + $0xe0] sm:$0xf] %vm2369_vm1, %v2361_v4  ;;  %v2055_v55 = vadd.f32 %v2054_v26, %v1886_v18  ;;  %v1720_v34 = vadd.f32 %v1719_v12, %v1551_v41  ;;  %v5173_v26 = vld [vmem:[#allocation24_spill] sm:$0xff] }
 0x2f0   :  { %v2226_v60 = vpop.f32.mrf.mxu0  ;;  %v1563_v12 = vadd.f32 %v5064_v59, %v5173_v26 }
 0x2f1   :  { %v2224_v30 = vadd.f32 %v2223_v19, %v2055_v55 }
 0x2f3   :  { %v2298_v43 = vmax.f32 %v2224_v30, 0.0 }
 0x2f4   :  { %v1888_v58 = vpop.f32.mrf.mxu2 }
 0x2f5   :  { %v2362_v37 = vpack.c.bf16 %v2298_v43, %v2298_v43  ;;  %v1889_v3 = vadd.f32 %v1888_v58, %v1720_v34  ;;  %v2057_v8 = vpop.f32.mrf.mxu3 }
 0x2f6   :  { %v1721_v28 = vpop.f32.mrf.mxu1 }
 0x2f7   :  { %2427 = vst.msk [vmem:[%s5127_s3 + $0xe4] sm:$0xf] %vm2369_vm1, %v2362_v37  ;;  %v2058_v32 = vadd.f32 %v2057_v8, %v1889_v3  ;;  %v1722_v14 = vadd.f32 %v1721_v28, %v1553_v6 }
 0x2f8   :  { %v2228_v48 = vpop.f32.mrf.mxu0 }
 0x2f9   :  { %v2227_v49 = vadd.f32 %v2226_v60, %v2058_v32 }
 0x2fb   :  { %v2299_v40 = vmax.f32 %v2227_v49, 0.0 }
 0x2fc   :  { %v1890_v57 = vpop.f32.mrf.mxu2 }
 0x2fd   :  { %v2363_v61 = vpack.c.bf16 %v2299_v40, %v2299_v40  ;;  %v1891_v42 = vadd.f32 %v1890_v57, %v1722_v14  ;;  %v2059_v24 = vpop.f32.mrf.mxu3 }
 0x2fe   :  { %v1724_v44 = vpop.f32.mrf.mxu1 }
 0x2ff   :  { %2428 = vst.msk [vmem:[%s5127_s3 + $0xe8] sm:$0xf] %vm2369_vm1, %v2363_v61  ;;  %v2060_v5 = vadd.f32 %v2059_v24, %v1891_v42  ;;  %v1725_v9 = vadd.f32 %v1724_v44, %v1556_v13 }
 0x300   :  { %v2231_v45 = vpop.f32.mrf.mxu0 }
 0x301   :  { %v2229_v20 = vadd.f32 %v2228_v48, %v2060_v5 }
 0x303   :  { %v2300_v21 = vmax.f32 %v2229_v20, 0.0 }
 0x304   :  { %v1893_v31 = vpop.f32.mrf.mxu2 }
 0x305   :  { %v2364_v52 = vpack.c.bf16 %v2300_v21, %v2300_v21  ;;  %v1894_v25 = vadd.f32 %v1893_v31, %v1725_v9  ;;  %v2062_v38 = vpop.f32.mrf.mxu3 }
 0x306   :  { %v1726_v47 = vpop.f32.mrf.mxu1 }
 0x307   :  { %2429 = vst.msk [vmem:[%s5127_s3 + $0xec] sm:$0xf] %vm2369_vm1, %v2364_v52  ;;  %v2063_v46 = vadd.f32 %v2062_v38, %v1894_v25  ;;  %v1727_v50 = vadd.f32 %v1726_v47, %v1558_v23 }
 0x308   :  { %v2233_v15 = vpop.f32.mrf.mxu0 }
 0x309   :  { %v2232_v17 = vadd.f32 %v2231_v45, %v2063_v46 }
 0x30b   :  { %v2301_v10 = vmax.f32 %v2232_v17, 0.0 }
 0x30c   :  { %v1895_v51 = vpop.f32.mrf.mxu2 }
 0x30d   :  { %v2365_v63 = vpack.c.bf16 %v2301_v10, %v2301_v10  ;;  %v1896_v2 = vadd.f32 %v1895_v51, %v1727_v50  ;;  %v2064_v53 = vpop.f32.mrf.mxu3 }
 0x30e   :  { %v1729_v29 = vpop.f32.mrf.mxu1 }
 0x30f   :  { %2430 = vst.msk [vmem:[%s5127_s3 + $0xf0] sm:$0xf] %vm2369_vm1, %v2365_v63  ;;  %v2065_v39 = vadd.f32 %v2064_v53, %v1896_v2  ;;  %v1730_v27 = vadd.f32 %v1729_v29, %v1561_v7 }
 0x310   :  { %v2236_v62 = vpop.f32.mrf.mxu0 }
 0x311   :  { %v2234_v22 = vadd.f32 %v2233_v15, %v2065_v39 }
 0x313   :  { %v2302_v19 = vmax.f32 %v2234_v22, 0.0 }
 0x314   :  { %v1898_v16 = vpop.f32.mrf.mxu2 }
 0x315   :  { %v2366_v56 = vpack.c.bf16 %v2302_v19, %v2302_v19  ;;  %v1899_v54 = vadd.f32 %v1898_v16, %v1730_v27  ;;  %v2067_v0 = vpop.f32.mrf.mxu3 }
 0x316   :  { %v1731_v18 = vpop.f32.mrf.mxu1 }
 0x317   :  { %2431 = vst.msk [vmem:[%s5127_s3 + $0xf4] sm:$0xf] %vm2369_vm1, %v2366_v56  ;;  %v2068_v4 = vadd.f32 %v2067_v0, %v1899_v54  ;;  %v1732_v11 = vadd.f32 %v1731_v18, %v1563_v12 }
 0x318   :  { %v2238_v37 = vpop.f32.mrf.mxu0 }
 0x319   :  { %v2237_v55 = vadd.f32 %v2236_v62, %v2068_v4 }
 0x31b   :  { %v2303_v60 = vmax.f32 %v2237_v55, 0.0 }
 0x31c   :  { %v1900_v41 = vpop.f32.mrf.mxu2 }
 0x31d   :  { %v2367_v30 = vpack.c.bf16 %v2303_v60, %v2303_v60  ;;  %v1901_v43 = vadd.f32 %v1900_v41, %v1732_v11  ;;  %v2069_v34 = vpop.f32.mrf.mxu3 }
 0x31f   :  { %2432 = vst.msk [vmem:[%s5127_s3 + $0xf8] sm:$0xf] %vm2369_vm1, %v2367_v30  ;;  %v2070_v58 = vadd.f32 %v2069_v34, %v1901_v43 }
 0x321   :  { %v2239_v3 = vadd.f32 %v2238_v37, %v2070_v58 }
 0x323   :  { %v2304_v8 = vmax.f32 %v2239_v3, 0.0 }
 0x325   :  { %v2368_v28 = vpack.c.bf16 %v2304_v8, %v2304_v8 }
 0x327   :  { %2433 = vst.msk [vmem:[%s5127_s3 + $0xfc] sm:$0xf] %vm2369_vm1, %v2368_v28 }

// kernel: autoencoder_forward.10
= control target key start
LH: loop header
LB: loop body
LE: loop exit
PB: predicated region body
PF: predicated region fallthrough
CT: control target
= control target key end

     0   :  { %vm315_vm0 = vcmask 261120   ;;  %vm519_vm1 = vcmask 125952   ;;  %s1086_s1 = inlined_call_operand.vmem [shape: bf16[288,16], index: 1, kind: input, shape index: {}]   ;;  %s1087_s0 = inlined_call_operand.vmem [shape: bf16[128,288], index: 0, kind: input, shape index: {}]   ;;  %s1088_s2 = inlined_call_operand.vmem [shape: f32[1,16], index: 2, kind: input, shape index: {}]   ;;  %s1089_s3 = inlined_call_operand.vmem [shape: bf16[128,16], index: 3, kind: output, shape index: {}]  }
   0x1   :  { %v747_v0 = vld [vmem:[%s1086_s1 + $0x38] sm:$0xff]  ;;  %v757_v1 = vld [vmem:[%s1086_s1 + $0x88] sm:$0xff]  ;;  %v746_v3 = vld [vmem:[%s1086_s1 + $0x30] sm:$0xff] }
   0x2   :  { %v755_v2 = vld [vmem:[%s1086_s1 + $0x78] sm:$0xff]  ;;  %340 = vmatpush.bf16.msra.mxu0 %v747_v0  ;;  %758 = vmatpush.bf16.msra.mxu3 %v747_v0  ;;  %v756_v4 = vld [vmem:[%s1086_s1 + $0x80] sm:$0xff]  ;;  %v754_v5 = vld [vmem:[%s1086_s1 + $0x70] sm:$0xff] }
   0x3   :  { %444 = vmatpush.bf16.msra.mxu2 %v757_v1  ;;  %389 = vmatpush.bf16.msra.mxu1 %v755_v2  ;;  %v550_v6 = vld [vmem:[%s1087_s0 + $0x8] sm:$0xf]  ;;  %v718_v7 = vld [vmem:[%s1087_s0 + $0x10] sm:$0xf0]  ;;  %v744_v11 = vld [vmem:[%s1086_s1 + $0x20] sm:$0xff] }
   0x4   :  { %v551_v8 = vor.u32 %v718_v7, %v550_v6  ;;  %v745_v9 = vld [vmem:[%s1086_s1 + $0x28] sm:$0xff]  ;;  %v752_v12 = vld [vmem:[%s1086_s1 + $0x60] sm:$0xff]  ;;  %v743_v13 = vld [vmem:[%s1086_s1 + $0x18] sm:$0xff] }
   0x5   :  { %v753_v10 = vld [vmem:[%s1086_s1 + $0x68] sm:$0xff]  ;;  %v751_v14 = vld [vmem:[%s1086_s1 + $0x58] sm:$0xff]  ;;  %v742_v15 = vld [vmem:[%s1086_s1 + $0x10] sm:$0xff] }
   0x6   :  { %341 = vmatpush.bf16.msra.mxu0 %v746_v3  ;;  %759 = vmatpush.bf16.msra.mxu3 %v746_v3  ;;  %v750_v16 = vld [vmem:[%s1086_s1 + $0x50] sm:$0xff]  ;;  %v562_v17 = vld [vmem:[%s1087_s0 + $0x20] sm:$0xf]  ;;  %v721_v18 = vld [vmem:[%s1087_s0 + $0x28] sm:$0xf0] }
   0x7   :  { %445 = vmatpush.bf16.msra.mxu2 %v756_v4  ;;  %390 = vmatpush.bf16.msra.mxu1 %v754_v5  ;;  %v563_v19 = vor.u32 %v721_v18, %v562_v17  ;;  %v741_v20 = vld [vmem:[%s1086_s1 + $0x8] sm:$0xff]  ;;  %v740_v22 = vld [vmem:[%s1086_s1] sm:$0xff]  ;;  %v614_v26 = vld [vmem:[%s1087_s0 + $0x90] sm:$0xf] }
   0x8   :  { %v749_v21 = vld [vmem:[%s1086_s1 + $0x48] sm:$0xff]  ;;  %v748_v23 = vld [vmem:[%s1086_s1 + $0x40] sm:$0xff]  ;;  %v735_v27 = vld [vmem:[%s1087_s0 + $0x98] sm:$0xf0] }
   0x9   :  { %v542_v24 = vld [vmem:[%s1087_s0] sm:$0xf]  ;;  %v717_v25 = vld [vmem:[%s1087_s0 + $0x8] sm:$0xf0]  ;;  %v716_v28 = vld [vmem:[%s1087_s0 + $0x4] sm:$0xf]  ;;  %v615_v31 = vor.u32 %v735_v27, %v614_v26 }
   0xa   :  { %708 = vmatmul.msk.bf16.vlgmr.msra.gmra.mxu2 %vm315_vm0, %v551_v8  ;;  %342 = vmatpush.bf16.msra.mxu0 %v745_v9  ;;  %v544_v29 = vld [vmem:[%s1087_s0 + $0xc] sm:$0xf0]  ;;  %v543_v30 = vor.u32 %v717_v25, %v542_v24  ;;  %v574_v33 = vld [vmem:[%s1087_s0 + $0x38] sm:$0xf]  ;;  %v724_v34 = vld [vmem:[%s1087_s0 + $0x40] sm:$0xf0] }
   0xb   :  { %760 = vmatpush.bf16.msra.mxu3 %v745_v9  ;;  %391 = vmatpush.bf16.msra.mxu1 %v753_v10  ;;  %v547_v32 = vor.u32 %v716_v28, %v544_v29  ;;  %v575_v35 = vor.u32 %v724_v34, %v574_v33  ;;  %v554_v36 = vld [vmem:[%s1087_s0 + $0x18] sm:$0xf]  ;;  %v720_v37 = vld [vmem:[%s1087_s0 + $0x20] sm:$0xf0]  ;;  %v626_v38 = vld [vmem:[%s1087_s0 + $0xa8] sm:$0xf] }
   0xc   :  { %v738_v39 = vld [vmem:[%s1087_s0 + $0xb0] sm:$0xf0]  ;;  %v719_v40 = vld [vmem:[%s1087_s0 + $0x1c] sm:$0xf]  ;;  %v556_v41 = vld [vmem:[%s1087_s0 + $0x24] sm:$0xf0]  ;;  %v555_v42 = vor.u32 %v720_v37, %v554_v36 }
   0xd   :  { %v627_v43 = vor.u32 %v738_v39, %v626_v38  ;;  %v559_v44 = vor.u32 %v719_v40, %v556_v41  ;;  %v586_v45 = vld [vmem:[%s1087_s0 + $0x50] sm:$0xf]  ;;  %v727_v46 = vld [vmem:[%s1087_s0 + $0x58] sm:$0xf0]  ;;  %v734_v50 = vld [vmem:[%s1087_s0 + $0x94] sm:$0xf] }
   0xe   :  { %343 = vmatpush.bf16.msra.mxu0 %v744_v11  ;;  %v587_v47 = vor.u32 %v727_v46, %v586_v45  ;;  %v566_v48 = vld [vmem:[%s1087_s0 + $0x30] sm:$0xf]  ;;  %v723_v49 = vld [vmem:[%s1087_s0 + $0x38] sm:$0xf0]  ;;  %v616_v51 = vld [vmem:[%s1087_s0 + $0x9c] sm:$0xf0] }
   0xf   :  { %761 = vmatpush.bf16.msra.mxu3 %v744_v11  ;;  %392 = vmatpush.bf16.msra.mxu1 %v752_v12  ;;  %v722_v52 = vld [vmem:[%s1087_s0 + $0x34] sm:$0xf]  ;;  %v568_v53 = vld [vmem:[%s1087_s0 + $0x3c] sm:$0xf0]  ;;  %v567_v54 = vor.u32 %v723_v49, %v566_v48  ;;  %v619_v55 = vor.u32 %v734_v50, %v616_v51  ;;  %v598_v57 = vld [vmem:[%s1087_s0 + $0x68] sm:$0xf] }
  0x10   :  { %v571_v56 = vor.u32 %v722_v52, %v568_v53  ;;  %v730_v58 = vld [vmem:[%s1087_s0 + $0x70] sm:$0xf0]  ;;  %v578_v60 = vld [vmem:[%s1087_s0 + $0x48] sm:$0xf]  ;;  %v737_v62 = vld [vmem:[%s1087_s0 + $0xac] sm:$0xf] }
  0x11   :  { %v599_v59 = vor.u32 %v730_v58, %v598_v57  ;;  %v726_v61 = vld [vmem:[%s1087_s0 + $0x50] sm:$0xf0]  ;;  %v628_v63 = vld [vmem:[%s1087_s0 + $0xb4] sm:$0xf0]  ;;  %v725_v0 = vld [vmem:[%s1087_s0 + $0x4c] sm:$0xf] }
  0x12   :  { %344 = vmatpush.bf16.msra.mxu0 %v743_v13  ;;  %v580_v1 = vld [vmem:[%s1087_s0 + $0x54] sm:$0xf0]  ;;  %v631_v3 = vor.u32 %v737_v62, %v628_v63  ;;  %v733_v6 = vld [vmem:[%s1087_s0 + $0x88] sm:$0xf0]  ;;  %v590_v8 = vld [vmem:[%s1087_s0 + $0x60] sm:$0xf] }
  0x13   :  { %762 = vmatpush.bf16.msra.mxu3 %v743_v13  ;;  %393 = vmatpush.bf16.msra.mxu1 %v751_v14  ;;  %v583_v4 = vor.u32 %v725_v0, %v580_v1  ;;  %v729_v9 = vld [vmem:[%s1087_s0 + $0x68] sm:$0xf0]  ;;  %v592_v11 = vld [vmem:[%s1087_s0 + $0x6c] sm:$0xf0]  ;;  %v602_v17 = vld [vmem:[%s1087_s0 + $0x78] sm:$0xf] }
  0x14   :  { %v732_v18 = vld [vmem:[%s1087_s0 + $0x80] sm:$0xf0]  ;;  %v739_v24 = vld [vmem:[%s1087_s0 + $0xb8] sm:$0xf0]  ;;  %v1004_v28 = vld [vmem:[%s1088_s2] ss:$0 sm:$0xff] }
  0x16   :  { %345 = vmatpush.bf16.msra.mxu0 %v742_v15 }
  0x17   :  { %763 = vmatpush.bf16.msra.mxu3 %v742_v15  ;;  %394 = vmatpush.bf16.msra.mxu1 %v750_v16  ;;  %v736_v15 = vld [vmem:[%s1087_s0 + $0xa0] sm:$0xf0] }
  0x1a   :  { %709 = vmatmul.msk.bf16.gmra.mxu2 %vm315_vm0, %v563_v19  ;;  %346 = vmatpush.bf16.msra.mxu0 %v741_v20  ;;  %v731_v19 = vld [vmem:[%s1087_s0 + $0x7c] sm:$0xf] }
  0x1b   :  { %764 = vmatpush.bf16.msra.mxu3 %v741_v20  ;;  %395 = vmatpush.bf16.msra.mxu1 %v749_v21  ;;  %v604_v20 = vld [vmem:[%s1087_s0 + $0x84] sm:$0xf0] }
  0x1e   :  { %347 = vmatpush.bf16.msra.mxu0 %v740_v22 }
  0x1f   :  { %765 = vmatpush.bf16.msra.mxu3 %v740_v22  ;;  %396 = vmatpush.bf16.msra.mxu1 %v748_v23  ;;  %v607_v22 = vor.u32 %v731_v19, %v604_v20 }
  0x21   :  { %348 = vmatmul.bf16.vlgmr.msra.gmra.mxu0 %v543_v30 }
  0x22   :  { %378 = vmatmul.bf16.vlgmr.msra.gmra.mxu3 %v615_v31  ;;  %397 = vmatmul.bf16.vlgmr.msra.gmra.mxu1 %v547_v32 }
  0x23   :  { %766 = vmatpush.bf16.msrb.mxu3 %v755_v2  ;;  %v579_v2 = vor.u32 %v726_v61, %v578_v60 }
  0x27   :  { %767 = vmatpush.bf16.msrb.mxu3 %v754_v5  ;;  %v610_v5 = vld [vmem:[%s1087_s0 + $0x80] sm:$0xf] }
  0x28   :  { %v611_v7 = vor.u32 %v733_v6, %v610_v5 }
  0x2a   :  { %710 = vmatmul.msk.bf16.gmra.mxu2 %vm315_vm0, %v575_v35 }
  0x2b   :  { %768 = vmatpush.bf16.msrb.mxu3 %v753_v10  ;;  %v728_v10 = vld [vmem:[%s1087_s0 + $0x64] sm:$0xf] }
  0x2c   :  { %v595_v13 = vor.u32 %v728_v10, %v592_v11 }
  0x2f   :  { %769 = vmatpush.bf16.msrb.mxu3 %v752_v12  ;;  %v591_v12 = vor.u32 %v729_v9, %v590_v8 }
  0x31   :  { %353 = vmatmul.bf16.gmra.mxu0 %v555_v42 }
  0x32   :  { %383 = vmatmul.bf16.gmra.mxu3 %v627_v43  ;;  %402 = vmatmul.bf16.gmra.mxu1 %v559_v44 }
  0x33   :  { %770 = vmatpush.bf16.msrb.mxu3 %v751_v14  ;;  %v622_v14 = vld [vmem:[%s1087_s0 + $0x98] sm:$0xf] }
  0x37   :  { %771 = vmatpush.bf16.msrb.mxu3 %v750_v16  ;;  %v623_v16 = vor.u32 %v736_v15, %v622_v14 }
  0x3a   :  { %711 = vmatmul.msk.bf16.gmra.mxu2 %vm315_vm0, %v587_v47 }
  0x3b   :  { %772 = vmatpush.bf16.msrb.mxu3 %v749_v21  ;;  %v603_v21 = vor.u32 %v732_v18, %v602_v17 }
  0x3f   :  { %773 = vmatpush.bf16.msrb.mxu3 %v748_v23  ;;  %v634_v23 = vld [vmem:[%s1087_s0 + $0xb0] sm:$0xf] }
  0x40   :  { %v635_v25 = vor.u32 %v739_v24, %v634_v23 }
  0x41   :  { %358 = vmatmul.bf16.gmra.mxu0 %v567_v54 }
  0x42   :  { %427 = vmatmul.bf16.vlgmr.msrb.gmra.mxu3 %v619_v55  ;;  %407 = vmatmul.bf16.gmra.mxu1 %v571_v56 }
  0x4a   :  { %712 = vmatmul.msk.bf16.gmra.mxu2 %vm315_vm0, %v599_v59 }
  0x51   :  { %363 = vmatmul.bf16.gmra.mxu0 %v579_v2 }
  0x52   :  { %432 = vmatmul.bf16.gmra.mxu3 %v631_v3  ;;  %412 = vmatmul.bf16.gmra.mxu1 %v583_v4 }
  0x5a   :  { %713 = vmatmul.msk.bf16.gmra.mxu2 %vm315_vm0, %v611_v7 }
  0x61   :  { %368 = vmatmul.bf16.gmra.mxu0 %v591_v12 }
  0x62   :  { %417 = vmatmul.bf16.gmra.mxu1 %v595_v13 }
  0x6a   :  { %714 = vmatmul.msk.bf16.gmra.mxu2 %vm315_vm0, %v623_v16 }
  0x71   :  { %373 = vmatmul.bf16.gmra.mxu0 %v603_v21 }
  0x72   :  { %422 = vmatmul.bf16.gmra.mxu1 %v607_v22 }
  0x7a   :  { %715 = vmatmul.msk.bf16.gmra.mxu2 %vm315_vm0, %v635_v25 }
  0x8d   :  { %v447_v26 = vpop.f32.mrf.mxu2 }
  0x95   :  { %v449_v27 = vpop.f32.mrf.mxu2 }
  0x9d   :  { %v452_v29 = vpop.f32.mrf.mxu2 }
  0x9e   :  { %v349_v30 = vpop.f32.mrf.mxu0 }
  0x9f   :  { %v350_v31 = vadd.f32 %v1004_v28, %v349_v30  ;;  %v398_v32 = vpop.f32.mrf.mxu1 }
  0xa1   :  { %v399_v33 = vadd.f32 %v398_v32, %v350_v31 }
  0xa3   :  { %v448_v34 = vadd.f32 %v447_v26, %v399_v33 }
  0xa5   :  { %v487_v35 = vmax.f32 %v448_v34, 0.0  ;;  %v454_v36 = vpop.f32.mrf.mxu2  ;;  %v379_v58 = vpop.f32.mrf.mxu3 }
  0xa6   :  { %v351_v37 = vpop.f32.mrf.mxu0 }
  0xa7   :  { %v503_v38 = vpack.c.bf16 %v487_v35, %v487_v35  ;;  %v352_v39 = vadd.f32 %v1004_v28, %v351_v37  ;;  %v400_v40 = vpop.f32.mrf.mxu1 }
  0xa9   :  { %520 = vst.msk [vmem:[%s1089_s3] sm:$0xf] %vm519_vm1, %v503_v38  ;;  %v401_v41 = vadd.f32 %v400_v40, %v352_v39 }
  0xab   :  { %v450_v42 = vadd.f32 %v449_v27, %v401_v41 }
  0xad   :  { %v488_v43 = vmax.f32 %v450_v42, 0.0  ;;  %v457_v44 = vpop.f32.mrf.mxu2  ;;  %v381_v4 = vpop.f32.mrf.mxu3 }
  0xae   :  { %v354_v45 = vpop.f32.mrf.mxu0 }
  0xaf   :  { %v504_v46 = vpack.c.bf16 %v488_v43, %v488_v43  ;;  %v355_v47 = vadd.f32 %v1004_v28, %v354_v45  ;;  %v403_v48 = vpop.f32.mrf.mxu1 }
  0xb1   :  { %521 = vst.msk [vmem:[%s1089_s3 + $0x4] sm:$0xf] %vm519_vm1, %v504_v46  ;;  %v404_v49 = vadd.f32 %v403_v48, %v355_v47  ;;  %v380_v47 = vadd.f32 %v1004_v28, %v379_v58 }
  0xb3   :  { %v453_v50 = vadd.f32 %v452_v29, %v404_v49 }
  0xb5   :  { %v489_v51 = vmax.f32 %v453_v50, 0.0  ;;  %v459_v52 = vpop.f32.mrf.mxu2  ;;  %v384_v16 = vpop.f32.mrf.mxu3 }
  0xb6   :  { %v356_v53 = vpop.f32.mrf.mxu0 }
  0xb7   :  { %v505_v54 = vpack.c.bf16 %v489_v51, %v489_v51  ;;  %v357_v55 = vadd.f32 %v1004_v28, %v356_v53  ;;  %v405_v56 = vpop.f32.mrf.mxu1 }
  0xb9   :  { %522 = vst.msk [vmem:[%s1089_s3 + $0x8] sm:$0xf] %vm519_vm1, %v505_v54  ;;  %v406_v57 = vadd.f32 %v405_v56, %v357_v55 }
  0xbb   :  { %v455_v59 = vadd.f32 %v454_v36, %v406_v57 }
  0xbd   :  { %v490_v60 = vmax.f32 %v455_v59, 0.0  ;;  %v462_v61 = vpop.f32.mrf.mxu2  ;;  %v386_v29 = vpop.f32.mrf.mxu3 }
  0xbe   :  { %v359_v62 = vpop.f32.mrf.mxu0 }
  0xbf   :  { %v506_v63 = vpack.c.bf16 %v490_v60, %v490_v60  ;;  %v360_v0 = vadd.f32 %v1004_v28, %v359_v62  ;;  %v408_v1 = vpop.f32.mrf.mxu1  ;;  %v382_v60 = vadd.f32 %v1004_v28, %v381_v4 }
  0xc1   :  { %523 = vst.msk [vmem:[%s1089_s3 + $0xc] sm:$0xf] %vm519_vm1, %v506_v63  ;;  %v409_v2 = vadd.f32 %v408_v1, %v360_v0 }
  0xc3   :  { %v458_v3 = vadd.f32 %v457_v44, %v409_v2 }
  0xc5   :  { %v491_v5 = vmax.f32 %v458_v3, 0.0  ;;  %v464_v6 = vpop.f32.mrf.mxu2  ;;  %v428_v39 = vpop.f32.mrf.mxu3 }
  0xc6   :  { %v361_v7 = vpop.f32.mrf.mxu0  ;;  %v429_v50 = vadd.f32 %v428_v39, %v380_v47 }
  0xc7   :  { %v507_v8 = vpack.c.bf16 %v491_v5, %v491_v5  ;;  %v362_v9 = vadd.f32 %v1004_v28, %v361_v7  ;;  %v410_v10 = vpop.f32.mrf.mxu1 }
  0xc9   :  { %524 = vst.msk [vmem:[%s1089_s3 + $0x10] sm:$0xf] %vm519_vm1, %v507_v8  ;;  %v411_v11 = vadd.f32 %v410_v10, %v362_v9  ;;  %v385_v9 = vadd.f32 %v1004_v28, %v384_v16  ;;  %v387_v16 = vadd.f32 %v1004_v28, %v386_v29 }
  0xcb   :  { %v460_v12 = vadd.f32 %v459_v52, %v411_v11 }
  0xcd   :  { %v492_v13 = vmax.f32 %v460_v12, 0.0  ;;  %v467_v14 = vpop.f32.mrf.mxu2  ;;  %v430_v51 = vpop.f32.mrf.mxu3 }
  0xce   :  { %v364_v15 = vpop.f32.mrf.mxu0  ;;  %v431_v0 = vadd.f32 %v430_v51, %v382_v60 }
  0xcf   :  { %v508_v17 = vpack.c.bf16 %v492_v13, %v492_v13  ;;  %v365_v18 = vadd.f32 %v1004_v28, %v364_v15  ;;  %v413_v19 = vpop.f32.mrf.mxu1 }
  0xd1   :  { %525 = vst.msk [vmem:[%s1089_s3 + $0x14] sm:$0xf] %vm519_vm1, %v508_v17  ;;  %v414_v20 = vadd.f32 %v413_v19, %v365_v18 }
  0xd3   :  { %v463_v21 = vadd.f32 %v462_v61, %v414_v20 }
  0xd5   :  { %v493_v22 = vmax.f32 %v463_v21, 0.0  ;;  %v469_v23 = vpop.f32.mrf.mxu2  ;;  %v433_v4 = vpop.f32.mrf.mxu3 }
  0xd6   :  { %v366_v24 = vpop.f32.mrf.mxu0 }
  0xd7   :  { %v509_v25 = vpack.c.bf16 %v493_v22, %v493_v22  ;;  %v367_v26 = vadd.f32 %v1004_v28, %v366_v24  ;;  %v415_v27 = vpop.f32.mrf.mxu1 }
  0xd9   :  { %526 = vst.msk [vmem:[%s1089_s3 + $0x18] sm:$0xf] %vm519_vm1, %v509_v25  ;;  %v416_v30 = vadd.f32 %v415_v27, %v367_v26 }
  0xdb   :  { %v465_v31 = vadd.f32 %v464_v6, %v416_v30 }
  0xdd   :  { %v494_v32 = vmax.f32 %v465_v31, 0.0  ;;  %v472_v33 = vpop.f32.mrf.mxu2  ;;  %v435_v21 = vpop.f32.mrf.mxu3 }
  0xde   :  { %v369_v34 = vpop.f32.mrf.mxu0 }
  0xdf   :  { %v510_v35 = vpack.c.bf16 %v494_v32, %v494_v32  ;;  %v370_v36 = vadd.f32 %v1004_v28, %v369_v34  ;;  %v418_v37 = vpop.f32.mrf.mxu1 }
  0xe1   :  { %527 = vst.msk [vmem:[%s1089_s3 + $0x1c] sm:$0xf] %vm519_vm1, %v510_v35  ;;  %v419_v38 = vadd.f32 %v418_v37, %v370_v36 }
  0xe3   :  { %v468_v40 = vadd.f32 %v467_v14, %v419_v38  ;;  %v434_v14 = vadd.f32 %v433_v4, %v385_v9 }
  0xe5   :  { %v495_v41 = vmax.f32 %v468_v40, 0.0  ;;  %v474_v42 = vpop.f32.mrf.mxu2 }
  0xe6   :  { %v371_v43 = vpop.f32.mrf.mxu0 }
  0xe7   :  { %v511_v44 = vpack.c.bf16 %v495_v41, %v495_v41  ;;  %v372_v45 = vadd.f32 %v1004_v28, %v371_v43  ;;  %v420_v46 = vpop.f32.mrf.mxu1 }
  0xe9   :  { %528 = vst.msk [vmem:[%s1089_s3 + $0x20] sm:$0xf] %vm519_vm1, %v511_v44  ;;  %v421_v48 = vadd.f32 %v420_v46, %v372_v45 }
  0xeb   :  { %v470_v49 = vadd.f32 %v469_v23, %v421_v48  ;;  %v436_v23 = vadd.f32 %v435_v21, %v387_v16 }
  0xed   :  { %v496_v52 = vmax.f32 %v470_v49, 0.0  ;;  %v477_v53 = vpop.f32.mrf.mxu2 }
  0xee   :  { %v478_v54 = vadd.f32 %v477_v53, %v429_v50  ;;  %v374_v55 = vpop.f32.mrf.mxu0 }
  0xef   :  { %v512_v56 = vpack.c.bf16 %v496_v52, %v496_v52  ;;  %v375_v57 = vadd.f32 %v1004_v28, %v374_v55  ;;  %v423_v59 = vpop.f32.mrf.mxu1 }
  0xf0   :  { %v499_v58 = vmax.f32 %v478_v54, 0.0 }
  0xf1   :  { %529 = vst.msk [vmem:[%s1089_s3 + $0x24] sm:$0xf] %vm519_vm1, %v512_v56  ;;  %v424_v61 = vadd.f32 %v423_v59, %v375_v57 }
  0xf2   :  { %v515_v62 = vpack.c.bf16 %v499_v58, %v499_v58 }
  0xf3   :  { %v473_v63 = vadd.f32 %v472_v33, %v424_v61 }
  0xf4   :  { %532 = vst.msk [vmem:[%s1089_s3 + $0x30] sm:$0xf] %vm519_vm1, %v515_v62 }
  0xf5   :  { %v497_v1 = vmax.f32 %v473_v63, 0.0  ;;  %v479_v2 = vpop.f32.mrf.mxu2 }
  0xf6   :  { %v480_v3 = vadd.f32 %v479_v2, %v431_v0  ;;  %v376_v5 = vpop.f32.mrf.mxu0 }
  0xf7   :  { %v513_v6 = vpack.c.bf16 %v497_v1, %v497_v1  ;;  %v377_v7 = vadd.f32 %v1004_v28, %v376_v5  ;;  %v425_v8 = vpop.f32.mrf.mxu1 }
  0xf8   :  { %v500_v10 = vmax.f32 %v480_v3, 0.0 }
  0xf9   :  { %530 = vst.msk [vmem:[%s1089_s3 + $0x28] sm:$0xf] %vm519_vm1, %v513_v6  ;;  %v426_v11 = vadd.f32 %v425_v8, %v377_v7 }
  0xfa   :  { %v516_v12 = vpack.c.bf16 %v500_v10, %v500_v10 }
  0xfb   :  { %v475_v13 = vadd.f32 %v474_v42, %v426_v11 }
  0xfc   :  { %533 = vst.msk [vmem:[%s1089_s3 + $0x34] sm:$0xf] %vm519_vm1, %v516_v12 }
  0xfd   :  { %v498_v15 = vmax.f32 %v475_v13, 0.0  ;;  %v482_v17 = vpop.f32.mrf.mxu2 }
  0xfe   :  { %v483_v18 = vadd.f32 %v482_v17, %v434_v14 }
  0xff   :  { %v514_v19 = vpack.c.bf16 %v498_v15, %v498_v15 }
 0x100   :  { %v501_v20 = vmax.f32 %v483_v18, 0.0 }
 0x101   :  { %531 = vst.msk [vmem:[%s1089_s3 + $0x2c] sm:$0xf] %vm519_vm1, %v514_v19 }
 0x102   :  { %v517_v22 = vpack.c.bf16 %v501_v20, %v501_v20 }
 0x104   :  { %534 = vst.msk [vmem:[%s1089_s3 + $0x38] sm:$0xf] %vm519_vm1, %v517_v22 }
 0x105   :  { %v484_v24 = vpop.f32.mrf.mxu2 }
 0x106   :  { %v485_v25 = vadd.f32 %v484_v24, %v436_v23 }
 0x108   :  { %v502_v26 = vmax.f32 %v485_v25, 0.0 }
 0x10a   :  { %v518_v27 = vpack.c.bf16 %v502_v26, %v502_v26 }
 0x10c   :  { %535 = vst.msk [vmem:[%s1089_s3 + $0x3c] sm:$0xf] %vm519_vm1, %v518_v27 }

// kernel: autoencoder_forward.12
= control target key start
LH: loop header
LB: loop body
LE: loop exit
PB: predicated region body
PF: predicated region fallthrough
CT: control target
= control target key end

     0   :  { %vm536_vm0 = vcmask 1040384   ;;  %vm540_vm1 = vcmask 1042434   ;;  %vm546_vm2 = vcmask 1044484   ;;  %vm544_vm3 = vcmask 1041408   ;;  %s1307_s1 = inlined_call_operand.vmem [shape: bf16[128,1024], index: 1, kind: input, shape index: {}]   ;;  %s1308_s0 = inlined_call_operand.vmem [shape: bf16[2,128], index: 0, kind: input, shape index: {}]   ;;  %s1309_s2 = inlined_call_operand.vmem [shape: f32[1,1024], index: 2, kind: input, shape index: {}]   ;;  %s1310_s3 = inlined_call_operand.vmem [shape: bf16[2,1024], index: 3, kind: output, shape index: {}]  }
   0x1   :  { %v790_v0 = vld [vmem:[%s1307_s1 + $0x1c0] sm:$0xf]  ;;  %v876_v2 = vld [vmem:[%s1307_s1 + $0x1c4] sm:$0xf]  ;;  %v798_v5 = vld [vmem:[%s1307_s1 + $0x1c8] sm:$0xf] }
   0x2   :  { %v880_v1 = vld [vmem:[%s1307_s1 + $0x1dc] sm:$0xf0]  ;;  %v792_v4 = vld [vmem:[%s1307_s1 + $0x1e0] sm:$0xf0]  ;;  %v881_v6 = vld [vmem:[%s1307_s1 + $0x1e4] sm:$0xf0] }
   0x3   :  { %v791_v3 = vor.u32 %v880_v1, %v790_v0  ;;  %v795_v7 = vor.u32 %v876_v2, %v792_v4  ;;  %v799_v8 = vor.u32 %v881_v6, %v798_v5  ;;  %v877_v9 = vld [vmem:[%s1307_s1 + $0x1cc] sm:$0xf]  ;;  %v758_v11 = vld [vmem:[%s1307_s1 + $0x180] sm:$0xf]  ;;  %v868_v14 = vld [vmem:[%s1307_s1 + $0x184] sm:$0xf] }
   0x4   :  { %v800_v10 = vld [vmem:[%s1307_s1 + $0x1e8] sm:$0xf0]  ;;  %v872_v13 = vld [vmem:[%s1307_s1 + $0x19c] sm:$0xf0]  ;;  %v760_v15 = vld [vmem:[%s1307_s1 + $0x1a0] sm:$0xf0] }
   0x5   :  { %417 = vmatpush.bf16.msra.mxu0 %v791_v3  ;;  %v803_v12 = vor.u32 %v877_v9, %v800_v10  ;;  %430 = vmatpush.bf16.msra.mxu1 %v795_v7  ;;  %v759_v16 = vor.u32 %v872_v13, %v758_v11  ;;  %v763_v17 = vor.u32 %v868_v14, %v760_v15  ;;  %v766_v18 = vld [vmem:[%s1307_s1 + $0x188] sm:$0xf]  ;;  %v869_v20 = vld [vmem:[%s1307_s1 + $0x18c] sm:$0xf]  ;;  %v726_v23 = vld [vmem:[%s1307_s1 + $0x140] sm:$0xf] }
   0x6   :  { %443 = vmatpush.bf16.msra.mxu2 %v799_v8  ;;  %v873_v19 = vld [vmem:[%s1307_s1 + $0x1a4] sm:$0xf0]  ;;  %v768_v22 = vld [vmem:[%s1307_s1 + $0x1a8] sm:$0xf0]  ;;  %v864_v24 = vld [vmem:[%s1307_s1 + $0x15c] sm:$0xf0] }
   0x7   :  { %456 = vmatpush.bf16.msra.mxu3 %v803_v12  ;;  %v767_v21 = vor.u32 %v873_v19, %v766_v18  ;;  %v771_v25 = vor.u32 %v869_v20, %v768_v22  ;;  %v860_v26 = vld [vmem:[%s1307_s1 + $0x144] sm:$0xf]  ;;  %v734_v28 = vld [vmem:[%s1307_s1 + $0x148] sm:$0xf]  ;;  %v727_v29 = vor.u32 %v864_v24, %v726_v23  ;;  %v861_v31 = vld [vmem:[%s1307_s1 + $0x14c] sm:$0xf] }
   0x8   :  { %v728_v27 = vld [vmem:[%s1307_s1 + $0x160] sm:$0xf0]  ;;  %v865_v30 = vld [vmem:[%s1307_s1 + $0x164] sm:$0xf0]  ;;  %v736_v32 = vld [vmem:[%s1307_s1 + $0x168] sm:$0xf0] }
   0x9   :  { %418 = vmatpush.bf16.msra.mxu0 %v759_v16  ;;  %431 = vmatpush.bf16.msra.mxu1 %v763_v17  ;;  %v731_v33 = vor.u32 %v860_v26, %v728_v27  ;;  %v735_v34 = vor.u32 %v865_v30, %v734_v28  ;;  %v694_v35 = vld [vmem:[%s1307_s1 + $0x100] sm:$0xf]  ;;  %v852_v37 = vld [vmem:[%s1307_s1 + $0x104] sm:$0xf]  ;;  %v739_v38 = vor.u32 %v861_v31, %v736_v32  ;;  %v702_v40 = vld [vmem:[%s1307_s1 + $0x108] sm:$0xf] }
   0xa   :  { %444 = vmatpush.bf16.msra.mxu2 %v767_v21  ;;  %v856_v36 = vld [vmem:[%s1307_s1 + $0x11c] sm:$0xf0]  ;;  %v696_v39 = vld [vmem:[%s1307_s1 + $0x120] sm:$0xf0]  ;;  %v857_v41 = vld [vmem:[%s1307_s1 + $0x124] sm:$0xf0] }
   0xb   :  { %457 = vmatpush.bf16.msra.mxu3 %v771_v25  ;;  %v853_v42 = vld [vmem:[%s1307_s1 + $0x10c] sm:$0xf]  ;;  %v695_v44 = vor.u32 %v856_v36, %v694_v35  ;;  %v699_v45 = vor.u32 %v852_v37, %v696_v39  ;;  %v703_v46 = vor.u32 %v857_v41, %v702_v40  ;;  %v662_v47 = vld [vmem:[%s1307_s1 + $0xc0] sm:$0xf]  ;;  %v844_v49 = vld [vmem:[%s1307_s1 + $0xc4] sm:$0xf] }
   0xc   :  { %v704_v43 = vld [vmem:[%s1307_s1 + $0x128] sm:$0xf0]  ;;  %v848_v48 = vld [vmem:[%s1307_s1 + $0xdc] sm:$0xf0]  ;;  %v664_v51 = vld [vmem:[%s1307_s1 + $0xe0] sm:$0xf0] }
   0xd   :  { %419 = vmatpush.bf16.msra.mxu0 %v727_v29  ;;  %432 = vmatpush.bf16.msra.mxu1 %v731_v33  ;;  %v707_v50 = vor.u32 %v853_v42, %v704_v43  ;;  %v670_v52 = vld [vmem:[%s1307_s1 + $0xc8] sm:$0xf]  ;;  %v845_v54 = vld [vmem:[%s1307_s1 + $0xcc] sm:$0xf]  ;;  %v663_v56 = vor.u32 %v848_v48, %v662_v47  ;;  %v667_v57 = vor.u32 %v844_v49, %v664_v51  ;;  %v630_v59 = vld [vmem:[%s1307_s1 + $0x80] sm:$0xf] }
   0xe   :  { %445 = vmatpush.bf16.msra.mxu2 %v735_v34  ;;  %v849_v53 = vld [vmem:[%s1307_s1 + $0xe4] sm:$0xf0]  ;;  %v672_v55 = vld [vmem:[%s1307_s1 + $0xe8] sm:$0xf0]  ;;  %v840_v60 = vld [vmem:[%s1307_s1 + $0x9c] sm:$0xf0] }
   0xf   :  { %458 = vmatpush.bf16.msra.mxu3 %v739_v38  ;;  %v671_v58 = vor.u32 %v849_v53, %v670_v52  ;;  %v836_v61 = vld [vmem:[%s1307_s1 + $0x84] sm:$0xf]  ;;  %v675_v62 = vor.u32 %v845_v54, %v672_v55  ;;  %v638_v0 = vld [vmem:[%s1307_s1 + $0x88] sm:$0xf]  ;;  %v837_v2 = vld [vmem:[%s1307_s1 + $0x8c] sm:$0xf]  ;;  %v631_v4 = vor.u32 %v840_v60, %v630_v59 }
  0x10   :  { %v632_v63 = vld [vmem:[%s1307_s1 + $0xa0] sm:$0xf0]  ;;  %v841_v1 = vld [vmem:[%s1307_s1 + $0xa4] sm:$0xf0]  ;;  %v640_v3 = vld [vmem:[%s1307_s1 + $0xa8] sm:$0xf0] }
  0x11   :  { %420 = vmatpush.bf16.msra.mxu0 %v695_v44  ;;  %433 = vmatpush.bf16.msra.mxu1 %v699_v45  ;;  %v635_v5 = vor.u32 %v836_v61, %v632_v63  ;;  %v639_v6 = vor.u32 %v841_v1, %v638_v0  ;;  %v598_v7 = vld [vmem:[%s1307_s1 + $0x40] sm:$0xf]  ;;  %v828_v9 = vld [vmem:[%s1307_s1 + $0x44] sm:$0xf]  ;;  %v643_v10 = vor.u32 %v837_v2, %v640_v3  ;;  %v606_v12 = vld [vmem:[%s1307_s1 + $0x48] sm:$0xf] }
  0x12   :  { %446 = vmatpush.bf16.msra.mxu2 %v703_v46  ;;  %v832_v8 = vld [vmem:[%s1307_s1 + $0x5c] sm:$0xf0]  ;;  %v600_v11 = vld [vmem:[%s1307_s1 + $0x60] sm:$0xf0]  ;;  %v833_v13 = vld [vmem:[%s1307_s1 + $0x64] sm:$0xf0] }
  0x13   :  { %459 = vmatpush.bf16.msra.mxu3 %v707_v50  ;;  %v829_v14 = vld [vmem:[%s1307_s1 + $0x4c] sm:$0xf]  ;;  %v599_v16 = vor.u32 %v832_v8, %v598_v7  ;;  %v566_v17 = vld [vmem:[%s1307_s1] sm:$0xf]  ;;  %v603_v19 = vor.u32 %v828_v9, %v600_v11  ;;  %v607_v20 = vor.u32 %v833_v13, %v606_v12  ;;  %v820_v21 = vld [vmem:[%s1307_s1 + $0x4] sm:$0xf] }
  0x14   :  { %v608_v15 = vld [vmem:[%s1307_s1 + $0x68] sm:$0xf0]  ;;  %v824_v18 = vld [vmem:[%s1307_s1 + $0x1c] sm:$0xf0]  ;;  %v568_v22 = vld [vmem:[%s1307_s1 + $0x20] sm:$0xf0] }
  0x15   :  { %421 = vmatpush.bf16.msra.mxu0 %v663_v56  ;;  %434 = vmatpush.bf16.msra.mxu1 %v667_v57  ;;  %v574_v23 = vld [vmem:[%s1307_s1 + $0x8] sm:$0xf]  ;;  %v611_v24 = vor.u32 %v829_v14, %v608_v15  ;;  %v821_v26 = vld [vmem:[%s1307_s1 + $0xc] sm:$0xf]  ;;  %v806_v28 = vld [vmem:[%s1307_s1 + $0x1d0] sm:$0xf]  ;;  %v567_v31 = vor.u32 %v824_v18, %v566_v17  ;;  %v571_v35 = vor.u32 %v820_v21, %v568_v22 }
  0x16   :  { %447 = vmatpush.bf16.msra.mxu2 %v671_v58  ;;  %v825_v25 = vld [vmem:[%s1307_s1 + $0x24] sm:$0xf0]  ;;  %v576_v27 = vld [vmem:[%s1307_s1 + $0x28] sm:$0xf0]  ;;  %v882_v29 = vld [vmem:[%s1307_s1 + $0x1ec] sm:$0xf0] }
  0x17   :  { %460 = vmatpush.bf16.msra.mxu3 %v675_v62  ;;  %v878_v30 = vld [vmem:[%s1307_s1 + $0x1d4] sm:$0xf]  ;;  %v814_v33 = vld [vmem:[%s1307_s1 + $0x1d8] sm:$0xf]  ;;  %v575_v36 = vor.u32 %v825_v25, %v574_v23  ;;  %v879_v37 = vld [vmem:[%s1307_s1 + $0x1dc] sm:$0xf]  ;;  %v579_v39 = vor.u32 %v821_v26, %v576_v27  ;;  %v807_v40 = vor.u32 %v882_v29, %v806_v28 }
  0x18   :  { %v808_v32 = vld [vmem:[%s1307_s1 + $0x1f0] sm:$0xf0]  ;;  %v883_v34 = vld [vmem:[%s1307_s1 + $0x1f4] sm:$0xf0]  ;;  %v816_v38 = vld [vmem:[%s1307_s1 + $0x1f8] sm:$0xf0] }
  0x19   :  { %422 = vmatpush.bf16.msra.mxu0 %v631_v4  ;;  %435 = vmatpush.bf16.msra.mxu1 %v635_v5  ;;  %v811_v41 = vor.u32 %v878_v30, %v808_v32  ;;  %v815_v42 = vor.u32 %v883_v34, %v814_v33  ;;  %v774_v43 = vld [vmem:[%s1307_s1 + $0x190] sm:$0xf]  ;;  %v870_v45 = vld [vmem:[%s1307_s1 + $0x194] sm:$0xf]  ;;  %v819_v46 = vor.u32 %v879_v37, %v816_v38  ;;  %v782_v48 = vld [vmem:[%s1307_s1 + $0x198] sm:$0xf] }
  0x1a   :  { %448 = vmatpush.bf16.msra.mxu2 %v639_v6  ;;  %v874_v44 = vld [vmem:[%s1307_s1 + $0x1ac] sm:$0xf0]  ;;  %v776_v47 = vld [vmem:[%s1307_s1 + $0x1b0] sm:$0xf0]  ;;  %v875_v49 = vld [vmem:[%s1307_s1 + $0x1b4] sm:$0xf0] }
  0x1b   :  { %461 = vmatpush.bf16.msra.mxu3 %v643_v10  ;;  %v871_v50 = vld [vmem:[%s1307_s1 + $0x19c] sm:$0xf]  ;;  %v1147_v52 = vld [vmem:[%s1308_s0] sm:$0x1]  ;;  %v775_v53 = vor.u32 %v874_v44, %v774_v43  ;;  %v779_v54 = vor.u32 %v870_v45, %v776_v47  ;;  %v783_v55 = vor.u32 %v875_v49, %v782_v48  ;;  %v742_v56 = vld [vmem:[%s1307_s1 + $0x150] sm:$0xf] }
  0x1c   :  { %v784_v51 = vld [vmem:[%s1307_s1 + $0x1b8] sm:$0xf0]  ;;  %v866_v57 = vld [vmem:[%s1307_s1 + $0x16c] sm:$0xf0]  ;;  %v862_v58 = vld [vmem:[%s1307_s1 + $0x154] sm:$0xf] }
  0x1d   :  { %423 = vmatpush.bf16.msra.mxu0 %v599_v16  ;;  %436 = vmatpush.bf16.msra.mxu1 %v603_v19  ;;  %v787_v59 = vor.u32 %v871_v50, %v784_v51  ;;  %v744_v60 = vld [vmem:[%s1307_s1 + $0x170] sm:$0xf0]  ;;  %v750_v61 = vld [vmem:[%s1307_s1 + $0x158] sm:$0xf]  ;;  %v863_v63 = vld [vmem:[%s1307_s1 + $0x15c] sm:$0xf]  ;;  %v743_v1 = vor.u32 %v866_v57, %v742_v56 }
  0x1e   :  { %449 = vmatpush.bf16.msra.mxu2 %v607_v20  ;;  %v867_v62 = vld [vmem:[%s1307_s1 + $0x174] sm:$0xf0]  ;;  %v752_v0 = vld [vmem:[%s1307_s1 + $0x178] sm:$0xf0]  ;;  %v747_v2 = vor.u32 %v862_v58, %v744_v60  ;;  %v710_v4 = vld [vmem:[%s1307_s1 + $0x110] sm:$0xf] }
  0x1f   :  { %462 = vmatpush.bf16.msra.mxu3 %v611_v24  ;;  %v751_v3 = vor.u32 %v867_v62, %v750_v61  ;;  %v858_v5 = vld [vmem:[%s1307_s1 + $0x12c] sm:$0xf0]  ;;  %v854_v6 = vld [vmem:[%s1307_s1 + $0x114] sm:$0xf]  ;;  %v755_v7 = vor.u32 %v863_v63, %v752_v0  ;;  %v718_v9 = vld [vmem:[%s1307_s1 + $0x118] sm:$0xf] }
  0x20   :  { %v712_v8 = vld [vmem:[%s1307_s1 + $0x130] sm:$0xf0]  ;;  %v859_v10 = vld [vmem:[%s1307_s1 + $0x134] sm:$0xf0]  ;;  %v855_v11 = vld [vmem:[%s1307_s1 + $0x11c] sm:$0xf]  ;;  %v711_v13 = vor.u32 %v858_v5, %v710_v4 }
  0x21   :  { %424 = vmatpush.bf16.msra.mxu0 %v567_v31  ;;  %437 = vmatpush.bf16.msra.mxu1 %v571_v35  ;;  %v720_v12 = vld [vmem:[%s1307_s1 + $0x138] sm:$0xf0]  ;;  %v715_v14 = vor.u32 %v854_v6, %v712_v8  ;;  %v719_v15 = vor.u32 %v859_v10, %v718_v9  ;;  %v678_v16 = vld [vmem:[%s1307_s1 + $0xd0] sm:$0xf]  ;;  %v846_v18 = vld [vmem:[%s1307_s1 + $0xd4] sm:$0xf] }
  0x22   :  { %450 = vmatpush.bf16.msra.mxu2 %v575_v36  ;;  %v850_v17 = vld [vmem:[%s1307_s1 + $0xec] sm:$0xf0]  ;;  %v723_v19 = vor.u32 %v855_v11, %v720_v12  ;;  %v680_v20 = vld [vmem:[%s1307_s1 + $0xf0] sm:$0xf0]  ;;  %v686_v21 = vld [vmem:[%s1307_s1 + $0xd8] sm:$0xf] }
  0x23   :  { %463 = vmatpush.bf16.msra.mxu3 %v579_v39  ;;  %v851_v22 = vld [vmem:[%s1307_s1 + $0xf4] sm:$0xf0]  ;;  %v847_v23 = vld [vmem:[%s1307_s1 + $0xdc] sm:$0xf]  ;;  %v679_v25 = vor.u32 %v850_v17, %v678_v16  ;;  %v683_v26 = vor.u32 %v846_v18, %v680_v20  ;;  %v646_v28 = vld [vmem:[%s1307_s1 + $0x90] sm:$0xf] }
  0x24   :  { %425 = vmatmul.bf16.vlgmr.msra.gmra.mxu0 %v1147_v52  ;;  %438 = vmatmul.bf16.vlgmr.msra.gmra.mxu1 %v1147_v52  ;;  %v688_v24 = vld [vmem:[%s1307_s1 + $0xf8] sm:$0xf0]  ;;  %v687_v27 = vor.u32 %v851_v22, %v686_v21  ;;  %v842_v29 = vld [vmem:[%s1307_s1 + $0xac] sm:$0xf0]  ;;  %v838_v30 = vld [vmem:[%s1307_s1 + $0x94] sm:$0xf] }
  0x25   :  { %469 = vmatpush.bf16.msrb.mxu0 %v807_v40  ;;  %482 = vmatpush.bf16.msrb.mxu1 %v811_v41  ;;  %v691_v31 = vor.u32 %v847_v23, %v688_v24  ;;  %v648_v32 = vld [vmem:[%s1307_s1 + $0xb0] sm:$0xf0]  ;;  %v654_v33 = vld [vmem:[%s1307_s1 + $0x98] sm:$0xf]  ;;  %v839_v35 = vld [vmem:[%s1307_s1 + $0x9c] sm:$0xf]  ;;  %v647_v37 = vor.u32 %v842_v29, %v646_v28 }
  0x26   :  { %495 = vmatpush.bf16.msrb.mxu2 %v815_v42  ;;  %464 = vmatmul.bf16.vlgmr.msra.gmra.mxu3 %v1147_v52  ;;  %v843_v34 = vld [vmem:[%s1307_s1 + $0xb4] sm:$0xf0]  ;;  %v656_v36 = vld [vmem:[%s1307_s1 + $0xb8] sm:$0xf0]  ;;  %v651_v38 = vor.u32 %v838_v30, %v648_v32  ;;  %v614_v40 = vld [vmem:[%s1307_s1 + $0x50] sm:$0xf] }
  0x27   :  { %508 = vmatpush.bf16.msrb.mxu3 %v819_v46  ;;  %451 = vmatmul.bf16.vlgmr.msra.gmra.mxu2 %v1147_v52  ;;  %v655_v39 = vor.u32 %v843_v34, %v654_v33  ;;  %v834_v41 = vld [vmem:[%s1307_s1 + $0x6c] sm:$0xf0]  ;;  %v830_v42 = vld [vmem:[%s1307_s1 + $0x54] sm:$0xf]  ;;  %v659_v43 = vor.u32 %v839_v35, %v656_v36  ;;  %v622_v45 = vld [vmem:[%s1307_s1 + $0x58] sm:$0xf] }
  0x28   :  { %v616_v44 = vld [vmem:[%s1307_s1 + $0x70] sm:$0xf0]  ;;  %v835_v46 = vld [vmem:[%s1307_s1 + $0x74] sm:$0xf0]  ;;  %v831_v47 = vld [vmem:[%s1307_s1 + $0x5c] sm:$0xf]  ;;  %v615_v49 = vor.u32 %v834_v41, %v614_v40 }
  0x29   :  { %470 = vmatpush.bf16.msrb.mxu0 %v775_v53  ;;  %483 = vmatpush.bf16.msrb.mxu1 %v779_v54  ;;  %v624_v48 = vld [vmem:[%s1307_s1 + $0x78] sm:$0xf0]  ;;  %v619_v50 = vor.u32 %v830_v42, %v616_v44  ;;  %v623_v51 = vor.u32 %v835_v46, %v622_v45  ;;  %v582_v53 = vld [vmem:[%s1307_s1 + $0x10] sm:$0xf]  ;;  %v584_v57 = vld [vmem:[%s1307_s1 + $0x30] sm:$0xf0] }
  0x2a   :  { %496 = vmatpush.bf16.msrb.mxu2 %v783_v55  ;;  %v826_v54 = vld [vmem:[%s1307_s1 + $0x2c] sm:$0xf0]  ;;  %v822_v55 = vld [vmem:[%s1307_s1 + $0x14] sm:$0xf]  ;;  %v627_v56 = vor.u32 %v831_v47, %v624_v48  ;;  %v590_v58 = vld [vmem:[%s1307_s1 + $0x18] sm:$0xf] }
  0x2b   :  { %509 = vmatpush.bf16.msrb.mxu3 %v787_v59  ;;  %v827_v59 = vld [vmem:[%s1307_s1 + $0x34] sm:$0xf0]  ;;  %v823_v60 = vld [vmem:[%s1307_s1 + $0x1c] sm:$0xf]  ;;  %v583_v62 = vor.u32 %v826_v54, %v582_v53  ;;  %v587_v63 = vor.u32 %v822_v55, %v584_v57  ;;  %v79_v10 = vld [vmem:[%s1309_s2] sm:$0xff]  ;;  %vm550_vm4 = vcmask 1046534  }
  0x2c   :  { %v592_v61 = vld [vmem:[%s1307_s1 + $0x38] sm:$0xf0]  ;;  %v591_v0 = vor.u32 %v827_v59, %v590_v58  ;;  %v81_v11 = vperm.slane %v79_v10, 0  ;;  %v82_v12 = vperm.slane %v79_v10, 1  ;;  %v86_v16 = vperm.slane %v79_v10, 5 }
  0x2d   :  { %471 = vmatpush.bf16.msrb.mxu0 %v743_v1  ;;  %484 = vmatpush.bf16.msrb.mxu1 %v747_v2  ;;  %v595_v1 = vor.u32 %v823_v60, %v592_v61  ;;  %v88_v28 = vperm.slane %v79_v10, 7  ;;  %vm554_vm5 = vcmask 1045508   ;;  %vm556_vm6 = vcmask 1043456  }
  0x2e   :  { %497 = vmatpush.bf16.msrb.mxu2 %v751_v3 }
  0x2f   :  { %510 = vmatpush.bf16.msrb.mxu3 %v755_v7 }
  0x31   :  { %472 = vmatpush.bf16.msrb.mxu0 %v711_v13  ;;  %485 = vmatpush.bf16.msrb.mxu1 %v715_v14  ;;  %v83_v13 = vperm.slane %v79_v10, 2  ;;  %v84_v14 = vperm.slane %v79_v10, 3 }
  0x32   :  { %498 = vmatpush.bf16.msrb.mxu2 %v719_v15  ;;  %v85_v15 = vperm.slane %v79_v10, 4 }
  0x33   :  { %511 = vmatpush.bf16.msrb.mxu3 %v723_v19 }
  0x35   :  { %473 = vmatpush.bf16.msrb.mxu0 %v679_v25  ;;  %486 = vmatpush.bf16.msrb.mxu1 %v683_v26  ;;  %v87_v26 = vperm.slane %v79_v10, 6 }
  0x36   :  { %499 = vmatpush.bf16.msrb.mxu2 %v687_v27 }
  0x37   :  { %512 = vmatpush.bf16.msrb.mxu3 %v691_v31 }
  0x39   :  { %474 = vmatpush.bf16.msrb.mxu0 %v647_v37  ;;  %487 = vmatpush.bf16.msrb.mxu1 %v651_v38 }
  0x3a   :  { %500 = vmatpush.bf16.msrb.mxu2 %v655_v39 }
  0x3b   :  { %513 = vmatpush.bf16.msrb.mxu3 %v659_v43 }
  0x3d   :  { %475 = vmatpush.bf16.msrb.mxu0 %v615_v49  ;;  %488 = vmatpush.bf16.msrb.mxu1 %v619_v50 }
  0x3e   :  { %501 = vmatpush.bf16.msrb.mxu2 %v623_v51 }
  0x3f   :  { %514 = vmatpush.bf16.msrb.mxu3 %v627_v56 }
  0x41   :  { %476 = vmatpush.bf16.msrb.mxu0 %v583_v62  ;;  %489 = vmatpush.bf16.msrb.mxu1 %v587_v63 }
  0x42   :  { %502 = vmatpush.bf16.msrb.mxu2 %v591_v0 }
  0x43   :  { %515 = vmatpush.bf16.msrb.mxu3 %v595_v1 }
  0x44   :  { %477 = vmatmul.bf16.vlgmr.msrb.gmra.mxu0 %v1147_v52  ;;  %490 = vmatmul.bf16.vlgmr.msrb.gmra.mxu1 %v1147_v52 }
  0x45   :  { %503 = vmatmul.bf16.vlgmr.msrb.gmra.mxu2 %v1147_v52 }
  0x46   :  { %516 = vmatmul.bf16.vlgmr.msrb.gmra.mxu3 %v1147_v52 }
  0xa1   :  { %v426_v2 = vpop.f32.mrf.mxu0  ;;  %v439_v3 = vpop.f32.mrf.mxu1 }
  0xa2   :  { %v427_v17 = vadd.f32 %v426_v2, %v81_v11  ;;  %v440_v52 = vadd.f32 %v439_v3, %v82_v12 }
  0xa4   :  { %v521_v24 = vpack.c.bf16 %v440_v52, %v427_v17 }
  0xa6   :  { %v529_v30 = vrot.slane %v521_v24, 3 }
  0xa8   :  { %v539_v41 = vsel %vm536_vm0, %v521_v24, %v529_v30 }
  0xa9   :  { %v465_v5 = vpop.f32.mrf.mxu3  ;;  %v428_v6 = vpop.f32.mrf.mxu0 }
  0xaa   :  { %v452_v4 = vpop.f32.mrf.mxu2  ;;  %v441_v7 = vpop.f32.mrf.mxu1  ;;  %v466_v19 = vadd.f32 %v465_v5, %v84_v14 }
  0xab   :  { %v453_v18 = vadd.f32 %v452_v4, %v83_v13 }
  0xad   :  { %v522_v25 = vpack.c.bf16 %v466_v19, %v453_v18 }
  0xaf   :  { %v530_v31 = vrot.slane %v522_v25, 6  ;;  %v531_v35 = vrot.slane %v522_v25, 1 }
  0xb1   :  { %v467_v9 = vpop.f32.mrf.mxu3  ;;  %v543_v42 = vsel %vm540_vm1, %v530_v31, %v531_v35 }
  0xb2   :  { %v454_v8 = vpop.f32.mrf.mxu2  ;;  %v545_v48 = vsel %vm544_vm3, %v539_v41, %v543_v42 }
  0xc1   :  { %v478_v20 = vpop.f32.mrf.mxu0  ;;  %v491_v22 = vpop.f32.mrf.mxu1 }
  0xc2   :  { %v479_v21 = vadd.f32 %v478_v20, %v85_v15  ;;  %v492_v23 = vadd.f32 %v491_v22, %v86_v16 }
  0xc4   :  { %v523_v27 = vpack.c.bf16 %v492_v23, %v479_v21 }
  0xc6   :  { %v532_v36 = vrot.slane %v523_v27, 4  ;;  %v533_v37 = vrot.slane %v523_v27, 7 }
  0xc8   :  { %v504_v29 = vpop.f32.mrf.mxu2  ;;  %v549_v43 = vsel %vm546_vm2, %v532_v36, %v533_v37 }
  0xc9   :  { %v505_v32 = vadd.f32 %v504_v29, %v87_v26  ;;  %v517_v33 = vpop.f32.mrf.mxu3  ;;  %v480_v34 = vpop.f32.mrf.mxu0 }
  0xca   :  { %v518_v38 = vadd.f32 %v517_v33, %v88_v28  ;;  %v493_v39 = vpop.f32.mrf.mxu1 }
  0xcc   :  { %v524_v40 = vpack.c.bf16 %v518_v38, %v505_v32 }
  0xce   :  { %v534_v44 = vrot.slane %v524_v40, 2  ;;  %v535_v45 = vrot.slane %v524_v40, 5 }
  0xd0   :  { %v553_v46 = vsel %vm550_vm4, %v534_v44, %v535_v45  ;;  %v506_v47 = vpop.f32.mrf.mxu2 }
  0xd1   :  { %v555_v49 = vsel %vm554_vm5, %v549_v43, %v553_v46  ;;  %v519_v50 = vpop.f32.mrf.mxu3 }
  0xd2   :  { %v557_v51 = vsel %vm556_vm6, %v545_v48, %v555_v49 }
  0xd3   :  { %559 = vst [vmem:[%s1310_s3] sm:$0xff] %v557_v51 }

// kernel: autoencoder_forward.11
= control target key start
LH: loop header
LB: loop body
LE: loop exit
PB: predicated region body
PF: predicated region fallthrough
CT: control target
= control target key end

     0   :  { %s1201_s1 = inlined_call_operand.vmem [shape: bf16[1024,128], index: 1, kind: input, shape index: {}]   ;;  %s1202_s0 = inlined_call_operand.vmem [shape: bf16[2,1024], index: 0, kind: input, shape index: {}]   ;;  %s1203_s2 = inlined_call_operand.vmem [shape: f32[1,128], index: 2, kind: input, shape index: {}]   ;;  %s1204_s3 = inlined_call_operand.vmem [shape: bf16[2,128], index: 3, kind: output, shape index: {}]  }
   0x1   :  { %v922_v0 = vld [vmem:[%s1201_s1 + $0x38] sm:$0xff]  ;;  %v921_v4 = vld [vmem:[%s1201_s1 + $0x30] sm:$0xff]  ;;  %v920_v8 = vld [vmem:[%s1201_s1 + $0x28] sm:$0xff] }
   0x2   :  { %v930_v1 = vld [vmem:[%s1201_s1 + $0x78] sm:$0xff]  ;;  %549 = vmatpush.bf16.msra.mxu0 %v922_v0  ;;  %v929_v5 = vld [vmem:[%s1201_s1 + $0x70] sm:$0xff]  ;;  %v928_v9 = vld [vmem:[%s1201_s1 + $0x68] sm:$0xff] }
   0x3   :  { %v938_v2 = vld [vmem:[%s1201_s1 + $0xb8] sm:$0xff]  ;;  %562 = vmatpush.bf16.msra.mxu1 %v930_v1  ;;  %v937_v6 = vld [vmem:[%s1201_s1 + $0xb0] sm:$0xff]  ;;  %v936_v10 = vld [vmem:[%s1201_s1 + $0xa8] sm:$0xff] }
   0x4   :  { %v946_v3 = vld [vmem:[%s1201_s1 + $0xf8] sm:$0xff]  ;;  %575 = vmatpush.bf16.msra.mxu2 %v938_v2  ;;  %v945_v7 = vld [vmem:[%s1201_s1 + $0xf0] sm:$0xff]  ;;  %v944_v11 = vld [vmem:[%s1201_s1 + $0xe8] sm:$0xff] }
   0x5   :  { %588 = vmatpush.bf16.msra.mxu3 %v946_v3  ;;  %v919_v12 = vld [vmem:[%s1201_s1 + $0x20] sm:$0xff]  ;;  %v918_v17 = vld [vmem:[%s1201_s1 + $0x18] sm:$0xff]  ;;  %v917_v21 = vld [vmem:[%s1201_s1 + $0x10] sm:$0xff] }
   0x6   :  { %550 = vmatpush.bf16.msra.mxu0 %v921_v4  ;;  %v927_v13 = vld [vmem:[%s1201_s1 + $0x60] sm:$0xff]  ;;  %v926_v18 = vld [vmem:[%s1201_s1 + $0x58] sm:$0xff]  ;;  %v925_v22 = vld [vmem:[%s1201_s1 + $0x50] sm:$0xff] }
   0x7   :  { %563 = vmatpush.bf16.msra.mxu1 %v929_v5  ;;  %v935_v14 = vld [vmem:[%s1201_s1 + $0xa0] sm:$0xff]  ;;  %v934_v19 = vld [vmem:[%s1201_s1 + $0x98] sm:$0xff]  ;;  %v933_v23 = vld [vmem:[%s1201_s1 + $0x90] sm:$0xff] }
   0x8   :  { %576 = vmatpush.bf16.msra.mxu2 %v937_v6  ;;  %v943_v15 = vld [vmem:[%s1201_s1 + $0xe0] sm:$0xff]  ;;  %v942_v20 = vld [vmem:[%s1201_s1 + $0xd8] sm:$0xff]  ;;  %v941_v24 = vld [vmem:[%s1201_s1 + $0xd0] sm:$0xff] }
   0x9   :  { %589 = vmatpush.bf16.msra.mxu3 %v945_v7  ;;  %v14_v16 = vld [vmem:[%s1202_s0] sm:$0xff]  ;;  %v916_v25 = vld [vmem:[%s1201_s1 + $0x8] sm:$0xff]  ;;  %v954_v33 = vld [vmem:[%s1201_s1 + $0x138] sm:$0xff] }
   0xa   :  { %551 = vmatpush.bf16.msra.mxu0 %v920_v8  ;;  %148 = vst [vmem:[#allocation1] ss:$9 sm:$0xff] %v14_v16  ;;  %v924_v26 = vld [vmem:[%s1201_s1 + $0x48] sm:$0xff]  ;;  %v915_v29 = vld [vmem:[%s1201_s1] sm:$0xff]  ;;  %v962_v34 = vld [vmem:[%s1201_s1 + $0x178] sm:$0xff] }
   0xb   :  { %564 = vmatpush.bf16.msra.mxu1 %v928_v9  ;;  %v932_v27 = vld [vmem:[%s1201_s1 + $0x88] sm:$0xff]  ;;  %v923_v30 = vld [vmem:[%s1201_s1 + $0x40] sm:$0xff]  ;;  %v970_v35 = vld [vmem:[%s1201_s1 + $0x1b8] sm:$0xff] }
   0xc   :  { %577 = vmatpush.bf16.msra.mxu2 %v936_v10  ;;  %v940_v28 = vld [vmem:[%s1201_s1 + $0xc8] sm:$0xff]  ;;  %v931_v31 = vld [vmem:[%s1201_s1 + $0x80] sm:$0xff]  ;;  %v978_v36 = vld [vmem:[%s1201_s1 + $0x1f8] sm:$0xff] }
   0xd   :  { %590 = vmatpush.bf16.msra.mxu3 %v944_v11  ;;  %v939_v32 = vld [vmem:[%s1201_s1 + $0xc0] sm:$0xff]  ;;  %v953_v37 = vld [vmem:[%s1201_s1 + $0x130] sm:$0xff]  ;;  %v952_v45 = vld [vmem:[%s1201_s1 + $0x128] sm:$0xff] }
   0xe   :  { %552 = vmatpush.bf16.msra.mxu0 %v919_v12  ;;  %v961_v40 = vld [vmem:[%s1201_s1 + $0x170] sm:$0xff]  ;;  %v960_v46 = vld [vmem:[%s1201_s1 + $0x168] sm:$0xff]  ;;  %v951_v49 = vld [vmem:[%s1201_s1 + $0x120] sm:$0xff] }
   0xf   :  { %565 = vmatpush.bf16.msra.mxu1 %v927_v13  ;;  %v969_v43 = vld [vmem:[%s1201_s1 + $0x1b0] sm:$0xff]  ;;  %v968_v47 = vld [vmem:[%s1201_s1 + $0x1a8] sm:$0xff]  ;;  %v959_v50 = vld [vmem:[%s1201_s1 + $0x160] sm:$0xff] }
  0x10   :  { %578 = vmatpush.bf16.msra.mxu2 %v935_v14  ;;  %v977_v44 = vld [vmem:[%s1201_s1 + $0x1f0] sm:$0xff]  ;;  %v976_v48 = vld [vmem:[%s1201_s1 + $0x1e8] sm:$0xff]  ;;  %v967_v51 = vld [vmem:[%s1201_s1 + $0x1a0] sm:$0xff] }
  0x11   :  { %591 = vmatpush.bf16.msra.mxu3 %v943_v15  ;;  %v151_v38 = vld [vmem:[#allocation1 + $0x12] sm:$0xff]  ;;  %v152_v39 = vld [vmem:[#allocation1 + $0x1b] sm:$0xff]  ;;  %v150_v42 = vld [vmem:[#allocation1 + $0x9] sm:$0xff] }
  0x12   :  { %553 = vmatpush.bf16.msra.mxu0 %v918_v17  ;;  %v149_v41 = vld [vmem:[#allocation1] sm:$0xff]  ;;  %v950_v53 = vld [vmem:[%s1201_s1 + $0x118] sm:$0xff]  ;;  %v949_v57 = vld [vmem:[%s1201_s1 + $0x110] sm:$0xff] }
  0x13   :  { %566 = vmatpush.bf16.msra.mxu1 %v926_v18  ;;  %v975_v52 = vld [vmem:[%s1201_s1 + $0x1e0] sm:$0xff]  ;;  %v958_v54 = vld [vmem:[%s1201_s1 + $0x158] sm:$0xff]  ;;  %v957_v58 = vld [vmem:[%s1201_s1 + $0x150] sm:$0xff] }
  0x14   :  { %579 = vmatpush.bf16.msra.mxu2 %v934_v19  ;;  %v966_v55 = vld [vmem:[%s1201_s1 + $0x198] sm:$0xff]  ;;  %v965_v59 = vld [vmem:[%s1201_s1 + $0x190] sm:$0xff]  ;;  %v948_v61 = vld [vmem:[%s1201_s1 + $0x108] sm:$0xff] }
  0x15   :  { %592 = vmatpush.bf16.msra.mxu3 %v942_v20  ;;  %v974_v56 = vld [vmem:[%s1201_s1 + $0x1d8] sm:$0xff]  ;;  %v973_v60 = vld [vmem:[%s1201_s1 + $0x1d0] sm:$0xff]  ;;  %v956_v62 = vld [vmem:[%s1201_s1 + $0x148] sm:$0xff] }
  0x16   :  { %554 = vmatpush.bf16.msra.mxu0 %v917_v21  ;;  %v964_v63 = vld [vmem:[%s1201_s1 + $0x188] sm:$0xff]  ;;  %v947_v1 = vld [vmem:[%s1201_s1 + $0x100] sm:$0xff]  ;;  %v155_v7 = vld [vmem:[#allocation1 + $0x36] sm:$0xff] }
  0x17   :  { %567 = vmatpush.bf16.msra.mxu1 %v925_v22  ;;  %v972_v0 = vld [vmem:[%s1201_s1 + $0x1c8] sm:$0xff]  ;;  %v955_v2 = vld [vmem:[%s1201_s1 + $0x140] sm:$0xff] }
  0x18   :  { %580 = vmatpush.bf16.msra.mxu2 %v933_v23  ;;  %v963_v3 = vld [vmem:[%s1201_s1 + $0x180] sm:$0xff]  ;;  %v154_v6 = vld [vmem:[#allocation1 + $0x2d] sm:$0xff] }
  0x19   :  { %593 = vmatpush.bf16.msra.mxu3 %v941_v24  ;;  %v971_v4 = vld [vmem:[%s1201_s1 + $0x1c0] sm:$0xff] }
  0x1a   :  { %555 = vmatpush.bf16.msra.mxu0 %v916_v25  ;;  %v153_v5 = vld [vmem:[#allocation1 + $0x24] sm:$0xff]  ;;  %v979_v15 = vld [vmem:[%s1203_s2] ss:$0 sm:$0xff] }
  0x1b   :  { %568 = vmatpush.bf16.msra.mxu1 %v924_v26  ;;  %v156_v8 = vld [vmem:[#allocation1 + $0x3f] sm:$0xff] }
  0x1c   :  { %581 = vmatpush.bf16.msra.mxu2 %v932_v27 }
  0x1d   :  { %594 = vmatpush.bf16.msra.mxu3 %v940_v28 }
  0x1e   :  { %556 = vmatpush.bf16.msra.mxu0 %v915_v29 }
  0x1f   :  { %569 = vmatpush.bf16.msra.mxu1 %v923_v30 }
  0x20   :  { %582 = vmatpush.bf16.msra.mxu2 %v931_v31 }
  0x21   :  { %595 = vmatpush.bf16.msra.mxu3 %v939_v32  ;;  %557 = vmatmul.bf16.vlgmr.msra.gmra.mxu0 %v149_v41 }
  0x22   :  { %601 = vmatpush.bf16.msrb.mxu0 %v954_v33  ;;  %570 = vmatmul.bf16.vlgmr.msra.gmra.mxu1 %v150_v42 }
  0x23   :  { %614 = vmatpush.bf16.msrb.mxu1 %v962_v34  ;;  %583 = vmatmul.bf16.vlgmr.msra.gmra.mxu2 %v151_v38 }
  0x24   :  { %627 = vmatpush.bf16.msrb.mxu2 %v970_v35  ;;  %596 = vmatmul.bf16.vlgmr.msra.gmra.mxu3 %v152_v39 }
  0x25   :  { %640 = vmatpush.bf16.msrb.mxu3 %v978_v36 }
  0x26   :  { %602 = vmatpush.bf16.msrb.mxu0 %v953_v37 }
  0x27   :  { %615 = vmatpush.bf16.msrb.mxu1 %v961_v40 }
  0x28   :  { %628 = vmatpush.bf16.msrb.mxu2 %v969_v43 }
  0x29   :  { %641 = vmatpush.bf16.msrb.mxu3 %v977_v44 }
  0x2a   :  { %603 = vmatpush.bf16.msrb.mxu0 %v952_v45 }
  0x2b   :  { %616 = vmatpush.bf16.msrb.mxu1 %v960_v46 }
  0x2c   :  { %629 = vmatpush.bf16.msrb.mxu2 %v968_v47 }
  0x2d   :  { %642 = vmatpush.bf16.msrb.mxu3 %v976_v48 }
  0x2e   :  { %604 = vmatpush.bf16.msrb.mxu0 %v951_v49 }
  0x2f   :  { %617 = vmatpush.bf16.msrb.mxu1 %v959_v50 }
  0x30   :  { %630 = vmatpush.bf16.msrb.mxu2 %v967_v51 }
  0x31   :  { %643 = vmatpush.bf16.msrb.mxu3 %v975_v52 }
  0x32   :  { %605 = vmatpush.bf16.msrb.mxu0 %v950_v53 }
  0x33   :  { %618 = vmatpush.bf16.msrb.mxu1 %v958_v54 }
  0x34   :  { %631 = vmatpush.bf16.msrb.mxu2 %v966_v55 }
  0x35   :  { %644 = vmatpush.bf16.msrb.mxu3 %v974_v56 }
  0x36   :  { %606 = vmatpush.bf16.msrb.mxu0 %v949_v57 }
  0x37   :  { %619 = vmatpush.bf16.msrb.mxu1 %v957_v58 }
  0x38   :  { %632 = vmatpush.bf16.msrb.mxu2 %v965_v59 }
  0x39   :  { %645 = vmatpush.bf16.msrb.mxu3 %v973_v60 }
  0x3a   :  { %607 = vmatpush.bf16.msrb.mxu0 %v948_v61 }
  0x3b   :  { %620 = vmatpush.bf16.msrb.mxu1 %v956_v62 }
  0x3c   :  { %633 = vmatpush.bf16.msrb.mxu2 %v964_v63 }
  0x3d   :  { %646 = vmatpush.bf16.msrb.mxu3 %v972_v0 }
  0x3e   :  { %608 = vmatpush.bf16.msrb.mxu0 %v947_v1 }
  0x3f   :  { %621 = vmatpush.bf16.msrb.mxu1 %v955_v2 }
  0x40   :  { %634 = vmatpush.bf16.msrb.mxu2 %v963_v3 }
  0x41   :  { %647 = vmatpush.bf16.msrb.mxu3 %v971_v4  ;;  %609 = vmatmul.bf16.vlgmr.msrb.gmra.mxu0 %v153_v5 }
  0x42   :  { %622 = vmatmul.bf16.vlgmr.msrb.gmra.mxu1 %v154_v6 }
  0x43   :  { %635 = vmatmul.bf16.vlgmr.msrb.gmra.mxu2 %v155_v7 }
  0x44   :  { %648 = vmatmul.bf16.vlgmr.msrb.gmra.mxu3 %v156_v8 }
  0x9e   :  { %v558_v9 = vpop.f32.mrf.mxu0 }
  0x9f   :  { %v571_v10 = vpop.f32.mrf.mxu1  ;;  %v559_v18 = vadd.f32 %v979_v15, %v558_v9 }
  0xa1   :  { %v572_v19 = vadd.f32 %v571_v10, %v559_v18 }
  0xa6   :  { %v584_v11 = vpop.f32.mrf.mxu2  ;;  %v560_v13 = vpop.f32.mrf.mxu0 }
  0xa7   :  { %v597_v12 = vpop.f32.mrf.mxu3  ;;  %v573_v14 = vpop.f32.mrf.mxu1  ;;  %v585_v20 = vadd.f32 %v584_v11, %v572_v19 }
  0xa9   :  { %v598_v21 = vadd.f32 %v597_v12, %v585_v20 }
  0xae   :  { %v586_v16 = vpop.f32.mrf.mxu2 }
  0xaf   :  { %v599_v17 = vpop.f32.mrf.mxu3 }
  0xbe   :  { %v610_v22 = vpop.f32.mrf.mxu0 }
  0xbf   :  { %v623_v23 = vpop.f32.mrf.mxu1  ;;  %v611_v24 = vadd.f32 %v610_v22, %v598_v21 }
  0xc1   :  { %v624_v25 = vadd.f32 %v623_v23, %v611_v24 }
  0xc6   :  { %v636_v26 = vpop.f32.mrf.mxu2  ;;  %v612_v29 = vpop.f32.mrf.mxu0 }
  0xc7   :  { %v649_v27 = vpop.f32.mrf.mxu3  ;;  %v637_v28 = vadd.f32 %v636_v26, %v624_v25  ;;  %v625_v30 = vpop.f32.mrf.mxu1 }
  0xc9   :  { %v650_v31 = vadd.f32 %v649_v27, %v637_v28 }
  0xcb   :  { %v653_v32 = vpack.c.bf16 %v650_v31, %v650_v31 }
  0xcd   :  { %654 = vst [vmem:[%s1204_s3] sm:$0x1] %v653_v32 }
  0xce   :  { %v638_v33 = vpop.f32.mrf.mxu2 }
  0xcf   :  { %v651_v34 = vpop.f32.mrf.mxu3 }

// kernel: autoencoder_forward.13
= control target key start
LH: loop header
LB: loop body
LE: loop exit
PB: predicated region body
PF: predicated region fallthrough
CT: control target
= control target key end

     0   :  { %vm107_vm0 = vcmask 523264   ;;  %s452_s1 = inlined_call_operand.vmem [shape: bf16[64,128], index: 1, kind: input, shape index: {}]   ;;  %s453_s2 = inlined_call_operand.vmem [shape: f32[1,128], index: 2, kind: input, shape index: {}]   ;;  %s454_s0 = inlined_call_operand.vmem [shape: bf16[128,64], index: 0, kind: input, shape index: {}]   ;;  %s455_s3 = inlined_call_operand.vmem [shape: bf16[128,128], index: 3, kind: output, shape index: {}]  }
   0x1   :  { %v300_v0 = vld [vmem:[%s452_s1 + $0x18] sm:$0xff]  ;;  %v299_v1 = vld [vmem:[%s452_s1 + $0x10] sm:$0xff]  ;;  %v298_v2 = vld [vmem:[%s452_s1 + $0x8] sm:$0xff] }
   0x2   :  { %136 = vmatpush.bf16.msra.mxu0 %v300_v0  ;;  %348 = vmatpush.bf16.msra.mxu1 %v300_v0  ;;  %v297_v3 = vld [vmem:[%s452_s1] sm:$0xff]  ;;  %v291_v5 = vld [vmem:[%s454_s0 + $0x10] sm:$0xff]  ;;  %v290_v8 = vld [vmem:[%s454_s0 + $0x8] sm:$0xff] }
   0x3   :  { %349 = vmatpush.bf16.msra.mxu2 %v300_v0  ;;  %350 = vmatpush.bf16.msra.mxu3 %v300_v0  ;;  %v289_v4 = vld [vmem:[%s454_s0] sm:$0xff]  ;;  %v295_v7 = vld [vmem:[%s454_s0 + $0x30] sm:$0xff]  ;;  %v292_v9 = vld [vmem:[%s454_s0 + $0x18] sm:$0xff] }
   0x4   :  { %v293_v6 = vld [vmem:[%s454_s0 + $0x20] sm:$0xff]  ;;  %v294_v10 = vld [vmem:[%s454_s0 + $0x28] sm:$0xff]  ;;  %v296_v11 = vld [vmem:[%s454_s0 + $0x38] sm:$0xff] }
   0x5   :  { %v360_v14 = vld [vmem:[%s453_s2] ss:$0 sm:$0xff] }
   0x6   :  { %137 = vmatpush.bf16.msra.mxu0 %v299_v1  ;;  %351 = vmatpush.bf16.msra.mxu1 %v299_v1 }
   0x7   :  { %352 = vmatpush.bf16.msra.mxu2 %v299_v1  ;;  %353 = vmatpush.bf16.msra.mxu3 %v299_v1 }
   0xa   :  { %138 = vmatpush.bf16.msra.mxu0 %v298_v2  ;;  %354 = vmatpush.bf16.msra.mxu1 %v298_v2 }
   0xb   :  { %355 = vmatpush.bf16.msra.mxu2 %v298_v2  ;;  %356 = vmatpush.bf16.msra.mxu3 %v298_v2 }
   0xe   :  { %139 = vmatpush.bf16.msra.mxu0 %v297_v3  ;;  %357 = vmatpush.bf16.msra.mxu1 %v297_v3 }
   0xf   :  { %358 = vmatpush.bf16.msra.mxu2 %v297_v3  ;;  %359 = vmatpush.bf16.msra.mxu3 %v297_v3 }
  0x11   :  { %281 = vmatmul.msk.bf16.vlgmr.msra.gmra.mxu0 %vm107_vm0, %v289_v4  ;;  %283 = vmatmul.msk.bf16.vlgmr.msra.gmra.mxu1 %vm107_vm0, %v291_v5 }
  0x12   :  { %285 = vmatmul.msk.bf16.vlgmr.msra.gmra.mxu2 %vm107_vm0, %v293_v6  ;;  %287 = vmatmul.msk.bf16.vlgmr.msra.gmra.mxu3 %vm107_vm0, %v295_v7 }
  0x21   :  { %282 = vmatmul.msk.bf16.gmra.mxu0 %vm107_vm0, %v290_v8  ;;  %284 = vmatmul.msk.bf16.gmra.mxu1 %vm107_vm0, %v292_v9 }
  0x22   :  { %286 = vmatmul.msk.bf16.gmra.mxu2 %vm107_vm0, %v294_v10  ;;  %288 = vmatmul.msk.bf16.gmra.mxu3 %vm107_vm0, %v296_v11 }
  0x8e   :  { %v141_v12 = vpop.f32.mrf.mxu0  ;;  %v151_v13 = vpop.f32.mrf.mxu1 }
  0x8f   :  { %v142_v15 = vadd.f32 %v360_v14, %v141_v12  ;;  %v152_v16 = vadd.f32 %v360_v14, %v151_v13 }
  0x91   :  { %v181_v23 = vmax.f32 %v142_v15, 0.0  ;;  %v185_v24 = vmax.f32 %v152_v16, 0.0 }
  0x95   :  { %v161_v17 = vpop.f32.mrf.mxu2  ;;  %v171_v18 = vpop.f32.mrf.mxu3 }
  0x96   :  { %v143_v19 = vpop.f32.mrf.mxu0  ;;  %v153_v20 = vpop.f32.mrf.mxu1  ;;  %v162_v29 = vadd.f32 %v360_v14, %v161_v17  ;;  %v172_v30 = vadd.f32 %v360_v14, %v171_v18 }
  0x97   :  { %v144_v21 = vadd.f32 %v360_v14, %v143_v19  ;;  %v154_v22 = vadd.f32 %v360_v14, %v153_v20 }
  0x98   :  { %v189_v37 = vmax.f32 %v162_v29, 0.0  ;;  %v193_v38 = vmax.f32 %v172_v30, 0.0 }
  0x99   :  { %v182_v25 = vmax.f32 %v144_v21, 0.0  ;;  %v186_v26 = vmax.f32 %v154_v22, 0.0 }
  0x9b   :  { %v304_v27 = vpack.c.bf16 %v182_v25, %v181_v23  ;;  %v314_v28 = vpack.c.bf16 %v186_v26, %v185_v24 }
  0x9d   :  { %305 = vst [vmem:[%s455_s3] sm:$0xff] %v304_v27   ;;  %v163_v31 = vpop.f32.mrf.mxu2  ;;  %v173_v32 = vpop.f32.mrf.mxu3 }
  0x9e   :  { %342 = vst [vmem:[%s455_s3 + $0x10] sm:$0xff] %v314_v28   ;;  %v164_v33 = vadd.f32 %v360_v14, %v163_v31  ;;  %v174_v34 = vadd.f32 %v360_v14, %v173_v32  ;;  %v146_v35 = vpop.f32.mrf.mxu0  ;;  %v156_v36 = vpop.f32.mrf.mxu1 }
  0x9f   :  { %v147_v43 = vadd.f32 %v360_v14, %v146_v35  ;;  %v157_v44 = vadd.f32 %v360_v14, %v156_v36 }
  0xa0   :  { %v190_v39 = vmax.f32 %v164_v33, 0.0  ;;  %v194_v40 = vmax.f32 %v174_v34, 0.0 }
  0xa1   :  { %v183_v51 = vmax.f32 %v147_v43, 0.0  ;;  %v187_v52 = vmax.f32 %v157_v44, 0.0 }
  0xa2   :  { %v324_v41 = vpack.c.bf16 %v190_v39, %v189_v37  ;;  %v334_v42 = vpack.c.bf16 %v194_v40, %v193_v38 }
  0xa4   :  { %344 = vst [vmem:[%s455_s3 + $0x20] sm:$0xff] %v324_v41  }
  0xa5   :  { %346 = vst [vmem:[%s455_s3 + $0x30] sm:$0xff] %v334_v42   ;;  %v166_v45 = vpop.f32.mrf.mxu2  ;;  %v176_v46 = vpop.f32.mrf.mxu3 }
  0xa6   :  { %v148_v47 = vpop.f32.mrf.mxu0  ;;  %v158_v48 = vpop.f32.mrf.mxu1  ;;  %v167_v57 = vadd.f32 %v360_v14, %v166_v45  ;;  %v177_v58 = vadd.f32 %v360_v14, %v176_v46 }
  0xa7   :  { %v149_v49 = vadd.f32 %v360_v14, %v148_v47  ;;  %v159_v50 = vadd.f32 %v360_v14, %v158_v48 }
  0xa8   :  { %v191_v63 = vmax.f32 %v167_v57, 0.0  ;;  %v195_v0 = vmax.f32 %v177_v58, 0.0 }
  0xa9   :  { %v184_v53 = vmax.f32 %v149_v49, 0.0  ;;  %v188_v54 = vmax.f32 %v159_v50, 0.0 }
  0xab   :  { %v309_v55 = vpack.c.bf16 %v184_v53, %v183_v51  ;;  %v319_v56 = vpack.c.bf16 %v188_v54, %v187_v52 }
  0xad   :  { %341 = vst [vmem:[%s455_s3 + $0x8] sm:$0xff] %v309_v55   ;;  %v168_v59 = vpop.f32.mrf.mxu2  ;;  %v178_v60 = vpop.f32.mrf.mxu3 }
  0xae   :  { %343 = vst [vmem:[%s455_s3 + $0x18] sm:$0xff] %v319_v56   ;;  %v169_v61 = vadd.f32 %v360_v14, %v168_v59  ;;  %v179_v62 = vadd.f32 %v360_v14, %v178_v60 }
  0xb0   :  { %v192_v1 = vmax.f32 %v169_v61, 0.0  ;;  %v196_v2 = vmax.f32 %v179_v62, 0.0 }
  0xb2   :  { %v329_v3 = vpack.c.bf16 %v192_v1, %v191_v63  ;;  %v339_v4 = vpack.c.bf16 %v196_v2, %v195_v0 }
  0xb4   :  { %345 = vst [vmem:[%s455_s3 + $0x28] sm:$0xff] %v329_v3  }
  0xb5   :  { %347 = vst [vmem:[%s455_s3 + $0x38] sm:$0xff] %v339_v4  }

// kernel: autoencoder_forward.14
= control target key start
LH: loop header
LB: loop body
LE: loop exit
PB: predicated region body
PF: predicated region fallthrough
CT: control target
= control target key end

     0   :  { %s1765_s1 = inlined_call_operand.vmem [shape: bf16[128,256], index: 1, kind: input, shape index: {}]   ;;  %s1766_s0 = inlined_call_operand.vmem [shape: bf16[512,128], index: 0, kind: input, shape index: {}]   ;;  %s1767_s2 = inlined_call_operand.vmem [shape: f32[1,256], index: 2, kind: input, shape index: {}]   ;;  %s1768_s3 = inlined_call_operand.vmem [shape: bf16[512,256], index: 3, kind: output, shape index: {}]  }
   0x1   :  { %v1156_v0 = vld [vmem:[%s1765_s1 + $0x70] sm:$0xf]  ;;  %v1209_v1 = vld [vmem:[%s1765_s1 + $0x74] sm:$0xf0]  ;;  %v1208_v2 = vld [vmem:[%s1765_s1 + $0x74] sm:$0xf] }
   0x2   :  { %v1157_v3 = vor.u32 %v1209_v1, %v1156_v0  ;;  %v1158_v4 = vld [vmem:[%s1765_s1 + $0x78] sm:$0xf0]  ;;  %v1148_v5 = vld [vmem:[%s1765_s1 + $0x60] sm:$0xf]  ;;  %v1207_v6 = vld [vmem:[%s1765_s1 + $0x64] sm:$0xf0] }
   0x3   :  { %v1161_v7 = vor.u32 %v1208_v2, %v1158_v4  ;;  %v1206_v8 = vld [vmem:[%s1765_s1 + $0x64] sm:$0xf]  ;;  %v1150_v9 = vld [vmem:[%s1765_s1 + $0x68] sm:$0xf0]  ;;  %v1149_v10 = vor.u32 %v1207_v6, %v1148_v5  ;;  %v1140_v12 = vld [vmem:[%s1765_s1 + $0x50] sm:$0xf] }
   0x4   :  { %372 = vmatpush.bf16.msra.mxu0 %v1157_v3  ;;  %1210 = vmatpush.bf16.msra.mxu2 %v1157_v3  ;;  %v1153_v11 = vor.u32 %v1206_v8, %v1150_v9  ;;  %v1205_v13 = vld [vmem:[%s1765_s1 + $0x54] sm:$0xf0]  ;;  %v1204_v14 = vld [vmem:[%s1765_s1 + $0x54] sm:$0xf]  ;;  %v1142_v15 = vld [vmem:[%s1765_s1 + $0x58] sm:$0xf0] }
   0x5   :  { %541 = vmatpush.bf16.msra.mxu1 %v1161_v7  ;;  %1218 = vmatpush.bf16.msra.mxu3 %v1161_v7  ;;  %v1141_v16 = vor.u32 %v1205_v13, %v1140_v12  ;;  %v1145_v17 = vor.u32 %v1204_v14, %v1142_v15  ;;  %v1132_v18 = vld [vmem:[%s1765_s1 + $0x40] sm:$0xf]  ;;  %v1203_v19 = vld [vmem:[%s1765_s1 + $0x44] sm:$0xf0]  ;;  %v1202_v20 = vld [vmem:[%s1765_s1 + $0x44] sm:$0xf] }
   0x6   :  { %v1134_v21 = vld [vmem:[%s1765_s1 + $0x48] sm:$0xf0]  ;;  %v1133_v22 = vor.u32 %v1203_v19, %v1132_v18  ;;  %v1124_v24 = vld [vmem:[%s1765_s1 + $0x30] sm:$0xf]  ;;  %v1201_v25 = vld [vmem:[%s1765_s1 + $0x34] sm:$0xf0] }
   0x7   :  { %v1137_v23 = vor.u32 %v1202_v20, %v1134_v21  ;;  %v1200_v26 = vld [vmem:[%s1765_s1 + $0x34] sm:$0xf]  ;;  %v1126_v27 = vld [vmem:[%s1765_s1 + $0x38] sm:$0xf0]  ;;  %v1125_v28 = vor.u32 %v1201_v25, %v1124_v24  ;;  %v1116_v30 = vld [vmem:[%s1765_s1 + $0x20] sm:$0xf] }
   0x8   :  { %373 = vmatpush.bf16.msra.mxu0 %v1149_v10  ;;  %1211 = vmatpush.bf16.msra.mxu2 %v1149_v10  ;;  %v1129_v29 = vor.u32 %v1200_v26, %v1126_v27  ;;  %v1199_v31 = vld [vmem:[%s1765_s1 + $0x24] sm:$0xf0]  ;;  %v1198_v32 = vld [vmem:[%s1765_s1 + $0x24] sm:$0xf]  ;;  %v1118_v33 = vld [vmem:[%s1765_s1 + $0x28] sm:$0xf0] }
   0x9   :  { %542 = vmatpush.bf16.msra.mxu1 %v1153_v11  ;;  %1219 = vmatpush.bf16.msra.mxu3 %v1153_v11  ;;  %v1117_v34 = vor.u32 %v1199_v31, %v1116_v30  ;;  %v1121_v35 = vor.u32 %v1198_v32, %v1118_v33  ;;  %v1108_v36 = vld [vmem:[%s1765_s1 + $0x10] sm:$0xf]  ;;  %v1197_v37 = vld [vmem:[%s1765_s1 + $0x14] sm:$0xf0]  ;;  %v1196_v38 = vld [vmem:[%s1765_s1 + $0x14] sm:$0xf] }
   0xa   :  { %v1110_v39 = vld [vmem:[%s1765_s1 + $0x18] sm:$0xf0]  ;;  %v1109_v40 = vor.u32 %v1197_v37, %v1108_v36  ;;  %v1100_v42 = vld [vmem:[%s1765_s1] sm:$0xf]  ;;  %v1195_v43 = vld [vmem:[%s1765_s1 + $0x4] sm:$0xf0] }
   0xb   :  { %v1113_v41 = vor.u32 %v1196_v38, %v1110_v39  ;;  %v1194_v44 = vld [vmem:[%s1765_s1 + $0x4] sm:$0xf]  ;;  %v1102_v45 = vld [vmem:[%s1765_s1 + $0x8] sm:$0xf0]  ;;  %v1101_v46 = vor.u32 %v1195_v43, %v1100_v42  ;;  %v1164_v52 = vld [vmem:[%s1766_s0 + $0x10] sm:$0xff] }
   0xc   :  { %374 = vmatpush.bf16.msra.mxu0 %v1141_v16  ;;  %1212 = vmatpush.bf16.msra.mxu2 %v1141_v16  ;;  %v1105_v47 = vor.u32 %v1194_v44, %v1102_v45  ;;  %v1162_v48 = vld [vmem:[%s1766_s0] sm:$0xff]  ;;  %v1163_v50 = vld [vmem:[%s1766_s0 + $0x8] sm:$0xff]  ;;  %v1180_v53 = vld [vmem:[%s1766_s0 + $0x90] sm:$0xff] }
   0xd   :  { %543 = vmatpush.bf16.msra.mxu1 %v1145_v17  ;;  %1220 = vmatpush.bf16.msra.mxu3 %v1145_v17  ;;  %v1178_v49 = vld [vmem:[%s1766_s0 + $0x80] sm:$0xff]  ;;  %v1179_v51 = vld [vmem:[%s1766_s0 + $0x88] sm:$0xff]  ;;  %v1165_v54 = vld [vmem:[%s1766_s0 + $0x18] sm:$0xff] }
   0xe   :  { %v1181_v55 = vld [vmem:[%s1766_s0 + $0x98] sm:$0xff]  ;;  %v1166_v56 = vld [vmem:[%s1766_s0 + $0x20] sm:$0xff]  ;;  %v1167_v58 = vld [vmem:[%s1766_s0 + $0x28] sm:$0xff] }
   0xf   :  { %v1182_v57 = vld [vmem:[%s1766_s0 + $0xa0] sm:$0xff]  ;;  %v1183_v59 = vld [vmem:[%s1766_s0 + $0xa8] sm:$0xff]  ;;  %v1168_v60 = vld [vmem:[%s1766_s0 + $0x30] sm:$0xff] }
  0x10   :  { %375 = vmatpush.bf16.msra.mxu0 %v1133_v22  ;;  %1213 = vmatpush.bf16.msra.mxu2 %v1133_v22  ;;  %v1184_v61 = vld [vmem:[%s1766_s0 + $0xb0] sm:$0xff]  ;;  %v1169_v62 = vld [vmem:[%s1766_s0 + $0x38] sm:$0xff]  ;;  %v94_v0 = vld [vmem:[%s1767_s2] sm:$0x3] }
  0x11   :  { %544 = vmatpush.bf16.msra.mxu1 %v1137_v23  ;;  %1221 = vmatpush.bf16.msra.mxu3 %v1137_v23  ;;  %v1185_v63 = vld [vmem:[%s1766_s0 + $0xb8] sm:$0xff]  ;;  %v1393_v1 = vperm.slane %v94_v0, 0  ;;  %v1395_v2 = vperm.slane %v94_v0, 1  ;;  %v1170_v3 = vld [vmem:[%s1766_s0 + $0x40] sm:$0xff]  ;;  %v1187_v30 = vld [vmem:[%s1766_s0 + $0xc8] sm:$0xff] }
  0x12   :  { %v1186_v4 = vld [vmem:[%s1766_s0 + $0xc0] sm:$0xff] }
  0x14   :  { %376 = vmatpush.bf16.msra.mxu0 %v1125_v28  ;;  %1214 = vmatpush.bf16.msra.mxu2 %v1125_v28 }
  0x15   :  { %545 = vmatpush.bf16.msra.mxu1 %v1129_v29  ;;  %1222 = vmatpush.bf16.msra.mxu3 %v1129_v29  ;;  %v1171_v29 = vld [vmem:[%s1766_s0 + $0x48] sm:$0xff] }
  0x18   :  { %377 = vmatpush.bf16.msra.mxu0 %v1117_v34  ;;  %1215 = vmatpush.bf16.msra.mxu2 %v1117_v34 }
  0x19   :  { %546 = vmatpush.bf16.msra.mxu1 %v1121_v35  ;;  %1223 = vmatpush.bf16.msra.mxu3 %v1121_v35 }
  0x1c   :  { %378 = vmatpush.bf16.msra.mxu0 %v1109_v40  ;;  %1216 = vmatpush.bf16.msra.mxu2 %v1109_v40 }
  0x1d   :  { %547 = vmatpush.bf16.msra.mxu1 %v1113_v41  ;;  %1224 = vmatpush.bf16.msra.mxu3 %v1113_v41 }
  0x20   :  { %379 = vmatpush.bf16.msra.mxu0 %v1101_v46  ;;  %1217 = vmatpush.bf16.msra.mxu2 %v1101_v46 }
  0x21   :  { %548 = vmatpush.bf16.msra.mxu1 %v1105_v47  ;;  %1225 = vmatpush.bf16.msra.mxu3 %v1105_v47 }
  0x23   :  { %380 = vmatmul.bf16.vlgmr.msra.gmra.mxu0 %v1162_v48  ;;  %460 = vmatmul.bf16.vlgmr.msra.gmra.mxu2 %v1178_v49 }
  0x24   :  { %549 = vmatmul.bf16.vlgmr.msra.gmra.mxu1 %v1162_v48  ;;  %629 = vmatmul.bf16.vlgmr.msra.gmra.mxu3 %v1178_v49 }
  0x33   :  { %385 = vmatmul.bf16.gmra.mxu0 %v1163_v50  ;;  %465 = vmatmul.bf16.gmra.mxu2 %v1179_v51 }
  0x34   :  { %554 = vmatmul.bf16.gmra.mxu1 %v1163_v50  ;;  %634 = vmatmul.bf16.gmra.mxu3 %v1179_v51 }
  0x43   :  { %390 = vmatmul.bf16.gmra.mxu0 %v1164_v52  ;;  %470 = vmatmul.bf16.gmra.mxu2 %v1180_v53 }
  0x44   :  { %559 = vmatmul.bf16.gmra.mxu1 %v1164_v52  ;;  %639 = vmatmul.bf16.gmra.mxu3 %v1180_v53 }
  0x53   :  { %395 = vmatmul.bf16.gmra.mxu0 %v1165_v54  ;;  %475 = vmatmul.bf16.gmra.mxu2 %v1181_v55 }
  0x54   :  { %564 = vmatmul.bf16.gmra.mxu1 %v1165_v54  ;;  %644 = vmatmul.bf16.gmra.mxu3 %v1181_v55 }
  0x63   :  { %400 = vmatmul.bf16.gmra.mxu0 %v1166_v56  ;;  %480 = vmatmul.bf16.gmra.mxu2 %v1182_v57 }
  0x64   :  { %569 = vmatmul.bf16.gmra.mxu1 %v1166_v56  ;;  %649 = vmatmul.bf16.gmra.mxu3 %v1182_v57 }
  0x73   :  { %405 = vmatmul.bf16.gmra.mxu0 %v1167_v58  ;;  %485 = vmatmul.bf16.gmra.mxu2 %v1183_v59 }
  0x74   :  { %574 = vmatmul.bf16.gmra.mxu1 %v1167_v58  ;;  %654 = vmatmul.bf16.gmra.mxu3 %v1183_v59  ;;  %v1172_v59 = vld [vmem:[%s1766_s0 + $0x50] sm:$0xff] }
  0x83   :  { %410 = vmatmul.bf16.gmra.mxu0 %v1168_v60  ;;  %490 = vmatmul.bf16.gmra.mxu2 %v1184_v61 }
  0x84   :  { %579 = vmatmul.bf16.gmra.mxu1 %v1168_v60  ;;  %659 = vmatmul.bf16.gmra.mxu3 %v1184_v61  ;;  %v1188_v60 = vld [vmem:[%s1766_s0 + $0xd0] sm:$0xff] }
  0x93   :  { %415 = vmatmul.bf16.gmra.mxu0 %v1169_v62  ;;  %495 = vmatmul.bf16.gmra.mxu2 %v1185_v63 }
  0x94   :  { %584 = vmatmul.bf16.gmra.mxu1 %v1169_v62  ;;  %664 = vmatmul.bf16.gmra.mxu3 %v1185_v63 }
  0xa0   :  { %v381_v5 = vpop.f32.mrf.mxu0 }
  0xa1   :  { %v382_v6 = vadd.f32 %v381_v5, %v1393_v1  ;;  %v550_v7 = vpop.f32.mrf.mxu1 }
  0xa2   :  { %v551_v8 = vadd.f32 %v550_v7, %v1395_v2 }
  0xa3   :  { %v710_v9 = vmax.f32 %v382_v6, 0.0  ;;  %420 = vmatmul.bf16.gmra.mxu0 %v1170_v3  ;;  %500 = vmatmul.bf16.gmra.mxu2 %v1186_v4 }
  0xa4   :  { %v711_v10 = vmax.f32 %v551_v8, 0.0  ;;  %589 = vmatmul.bf16.gmra.mxu1 %v1170_v3  ;;  %669 = vmatmul.bf16.gmra.mxu3 %v1186_v4 }
  0xa6   :  { %v838_v11 = vpack.c.bf16 %v711_v10, %v710_v9  ;;  %v461_v12 = vpop.f32.mrf.mxu2 }
  0xa7   :  { %v462_v13 = vadd.f32 %v461_v12, %v1393_v1  ;;  %v630_v14 = vpop.f32.mrf.mxu3 }
  0xa8   :  { %902 = vst [vmem:[%s1768_s3] sm:$0xff] %v838_v11  ;;  %v631_v15 = vadd.f32 %v630_v14, %v1395_v2  ;;  %v383_v16 = vpop.f32.mrf.mxu0 }
  0xa9   :  { %v774_v17 = vmax.f32 %v462_v13, 0.0  ;;  %v384_v18 = vadd.f32 %v383_v16, %v1393_v1  ;;  %v552_v19 = vpop.f32.mrf.mxu1 }
  0xaa   :  { %v775_v20 = vmax.f32 %v631_v15, 0.0  ;;  %v553_v21 = vadd.f32 %v552_v19, %v1395_v2 }
  0xab   :  { %v712_v22 = vmax.f32 %v384_v18, 0.0 }
  0xac   :  { %v870_v23 = vpack.c.bf16 %v775_v20, %v774_v17  ;;  %v713_v24 = vmax.f32 %v553_v21, 0.0 }
  0xae   :  { %934 = vst [vmem:[%s1768_s3 + $0x100] sm:$0xff] %v870_v23  ;;  %v839_v25 = vpack.c.bf16 %v713_v24, %v712_v22  ;;  %v463_v26 = vpop.f32.mrf.mxu2 }
  0xaf   :  { %v464_v27 = vadd.f32 %v463_v26, %v1393_v1  ;;  %v632_v28 = vpop.f32.mrf.mxu3 }
  0xb0   :  { %903 = vst [vmem:[%s1768_s3 + $0x8] sm:$0xff] %v839_v25  ;;  %v633_v31 = vadd.f32 %v632_v28, %v1395_v2  ;;  %v386_v32 = vpop.f32.mrf.mxu0  ;;  %v1189_v28 = vld [vmem:[%s1766_s0 + $0xd8] sm:$0xff] }
  0xb1   :  { %v776_v33 = vmax.f32 %v464_v27, 0.0  ;;  %v387_v34 = vadd.f32 %v386_v32, %v1393_v1  ;;  %v555_v35 = vpop.f32.mrf.mxu1  ;;  %v1173_v27 = vld [vmem:[%s1766_s0 + $0x58] sm:$0xff] }
  0xb2   :  { %v777_v36 = vmax.f32 %v633_v31, 0.0  ;;  %v556_v37 = vadd.f32 %v555_v35, %v1395_v2 }
  0xb3   :  { %v714_v38 = vmax.f32 %v387_v34, 0.0  ;;  %425 = vmatmul.bf16.gmra.mxu0 %v1171_v29  ;;  %505 = vmatmul.bf16.gmra.mxu2 %v1187_v30 }
  0xb4   :  { %v871_v39 = vpack.c.bf16 %v777_v36, %v776_v33  ;;  %v715_v40 = vmax.f32 %v556_v37, 0.0  ;;  %594 = vmatmul.bf16.gmra.mxu1 %v1171_v29  ;;  %674 = vmatmul.bf16.gmra.mxu3 %v1187_v30 }
  0xb6   :  { %935 = vst [vmem:[%s1768_s3 + $0x108] sm:$0xff] %v871_v39  ;;  %v840_v41 = vpack.c.bf16 %v715_v40, %v714_v38  ;;  %v466_v42 = vpop.f32.mrf.mxu2 }
  0xb7   :  { %v467_v43 = vadd.f32 %v466_v42, %v1393_v1  ;;  %v635_v44 = vpop.f32.mrf.mxu3 }
  0xb8   :  { %904 = vst [vmem:[%s1768_s3 + $0x10] sm:$0xff] %v840_v41  ;;  %v636_v45 = vadd.f32 %v635_v44, %v1395_v2  ;;  %v388_v46 = vpop.f32.mrf.mxu0 }
  0xb9   :  { %v778_v47 = vmax.f32 %v467_v43, 0.0  ;;  %v389_v48 = vadd.f32 %v388_v46, %v1393_v1  ;;  %v557_v49 = vpop.f32.mrf.mxu1 }
  0xba   :  { %v779_v50 = vmax.f32 %v636_v45, 0.0  ;;  %v558_v51 = vadd.f32 %v557_v49, %v1395_v2 }
  0xbb   :  { %v716_v52 = vmax.f32 %v389_v48, 0.0 }
  0xbc   :  { %v872_v53 = vpack.c.bf16 %v779_v50, %v778_v47  ;;  %v717_v54 = vmax.f32 %v558_v51, 0.0 }
  0xbe   :  { %936 = vst [vmem:[%s1768_s3 + $0x110] sm:$0xff] %v872_v53  ;;  %v841_v55 = vpack.c.bf16 %v717_v54, %v716_v52  ;;  %v468_v56 = vpop.f32.mrf.mxu2 }
  0xbf   :  { %v469_v57 = vadd.f32 %v468_v56, %v1393_v1  ;;  %v637_v58 = vpop.f32.mrf.mxu3 }
  0xc0   :  { %905 = vst [vmem:[%s1768_s3 + $0x18] sm:$0xff] %v841_v55  ;;  %v638_v61 = vadd.f32 %v637_v58, %v1395_v2  ;;  %v391_v62 = vpop.f32.mrf.mxu0  ;;  %v1190_v58 = vld [vmem:[%s1766_s0 + $0xe0] sm:$0xff] }
  0xc1   :  { %v780_v63 = vmax.f32 %v469_v57, 0.0  ;;  %v392_v0 = vadd.f32 %v391_v62, %v1393_v1  ;;  %v560_v3 = vpop.f32.mrf.mxu1  ;;  %v1174_v57 = vld [vmem:[%s1766_s0 + $0x60] sm:$0xff] }
  0xc2   :  { %v781_v4 = vmax.f32 %v638_v61, 0.0  ;;  %v561_v5 = vadd.f32 %v560_v3, %v1395_v2 }
  0xc3   :  { %v718_v6 = vmax.f32 %v392_v0, 0.0  ;;  %430 = vmatmul.bf16.gmra.mxu0 %v1172_v59  ;;  %510 = vmatmul.bf16.gmra.mxu2 %v1188_v60 }
  0xc4   :  { %v873_v7 = vpack.c.bf16 %v781_v4, %v780_v63  ;;  %v719_v8 = vmax.f32 %v561_v5, 0.0  ;;  %599 = vmatmul.bf16.gmra.mxu1 %v1172_v59  ;;  %679 = vmatmul.bf16.gmra.mxu3 %v1188_v60 }
  0xc6   :  { %937 = vst [vmem:[%s1768_s3 + $0x118] sm:$0xff] %v873_v7  ;;  %v842_v9 = vpack.c.bf16 %v719_v8, %v718_v6  ;;  %v471_v10 = vpop.f32.mrf.mxu2 }
  0xc7   :  { %v472_v11 = vadd.f32 %v471_v10, %v1393_v1  ;;  %v640_v12 = vpop.f32.mrf.mxu3 }
  0xc8   :  { %906 = vst [vmem:[%s1768_s3 + $0x20] sm:$0xff] %v842_v9  ;;  %v641_v13 = vadd.f32 %v640_v12, %v1395_v2  ;;  %v393_v14 = vpop.f32.mrf.mxu0 }
  0xc9   :  { %v782_v15 = vmax.f32 %v472_v11, 0.0  ;;  %v394_v16 = vadd.f32 %v393_v14, %v1393_v1  ;;  %v562_v17 = vpop.f32.mrf.mxu1 }
  0xca   :  { %v783_v18 = vmax.f32 %v641_v13, 0.0  ;;  %v563_v19 = vadd.f32 %v562_v17, %v1395_v2 }
  0xcb   :  { %v720_v20 = vmax.f32 %v394_v16, 0.0 }
  0xcc   :  { %v874_v21 = vpack.c.bf16 %v783_v18, %v782_v15  ;;  %v721_v22 = vmax.f32 %v563_v19, 0.0 }
  0xce   :  { %938 = vst [vmem:[%s1768_s3 + $0x120] sm:$0xff] %v874_v21  ;;  %v843_v23 = vpack.c.bf16 %v721_v22, %v720_v20  ;;  %v473_v24 = vpop.f32.mrf.mxu2 }
  0xcf   :  { %v474_v25 = vadd.f32 %v473_v24, %v1393_v1  ;;  %v642_v26 = vpop.f32.mrf.mxu3 }
  0xd0   :  { %907 = vst [vmem:[%s1768_s3 + $0x28] sm:$0xff] %v843_v23  ;;  %v643_v29 = vadd.f32 %v642_v26, %v1395_v2  ;;  %v396_v30 = vpop.f32.mrf.mxu0  ;;  %v1191_v26 = vld [vmem:[%s1766_s0 + $0xe8] sm:$0xff] }
  0xd1   :  { %v784_v31 = vmax.f32 %v474_v25, 0.0  ;;  %v397_v32 = vadd.f32 %v396_v30, %v1393_v1  ;;  %v565_v33 = vpop.f32.mrf.mxu1  ;;  %v1175_v25 = vld [vmem:[%s1766_s0 + $0x68] sm:$0xff] }
  0xd2   :  { %v785_v34 = vmax.f32 %v643_v29, 0.0  ;;  %v566_v35 = vadd.f32 %v565_v33, %v1395_v2 }
  0xd3   :  { %v722_v36 = vmax.f32 %v397_v32, 0.0  ;;  %435 = vmatmul.bf16.gmra.mxu0 %v1173_v27  ;;  %515 = vmatmul.bf16.gmra.mxu2 %v1189_v28 }
  0xd4   :  { %v875_v37 = vpack.c.bf16 %v785_v34, %v784_v31  ;;  %v723_v38 = vmax.f32 %v566_v35, 0.0  ;;  %604 = vmatmul.bf16.gmra.mxu1 %v1173_v27  ;;  %684 = vmatmul.bf16.gmra.mxu3 %v1189_v28 }
  0xd6   :  { %939 = vst [vmem:[%s1768_s3 + $0x128] sm:$0xff] %v875_v37  ;;  %v844_v39 = vpack.c.bf16 %v723_v38, %v722_v36  ;;  %v476_v40 = vpop.f32.mrf.mxu2 }
  0xd7   :  { %v477_v41 = vadd.f32 %v476_v40, %v1393_v1  ;;  %v645_v42 = vpop.f32.mrf.mxu3 }
  0xd8   :  { %908 = vst [vmem:[%s1768_s3 + $0x30] sm:$0xff] %v844_v39  ;;  %v646_v43 = vadd.f32 %v645_v42, %v1395_v2  ;;  %v398_v44 = vpop.f32.mrf.mxu0 }
  0xd9   :  { %v786_v45 = vmax.f32 %v477_v41, 0.0  ;;  %v399_v46 = vadd.f32 %v398_v44, %v1393_v1  ;;  %v567_v47 = vpop.f32.mrf.mxu1 }
  0xda   :  { %v787_v48 = vmax.f32 %v646_v43, 0.0  ;;  %v568_v49 = vadd.f32 %v567_v47, %v1395_v2 }
  0xdb   :  { %v724_v50 = vmax.f32 %v399_v46, 0.0 }
  0xdc   :  { %v876_v51 = vpack.c.bf16 %v787_v48, %v786_v45  ;;  %v725_v52 = vmax.f32 %v568_v49, 0.0 }
  0xde   :  { %940 = vst [vmem:[%s1768_s3 + $0x130] sm:$0xff] %v876_v51  ;;  %v845_v53 = vpack.c.bf16 %v725_v52, %v724_v50  ;;  %v478_v54 = vpop.f32.mrf.mxu2 }
  0xdf   :  { %v479_v55 = vadd.f32 %v478_v54, %v1393_v1  ;;  %v647_v56 = vpop.f32.mrf.mxu3 }
  0xe0   :  { %909 = vst [vmem:[%s1768_s3 + $0x38] sm:$0xff] %v845_v53  ;;  %v648_v59 = vadd.f32 %v647_v56, %v1395_v2  ;;  %v401_v60 = vpop.f32.mrf.mxu0  ;;  %v1192_v56 = vld [vmem:[%s1766_s0 + $0xf0] sm:$0xff] }
  0xe1   :  { %v788_v61 = vmax.f32 %v479_v55, 0.0  ;;  %v402_v62 = vadd.f32 %v401_v60, %v1393_v1  ;;  %v570_v63 = vpop.f32.mrf.mxu1  ;;  %v1176_v55 = vld [vmem:[%s1766_s0 + $0x70] sm:$0xff] }
  0xe2   :  { %v789_v0 = vmax.f32 %v648_v59, 0.0  ;;  %v571_v3 = vadd.f32 %v570_v63, %v1395_v2 }
  0xe3   :  { %v726_v4 = vmax.f32 %v402_v62, 0.0  ;;  %440 = vmatmul.bf16.gmra.mxu0 %v1174_v57  ;;  %520 = vmatmul.bf16.gmra.mxu2 %v1190_v58 }
  0xe4   :  { %v877_v5 = vpack.c.bf16 %v789_v0, %v788_v61  ;;  %v727_v6 = vmax.f32 %v571_v3, 0.0  ;;  %609 = vmatmul.bf16.gmra.mxu1 %v1174_v57  ;;  %689 = vmatmul.bf16.gmra.mxu3 %v1190_v58 }
  0xe6   :  { %941 = vst [vmem:[%s1768_s3 + $0x138] sm:$0xff] %v877_v5  ;;  %v846_v7 = vpack.c.bf16 %v727_v6, %v726_v4  ;;  %v481_v8 = vpop.f32.mrf.mxu2 }
  0xe7   :  { %v482_v9 = vadd.f32 %v481_v8, %v1393_v1  ;;  %v650_v10 = vpop.f32.mrf.mxu3 }
  0xe8   :  { %910 = vst [vmem:[%s1768_s3 + $0x40] sm:$0xff] %v846_v7  ;;  %v651_v11 = vadd.f32 %v650_v10, %v1395_v2  ;;  %v403_v12 = vpop.f32.mrf.mxu0 }
  0xe9   :  { %v790_v13 = vmax.f32 %v482_v9, 0.0  ;;  %v404_v14 = vadd.f32 %v403_v12, %v1393_v1  ;;  %v572_v15 = vpop.f32.mrf.mxu1 }
  0xea   :  { %v791_v16 = vmax.f32 %v651_v11, 0.0  ;;  %v573_v17 = vadd.f32 %v572_v15, %v1395_v2 }
  0xeb   :  { %v728_v18 = vmax.f32 %v404_v14, 0.0 }
  0xec   :  { %v878_v19 = vpack.c.bf16 %v791_v16, %v790_v13  ;;  %v729_v20 = vmax.f32 %v573_v17, 0.0 }
  0xee   :  { %942 = vst [vmem:[%s1768_s3 + $0x140] sm:$0xff] %v878_v19  ;;  %v847_v21 = vpack.c.bf16 %v729_v20, %v728_v18  ;;  %v483_v22 = vpop.f32.mrf.mxu2 }
  0xef   :  { %v484_v23 = vadd.f32 %v483_v22, %v1393_v1  ;;  %v652_v24 = vpop.f32.mrf.mxu3 }
  0xf0   :  { %911 = vst [vmem:[%s1768_s3 + $0x48] sm:$0xff] %v847_v21  ;;  %v653_v27 = vadd.f32 %v652_v24, %v1395_v2  ;;  %v406_v28 = vpop.f32.mrf.mxu0  ;;  %v1193_v24 = vld [vmem:[%s1766_s0 + $0xf8] sm:$0xff] }
  0xf1   :  { %v792_v29 = vmax.f32 %v484_v23, 0.0  ;;  %v407_v30 = vadd.f32 %v406_v28, %v1393_v1  ;;  %v575_v31 = vpop.f32.mrf.mxu1  ;;  %v1177_v23 = vld [vmem:[%s1766_s0 + $0x78] sm:$0xff] }
  0xf2   :  { %v793_v32 = vmax.f32 %v653_v27, 0.0  ;;  %v576_v33 = vadd.f32 %v575_v31, %v1395_v2 }
  0xf3   :  { %v730_v34 = vmax.f32 %v407_v30, 0.0  ;;  %445 = vmatmul.bf16.gmra.mxu0 %v1175_v25  ;;  %525 = vmatmul.bf16.gmra.mxu2 %v1191_v26 }
  0xf4   :  { %v879_v35 = vpack.c.bf16 %v793_v32, %v792_v29  ;;  %v731_v36 = vmax.f32 %v576_v33, 0.0  ;;  %614 = vmatmul.bf16.gmra.mxu1 %v1175_v25  ;;  %694 = vmatmul.bf16.gmra.mxu3 %v1191_v26 }
  0xf6   :  { %943 = vst [vmem:[%s1768_s3 + $0x148] sm:$0xff] %v879_v35  ;;  %v848_v37 = vpack.c.bf16 %v731_v36, %v730_v34  ;;  %v486_v38 = vpop.f32.mrf.mxu2 }
  0xf7   :  { %v487_v39 = vadd.f32 %v486_v38, %v1393_v1  ;;  %v655_v40 = vpop.f32.mrf.mxu3 }
  0xf8   :  { %912 = vst [vmem:[%s1768_s3 + $0x50] sm:$0xff] %v848_v37  ;;  %v656_v41 = vadd.f32 %v655_v40, %v1395_v2  ;;  %v408_v42 = vpop.f32.mrf.mxu0 }
  0xf9   :  { %v794_v43 = vmax.f32 %v487_v39, 0.0  ;;  %v409_v44 = vadd.f32 %v408_v42, %v1393_v1  ;;  %v577_v45 = vpop.f32.mrf.mxu1 }
  0xfa   :  { %v795_v46 = vmax.f32 %v656_v41, 0.0  ;;  %v578_v47 = vadd.f32 %v577_v45, %v1395_v2 }
  0xfb   :  { %v732_v48 = vmax.f32 %v409_v44, 0.0 }
  0xfc   :  { %v880_v49 = vpack.c.bf16 %v795_v46, %v794_v43  ;;  %v733_v50 = vmax.f32 %v578_v47, 0.0 }
  0xfe   :  { %944 = vst [vmem:[%s1768_s3 + $0x150] sm:$0xff] %v880_v49  ;;  %v849_v51 = vpack.c.bf16 %v733_v50, %v732_v48  ;;  %v488_v52 = vpop.f32.mrf.mxu2 }
  0xff   :  { %v489_v53 = vadd.f32 %v488_v52, %v1393_v1  ;;  %v657_v54 = vpop.f32.mrf.mxu3 }
 0x100   :  { %913 = vst [vmem:[%s1768_s3 + $0x58] sm:$0xff] %v849_v51  ;;  %v658_v57 = vadd.f32 %v657_v54, %v1395_v2  ;;  %v411_v58 = vpop.f32.mrf.mxu0 }
 0x101   :  { %v796_v59 = vmax.f32 %v489_v53, 0.0  ;;  %v412_v60 = vadd.f32 %v411_v58, %v1393_v1  ;;  %v580_v61 = vpop.f32.mrf.mxu1 }
 0x102   :  { %v797_v62 = vmax.f32 %v658_v57, 0.0  ;;  %v581_v63 = vadd.f32 %v580_v61, %v1395_v2 }
 0x103   :  { %v734_v0 = vmax.f32 %v412_v60, 0.0  ;;  %450 = vmatmul.bf16.gmra.mxu0 %v1176_v55  ;;  %530 = vmatmul.bf16.gmra.mxu2 %v1192_v56 }
 0x104   :  { %v881_v3 = vpack.c.bf16 %v797_v62, %v796_v59  ;;  %v735_v4 = vmax.f32 %v581_v63, 0.0  ;;  %619 = vmatmul.bf16.gmra.mxu1 %v1176_v55  ;;  %699 = vmatmul.bf16.gmra.mxu3 %v1192_v56 }
 0x106   :  { %945 = vst [vmem:[%s1768_s3 + $0x158] sm:$0xff] %v881_v3  ;;  %v850_v5 = vpack.c.bf16 %v735_v4, %v734_v0  ;;  %v491_v6 = vpop.f32.mrf.mxu2 }
 0x107   :  { %v492_v7 = vadd.f32 %v491_v6, %v1393_v1  ;;  %v660_v8 = vpop.f32.mrf.mxu3 }
 0x108   :  { %914 = vst [vmem:[%s1768_s3 + $0x60] sm:$0xff] %v850_v5  ;;  %v661_v9 = vadd.f32 %v660_v8, %v1395_v2  ;;  %v413_v10 = vpop.f32.mrf.mxu0 }
 0x109   :  { %v798_v11 = vmax.f32 %v492_v7, 0.0  ;;  %v414_v12 = vadd.f32 %v413_v10, %v1393_v1  ;;  %v582_v13 = vpop.f32.mrf.mxu1 }
 0x10a   :  { %v799_v14 = vmax.f32 %v661_v9, 0.0  ;;  %v583_v15 = vadd.f32 %v582_v13, %v1395_v2 }
 0x10b   :  { %v736_v16 = vmax.f32 %v414_v12, 0.0 }
 0x10c   :  { %v882_v17 = vpack.c.bf16 %v799_v14, %v798_v11  ;;  %v737_v18 = vmax.f32 %v583_v15, 0.0 }
 0x10e   :  { %946 = vst [vmem:[%s1768_s3 + $0x160] sm:$0xff] %v882_v17  ;;  %v851_v19 = vpack.c.bf16 %v737_v18, %v736_v16  ;;  %v493_v20 = vpop.f32.mrf.mxu2 }
 0x10f   :  { %v494_v21 = vadd.f32 %v493_v20, %v1393_v1  ;;  %v662_v22 = vpop.f32.mrf.mxu3 }
 0x110   :  { %915 = vst [vmem:[%s1768_s3 + $0x68] sm:$0xff] %v851_v19  ;;  %v663_v25 = vadd.f32 %v662_v22, %v1395_v2  ;;  %v416_v26 = vpop.f32.mrf.mxu0 }
 0x111   :  { %v800_v27 = vmax.f32 %v494_v21, 0.0  ;;  %v417_v28 = vadd.f32 %v416_v26, %v1393_v1  ;;  %v585_v29 = vpop.f32.mrf.mxu1 }
 0x112   :  { %v801_v30 = vmax.f32 %v663_v25, 0.0  ;;  %v586_v31 = vadd.f32 %v585_v29, %v1395_v2 }
 0x113   :  { %v738_v32 = vmax.f32 %v417_v28, 0.0  ;;  %455 = vmatmul.bf16.gmra.mxu0 %v1177_v23  ;;  %535 = vmatmul.bf16.gmra.mxu2 %v1193_v24 }
 0x114   :  { %v883_v33 = vpack.c.bf16 %v801_v30, %v800_v27  ;;  %v739_v34 = vmax.f32 %v586_v31, 0.0  ;;  %624 = vmatmul.bf16.gmra.mxu1 %v1177_v23  ;;  %704 = vmatmul.bf16.gmra.mxu3 %v1193_v24 }
 0x116   :  { %947 = vst [vmem:[%s1768_s3 + $0x168] sm:$0xff] %v883_v33  ;;  %v852_v35 = vpack.c.bf16 %v739_v34, %v738_v32  ;;  %v496_v36 = vpop.f32.mrf.mxu2 }
 0x117   :  { %v497_v37 = vadd.f32 %v496_v36, %v1393_v1  ;;  %v665_v38 = vpop.f32.mrf.mxu3 }
 0x118   :  { %916 = vst [vmem:[%s1768_s3 + $0x70] sm:$0xff] %v852_v35  ;;  %v666_v39 = vadd.f32 %v665_v38, %v1395_v2  ;;  %v418_v40 = vpop.f32.mrf.mxu0 }
 0x119   :  { %v802_v41 = vmax.f32 %v497_v37, 0.0  ;;  %v419_v42 = vadd.f32 %v418_v40, %v1393_v1  ;;  %v587_v43 = vpop.f32.mrf.mxu1 }
 0x11a   :  { %v803_v44 = vmax.f32 %v666_v39, 0.0  ;;  %v588_v45 = vadd.f32 %v587_v43, %v1395_v2 }
 0x11b   :  { %v740_v46 = vmax.f32 %v419_v42, 0.0 }
 0x11c   :  { %v884_v47 = vpack.c.bf16 %v803_v44, %v802_v41  ;;  %v741_v48 = vmax.f32 %v588_v45, 0.0 }
 0x11e   :  { %948 = vst [vmem:[%s1768_s3 + $0x170] sm:$0xff] %v884_v47  ;;  %v853_v49 = vpack.c.bf16 %v741_v48, %v740_v46  ;;  %v498_v50 = vpop.f32.mrf.mxu2 }
 0x11f   :  { %v499_v51 = vadd.f32 %v498_v50, %v1393_v1  ;;  %v667_v52 = vpop.f32.mrf.mxu3 }
 0x120   :  { %917 = vst [vmem:[%s1768_s3 + $0x78] sm:$0xff] %v853_v49  ;;  %v668_v53 = vadd.f32 %v667_v52, %v1395_v2  ;;  %v421_v54 = vpop.f32.mrf.mxu0 }
 0x121   :  { %v804_v55 = vmax.f32 %v499_v51, 0.0  ;;  %v422_v56 = vadd.f32 %v421_v54, %v1393_v1  ;;  %v590_v57 = vpop.f32.mrf.mxu1 }
 0x122   :  { %v805_v58 = vmax.f32 %v668_v53, 0.0  ;;  %v591_v59 = vadd.f32 %v590_v57, %v1395_v2 }
 0x123   :  { %v742_v60 = vmax.f32 %v422_v56, 0.0 }
 0x124   :  { %v885_v61 = vpack.c.bf16 %v805_v58, %v804_v55  ;;  %v743_v62 = vmax.f32 %v591_v59, 0.0 }
 0x126   :  { %949 = vst [vmem:[%s1768_s3 + $0x178] sm:$0xff] %v885_v61  ;;  %v854_v63 = vpack.c.bf16 %v743_v62, %v742_v60  ;;  %v501_v0 = vpop.f32.mrf.mxu2 }
 0x127   :  { %v502_v3 = vadd.f32 %v501_v0, %v1393_v1  ;;  %v670_v4 = vpop.f32.mrf.mxu3 }
 0x128   :  { %918 = vst [vmem:[%s1768_s3 + $0x80] sm:$0xff] %v854_v63  ;;  %v671_v5 = vadd.f32 %v670_v4, %v1395_v2  ;;  %v423_v6 = vpop.f32.mrf.mxu0 }
 0x129   :  { %v806_v7 = vmax.f32 %v502_v3, 0.0  ;;  %v424_v8 = vadd.f32 %v423_v6, %v1393_v1  ;;  %v592_v9 = vpop.f32.mrf.mxu1 }
 0x12a   :  { %v807_v10 = vmax.f32 %v671_v5, 0.0  ;;  %v593_v11 = vadd.f32 %v592_v9, %v1395_v2 }
 0x12b   :  { %v744_v12 = vmax.f32 %v424_v8, 0.0 }
 0x12c   :  { %v886_v13 = vpack.c.bf16 %v807_v10, %v806_v7  ;;  %v745_v14 = vmax.f32 %v593_v11, 0.0 }
 0x12e   :  { %950 = vst [vmem:[%s1768_s3 + $0x180] sm:$0xff] %v886_v13  ;;  %v855_v15 = vpack.c.bf16 %v745_v14, %v744_v12  ;;  %v503_v16 = vpop.f32.mrf.mxu2 }
 0x12f   :  { %v504_v17 = vadd.f32 %v503_v16, %v1393_v1  ;;  %v672_v18 = vpop.f32.mrf.mxu3 }
 0x130   :  { %919 = vst [vmem:[%s1768_s3 + $0x88] sm:$0xff] %v855_v15  ;;  %v673_v19 = vadd.f32 %v672_v18, %v1395_v2  ;;  %v426_v20 = vpop.f32.mrf.mxu0 }
 0x131   :  { %v808_v21 = vmax.f32 %v504_v17, 0.0  ;;  %v427_v22 = vadd.f32 %v426_v20, %v1393_v1  ;;  %v595_v23 = vpop.f32.mrf.mxu1 }
 0x132   :  { %v809_v24 = vmax.f32 %v673_v19, 0.0  ;;  %v596_v25 = vadd.f32 %v595_v23, %v1395_v2 }
 0x133   :  { %v746_v26 = vmax.f32 %v427_v22, 0.0 }
 0x134   :  { %v887_v27 = vpack.c.bf16 %v809_v24, %v808_v21  ;;  %v747_v28 = vmax.f32 %v596_v25, 0.0 }
 0x136   :  { %951 = vst [vmem:[%s1768_s3 + $0x188] sm:$0xff] %v887_v27  ;;  %v856_v29 = vpack.c.bf16 %v747_v28, %v746_v26  ;;  %v506_v30 = vpop.f32.mrf.mxu2 }
 0x137   :  { %v507_v31 = vadd.f32 %v506_v30, %v1393_v1  ;;  %v675_v32 = vpop.f32.mrf.mxu3 }
 0x138   :  { %920 = vst [vmem:[%s1768_s3 + $0x90] sm:$0xff] %v856_v29  ;;  %v676_v33 = vadd.f32 %v675_v32, %v1395_v2  ;;  %v428_v34 = vpop.f32.mrf.mxu0 }
 0x139   :  { %v810_v35 = vmax.f32 %v507_v31, 0.0  ;;  %v429_v36 = vadd.f32 %v428_v34, %v1393_v1  ;;  %v597_v37 = vpop.f32.mrf.mxu1 }
 0x13a   :  { %v811_v38 = vmax.f32 %v676_v33, 0.0  ;;  %v598_v39 = vadd.f32 %v597_v37, %v1395_v2 }
 0x13b   :  { %v748_v40 = vmax.f32 %v429_v36, 0.0 }
 0x13c   :  { %v888_v41 = vpack.c.bf16 %v811_v38, %v810_v35  ;;  %v749_v42 = vmax.f32 %v598_v39, 0.0 }
 0x13e   :  { %952 = vst [vmem:[%s1768_s3 + $0x190] sm:$0xff] %v888_v41  ;;  %v857_v43 = vpack.c.bf16 %v749_v42, %v748_v40  ;;  %v508_v44 = vpop.f32.mrf.mxu2 }
 0x13f   :  { %v509_v45 = vadd.f32 %v508_v44, %v1393_v1  ;;  %v677_v46 = vpop.f32.mrf.mxu3 }
 0x140   :  { %921 = vst [vmem:[%s1768_s3 + $0x98] sm:$0xff] %v857_v43  ;;  %v678_v47 = vadd.f32 %v677_v46, %v1395_v2  ;;  %v431_v48 = vpop.f32.mrf.mxu0 }
 0x141   :  { %v812_v49 = vmax.f32 %v509_v45, 0.0  ;;  %v432_v50 = vadd.f32 %v431_v48, %v1393_v1  ;;  %v600_v51 = vpop.f32.mrf.mxu1 }
 0x142   :  { %v813_v52 = vmax.f32 %v678_v47, 0.0  ;;  %v601_v53 = vadd.f32 %v600_v51, %v1395_v2 }
 0x143   :  { %v750_v54 = vmax.f32 %v432_v50, 0.0 }
 0x144   :  { %v889_v55 = vpack.c.bf16 %v813_v52, %v812_v49  ;;  %v751_v56 = vmax.f32 %v601_v53, 0.0 }
 0x146   :  { %953 = vst [vmem:[%s1768_s3 + $0x198] sm:$0xff] %v889_v55  ;;  %v858_v57 = vpack.c.bf16 %v751_v56, %v750_v54  ;;  %v511_v58 = vpop.f32.mrf.mxu2 }
 0x147   :  { %v512_v59 = vadd.f32 %v511_v58, %v1393_v1  ;;  %v680_v60 = vpop.f32.mrf.mxu3 }
 0x148   :  { %922 = vst [vmem:[%s1768_s3 + $0xa0] sm:$0xff] %v858_v57  ;;  %v681_v61 = vadd.f32 %v680_v60, %v1395_v2  ;;  %v433_v62 = vpop.f32.mrf.mxu0 }
 0x149   :  { %v814_v63 = vmax.f32 %v512_v59, 0.0  ;;  %v434_v0 = vadd.f32 %v433_v62, %v1393_v1  ;;  %v602_v3 = vpop.f32.mrf.mxu1 }
 0x14a   :  { %v815_v4 = vmax.f32 %v681_v61, 0.0  ;;  %v603_v5 = vadd.f32 %v602_v3, %v1395_v2 }
 0x14b   :  { %v752_v6 = vmax.f32 %v434_v0, 0.0 }
 0x14c   :  { %v890_v7 = vpack.c.bf16 %v815_v4, %v814_v63  ;;  %v753_v8 = vmax.f32 %v603_v5, 0.0 }
 0x14e   :  { %954 = vst [vmem:[%s1768_s3 + $0x1a0] sm:$0xff] %v890_v7  ;;  %v859_v9 = vpack.c.bf16 %v753_v8, %v752_v6  ;;  %v513_v10 = vpop.f32.mrf.mxu2 }
 0x14f   :  { %v514_v11 = vadd.f32 %v513_v10, %v1393_v1  ;;  %v682_v12 = vpop.f32.mrf.mxu3 }
 0x150   :  { %923 = vst [vmem:[%s1768_s3 + $0xa8] sm:$0xff] %v859_v9  ;;  %v683_v13 = vadd.f32 %v682_v12, %v1395_v2  ;;  %v436_v14 = vpop.f32.mrf.mxu0 }
 0x151   :  { %v816_v15 = vmax.f32 %v514_v11, 0.0  ;;  %v437_v16 = vadd.f32 %v436_v14, %v1393_v1  ;;  %v605_v17 = vpop.f32.mrf.mxu1 }
 0x152   :  { %v817_v18 = vmax.f32 %v683_v13, 0.0  ;;  %v606_v19 = vadd.f32 %v605_v17, %v1395_v2 }
 0x153   :  { %v754_v20 = vmax.f32 %v437_v16, 0.0 }
 0x154   :  { %v891_v21 = vpack.c.bf16 %v817_v18, %v816_v15  ;;  %v755_v22 = vmax.f32 %v606_v19, 0.0 }
 0x156   :  { %955 = vst [vmem:[%s1768_s3 + $0x1a8] sm:$0xff] %v891_v21  ;;  %v860_v23 = vpack.c.bf16 %v755_v22, %v754_v20  ;;  %v516_v24 = vpop.f32.mrf.mxu2 }
 0x157   :  { %v517_v25 = vadd.f32 %v516_v24, %v1393_v1  ;;  %v685_v26 = vpop.f32.mrf.mxu3 }
 0x158   :  { %924 = vst [vmem:[%s1768_s3 + $0xb0] sm:$0xff] %v860_v23  ;;  %v686_v27 = vadd.f32 %v685_v26, %v1395_v2  ;;  %v438_v28 = vpop.f32.mrf.mxu0 }
 0x159   :  { %v818_v29 = vmax.f32 %v517_v25, 0.0  ;;  %v439_v30 = vadd.f32 %v438_v28, %v1393_v1  ;;  %v607_v31 = vpop.f32.mrf.mxu1 }
 0x15a   :  { %v819_v32 = vmax.f32 %v686_v27, 0.0  ;;  %v608_v33 = vadd.f32 %v607_v31, %v1395_v2 }
 0x15b   :  { %v756_v34 = vmax.f32 %v439_v30, 0.0 }
 0x15c   :  { %v892_v35 = vpack.c.bf16 %v819_v32, %v818_v29  ;;  %v757_v36 = vmax.f32 %v608_v33, 0.0 }
 0x15e   :  { %956 = vst [vmem:[%s1768_s3 + $0x1b0] sm:$0xff] %v892_v35  ;;  %v861_v37 = vpack.c.bf16 %v757_v36, %v756_v34  ;;  %v518_v38 = vpop.f32.mrf.mxu2 }
 0x15f   :  { %v519_v39 = vadd.f32 %v518_v38, %v1393_v1  ;;  %v687_v40 = vpop.f32.mrf.mxu3 }
 0x160   :  { %925 = vst [vmem:[%s1768_s3 + $0xb8] sm:$0xff] %v861_v37  ;;  %v688_v41 = vadd.f32 %v687_v40, %v1395_v2  ;;  %v441_v42 = vpop.f32.mrf.mxu0 }
 0x161   :  { %v820_v43 = vmax.f32 %v519_v39, 0.0  ;;  %v442_v44 = vadd.f32 %v441_v42, %v1393_v1  ;;  %v610_v45 = vpop.f32.mrf.mxu1 }
 0x162   :  { %v821_v46 = vmax.f32 %v688_v41, 0.0  ;;  %v611_v47 = vadd.f32 %v610_v45, %v1395_v2 }
 0x163   :  { %v758_v48 = vmax.f32 %v442_v44, 0.0 }
 0x164   :  { %v893_v49 = vpack.c.bf16 %v821_v46, %v820_v43  ;;  %v759_v50 = vmax.f32 %v611_v47, 0.0 }
 0x166   :  { %957 = vst [vmem:[%s1768_s3 + $0x1b8] sm:$0xff] %v893_v49  ;;  %v862_v51 = vpack.c.bf16 %v759_v50, %v758_v48  ;;  %v521_v52 = vpop.f32.mrf.mxu2 }
 0x167   :  { %v522_v53 = vadd.f32 %v521_v52, %v1393_v1  ;;  %v690_v54 = vpop.f32.mrf.mxu3 }
 0x168   :  { %926 = vst [vmem:[%s1768_s3 + $0xc0] sm:$0xff] %v862_v51  ;;  %v691_v55 = vadd.f32 %v690_v54, %v1395_v2  ;;  %v443_v56 = vpop.f32.mrf.mxu0 }
 0x169   :  { %v822_v57 = vmax.f32 %v522_v53, 0.0  ;;  %v444_v58 = vadd.f32 %v443_v56, %v1393_v1  ;;  %v612_v59 = vpop.f32.mrf.mxu1 }
 0x16a   :  { %v823_v60 = vmax.f32 %v691_v55, 0.0  ;;  %v613_v61 = vadd.f32 %v612_v59, %v1395_v2 }
 0x16b   :  { %v760_v62 = vmax.f32 %v444_v58, 0.0 }
 0x16c   :  { %v894_v63 = vpack.c.bf16 %v823_v60, %v822_v57  ;;  %v761_v0 = vmax.f32 %v613_v61, 0.0 }
 0x16e   :  { %958 = vst [vmem:[%s1768_s3 + $0x1c0] sm:$0xff] %v894_v63  ;;  %v863_v3 = vpack.c.bf16 %v761_v0, %v760_v62  ;;  %v523_v4 = vpop.f32.mrf.mxu2 }
 0x16f   :  { %v524_v5 = vadd.f32 %v523_v4, %v1393_v1  ;;  %v692_v6 = vpop.f32.mrf.mxu3 }
 0x170   :  { %927 = vst [vmem:[%s1768_s3 + $0xc8] sm:$0xff] %v863_v3  ;;  %v693_v7 = vadd.f32 %v692_v6, %v1395_v2  ;;  %v446_v8 = vpop.f32.mrf.mxu0 }
 0x171   :  { %v824_v9 = vmax.f32 %v524_v5, 0.0  ;;  %v447_v10 = vadd.f32 %v446_v8, %v1393_v1  ;;  %v615_v11 = vpop.f32.mrf.mxu1 }
 0x172   :  { %v825_v12 = vmax.f32 %v693_v7, 0.0  ;;  %v616_v13 = vadd.f32 %v615_v11, %v1395_v2 }
 0x173   :  { %v762_v14 = vmax.f32 %v447_v10, 0.0 }
 0x174   :  { %v895_v15 = vpack.c.bf16 %v825_v12, %v824_v9  ;;  %v763_v16 = vmax.f32 %v616_v13, 0.0 }
 0x176   :  { %959 = vst [vmem:[%s1768_s3 + $0x1c8] sm:$0xff] %v895_v15  ;;  %v864_v17 = vpack.c.bf16 %v763_v16, %v762_v14  ;;  %v526_v18 = vpop.f32.mrf.mxu2 }
 0x177   :  { %v527_v19 = vadd.f32 %v526_v18, %v1393_v1  ;;  %v695_v20 = vpop.f32.mrf.mxu3 }
 0x178   :  { %928 = vst [vmem:[%s1768_s3 + $0xd0] sm:$0xff] %v864_v17  ;;  %v696_v21 = vadd.f32 %v695_v20, %v1395_v2  ;;  %v448_v22 = vpop.f32.mrf.mxu0 }
 0x179   :  { %v826_v23 = vmax.f32 %v527_v19, 0.0  ;;  %v449_v24 = vadd.f32 %v448_v22, %v1393_v1  ;;  %v617_v25 = vpop.f32.mrf.mxu1 }
 0x17a   :  { %v827_v26 = vmax.f32 %v696_v21, 0.0  ;;  %v618_v27 = vadd.f32 %v617_v25, %v1395_v2 }
 0x17b   :  { %v764_v28 = vmax.f32 %v449_v24, 0.0 }
 0x17c   :  { %v896_v29 = vpack.c.bf16 %v827_v26, %v826_v23  ;;  %v765_v30 = vmax.f32 %v618_v27, 0.0 }
 0x17e   :  { %960 = vst [vmem:[%s1768_s3 + $0x1d0] sm:$0xff] %v896_v29  ;;  %v865_v31 = vpack.c.bf16 %v765_v30, %v764_v28  ;;  %v528_v32 = vpop.f32.mrf.mxu2 }
 0x17f   :  { %v529_v33 = vadd.f32 %v528_v32, %v1393_v1  ;;  %v697_v34 = vpop.f32.mrf.mxu3 }
 0x180   :  { %929 = vst [vmem:[%s1768_s3 + $0xd8] sm:$0xff] %v865_v31  ;;  %v698_v35 = vadd.f32 %v697_v34, %v1395_v2  ;;  %v451_v36 = vpop.f32.mrf.mxu0 }
 0x181   :  { %v828_v37 = vmax.f32 %v529_v33, 0.0  ;;  %v452_v38 = vadd.f32 %v451_v36, %v1393_v1  ;;  %v620_v39 = vpop.f32.mrf.mxu1 }
 0x182   :  { %v829_v40 = vmax.f32 %v698_v35, 0.0  ;;  %v621_v41 = vadd.f32 %v620_v39, %v1395_v2 }
 0x183   :  { %v766_v42 = vmax.f32 %v452_v38, 0.0 }
 0x184   :  { %v897_v43 = vpack.c.bf16 %v829_v40, %v828_v37  ;;  %v767_v44 = vmax.f32 %v621_v41, 0.0 }
 0x186   :  { %961 = vst [vmem:[%s1768_s3 + $0x1d8] sm:$0xff] %v897_v43  ;;  %v866_v45 = vpack.c.bf16 %v767_v44, %v766_v42  ;;  %v531_v46 = vpop.f32.mrf.mxu2 }
 0x187   :  { %v532_v47 = vadd.f32 %v531_v46, %v1393_v1  ;;  %v700_v48 = vpop.f32.mrf.mxu3 }
 0x188   :  { %930 = vst [vmem:[%s1768_s3 + $0xe0] sm:$0xff] %v866_v45  ;;  %v701_v49 = vadd.f32 %v700_v48, %v1395_v2  ;;  %v453_v50 = vpop.f32.mrf.mxu0 }
 0x189   :  { %v830_v51 = vmax.f32 %v532_v47, 0.0  ;;  %v454_v52 = vadd.f32 %v453_v50, %v1393_v1  ;;  %v622_v53 = vpop.f32.mrf.mxu1 }
 0x18a   :  { %v831_v54 = vmax.f32 %v701_v49, 0.0  ;;  %v623_v55 = vadd.f32 %v622_v53, %v1395_v2 }
 0x18b   :  { %v768_v56 = vmax.f32 %v454_v52, 0.0 }
 0x18c   :  { %v898_v57 = vpack.c.bf16 %v831_v54, %v830_v51  ;;  %v769_v58 = vmax.f32 %v623_v55, 0.0 }
 0x18e   :  { %962 = vst [vmem:[%s1768_s3 + $0x1e0] sm:$0xff] %v898_v57  ;;  %v867_v59 = vpack.c.bf16 %v769_v58, %v768_v56  ;;  %v533_v60 = vpop.f32.mrf.mxu2 }
 0x18f   :  { %v534_v61 = vadd.f32 %v533_v60, %v1393_v1  ;;  %v702_v62 = vpop.f32.mrf.mxu3 }
 0x190   :  { %931 = vst [vmem:[%s1768_s3 + $0xe8] sm:$0xff] %v867_v59  ;;  %v703_v63 = vadd.f32 %v702_v62, %v1395_v2  ;;  %v456_v0 = vpop.f32.mrf.mxu0 }
 0x191   :  { %v832_v3 = vmax.f32 %v534_v61, 0.0  ;;  %v457_v4 = vadd.f32 %v456_v0, %v1393_v1  ;;  %v625_v5 = vpop.f32.mrf.mxu1 }
 0x192   :  { %v833_v6 = vmax.f32 %v703_v63, 0.0  ;;  %v626_v7 = vadd.f32 %v625_v5, %v1395_v2 }
 0x193   :  { %v770_v8 = vmax.f32 %v457_v4, 0.0 }
 0x194   :  { %v899_v9 = vpack.c.bf16 %v833_v6, %v832_v3  ;;  %v771_v10 = vmax.f32 %v626_v7, 0.0 }
 0x196   :  { %963 = vst [vmem:[%s1768_s3 + $0x1e8] sm:$0xff] %v899_v9  ;;  %v868_v11 = vpack.c.bf16 %v771_v10, %v770_v8  ;;  %v536_v12 = vpop.f32.mrf.mxu2 }
 0x197   :  { %v537_v13 = vadd.f32 %v536_v12, %v1393_v1  ;;  %v705_v14 = vpop.f32.mrf.mxu3 }
 0x198   :  { %932 = vst [vmem:[%s1768_s3 + $0xf0] sm:$0xff] %v868_v11  ;;  %v706_v15 = vadd.f32 %v705_v14, %v1395_v2  ;;  %v458_v16 = vpop.f32.mrf.mxu0 }
 0x199   :  { %v834_v17 = vmax.f32 %v537_v13, 0.0  ;;  %v459_v18 = vadd.f32 %v458_v16, %v1393_v1  ;;  %v627_v19 = vpop.f32.mrf.mxu1 }
 0x19a   :  { %v835_v20 = vmax.f32 %v706_v15, 0.0  ;;  %v628_v21 = vadd.f32 %v627_v19, %v1395_v2 }
 0x19b   :  { %v772_v22 = vmax.f32 %v459_v18, 0.0 }
 0x19c   :  { %v900_v23 = vpack.c.bf16 %v835_v20, %v834_v17  ;;  %v773_v24 = vmax.f32 %v628_v21, 0.0 }
 0x19e   :  { %964 = vst [vmem:[%s1768_s3 + $0x1f0] sm:$0xff] %v900_v23  ;;  %v869_v25 = vpack.c.bf16 %v773_v24, %v772_v22  ;;  %v538_v26 = vpop.f32.mrf.mxu2 }
 0x19f   :  { %v539_v27 = vadd.f32 %v538_v26, %v1393_v1  ;;  %v707_v28 = vpop.f32.mrf.mxu3 }
 0x1a0   :  { %933 = vst [vmem:[%s1768_s3 + $0xf8] sm:$0xff] %v869_v25  ;;  %v708_v29 = vadd.f32 %v707_v28, %v1395_v2 }
 0x1a1   :  { %v836_v30 = vmax.f32 %v539_v27, 0.0 }
 0x1a2   :  { %v837_v31 = vmax.f32 %v708_v29, 0.0 }
 0x1a4   :  { %v901_v32 = vpack.c.bf16 %v837_v31, %v836_v30 }
 0x1a6   :  { %965 = vst [vmem:[%s1768_s3 + $0x1f8] sm:$0xff] %v901_v32 }

// kernel: autoencoder_forward.15
= control target key start
LH: loop header
LB: loop body
LE: loop exit
PB: predicated region body
PF: predicated region fallthrough
CT: control target
= control target key end

     0   :  { %s5784_s12 = smov 0   ;;  %s9447_s0 = inlined_call_operand.vmem [shape: bf16[2048,256], index: 0, kind: input, shape index: {}]   ;;  %s9448_s1 = inlined_call_operand.vmem [shape: bf16[256,16], index: 1, kind: input, shape index: {}]   ;;  %s9449_s2 = inlined_call_operand.vmem [shape: f32[1,16], index: 2, kind: input, shape index: {}]   ;;  %s9450_s3 = inlined_call_operand.vmem [shape: f32[2048,16], index: 3, kind: output, shape index: {}]  }
   0x1 LB: > { %s4352_s13 = sadd.s32 4294967295, %s5762_s12   ;;  %p4356_p0 = scmp.ge.s32.totalorder %s5762_s12, 1  ;;  %s5762_s12 = sphi %s5784_s12, %s13_s12  }
   0x2   : > { %p139_p1 = scmp.lt.s32.totalorder %s5762_s12, 3 }
   0x4   : > { %p140_p2 = pnand %p4356_p0, %p139_p1 }
   0x5   : > { %s4357_s26 = sshll.u32 (!%p140_p2), %s4352_s13, 7 }
   0x6   : > { %143 = sbr.rel (%p140_p2) target bundleno = 792 (0x318), region = 32  ;;  %p165_p3 = scmp.lt.s32.totalorder (!%p140_p2), %s4357_s26, 255 }
   0xb   : > { %v5204_v0 = vld [vmem:[%s9448_s1 + $0x38] sm:$0xff]  ;;  %v5203_v2 = vld [vmem:[%s9448_s1 + $0x30] sm:$0xff]  ;;  %v5202_v4 = vld [vmem:[%s9448_s1 + $0x28] sm:$0xff]  ;;  %s9680_s26 = smov (!%p165_p3, %s4357_s26), 255  ;;  %vm4167_vm0 = vcmask 130048  }
   0xc   : > { %v5212_v1 = vld [vmem:[%s9448_s1 + $0x78] sm:$0xff]  ;;  %1077 = vmatpush.bf16.msra.mxu0 %v5204_v0  ;;  %5213 = vmatpush.bf16.msra.mxu2 %v5204_v0  ;;  %v5211_v3 = vld [vmem:[%s9448_s1 + $0x70] sm:$0xff]  ;;  %v5210_v5 = vld [vmem:[%s9448_s1 + $0x68] sm:$0xff]  ;;  %s5068_s13 = sshll.u32 %s9680_s26, 3 }
   0xd   : > { %1406 = vmatpush.bf16.msra.mxu1 %v5212_v1  ;;  %5221 = vmatpush.bf16.msra.mxu3 %v5212_v1  ;;  %v5201_v6 = vld [vmem:[%s9448_s1 + $0x20] sm:$0xff]  ;;  %v5200_v8 = vld [vmem:[%s9448_s1 + $0x18] sm:$0xff]  ;;  %v5199_v10 = vld [vmem:[%s9448_s1 + $0x10] sm:$0xff]  ;;  %s5839_s18 = scalar_lea.vmem %s9447_s0, %s5068_s13  ;;  %s6022_s30 = scalar_lea.vmem %s9450_s3, %s5068_s13 }
   0xe   : > { %v5209_v7 = vld [vmem:[%s9448_s1 + $0x60] sm:$0xff]  ;;  %v5208_v9 = vld [vmem:[%s9448_s1 + $0x58] sm:$0xff]  ;;  %v5207_v11 = vld [vmem:[%s9448_s1 + $0x50] sm:$0xff] }
   0xf   : > { %v5198_v12 = vld [vmem:[%s9448_s1 + $0x8] sm:$0xff]  ;;  %v5197_v14 = vld [vmem:[%s9448_s1] sm:$0xff]  ;;  %v4372_v28 = vld [vmem:[%s5839_s18 + $0x10] sm:$0xf] }
  0x10   : > { %1078 = vmatpush.bf16.msra.mxu0 %v5203_v2  ;;  %5214 = vmatpush.bf16.msra.mxu2 %v5203_v2  ;;  %v5206_v13 = vld [vmem:[%s9448_s1 + $0x48] sm:$0xff]  ;;  %v5205_v15 = vld [vmem:[%s9448_s1 + $0x40] sm:$0xff]  ;;  %v5072_v29 = vld [vmem:[%s5839_s18 + $0x14] sm:$0xf0] }
  0x11   : > { %1407 = vmatpush.bf16.msra.mxu1 %v5211_v3  ;;  %5222 = vmatpush.bf16.msra.mxu3 %v5211_v3  ;;  %v4364_v16 = vld [vmem:[%s5839_s18] sm:$0xf]  ;;  %v5070_v17 = vld [vmem:[%s5839_s18 + $0x4] sm:$0xf0]  ;;  %v5069_v20 = vld [vmem:[%s5839_s18 + $0x4] sm:$0xf]  ;;  %v4373_v36 = vor.u32 %v5072_v29, %v4372_v28 }
  0x12   : > { %v4620_v18 = vld [vmem:[%s5839_s18 + $0x200] sm:$0xf]  ;;  %v5134_v19 = vld [vmem:[%s5839_s18 + $0x204] sm:$0xf0]  ;;  %v4366_v21 = vld [vmem:[%s5839_s18 + $0x8] sm:$0xf0]  ;;  %v4365_v24 = vor.u32 %v5070_v17, %v4364_v16 }
  0x13   : > { %v5133_v22 = vld [vmem:[%s5839_s18 + $0x204] sm:$0xf]  ;;  %v4622_v23 = vld [vmem:[%s5839_s18 + $0x208] sm:$0xf0]  ;;  %v4621_v25 = vor.u32 %v5134_v19, %v4620_v18  ;;  %v4369_v26 = vor.u32 %v5069_v20, %v4366_v21  ;;  %v4628_v30 = vld [vmem:[%s5839_s18 + $0x210] sm:$0xf] }
  0x14   : > { %1079 = vmatpush.bf16.msra.mxu0 %v5202_v4  ;;  %5215 = vmatpush.bf16.msra.mxu2 %v5202_v4  ;;  %v4625_v27 = vor.u32 %v5133_v22, %v4622_v23  ;;  %v5136_v31 = vld [vmem:[%s5839_s18 + $0x214] sm:$0xf0]  ;;  %v5071_v32 = vld [vmem:[%s5839_s18 + $0x14] sm:$0xf]  ;;  %v4374_v33 = vld [vmem:[%s5839_s18 + $0x18] sm:$0xf0] }
  0x15   : > { %1408 = vmatpush.bf16.msra.mxu1 %v5210_v5  ;;  %5223 = vmatpush.bf16.msra.mxu3 %v5210_v5  ;;  %v5135_v34 = vld [vmem:[%s5839_s18 + $0x214] sm:$0xf]  ;;  %v4630_v35 = vld [vmem:[%s5839_s18 + $0x218] sm:$0xf0]  ;;  %v4629_v37 = vor.u32 %v5136_v31, %v4628_v30  ;;  %v4377_v38 = vor.u32 %v5071_v32, %v4374_v33  ;;  %v4380_v40 = vld [vmem:[%s5839_s18 + $0x20] sm:$0xf] }
  0x16   : > { %v4633_v39 = vor.u32 %v5135_v34, %v4630_v35  ;;  %v5074_v41 = vld [vmem:[%s5839_s18 + $0x24] sm:$0xf0]  ;;  %v4636_v42 = vld [vmem:[%s5839_s18 + $0x220] sm:$0xf]  ;;  %v5073_v44 = vld [vmem:[%s5839_s18 + $0x24] sm:$0xf] }
  0x17   : > { %v5138_v43 = vld [vmem:[%s5839_s18 + $0x224] sm:$0xf0]  ;;  %v4382_v45 = vld [vmem:[%s5839_s18 + $0x28] sm:$0xf0]  ;;  %v5137_v46 = vld [vmem:[%s5839_s18 + $0x224] sm:$0xf]  ;;  %v4381_v48 = vor.u32 %v5074_v41, %v4380_v40 }
  0x18   : > { %1080 = vmatpush.bf16.msra.mxu0 %v5201_v6  ;;  %5216 = vmatpush.bf16.msra.mxu2 %v5201_v6  ;;  %v4638_v47 = vld [vmem:[%s5839_s18 + $0x228] sm:$0xf0]  ;;  %v4637_v49 = vor.u32 %v5138_v43, %v4636_v42  ;;  %v4385_v50 = vor.u32 %v5073_v44, %v4382_v45  ;;  %v4388_v52 = vld [vmem:[%s5839_s18 + $0x30] sm:$0xf]  ;;  %v5076_v53 = vld [vmem:[%s5839_s18 + $0x34] sm:$0xf0] }
  0x19   : > { %1409 = vmatpush.bf16.msra.mxu1 %v5209_v7  ;;  %5224 = vmatpush.bf16.msra.mxu3 %v5209_v7  ;;  %v4641_v51 = vor.u32 %v5137_v46, %v4638_v47  ;;  %v4644_v54 = vld [vmem:[%s5839_s18 + $0x230] sm:$0xf]  ;;  %v5140_v55 = vld [vmem:[%s5839_s18 + $0x234] sm:$0xf0]  ;;  %v5075_v56 = vld [vmem:[%s5839_s18 + $0x34] sm:$0xf]  ;;  %v4389_v60 = vor.u32 %v5076_v53, %v4388_v52 }
  0x1a   : > { %v4390_v57 = vld [vmem:[%s5839_s18 + $0x38] sm:$0xf0]  ;;  %v5139_v58 = vld [vmem:[%s5839_s18 + $0x234] sm:$0xf]  ;;  %v4645_v61 = vor.u32 %v5140_v55, %v4644_v54  ;;  %v4396_v0 = vld [vmem:[%s5839_s18 + $0x40] sm:$0xf] }
  0x1b   : > { %v4646_v59 = vld [vmem:[%s5839_s18 + $0x238] sm:$0xf0]  ;;  %v4393_v62 = vor.u32 %v5075_v56, %v4390_v57  ;;  %v5078_v1 = vld [vmem:[%s5839_s18 + $0x44] sm:$0xf0]  ;;  %v4652_v2 = vld [vmem:[%s5839_s18 + $0x240] sm:$0xf] }
  0x1c   : > { %1081 = vmatpush.bf16.msra.mxu0 %v5200_v8  ;;  %5217 = vmatpush.bf16.msra.mxu2 %v5200_v8  ;;  %v4649_v63 = vor.u32 %v5139_v58, %v4646_v59  ;;  %v5142_v3 = vld [vmem:[%s5839_s18 + $0x244] sm:$0xf0]  ;;  %v5077_v4 = vld [vmem:[%s5839_s18 + $0x44] sm:$0xf]  ;;  %v4398_v5 = vld [vmem:[%s5839_s18 + $0x48] sm:$0xf0]  ;;  %v4397_v8 = vor.u32 %v5078_v1, %v4396_v0 }
  0x1d   : > { %1410 = vmatpush.bf16.msra.mxu1 %v5208_v9  ;;  %5225 = vmatpush.bf16.msra.mxu3 %v5208_v9  ;;  %v5141_v6 = vld [vmem:[%s5839_s18 + $0x244] sm:$0xf]  ;;  %v4654_v7 = vld [vmem:[%s5839_s18 + $0x248] sm:$0xf0]  ;;  %v4653_v9 = vor.u32 %v5142_v3, %v4652_v2  ;;  %v5079_v16 = vld [vmem:[%s5839_s18 + $0x54] sm:$0xf] }
  0x1e   : > { %v4406_v17 = vld [vmem:[%s5839_s18 + $0x58] sm:$0xf0]  ;;  %v5143_v18 = vld [vmem:[%s5839_s18 + $0x254] sm:$0xf]  ;;  %v5081_v28 = vld [vmem:[%s5839_s18 + $0x64] sm:$0xf] }
  0x1f   : > { %v4662_v19 = vld [vmem:[%s5839_s18 + $0x258] sm:$0xf0]  ;;  %v4409_v22 = vor.u32 %v5079_v16, %v4406_v17  ;;  %v4414_v29 = vld [vmem:[%s5839_s18 + $0x68] sm:$0xf0]  ;;  %v5145_v30 = vld [vmem:[%s5839_s18 + $0x264] sm:$0xf] }
  0x20   : > { %1082 = vmatpush.bf16.msra.mxu0 %v5199_v10  ;;  %5218 = vmatpush.bf16.msra.mxu2 %v5199_v10  ;;  %v4401_v10 = vor.u32 %v5077_v4, %v4398_v5  ;;  %v4665_v23 = vor.u32 %v5143_v18, %v4662_v19  ;;  %v4670_v31 = vld [vmem:[%s5839_s18 + $0x268] sm:$0xf0]  ;;  %v4417_v34 = vor.u32 %v5081_v28, %v4414_v29  ;;  %v5083_v40 = vld [vmem:[%s5839_s18 + $0x74] sm:$0xf]  ;;  %v4422_v41 = vld [vmem:[%s5839_s18 + $0x78] sm:$0xf0] }
  0x21   : > { %1411 = vmatpush.bf16.msra.mxu1 %v5207_v11  ;;  %5226 = vmatpush.bf16.msra.mxu3 %v5207_v11  ;;  %v4657_v11 = vor.u32 %v5141_v6, %v4654_v7  ;;  %v4673_v35 = vor.u32 %v5145_v30, %v4670_v31  ;;  %v5147_v42 = vld [vmem:[%s5839_s18 + $0x274] sm:$0xf]  ;;  %v4678_v43 = vld [vmem:[%s5839_s18 + $0x278] sm:$0xf0]  ;;  %v4425_v46 = vor.u32 %v5083_v40, %v4422_v41  ;;  %v5150_v52 = vld [vmem:[%s5839_s18 + $0x284] sm:$0xf0] }
  0x22   : > { %v4681_v47 = vor.u32 %v5147_v42, %v4678_v43  ;;  %v5085_v53 = vld [vmem:[%s5839_s18 + $0x84] sm:$0xf]  ;;  %v4430_v54 = vld [vmem:[%s5839_s18 + $0x88] sm:$0xf0]  ;;  %v4438_v16 = vld [vmem:[%s5839_s18 + $0x98] sm:$0xf0] }
  0x23   : > { %v5149_v55 = vld [vmem:[%s5839_s18 + $0x284] sm:$0xf]  ;;  %v4686_v56 = vld [vmem:[%s5839_s18 + $0x288] sm:$0xf0]  ;;  %v5151_v19 = vld [vmem:[%s5839_s18 + $0x294] sm:$0xf] }
  0x24   : > { %1083 = vmatpush.bf16.msra.mxu0 %v5198_v12  ;;  %5219 = vmatpush.bf16.msra.mxu2 %v5198_v12  ;;  %v4404_v12 = vld [vmem:[%s5839_s18 + $0x50] sm:$0xf]  ;;  %v5949_v40 = vld [vmem:[%s5839_s18 + $0xa4] sm:$0xf0]  ;;  %v5955_v43 = vld [vmem:[%s5839_s18 + $0x2a0] sm:$0xf] }
  0x25   : > { %1412 = vmatpush.bf16.msra.mxu1 %v5206_v13  ;;  %5227 = vmatpush.bf16.msra.mxu3 %v5206_v13  ;;  %v5080_v13 = vld [vmem:[%s5839_s18 + $0x54] sm:$0xf0] }
  0x26   : > { %v4405_v20 = vor.u32 %v5080_v13, %v4404_v12  ;;  %v5088_v12 = vld [vmem:[%s5839_s18 + $0x94] sm:$0xf0]  ;;  %v4692_v13 = vld [vmem:[%s5839_s18 + $0x290] sm:$0xf] }
  0x28   : > { %1084 = vmatpush.bf16.msra.mxu0 %v5197_v14  ;;  %5220 = vmatpush.bf16.msra.mxu2 %v5197_v14  ;;  %v4660_v14 = vld [vmem:[%s5839_s18 + $0x250] sm:$0xf] }
  0x29   : > { %1413 = vmatpush.bf16.msra.mxu1 %v5205_v15  ;;  %5228 = vmatpush.bf16.msra.mxu3 %v5205_v15  ;;  %v5144_v15 = vld [vmem:[%s5839_s18 + $0x254] sm:$0xf0] }
  0x2a   : > { %v4661_v21 = vor.u32 %v5144_v15, %v4660_v14  ;;  %v5152_v14 = vld [vmem:[%s5839_s18 + $0x294] sm:$0xf0]  ;;  %v5087_v15 = vld [vmem:[%s5839_s18 + $0x94] sm:$0xf] }
  0x2b   : > { %1085 = vmatmul.bf16.vlgmr.msra.gmra.mxu0 %v4365_v24  ;;  %1245 = vmatmul.bf16.vlgmr.msra.gmra.mxu2 %v4621_v25  ;;  %v4412_v24 = vld [vmem:[%s5839_s18 + $0x60] sm:$0xf]  ;;  %v5082_v25 = vld [vmem:[%s5839_s18 + $0x64] sm:$0xf0]  ;;  %v4441_v28 = vor.u32 %v5087_v15, %v4438_v16  ;;  %v6012_v15 = vld [vmem:[%s5839_s18 + $0xb0] sm:$0xf] }
  0x2c   : > { %1414 = vmatmul.bf16.vlgmr.msra.gmra.mxu1 %v4369_v26  ;;  %1574 = vmatmul.bf16.vlgmr.msra.gmra.mxu3 %v4625_v27  ;;  %v4668_v26 = vld [vmem:[%s5839_s18 + $0x260] sm:$0xf]  ;;  %v5146_v27 = vld [vmem:[%s5839_s18 + $0x264] sm:$0xf0]  ;;  %v4413_v32 = vor.u32 %v5082_v25, %v4412_v24  ;;  %v6015_v16 = vld [vmem:[%s5839_s18 + $0xb4] sm:$0xf0] }
  0x2d   : > { %v4669_v33 = vor.u32 %v5146_v27, %v4668_v26  ;;  %v4693_v26 = vor.u32 %v5152_v14, %v4692_v13 }
  0x3b   : > { %1090 = vmatmul.bf16.gmra.mxu0 %v4373_v36  ;;  %1250 = vmatmul.bf16.gmra.mxu2 %v4629_v37  ;;  %v4420_v36 = vld [vmem:[%s5839_s18 + $0x70] sm:$0xf]  ;;  %v5084_v37 = vld [vmem:[%s5839_s18 + $0x74] sm:$0xf0] }
  0x3c   : > { %1419 = vmatmul.bf16.gmra.mxu1 %v4377_v38  ;;  %1579 = vmatmul.bf16.gmra.mxu3 %v4633_v39  ;;  %v4676_v38 = vld [vmem:[%s5839_s18 + $0x270] sm:$0xf]  ;;  %v5148_v39 = vld [vmem:[%s5839_s18 + $0x274] sm:$0xf0]  ;;  %v4421_v44 = vor.u32 %v5084_v37, %v4420_v36 }
  0x3d   : > { %v4677_v45 = vor.u32 %v5148_v39, %v4676_v38  ;;  %v5946_v39 = vld [vmem:[%s5839_s18 + $0xa0] sm:$0xf] }
  0x4b   : > { %1095 = vmatmul.bf16.gmra.mxu0 %v4381_v48  ;;  %1255 = vmatmul.bf16.gmra.mxu2 %v4637_v49  ;;  %v5917_v48 = vld [vmem:[%s9449_s2] ss:$0 sm:$0xff] }
  0x4c   : > { %1424 = vmatmul.bf16.gmra.mxu1 %v4385_v50  ;;  %1584 = vmatmul.bf16.gmra.mxu3 %v4641_v51  ;;  %v4428_v49 = vld [vmem:[%s5839_s18 + $0x80] sm:$0xf]  ;;  %v5086_v50 = vld [vmem:[%s5839_s18 + $0x84] sm:$0xf0] }
  0x4d   : > { %v4684_v51 = vld [vmem:[%s5839_s18 + $0x280] sm:$0xf]  ;;  %v4429_v57 = vor.u32 %v5086_v50, %v4428_v49  ;;  %v5968_v50 = vld [vmem:[%s5839_s18 + $0xa8] sm:$0xf0] }
  0x4e   : > { %v4685_v58 = vor.u32 %v5150_v52, %v4684_v51  ;;  %v5971_v51 = vld [vmem:[%s5839_s18 + $0x2a4] sm:$0xf] }
  0x5b   : > { %1100 = vmatmul.bf16.gmra.mxu0 %v4389_v60  ;;  %1260 = vmatmul.bf16.gmra.mxu2 %v4645_v61  ;;  %v4433_v60 = vor.u32 %v5085_v53, %v4430_v54  ;;  %v4689_v61 = vor.u32 %v5149_v55, %v4686_v56  ;;  %v4445_v56 = vor.u32 %v5949_v40, %v5946_v39 }
  0x5c   : > { %1429 = vmatmul.bf16.gmra.mxu1 %v4393_v62  ;;  %1589 = vmatmul.bf16.gmra.mxu3 %v4649_v63 }
  0x6b   : > { %1105 = vmatmul.bf16.gmra.mxu0 %v4397_v8  ;;  %1265 = vmatmul.bf16.gmra.mxu2 %v4653_v9  ;;  %v4436_v9 = vld [vmem:[%s5839_s18 + $0x90] sm:$0xf] }
  0x6c   : > { %1434 = vmatmul.bf16.gmra.mxu1 %v4401_v10  ;;  %1594 = vmatmul.bf16.gmra.mxu3 %v4657_v11  ;;  %v4437_v25 = vor.u32 %v5088_v12, %v4436_v9 }
  0x7b   : > { %1110 = vmatmul.bf16.gmra.mxu0 %v4405_v20  ;;  %1270 = vmatmul.bf16.gmra.mxu2 %v4661_v21  ;;  %v4694_v20 = vld [vmem:[%s5839_s18 + $0x298] sm:$0xf0] }
  0x7c   : > { %1439 = vmatmul.bf16.gmra.mxu1 %v4409_v22  ;;  %1599 = vmatmul.bf16.gmra.mxu3 %v4665_v23  ;;  %v4697_v29 = vor.u32 %v5151_v19, %v4694_v20 }
  0x8b   : > { %1115 = vmatmul.bf16.gmra.mxu0 %v4413_v32  ;;  %1275 = vmatmul.bf16.gmra.mxu2 %v4669_v33 }
  0x8c   : > { %1444 = vmatmul.bf16.gmra.mxu1 %v4417_v34  ;;  %1604 = vmatmul.bf16.gmra.mxu3 %v4673_v35 }
  0x9b   : > { %1120 = vmatmul.bf16.gmra.mxu0 %v4421_v44  ;;  %1280 = vmatmul.bf16.gmra.mxu2 %v4677_v45  ;;  %v5958_v44 = vld [vmem:[%s5839_s18 + $0x2a4] sm:$0xf0]  ;;  %v5961_v45 = vld [vmem:[%s5839_s18 + $0xa4] sm:$0xf] }
  0x9c   : > { %1449 = vmatmul.bf16.gmra.mxu1 %v4425_v46  ;;  %1609 = vmatmul.bf16.gmra.mxu3 %v4681_v47 }
  0xa8   : > { %v1086_v59 = vpop.f32.mrf.mxu0 }
  0xa9   : > { %v1087_v62 = vadd.f32 %v5917_v48, %v1086_v59  ;;  %v1415_v63 = vpop.f32.mrf.mxu1 }
  0xab   : > { %v1416_v0 = vadd.f32 %v1415_v63, %v1087_v62  ;;  %1125 = vmatmul.bf16.gmra.mxu0 %v4429_v57  ;;  %1285 = vmatmul.bf16.gmra.mxu2 %v4685_v58  ;;  %v5979_v57 = vld [vmem:[%s5839_s18 + $0x2a8] sm:$0xf0] }
  0xac   : > { %1454 = vmatmul.bf16.gmra.mxu1 %v4433_v60  ;;  %1614 = vmatmul.bf16.gmra.mxu3 %v4689_v61  ;;  %v4701_v61 = vor.u32 %v5958_v44, %v5955_v43 }
  0xad   : > { %v4938_v1 = vmul.f32 -1.442695, %v1416_v0 }
  0xae   : > { %v1246_v2 = vpop.f32.mrf.mxu2 }
  0xaf   : > { %5238 = vpow2.f32 %v4938_v1  ;;  %v1247_v3 = vadd.f32 %v5917_v48, %v1246_v2  ;;  %v1575_v4 = vpop.f32.mrf.mxu3  ;;  %v4449_v1 = vor.u32 %v5961_v45, %v5968_v50 }
  0xb0   : > { %v1088_v5 = vpop.f32.mrf.mxu0 }
  0xb1   : > { %v1576_v6 = vadd.f32 %v1575_v4, %v1247_v3  ;;  %v1089_v7 = vadd.f32 %v5917_v48, %v1088_v5  ;;  %v1417_v8 = vpop.f32.mrf.mxu1  ;;  %v4705_v4 = vor.u32 %v5971_v51, %v5979_v57 }
  0xb3   : > { %v5002_v10 = vmul.f32 -1.442695, %v1576_v6  ;;  %v1418_v11 = vadd.f32 %v1417_v8, %v1089_v7 }
  0xb5   : > { %v5239_v17 = vpop.eup %5238  ;;  %5240 = vpow2.f32 %v5002_v10  ;;  %v4939_v18 = vmul.f32 -1.442695, %v1418_v11 }
  0xb6   : > { %v5938_v21 = vadd.f32 1.0, %v5239_v17  ;;  %v1248_v22 = vpop.f32.mrf.mxu2 }
  0xb7   : > { %5242 = vpow2.f32 %v4939_v18  ;;  %v1249_v23 = vadd.f32 %v5917_v48, %v1248_v22  ;;  %v1577_v24 = vpop.f32.mrf.mxu3 }
  0xb8   : > { %5244 = vrcp.f32 %v5938_v21  ;;  %v1091_v27 = vpop.f32.mrf.mxu0  ;;  %v2256_v52 = vand.u32 2147483647, %v5938_v21  ;;  %v2258_v53 = vand.u32 2147483648, %v5938_v21  ;;  %vm2252_vm1 = vweird.f32 %v5938_v21 }
  0xb9   : > { %v1578_v30 = vadd.f32 %v1577_v24, %v1249_v23  ;;  %v1092_v31 = vadd.f32 %v5917_v48, %v1091_v27  ;;  %v1420_v32 = vpop.f32.mrf.mxu1  ;;  %v6035_v23 = vld [vmem:[%s5839_s18 + $0x2b0] sm:$0xf]  ;;  %v6038_v24 = vld [vmem:[%s5839_s18 + $0x2b4] sm:$0xf0] }
  0xba   : > { %vm5996_vm3 = vcmp.eq.f32.partialorder %v2256_v52, 8.507059e+37  ;;  %v2259_v7 = vor.u32 1.1754944e-38, %v2258_v53  ;;  %v4709_v43 = vor.u32 %v6038_v24, %v6035_v23  ;;  %v6160_v24 = vld [vmem:[%s5839_s18 + $0xc0] sm:$0xf] }
  0xbb   : > { %v5241_v33 = vpop.eup %5240  ;;  %v5003_v34 = vmul.f32 -1.442695, %v1578_v30  ;;  %v1421_v35 = vadd.f32 %v1420_v32, %v1092_v31  ;;  %1130 = vmatmul.bf16.gmra.mxu0 %v4437_v25  ;;  %1290 = vmatmul.bf16.gmra.mxu2 %v4693_v26  ;;  %v6049_v30 = vld [vmem:[%s5839_s18 + $0xb8] sm:$0xf0] }
  0xbc   : > { %v5943_v36 = vadd.f32 1.0, %v5241_v33  ;;  %1459 = vmatmul.bf16.gmra.mxu1 %v4441_v28  ;;  %1619 = vmatmul.bf16.gmra.mxu3 %v4697_v29  ;;  %v6046_v29 = vld [vmem:[%s5839_s18 + $0xb4] sm:$0xf] }
  0xbd   : > { %v5243_v37 = vpop.eup %5242  ;;  %5246 = vpow2.f32 %v5003_v34  ;;  %v4940_v38 = vmul.f32 -1.442695, %v1421_v35  ;;  %v4453_v34 = vor.u32 %v6015_v16, %v6012_v15  ;;  %v4457_v44 = vor.u32 %v6046_v29, %v6049_v30 }
  0xbe   : > { %v5951_v41 = vpop.eup %5244  ;;  %5248 = vrcp.f32 %v5943_v36  ;;  %v1251_v42 = vpop.f32.mrf.mxu2  ;;  %v5965_v47 = vadd.f32 1.0, %v5243_v37  ;;  %v3216_v59 = vand.u32 2147483647, %v5943_v36  ;;  %v3218_v62 = vand.u32 2147483648, %v5943_v36 }
  0xbf   : > { %v2248_v46 = vmul.f32 %v5951_v41, %v5938_v21  ;;  %5250 = vpow2.f32 %v4940_v38  ;;  %v1580_v49 = vpop.f32.mrf.mxu3  ;;  %v1252_v54 = vadd.f32 %v5917_v48, %v1251_v42  ;;  %vm2253_vm2 = vweird.f32 %v5951_v41 }
  0xc0   : > { %v1093_v55 = vpop.f32.mrf.mxu0  ;;  %5252 = vrcp.f32 %v5965_v47  ;;  %vm3212_vm4 = vweird.f32 %v5943_v36  ;;  %vm6006_vm5 = vcmp.eq.f32.partialorder %v3216_v59, 8.507059e+37  ;;  %v2271_v14 = vand.u32 2147483647, %v5965_v47  ;;  %vm6028_vm6 = vmor %vm2252_vm1, %vm2253_vm2 }
  0xc1   : > { %v2249_v58 = vsub.f32 1.0, %v2248_v46  ;;  %v1422_v60 = vpop.f32.mrf.mxu1  ;;  %v1581_v63 = vadd.f32 %v1580_v49, %v1252_v54  ;;  %v1094_v0 = vadd.f32 %v5917_v48, %v1093_v55  ;;  %v3219_v18 = vor.u32 1.1754944e-38, %v3218_v62 }
  0xc2   : > { %v2273_v19 = vand.u32 2147483648, %v5965_v47  ;;  %vm2267_vm7 = vweird.f32 %v5965_v47  ;;  %vm6061_vm9 = vcmp.eq.f32.partialorder %v2271_v14, 8.507059e+37 }
  0xc3   : > { %v5247_v2 = vpop.eup %5246  ;;  %v2250_v3 = vmul.f32 %v5951_v41, %v2249_v58  ;;  %v5004_v9 = vmul.f32 -1.442695, %v1581_v63  ;;  %v1423_v20 = vadd.f32 %v1422_v60, %v1094_v0 }
  0xc4   : > { %v5994_v5 = vpop.eup %5248  ;;  %v6000_v8 = vadd.f32 1.0, %v5247_v2  ;;  %v2274_v46 = vor.u32 1.1754944e-38, %v2273_v19 }
  0xc5   : > { %v5251_v10 = vpop.eup %5250  ;;  %v2251_v11 = vadd.f32 %v5951_v41, %v2250_v3  ;;  %v3208_v12 = vmul.f32 %v5994_v5, %v5943_v36  ;;  %vm3213_vm8 = vweird.f32 %v5994_v5  ;;  %v4941_v42 = vmul.f32 -1.442695, %v1423_v20 }
  0xc6   : > { %5254 = vrcp.f32 %v6000_v8  ;;  %v1253_v22 = vpop.f32.mrf.mxu2  ;;  %v5253_v25 = vpop.eup %5252  ;;  %v6043_v27 = vadd.f32 1.0, %v5251_v10  ;;  %vm3214_vm10 = vmor %vm3212_vm4, %vm3213_vm8  ;;  %v3233_v53 = vand.u32 2147483648, %v6000_v8  ;;  %vm3227_vm12 = vweird.f32 %v6000_v8 }
  0xc7   : > { %v2255_v21 = vsel %vm6028_vm6, %v5951_v41, %v2251_v11  ;;  %v3209_v26 = vsub.f32 1.0, %v3208_v12  ;;  %5256 = vpow2.f32 %v5004_v9  ;;  %v1582_v28 = vpop.f32.mrf.mxu3  ;;  %v2263_v32 = vmul.f32 %v5253_v25, %v5965_v47 }
  0xc8   : > { %v2260_v31 = vsel %vm5996_vm3, %v2259_v7, %v2255_v21  ;;  %v1096_v33 = vpop.f32.mrf.mxu0  ;;  %5258 = vrcp.f32 %v6043_v27  ;;  %v1254_v49 = vadd.f32 %v5917_v48, %v1253_v22  ;;  %vm2268_vm11 = vweird.f32 %v5253_v25  ;;  %v5155_v21 = vld [vmem:[%s5839_s18 + $0x2b4] sm:$0xf] }
  0xc9   : > { %4168 = vst.msk [vmem:[%s6022_s30] sm:$0xff] %vm4167_vm0, %v2260_v31  ;;  %v3210_v35 = vmul.f32 %v5994_v5, %v3209_v26  ;;  %v1425_v38 = vpop.f32.mrf.mxu1  ;;  %v2264_v41 = vsub.f32 1.0, %v2263_v32  ;;  %v1097_v50 = vadd.f32 %v5917_v48, %v1096_v33  ;;  %5260 = vpow2.f32 %v4941_v42  ;;  %vm2269_vm13 = vmor %vm2267_vm7, %vm2268_vm11  ;;  %v4710_v26 = vld [vmem:[%s5839_s18 + $0x2b8] sm:$0xf0] }
  0xca   : > { %v1583_v40 = vadd.f32 %v1582_v28, %v1254_v49  ;;  %v3231_v62 = vand.u32 2147483647, %v6000_v8  ;;  %v3234_v3 = vor.u32 1.1754944e-38, %v3233_v53  ;;  %v2286_v7 = vand.u32 2147483647, %v6043_v27 }
  0xcb   : > { %v3211_v45 = vadd.f32 %v5994_v5, %v3210_v35  ;;  %1135 = vmatmul.bf16.gmra.mxu0 %v4445_v56  ;;  %1295 = vmatmul.bf16.gmra.mxu2 %v4701_v61  ;;  %v2265_v52 = vmul.f32 %v5253_v25, %v2264_v41  ;;  %v1426_v58 = vadd.f32 %v1425_v38, %v1097_v50  ;;  %vm2282_vm15 = vweird.f32 %v6043_v27 }
  0xcc   : > { %v5255_v51 = vpop.eup %5254  ;;  %1464 = vmatmul.bf16.gmra.mxu1 %v4449_v1  ;;  %1624 = vmatmul.bf16.gmra.mxu3 %v4705_v4  ;;  %v5005_v63 = vmul.f32 -1.442695, %v1583_v40  ;;  %v2288_v14 = vand.u32 2147483648, %v6043_v27  ;;  %vm3232_vm3 = vcmp.eq.f32.partialorder %v3231_v62, 8.507059e+37  ;;  %vm6109_vm4 = vcmp.eq.f32.partialorder %v2286_v7, 8.507059e+37 }
  0xcd   : > { %v5257_v54 = vpop.eup %5256  ;;  %v3215_v55 = vsel %vm3214_vm10, %v5994_v5, %v3211_v45  ;;  %v3223_v39 = vmul.f32 %v5255_v51, %v6000_v8  ;;  %v2266_v56 = vadd.f32 %v5253_v25, %v2265_v52  ;;  %vm3228_vm14 = vweird.f32 %v5255_v51 }
  0xce   : > { %v3220_v36 = vsel %vm6006_vm5, %v3219_v18, %v3215_v55  ;;  %v6086_v57 = vadd.f32 1.0, %v5257_v54  ;;  %v1256_v59 = vpop.f32.mrf.mxu2  ;;  %v5259_v60 = vpop.eup %5258  ;;  %v4942_v12 = vmul.f32 -1.442695, %v1426_v58  ;;  %vm3229_vm1 = vmor %vm3227_vm12, %vm3228_vm14  ;;  %v2289_v37 = vor.u32 1.1754944e-38, %v2288_v14 }
  0xcf   : > { %4232 = vst.msk [vmem:[%s6022_s30 + $0x200] sm:$0xff] %vm4167_vm0, %v3220_v36  ;;  %v3224_v61 = vsub.f32 1.0, %v3223_v39  ;;  %v1257_v0 = vadd.f32 %v5917_v48, %v1256_v59  ;;  %v1585_v1 = vpop.f32.mrf.mxu3  ;;  %v2270_v2 = vsel %vm2269_vm13, %v5253_v25, %v2266_v56  ;;  %v2278_v4 = vmul.f32 %v5259_v60, %v6043_v27  ;;  %v5261_v10 = vpop.eup %5260 }
  0xd0   : > { %5262 = vrcp.f32 %v6086_v57  ;;  %v1098_v5 = vpop.f32.mrf.mxu0  ;;  %v2275_v6 = vsel %vm6061_vm9, %v2274_v46, %v2270_v2  ;;  %v6104_v17 = vadd.f32 1.0, %v5261_v10  ;;  %vm2283_vm2 = vweird.f32 %v5259_v60 }
  0xd1   : > { %v3225_v47 = vmul.f32 %v5255_v51, %v3224_v61  ;;  %v1427_v9 = vpop.f32.mrf.mxu1  ;;  %4169 = vst.msk [vmem:[%s6022_s30 + $0x8] sm:$0xff] %vm4167_vm0, %v2275_v6  ;;  %v2279_v11 = vsub.f32 1.0, %v2278_v4  ;;  %5264 = vpow2.f32 %v5005_v63  ;;  %v1586_v18 = vadd.f32 %v1585_v1, %v1257_v0  ;;  %vm2284_vm5 = vmor %vm2282_vm15, %vm2283_vm2  ;;  %v6173_v1 = vld [vmem:[%s5839_s18 + $0xc4] sm:$0xf0] }
  0xd2   : > { %5266 = vpow2.f32 %v4942_v12  ;;  %v1099_v20 = vadd.f32 %v5917_v48, %v1098_v5  ;;  %v3246_v32 = vand.u32 2147483647, %v6086_v57  ;;  %v3248_v41 = vand.u32 2147483648, %v6086_v57  ;;  %v6182_v5 = vld [vmem:[%s5839_s18 + $0x2c0] sm:$0xf] }
  0xd3   : > { %v3226_v13 = vadd.f32 %v5255_v51, %v3225_v47  ;;  %v2280_v19 = vmul.f32 %v5259_v60, %v2279_v11  ;;  %5268 = vrcp.f32 %v6104_v17  ;;  %v5006_v33 = vmul.f32 -1.442695, %v1586_v18  ;;  %v6185_v6 = vld [vmem:[%s5839_s18 + $0x2c4] sm:$0xf0] }
  0xd4   : > { %v1428_v42 = vadd.f32 %v1427_v9, %v1099_v20  ;;  %v4713_v52 = vor.u32 %v5155_v21, %v4710_v26  ;;  %vm3242_vm6 = vweird.f32 %v6086_v57  ;;  %vm6135_vm7 = vcmp.eq.f32.partialorder %v3246_v32, 8.507059e+37 }
  0xd5   : > { %v3230_v22 = vsel %vm3229_vm1, %v5255_v51, %v3226_v13  ;;  %v2281_v31 = vadd.f32 %v5259_v60, %v2280_v19  ;;  %5270 = vpow2.f32 %v5006_v33  ;;  %v2301_v56 = vand.u32 2147483647, %v6104_v17 }
  0xd6   : > { %v6116_v28 = vpop.eup %5262  ;;  %v3235_v8 = vsel %vm3232_vm3, %v3234_v3, %v3230_v22  ;;  %v1258_v35 = vpop.f32.mrf.mxu2  ;;  %v4943_v55 = vmul.f32 -1.442695, %v1428_v42  ;;  %v3249_v61 = vor.u32 1.1754944e-38, %v3248_v41  ;;  %vm2297_vm9 = vweird.f32 %v6104_v17 }
  0xd7   : > { %4233 = vst.msk [vmem:[%s6022_s30 + $0x208] sm:$0xff] %vm4167_vm0, %v3235_v8  ;;  %v3238_v38 = vmul.f32 %v6116_v28, %v6086_v57  ;;  %v1587_v45 = vpop.f32.mrf.mxu3  ;;  %v5265_v46 = vpop.eup %5264  ;;  %v2285_v49 = vsel %vm2284_vm5, %v5259_v60, %v2281_v31  ;;  %v1259_v50 = vadd.f32 %v5917_v48, %v1258_v35  ;;  %vm3243_vm8 = vweird.f32 %v6116_v28 }
  0xd8   : > { %v1101_v51 = vpop.f32.mrf.mxu0  ;;  %v2290_v27 = vsel %vm6109_vm4, %v2289_v37, %v2285_v49  ;;  %v6130_v54 = vadd.f32 1.0, %v5265_v46  ;;  %v5267_v40 = vpop.eup %5266  ;;  %v2303_v16 = vand.u32 2147483648, %v6104_v17  ;;  %vm3244_vm10 = vmor %vm3242_vm6, %vm3243_vm8  ;;  %vm6166_vm11 = vcmp.eq.f32.partialorder %v2301_v56, 8.507059e+37 }
  0xd9   : > { %v3239_v53 = vsub.f32 1.0, %v3238_v38  ;;  %v1430_v39 = vpop.f32.mrf.mxu1  ;;  %4170 = vst.msk [vmem:[%s6022_s30 + $0x10] sm:$0xff] %vm4167_vm0, %v2290_v27  ;;  %v1588_v58 = vadd.f32 %v1587_v45, %v1259_v50  ;;  %v5269_v59 = vpop.eup %5268  ;;  %v6151_v63 = vadd.f32 1.0, %v5267_v40  ;;  %v1102_v0 = vadd.f32 %v5917_v48, %v1101_v51 }
  0xda   : > { %5272 = vrcp.f32 %v6130_v54  ;;  %v2293_v62 = vmul.f32 %v5269_v59, %v6104_v17  ;;  %v3261_v30 = vand.u32 2147483647, %v6130_v54  ;;  %vm2298_vm12 = vweird.f32 %v5269_v59 }
  0xdb   : > { %v3240_v60 = vmul.f32 %v6116_v28, %v3239_v53  ;;  %1140 = vmatmul.bf16.gmra.mxu0 %v4453_v34  ;;  %1300 = vmatmul.bf16.gmra.mxu2 %v4709_v43  ;;  %5274 = vpow2.f32 %v4943_v55  ;;  %v5007_v23 = vmul.f32 -1.442695, %v1588_v58  ;;  %v5271_v34 = vpop.eup %5270  ;;  %v3263_v3 = vand.u32 2147483648, %v6130_v54  ;;  %vm2299_vm14 = vmor %vm2297_vm9, %vm2298_vm12 }
  0xdc   : > { %1469 = vmatmul.bf16.gmra.mxu1 %v4457_v44  ;;  %1629 = vmatmul.bf16.gmra.mxu3 %v4713_v52  ;;  %v2294_v43 = vsub.f32 1.0, %v2293_v62  ;;  %5276 = vrcp.f32 %v6151_v63  ;;  %v6177_v57 = vadd.f32 1.0, %v5271_v34  ;;  %v1431_v9 = vadd.f32 %v1430_v39, %v1102_v0 }
  0xdd   : > { %v3241_v15 = vadd.f32 %v6116_v28, %v3240_v60  ;;  %5278 = vpow2.f32 %v5007_v23  ;;  %v2304_v12 = vor.u32 1.1754944e-38, %v2303_v16  ;;  %v2316_v13 = vand.u32 2147483647, %v6151_v63 }
  0xde   : > { %v1261_v44 = vpop.f32.mrf.mxu2  ;;  %v2295_v7 = vmul.f32 %v5269_v59, %v2294_v43  ;;  %5280 = vrcp.f32 %v6177_v57  ;;  %v4461_v18 = vor.u32 %v6173_v1, %v6160_v24  ;;  %vm3257_vm13 = vweird.f32 %v6130_v54 }
  0xdf   : > { %v3245_v2 = vsel %vm3244_vm10, %v6116_v28, %v3241_v15  ;;  %v6179_v4 = vpop.f32.mrf.mxu3  ;;  %v4717_v22 = vor.u32 %v6185_v6, %v6182_v5  ;;  %vm6202_vm15 = vcmp.eq.f32.partialorder %v3261_v30, 8.507059e+37  ;;  %v3264_v26 = vor.u32 1.1754944e-38, %v3263_v3 }
  0xe0   : > { %v3250_v47 = vsel %vm6135_vm7, %v3249_v61, %v3245_v2  ;;  %v1103_v10 = vpop.f32.mrf.mxu0  ;;  %v5273_v11 = vpop.eup %5272  ;;  %v2296_v19 = vadd.f32 %v5269_v59, %v2295_v7  ;;  %vm2312_vm1 = vweird.f32 %v6151_v63  ;;  %v4944_v28 = vmul.f32 -1.442695, %v1431_v9 }
  0xe1   : > { %4234 = vst.msk [vmem:[%s6022_s30 + $0x210] sm:$0xff] %vm4167_vm0, %v3250_v47  ;;  %v1432_v14 = vpop.f32.mrf.mxu1  ;;  %v3253_v20 = vmul.f32 %v5273_v11, %v6130_v54  ;;  %v5275_v25 = vpop.eup %5274  ;;  %v2318_v33 = vand.u32 2147483648, %v6151_v63  ;;  %vm3258_vm2 = vweird.f32 %v5273_v11  ;;  %vm6213_vm3 = vcmp.eq.f32.partialorder %v2316_v13, 8.507059e+37 }
  0xe2   : > { %v5277_v8 = vpop.eup %5276  ;;  %v2300_v31 = vsel %vm2299_vm14, %v5269_v59, %v2296_v19  ;;  %v6208_v35 = vadd.f32 1.0, %v5275_v25  ;;  %v3276_v41 = vand.u32 2147483647, %v6177_v57  ;;  %v3278_v46 = vand.u32 2147483648, %v6177_v57  ;;  %vm3259_vm5 = vmor %vm3257_vm13, %vm3258_vm2 }
  0xe3   : > { %v3254_v32 = vsub.f32 1.0, %v3253_v20  ;;  %v2305_v17 = vsel %vm6166_vm11, %v2304_v12, %v2300_v31  ;;  %v2308_v37 = vmul.f32 %v5277_v8, %v6151_v63  ;;  %v5279_v42 = vpop.eup %5278  ;;  %v1262_v49 = vadd.f32 %v5917_v48, %v1261_v44  ;;  %v4718_v31 = vld [vmem:[%s5839_s18 + $0x2c8] sm:$0xf0] }
  0xe4   : > { %4171 = vst.msk [vmem:[%s6022_s30 + $0x18] sm:$0xff] %vm4167_vm0, %v2305_v17  ;;  %5282 = vrcp.f32 %v6208_v35  ;;  %v6223_v51 = vpop.eup %5280  ;;  %v6225_v27 = vadd.f32 1.0, %v5279_v42  ;;  %v1104_v53 = vadd.f32 %v5917_v48, %v1103_v10  ;;  %v2319_v40 = vor.u32 1.1754944e-38, %v2318_v33 }
  0xe5   : > { %v3255_v45 = vmul.f32 %v5273_v11, %v3254_v32  ;;  %v2309_v52 = vsub.f32 1.0, %v2308_v37  ;;  %5284 = vpow2.f32 %v4944_v28  ;;  %v3268_v36 = vmul.f32 %v6223_v51, %v6177_v57 }
  0xe6   : > { %v1263_v50 = vpop.f32.mrf.mxu2  ;;  %vm3272_vm4 = vweird.f32 %v6177_v57  ;;  %vm2313_vm6 = vweird.f32 %v5277_v8  ;;  %v2331_v59 = vand.u32 2147483647, %v6208_v35  ;;  %5286 = vrcp.f32 %v6225_v27  ;;  %v4462_v57 = vld [vmem:[%s5839_s18 + $0xc8] sm:$0xf0] }
  0xe7   : > { %v1592_v55 = vpop.f32.mrf.mxu3  ;;  %v3256_v39 = vadd.f32 %v5273_v11, %v3255_v45  ;;  %v2310_v58 = vmul.f32 %v5277_v8, %v2309_v52  ;;  %v3269_v62 = vsub.f32 1.0, %v3268_v36  ;;  %vm6236_vm7 = vcmp.eq.f32.partialorder %v3276_v41, 8.507059e+37  ;;  %vm2314_vm9 = vmor %vm2312_vm1, %vm2313_vm6 }
  0xe8   : > { %v1106_v56 = vpop.f32.mrf.mxu0  ;;  %v3279_v15 = vor.u32 1.1754944e-38, %v3278_v46  ;;  %vm2327_vm8 = vweird.f32 %v6208_v35  ;;  %v1591_v23 = vadd.f32 %v6179_v4, %v1262_v49  ;;  %v1433_v24 = vadd.f32 %v1432_v14, %v1104_v53  ;;  %v4468_v49 = vld [vmem:[%s5839_s18 + $0xd0] sm:$0xf] }
  0xe9   : > { %v1435_v60 = vpop.f32.mrf.mxu1  ;;  %v3260_v61 = vsel %vm3259_vm5, %v5273_v11, %v3256_v39  ;;  %v2311_v54 = vadd.f32 %v5277_v8, %v2310_v58  ;;  %v3270_v43 = vmul.f32 %v6223_v51, %v3269_v62  ;;  %vm3273_vm10 = vweird.f32 %v6223_v51 }
  0xea   : > { %v3265_v16 = vsel %vm6202_vm15, %v3264_v26, %v3260_v61  ;;  %v6244_v34 = vpop.eup %5282  ;;  %v2333_v29 = vand.u32 2147483648, %v6208_v35  ;;  %v1264_v30 = vadd.f32 %v5917_v48, %v1263_v50  ;;  %vm6257_vm11 = vcmp.eq.f32.partialorder %v2331_v59, 8.507059e+37  ;;  %vm3274_vm12 = vmor %vm3272_vm4, %vm3273_vm10  ;;  %v5096_v50 = vld [vmem:[%s5839_s18 + $0xd4] sm:$0xf0] }
  0xeb   : > { %1145 = vmatmul.bf16.gmra.mxu0 %v4461_v18  ;;  %4235 = vst.msk [vmem:[%s6022_s30 + $0x218] sm:$0xff] %vm4167_vm0, %v3265_v16  ;;  %1305 = vmatmul.bf16.gmra.mxu2 %v4717_v22  ;;  %v5285_v44 = vpop.eup %5284  ;;  %v2315_v1 = vsel %vm2314_vm9, %v5277_v8, %v2311_v54  ;;  %v2323_v2 = vmul.f32 %v6244_v34, %v6208_v35  ;;  %v3291_v63 = vand.u32 2147483647, %v6225_v27  ;;  %v5008_v4 = vmul.f32 -1.442695, %v1591_v23 }
  0xec   : > { %v2320_v5 = vsel %vm6213_vm3, %v2319_v40, %v2315_v1  ;;  %v3271_v6 = vadd.f32 %v6223_v51, %v3270_v43  ;;  %v6265_v47 = vadd.f32 1.0, %v5285_v44  ;;  %v4945_v7 = vmul.f32 -1.442695, %v1433_v24  ;;  %v6267_v10 = vpop.eup %5286  ;;  %v5093_v22 = vld [vmem:[%s5839_s18 + $0xc4] sm:$0xf] }
  0xed   : > { %4172 = vst.msk [vmem:[%s6022_s30 + $0x20] sm:$0xff] %vm4167_vm0, %v2320_v5  ;;  %v2324_v11 = vsub.f32 1.0, %v2323_v2  ;;  %5288 = vpow2.f32 %v5008_v4  ;;  %v1593_v12 = vadd.f32 %v1592_v55, %v1264_v30  ;;  %v1107_v13 = vadd.f32 %v5917_v48, %v1106_v56  ;;  %v5157_v8 = vld [vmem:[%s5839_s18 + $0x2c4] sm:$0xf] }
  0xee   : > { %v1266_v9 = vpop.f32.mrf.mxu2  ;;  %v3275_v18 = vsel %vm3274_vm12, %v6223_v51, %v3271_v6  ;;  %v2334_v19 = vor.u32 1.1754944e-38, %v2333_v29  ;;  %v3283_v20 = vmul.f32 %v6267_v10, %v6225_v27  ;;  %5290 = vrcp.f32 %v6265_v47 }
  0xef   : > { %v1595_v14 = vpop.f32.mrf.mxu3  ;;  %v3280_v21 = vsel %vm6236_vm7, %v3279_v15, %v3275_v18  ;;  %v2325_v26 = vmul.f32 %v6244_v34, %v2324_v11  ;;  %vm2328_vm13 = vweird.f32 %v6244_v34  ;;  %v3293_v28 = vand.u32 2147483648, %v6225_v27 }
  0xf0   : > { %v1108_v25 = vpop.f32.mrf.mxu0  ;;  %4236 = vst.msk [vmem:[%s6022_s30 + $0x220] sm:$0xff] %vm4167_vm0, %v3280_v21  ;;  %v3284_v33 = vsub.f32 1.0, %v3283_v20  ;;  %vm3287_vm14 = vweird.f32 %v6225_v27  ;;  %5292 = vpow2.f32 %v4945_v7  ;;  %v5009_v17 = vmul.f32 -1.442695, %v1593_v12  ;;  %vm2329_vm1 = vmor %vm2327_vm8, %vm2328_vm13 }
  0xf1   : > { %v1437_v32 = vpop.f32.mrf.mxu1  ;;  %v2326_v37 = vadd.f32 %v6244_v34, %v2325_v26  ;;  %vm6293_vm15 = vcmp.eq.f32.partialorder %v3291_v63, 8.507059e+37  ;;  %v1436_v41 = vadd.f32 %v1435_v60, %v1107_v13  ;;  %v4465_v42 = vor.u32 %v5093_v22, %v4462_v57 }
  0xf2   : > { %v3285_v45 = vmul.f32 %v6267_v10, %v3284_v33  ;;  %vm3288_vm2 = vweird.f32 %v6267_v10  ;;  %5294 = vpow2.f32 %v5009_v17  ;;  %v4721_v46 = vor.u32 %v5157_v8, %v4718_v31 }
  0xf3   : > { %v5289_v51 = vpop.eup %5288  ;;  %v2330_v52 = vsel %vm2329_vm1, %v6244_v34, %v2326_v37  ;;  %v3294_v53 = vor.u32 1.1754944e-38, %v3293_v28  ;;  %v4946_v55 = vmul.f32 -1.442695, %v1436_v41  ;;  %1474 = vmatmul.bf16.gmra.mxu1 %v4465_v42  ;;  %v1267_v39 = vadd.f32 %v5917_v48, %v1266_v9  ;;  %vm3289_vm3 = vmor %vm3287_vm14, %vm3288_vm2 }
  0xf4   : > { %v5291_v40 = vpop.eup %5290  ;;  %v2335_v35 = vsel %vm6257_vm11, %v2334_v19, %v2330_v52  ;;  %v3286_v36 = vadd.f32 %v6267_v10, %v3285_v45  ;;  %v6308_v56 = vadd.f32 1.0, %v5289_v51  ;;  %1634 = vmatmul.bf16.gmra.mxu3 %v4721_v46  ;;  %v1109_v58 = vadd.f32 %v5917_v48, %v1108_v25 }
  0xf5   : > { %4173 = vst.msk [vmem:[%s6022_s30 + $0x28] sm:$0xff] %vm4167_vm0, %v2335_v35  ;;  %v2338_v60 = vmul.f32 %v5291_v40, %v6265_v47  ;;  %5296 = vpow2.f32 %v4946_v55  ;;  %v1596_v61 = vadd.f32 %v1595_v14, %v1267_v39  ;;  %v4469_v0 = vor.u32 %v5096_v50, %v4468_v49 }
  0xf6   : > { %v1268_v59 = vpop.f32.mrf.mxu2  ;;  %v5293_v15 = vpop.eup %5292  ;;  %v3290_v16 = vsel %vm3289_vm3, %v6267_v10, %v3286_v36  ;;  %vm2342_vm4 = vweird.f32 %v6265_v47  ;;  %v2346_v54 = vand.u32 2147483647, %v6265_v47  ;;  %5298 = vrcp.f32 %v6308_v56 }
  0xf7   : > { %v1597_v62 = vpop.f32.mrf.mxu3  ;;  %v3295_v27 = vsel %vm6293_vm15, %v3294_v53, %v3290_v16  ;;  %v2339_v24 = vsub.f32 1.0, %v2338_v60  ;;  %v2348_v34 = vand.u32 2147483648, %v6265_v47  ;;  %v6325_v43 = vadd.f32 1.0, %v5293_v15 }
  0xf8   : > { %v1111_v23 = vpop.f32.mrf.mxu0  ;;  %v5295_v30 = vpop.eup %5294  ;;  %4237 = vst.msk [vmem:[%s6022_s30 + $0x228] sm:$0xff] %vm4167_vm0, %v3295_v27  ;;  %vm2343_vm5 = vweird.f32 %v5291_v40  ;;  %v5010_v44 = vmul.f32 -1.442695, %v1596_v61  ;;  %v1438_v1 = vadd.f32 %v1437_v32, %v1109_v58  ;;  %v1269_v2 = vadd.f32 %v5917_v48, %v1268_v59 }
  0xf9   : > { %v1440_v29 = vpop.f32.mrf.mxu1  ;;  %v2340_v3 = vmul.f32 %v5291_v40, %v2339_v24  ;;  %v3306_v63 = vand.u32 2147483647, %v6308_v56  ;;  %v3308_v4 = vand.u32 2147483648, %v6308_v56  ;;  %5300 = vrcp.f32 %v6325_v43  ;;  %vm2344_vm7 = vmor %vm2342_vm4, %vm2343_vm5  ;;  %v5160_v24 = vld [vmem:[%s5839_s18 + $0x2d4] sm:$0xf0] }
  0xfa   : > { %vm6333_vm6 = vcmp.eq.f32.partialorder %v2346_v54, 8.507059e+37  ;;  %v6337_v6 = vadd.f32 1.0, %v5295_v30  ;;  %5302 = vpow2.f32 %v5010_v44  ;;  %v4947_v10 = vmul.f32 -1.442695, %v1438_v1 }
  0xfb   : > { %1150 = vmatmul.bf16.gmra.mxu0 %v4469_v0  ;;  %v5297_v7 = vpop.eup %5296  ;;  %v2341_v9 = vadd.f32 %v5291_v40, %v2340_v3  ;;  %v1598_v11 = vadd.f32 %v1597_v62, %v1269_v2  ;;  %v1112_v12 = vadd.f32 %v5917_v48, %v1111_v23  ;;  %v2349_v14 = vor.u32 1.1754944e-38, %v2348_v34  ;;  %v5095_v34 = vld [vmem:[%s5839_s18 + $0xd4] sm:$0xf]  ;;  %v4470_v3 = vld [vmem:[%s5839_s18 + $0xd8] sm:$0xf0] }
  0xfc   : > { %v5299_v13 = vpop.eup %5298  ;;  %vm3302_vm8 = vweird.f32 %v6308_v56  ;;  %v2361_v18 = vand.u32 2147483647, %v6325_v43  ;;  %5304 = vrcp.f32 %v6337_v6  ;;  %vm6349_vm9 = vcmp.eq.f32.partialorder %v3306_v63, 8.507059e+37 }
  0xfd   : > { %v2345_v20 = vsel %vm2344_vm7, %v5291_v40, %v2341_v9  ;;  %v3298_v22 = vmul.f32 %v5299_v13, %v6308_v56  ;;  %v3309_v57 = vor.u32 1.1754944e-38, %v3308_v4  ;;  %v2363_v47 = vand.u32 2147483648, %v6325_v43  ;;  %v4724_v56 = vld [vmem:[%s5839_s18 + $0x2d0] sm:$0xf] }
  0xfe   : > { %v6346_v19 = vpop.f32.mrf.mxu2  ;;  %v2350_v21 = vsel %vm6333_vm6, %v2349_v14, %v2345_v20  ;;  %v3321_v26 = vand.u32 2147483647, %v6337_v6  ;;  %v6359_v28 = vadd.f32 1.0, %v5297_v7  ;;  %5306 = vpow2.f32 %v4947_v10 }
  0xff   : > { %v6354_v25 = vpop.f32.mrf.mxu3  ;;  %v5301_v31 = vpop.eup %5300  ;;  %4174 = vst.msk [vmem:[%s6022_s30 + $0x30] sm:$0xff] %vm4167_vm0, %v2350_v21  ;;  %v3299_v32 = vsub.f32 1.0, %v3298_v22  ;;  %v3323_v33 = vand.u32 2147483648, %v6337_v6  ;;  %v5011_v17 = vmul.f32 -1.442695, %v1598_v11  ;;  %v1441_v37 = vadd.f32 %v1440_v29, %v1112_v12 }
 0x100   : > { %v6361_v8 = vpop.f32.mrf.mxu0  ;;  %v5303_v41 = vpop.eup %5302  ;;  %v2353_v42 = vmul.f32 %v5301_v31, %v6325_v43  ;;  %vm2357_vm10 = vweird.f32 %v6325_v43  ;;  %vm6370_vm11 = vcmp.eq.f32.partialorder %v2361_v18, 8.507059e+37  ;;  %5308 = vrcp.f32 %v6359_v28  ;;  %v4726_v21 = vld [vmem:[%s5839_s18 + $0x2d8] sm:$0xf0] }
 0x101   : > { %v6366_v38 = vpop.f32.mrf.mxu1  ;;  %v3300_v46 = vmul.f32 %v5299_v13, %v3299_v32  ;;  %vm3303_vm12 = vweird.f32 %v5299_v13  ;;  %v2364_v49 = vor.u32 1.1754944e-38, %v2363_v47  ;;  %vm3317_vm13 = vweird.f32 %v6337_v6  ;;  %v5159_v47 = vld [vmem:[%s5839_s18 + $0x2d4] sm:$0xf] }
 0x102   : > { %v6376_v50 = vpop.eup %5304  ;;  %v2354_v51 = vsub.f32 1.0, %v2353_v42  ;;  %v6378_v52 = vadd.f32 1.0, %v5303_v41  ;;  %5310 = vpow2.f32 %v5011_v17  ;;  %v4948_v53 = vmul.f32 -1.442695, %v1441_v37  ;;  %vm3304_vm1 = vmor %vm3302_vm8, %vm3303_vm12 }
 0x103   : > { %v3301_v55 = vadd.f32 %v5299_v13, %v3300_v46  ;;  %vm2358_vm14 = vweird.f32 %v5301_v31  ;;  %v3313_v39 = vmul.f32 %v6376_v50, %v6337_v6  ;;  %vm6382_vm15 = vcmp.eq.f32.partialorder %v3321_v26, 8.507059e+37 }
 0x104   : > { %v3324_v35 = vor.u32 1.1754944e-38, %v3323_v33  ;;  %v5307_v36 = vpop.eup %5306  ;;  %v2355_v58 = vmul.f32 %v5301_v31, %v2354_v51  ;;  %v2376_v59 = vand.u32 2147483647, %v6359_v28  ;;  %v2378_v60 = vand.u32 2147483648, %v6359_v28  ;;  %vm2359_vm4 = vmor %vm2357_vm10, %vm2358_vm14  ;;  %v6477_v51 = vld [vmem:[%s9449_s2] ss:$0 sm:$0xff] }
 0x105   : > { %5312 = vrcp.f32 %v6378_v52  ;;  %v3305_v62 = vsel %vm3304_vm1, %v5299_v13, %v3301_v55  ;;  %v3314_v0 = vsub.f32 1.0, %v3313_v39  ;;  %vm3318_vm2 = vweird.f32 %v6376_v50 }
 0x106   : > { %v6391_v61 = vpop.f32.mrf.mxu2  ;;  %vm2372_vm3 = vweird.f32 %v6359_v28  ;;  %v6398_v16 = vpop.eup %5308  ;;  %v3310_v54 = vsel %vm6349_vm9, %v3309_v57, %v3305_v62  ;;  %v2356_v23 = vadd.f32 %v5301_v31, %v2355_v58  ;;  %v6402_v27 = vadd.f32 1.0, %v5307_v36  ;;  %vm3319_vm7 = vmor %vm3317_vm13, %vm3318_vm2 }
 0x107   : > { %v6396_v15 = vpop.f32.mrf.mxu3  ;;  %5314 = vpow2.f32 %v4948_v53  ;;  %4238 = vst.msk [vmem:[%s6022_s30 + $0x230] sm:$0xff] %vm4167_vm0, %v3310_v54  ;;  %v3315_v30 = vmul.f32 %v6376_v50, %v3314_v0  ;;  %v2368_v44 = vmul.f32 %v6398_v16, %v6359_v28  ;;  %v3336_v1 = vand.u32 2147483647, %v6378_v52 }
 0x108   : > { %v6406_v29 = vpop.f32.mrf.mxu0  ;;  %v3338_v2 = vand.u32 2147483648, %v6378_v52  ;;  %v5311_v4 = vpop.eup %5310  ;;  %v2360_v5 = vsel %vm2359_vm4, %v5301_v31, %v2356_v23  ;;  %vm6421_vm5 = vcmp.eq.f32.partialorder %v2376_v59, 8.507059e+37  ;;  %v2379_v43 = vor.u32 1.1754944e-38, %v2378_v60 }
 0x109   : > { %v6419_v63 = vpop.f32.mrf.mxu1  ;;  %5316 = vrcp.f32 %v6402_v27  ;;  %v2365_v9 = vsel %vm6370_vm11, %v2364_v49, %v2360_v5  ;;  %v3316_v10 = vadd.f32 %v6376_v50, %v3315_v30  ;;  %v2369_v11 = vsub.f32 1.0, %v2368_v44  ;;  %v5098_v30 = vld [vmem:[%s5839_s18 + $0xe4] sm:$0xf0] }
 0x10a   : > { %vm3332_vm6 = vweird.f32 %v6378_v52  ;;  %4175 = vst.msk [vmem:[%s6022_s30 + $0x38] sm:$0xff] %vm4167_vm0, %v2365_v9  ;;  %vm2373_vm8 = vweird.f32 %v6398_v16  ;;  %v6439_v13 = vadd.f32 1.0, %v5311_v4  ;;  %v4725_v14 = vor.u32 %v5160_v24, %v4724_v56 }
 0x10b   : > { %v6430_v12 = vpop.eup %5312  ;;  %v4473_v18 = vor.u32 %v5095_v34, %v4470_v3  ;;  %v3320_v20 = vsel %vm3319_vm7, %v6376_v50, %v3316_v10  ;;  %v2370_v22 = vmul.f32 %v6398_v16, %v2369_v11  ;;  %vm6445_vm9 = vcmp.eq.f32.partialorder %v3336_v1, 8.507059e+37  ;;  %vm2374_vm12 = vmor %vm2372_vm3, %vm2373_vm8  ;;  %v4476_v34 = vld [vmem:[%s5839_s18 + $0xe0] sm:$0xf] }
 0x10c   : > { %v3328_v48 = vmul.f32 %v6430_v12, %v6378_v52  ;;  %v3339_v6 = vor.u32 1.1754944e-38, %v3338_v2  ;;  %v3325_v31 = vsel %vm6382_vm15, %v3324_v35, %v3320_v20  ;;  %v2391_v32 = vand.u32 2147483647, %v6402_v27  ;;  %1310 = vmatmul.bf16.gmra.mxu2 %v4725_v14  ;;  %v5162_v2 = vld [vmem:[%s5839_s18 + $0x2e4] sm:$0xf0] }
 0x10d   : > { %v5315_v26 = vpop.eup %5314  ;;  %v2393_v33 = vand.u32 2147483648, %v6402_v27  ;;  %5318 = vrcp.f32 %v6439_v13  ;;  %1479 = vmatmul.bf16.gmra.mxu1 %v4473_v18  ;;  %4239 = vst.msk [vmem:[%s6022_s30 + $0x238] sm:$0xff] %vm4167_vm0, %v3325_v31  ;;  %v2371_v37 = vadd.f32 %v6398_v16, %v2370_v22  ;;  %vm3333_vm10 = vweird.f32 %v6430_v12  ;;  %v4478_v14 = vld [vmem:[%s5839_s18 + $0xe8] sm:$0xf0] }
 0x10e   : > { %v6456_v17 = vpop.f32.mrf.mxu2  ;;  %v3329_v41 = vsub.f32 1.0, %v3328_v48  ;;  %vm2387_vm11 = vweird.f32 %v6402_v27  ;;  %v3353_v46 = vand.u32 2147483648, %v6439_v13  ;;  %v6472_v49 = vadd.f32 1.0, %v5315_v26  ;;  %vm6508_vm1 = vmor %vm3332_vm6, %vm3333_vm10 }
 0x10f   : > { %v6463_v42 = vpop.f32.mrf.mxu3  ;;  %v6465_v45 = vpop.eup %5316  ;;  %v4729_v50 = vor.u32 %v5159_v47, %v4726_v21  ;;  %v1272_v53 = vadd.f32 %v6477_v51, %v6346_v19  ;;  %v2375_v39 = vsel %vm2374_vm12, %v6398_v16, %v2371_v37  ;;  %v3351_v35 = vand.u32 2147483647, %v6439_v13 }
 0x110   : > { %v6481_v55 = vpop.f32.mrf.mxu0  ;;  %v3330_v28 = vmul.f32 %v6430_v12, %v3329_v41  ;;  %v2383_v40 = vmul.f32 %v6465_v45, %v6402_v27  ;;  %v2380_v58 = vsel %vm6421_vm5, %v2379_v43, %v2375_v39  ;;  %vm6492_vm13 = vcmp.eq.f32.partialorder %v2391_v32, 8.507059e+37 }
 0x111   : > { %v6488_v36 = vpop.f32.mrf.mxu1  ;;  %v2394_v19 = vor.u32 1.1754944e-38, %v2393_v33  ;;  %5320 = vrcp.f32 %v6472_v49  ;;  %1639 = vmatmul.bf16.gmra.mxu3 %v4729_v50  ;;  %4176 = vst.msk [vmem:[%s6022_s30 + $0x40] sm:$0xff] %vm4167_vm0, %v2380_v58  ;;  %vm2388_vm14 = vweird.f32 %v6465_v45  ;;  %vm3347_vm15 = vweird.f32 %v6439_v13 }
 0x112   : > { %v3331_v60 = vadd.f32 %v6430_v12, %v3330_v28  ;;  %v2384_v62 = vsub.f32 1.0, %v2383_v40  ;;  %v3354_v16 = vor.u32 1.1754944e-38, %v3353_v46  ;;  %v1601_v54 = vadd.f32 %v6354_v25, %v1272_v53  ;;  %vm2389_vm5 = vmor %vm2387_vm11, %vm2388_vm14  ;;  %v4740_v25 = vld [vmem:[%s5839_s18 + $0x2f0] sm:$0xf] }
 0x113   : > { %v6502_v0 = vpop.eup %5318  ;;  %v1114_v23 = vadd.f32 %v6477_v51, %v6361_v8  ;;  %v1274_v24 = vadd.f32 %v6477_v51, %v6391_v61  ;;  %vm6525_vm2 = vcmp.eq.f32.partialorder %v3351_v35, 8.507059e+37  ;;  %vm2402_vm3 = vweird.f32 %v6472_v49  ;;  %v4732_v61 = vld [vmem:[%s5839_s18 + $0x2e0] sm:$0xf] }
 0x114   : > { %v3335_v52 = vsel %vm6508_vm1, %v6430_v12, %v3331_v60  ;;  %v2385_v44 = vmul.f32 %v6465_v45, %v2384_v62  ;;  %v3343_v1 = vmul.f32 %v6502_v0, %v6439_v13  ;;  %v2406_v8 = vand.u32 2147483647, %v6472_v49  ;;  %v5097_v12 = vld [vmem:[%s5839_s18 + $0xe4] sm:$0xf] }
 0x115   : > { %v3340_v3 = vsel %vm6445_vm9, %v3339_v6, %v3335_v52  ;;  %vm3348_vm4 = vweird.f32 %v6502_v0  ;;  %v2408_v4 = vand.u32 2147483648, %v6472_v49  ;;  %v5012_v5 = vmul.f32 -1.442695, %v1601_v54  ;;  %v5161_v6 = vld [vmem:[%s5839_s18 + $0x2e4] sm:$0xf] }
 0x116   : > { %v1278_v7 = vpop.f32.mrf.mxu2  ;;  %4240 = vst.msk [vmem:[%s6022_s30 + $0x240] sm:$0xff] %vm4167_vm0, %v3340_v3  ;;  %v2386_v43 = vadd.f32 %v6465_v45, %v2385_v44  ;;  %v3344_v9 = vsub.f32 1.0, %v3343_v1  ;;  %v1443_v10 = vadd.f32 %v6366_v38, %v1114_v23  ;;  %v1603_v11 = vadd.f32 %v6396_v15, %v1274_v24  ;;  %v4734_v38 = vld [vmem:[%s5839_s18 + $0x2e8] sm:$0xf0]  ;;  %vm3349_vm7 = vmor %vm3347_vm15, %vm3348_vm4  ;;  %v4484_v52 = vld [vmem:[%s5839_s18 + $0xf0] sm:$0xf] }
 0x117   : > { %v1607_v18 = vpop.f32.mrf.mxu3  ;;  %v5321_v20 = vpop.eup %5320  ;;  %5322 = vpow2.f32 %v5012_v5  ;;  %v1117_v22 = vadd.f32 %v6477_v51, %v6406_v29  ;;  %v4477_v48 = vor.u32 %v5098_v30, %v4476_v34  ;;  %v4733_v57 = vor.u32 %v5162_v2, %v4732_v61  ;;  %v5100_v44 = vld [vmem:[%s5839_s18 + $0xf4] sm:$0xf0] }
 0x118   : > { %v1121_v47 = vpop.f32.mrf.mxu0  ;;  %v2390_v15 = vsel %vm2389_vm5, %v6465_v45, %v2386_v43  ;;  %v3345_v21 = vmul.f32 %v6502_v0, %v3344_v9  ;;  %v2398_v26 = vmul.f32 %v5321_v20, %v6472_v49  ;;  %vm2403_vm6 = vweird.f32 %v5321_v20  ;;  %v5099_v9 = vld [vmem:[%s5839_s18 + $0xf4] sm:$0xf] }
 0x119   : > { %v1450_v31 = vpop.f32.mrf.mxu1  ;;  %v2395_v27 = vsel %vm6492_vm13, %v2394_v19, %v2390_v15  ;;  %v4949_v32 = vmul.f32 -1.442695, %v1443_v10  ;;  %v5013_v33 = vmul.f32 -1.442695, %v1603_v11  ;;  %v1446_v29 = vadd.f32 %v6419_v63, %v1117_v22  ;;  %1155 = vmatmul.bf16.gmra.mxu0 %v4477_v48  ;;  %vm2404_vm8 = vmor %vm2402_vm3, %vm2403_vm6  ;;  %v4486_v10 = vld [vmem:[%s5839_s18 + $0xf8] sm:$0xf0] }
 0x11a   : > { %4177 = vst.msk [vmem:[%s6022_s30 + $0x48] sm:$0xff] %vm4167_vm0, %v2395_v27  ;;  %v3346_v37 = vadd.f32 %v6502_v0, %v3345_v21  ;;  %v2399_v41 = vsub.f32 1.0, %v2398_v26  ;;  %v4481_v45 = vor.u32 %v5097_v12, %v4478_v14  ;;  %v4737_v46 = vor.u32 %v5161_v6, %v4734_v38 }
 0x11b   : > { %5324 = vpow2.f32 %v4949_v32  ;;  %v4950_v50 = vmul.f32 -1.442695, %v1446_v29  ;;  %v1277_v53 = vadd.f32 %v6477_v51, %v6456_v17  ;;  %v1119_v63 = vadd.f32 %v6477_v51, %v6481_v55 }
 0x11c   : > { %v3350_v39 = vsel %vm3349_vm7, %v6502_v0, %v3346_v37  ;;  %v2400_v28 = vmul.f32 %v5321_v20, %v2399_v41  ;;  %5326 = vpow2.f32 %v5013_v33  ;;  %v1279_v40 = vadd.f32 %v6477_v51, %v1278_v7  ;;  %1315 = vmatmul.bf16.gmra.mxu2 %v4733_v57 }
 0x11d   : > { %v5323_v35 = vpop.eup %5322  ;;  %v3355_v13 = vsel %vm6525_vm2, %v3354_v16, %v3350_v39  ;;  %5328 = vpow2.f32 %v4950_v50  ;;  %1484 = vmatmul.bf16.gmra.mxu1 %v4481_v45  ;;  %v1606_v58 = vadd.f32 %v6463_v42, %v1277_v53  ;;  %v1448_v17 = vadd.f32 %v6488_v36, %v1119_v63  ;;  %v5163_v53 = vld [vmem:[%s5839_s18 + $0x2f4] sm:$0xf]  ;;  %v4742_v63 = vld [vmem:[%s5839_s18 + $0x2f8] sm:$0xf0] }
 0x11e   : > { %v6575_v59 = vpop.f32.mrf.mxu2  ;;  %4241 = vst.msk [vmem:[%s6022_s30 + $0x248] sm:$0xff] %vm4167_vm0, %v3355_v13  ;;  %v2401_v55 = vadd.f32 %v5321_v20, %v2400_v28  ;;  %v6579_v19 = vadd.f32 1.0, %v5323_v35  ;;  %v1608_v60 = vadd.f32 %v1607_v18, %v1279_v40  ;;  %v2409_v0 = vor.u32 1.1754944e-38, %v2408_v4 }
 0x11f   : > { %v6581_v62 = vpop.f32.mrf.mxu3  ;;  %v5014_v42 = vmul.f32 -1.442695, %v1606_v58  ;;  %v4951_v36 = vmul.f32 -1.442695, %v1448_v17  ;;  %vm2407_vm9 = vcmp.eq.f32.partialorder %v2406_v8, 8.507059e+37  ;;  %v1122_v54 = vadd.f32 %v6477_v51, %v1121_v47 }
 0x120   : > { %v6586_v56 = vpop.f32.mrf.mxu0  ;;  %v2405_v16 = vsel %vm2404_vm8, %v5321_v20, %v2401_v55  ;;  %5330 = vrcp.f32 %v6579_v19  ;;  %v5015_v30 = vmul.f32 -1.442695, %v1608_v60  ;;  %v5164_v8 = vld [vmem:[%s5839_s18 + $0x2f4] sm:$0xf0]  ;;  %v3366_v2 = vand.u32 2147483647, %v6579_v19 }
 0x121   : > { %v6592_v23 = vpop.f32.mrf.mxu1  ;;  %v5325_v24 = vpop.eup %5324  ;;  %v2410_v34 = vsel %vm2407_vm9, %v2409_v0, %v2405_v16  ;;  %1644 = vmatmul.bf16.gmra.mxu3 %v4737_v46  ;;  %5332 = vpow2.f32 %v5014_v42  ;;  %v3368_v3 = vand.u32 2147483648, %v6579_v19  ;;  %v1451_v5 = vadd.f32 %v1450_v31, %v1122_v54 }
 0x122   : > { %v5327_v1 = vpop.eup %5326  ;;  %4178 = vst.msk [vmem:[%s6022_s30 + $0x50] sm:$0xff] %vm4167_vm0, %v2410_v34  ;;  %v6598_v49 = vadd.f32 1.0, %v5325_v24  ;;  %5334 = vpow2.f32 %v4951_v36  ;;  %v4485_v7 = vor.u32 %v5100_v44, %v4484_v52  ;;  %v4741_v43 = vor.u32 %v5164_v8, %v4740_v25 }
 0x123   : > { %v5329_v61 = vpop.eup %5328  ;;  %v6604_v4 = vadd.f32 1.0, %v5327_v1  ;;  %5336 = vpow2.f32 %v5015_v30  ;;  %vm3362_vm10 = vweird.f32 %v6579_v19  ;;  %vm6623_vm11 = vcmp.eq.f32.partialorder %v3366_v2, 8.507059e+37 }
 0x124   : > { %5338 = vrcp.f32 %v6598_v49  ;;  %v2423_v14 = vand.u32 2147483648, %v6598_v49  ;;  %v6617_v20 = vadd.f32 1.0, %v5329_v61  ;;  %v3369_v38 = vor.u32 1.1754944e-38, %v3368_v3 }
 0x125   : > { %5340 = vrcp.f32 %v6604_v4  ;;  %v3383_v18 = vand.u32 2147483648, %v6604_v4  ;;  %v2421_v47 = vand.u32 2147483647, %v6598_v49  ;;  %v3381_v26 = vand.u32 2147483647, %v6604_v4 }
 0x126   : > { %v6610_v11 = vpop.f32.mrf.mxu2  ;;  %v6612_v12 = vpop.eup %5330  ;;  %5342 = vrcp.f32 %v6617_v20  ;;  %v4952_v31 = vmul.f32 -1.442695, %v1451_v5  ;;  %v4489_v27 = vor.u32 %v5099_v9, %v4486_v10  ;;  %vm2417_vm12 = vweird.f32 %v6598_v49 }
 0x127   : > { %v6619_v22 = vpop.f32.mrf.mxu3  ;;  %v5333_v48 = vpop.eup %5332  ;;  %v3358_v57 = vmul.f32 %v6612_v12, %v6579_v19  ;;  %vm3363_vm13 = vweird.f32 %v6612_v12  ;;  %v2424_v46 = vor.u32 1.1754944e-38, %v2423_v14  ;;  %vm3377_vm14 = vweird.f32 %v6604_v4 }
 0x128   : > { %v6628_v15 = vpop.f32.mrf.mxu0  ;;  %v5335_v21 = vpop.eup %5334  ;;  %v6635_v37 = vadd.f32 1.0, %v5333_v48  ;;  %v6643_v50 = vor.u32 1.1754944e-38, %v3383_v18  ;;  %vm6652_vm15 = vcmp.eq.f32.partialorder %v2421_v47, 8.507059e+37  ;;  %v2436_v13 = vand.u32 2147483647, %v6617_v20  ;;  %vm3364_vm2 = vmor %vm3362_vm10, %vm3363_vm13 }
 0x129   : > { %v6632_v32 = vpop.f32.mrf.mxu1  ;;  %v5337_v33 = vpop.eup %5336  ;;  %v3359_v29 = vsub.f32 1.0, %v3358_v57  ;;  %v6637_v41 = vadd.f32 1.0, %v5335_v21  ;;  %1160 = vmatmul.bf16.gmra.mxu0 %v4485_v7  ;;  %vm6660_vm1 = vcmp.eq.f32.partialorder %v3381_v26, 8.507059e+37  ;;  %v2438_v55 = vand.u32 2147483648, %v6617_v20 }
 0x12a   : > { %v6639_v45 = vpop.eup %5338  ;;  %5344 = vrcp.f32 %v6635_v37  ;;  %v6665_v60 = vadd.f32 1.0, %v5337_v33  ;;  %v4745_v36 = vor.u32 %v5163_v53, %v4742_v63  ;;  %vm2432_vm4 = vweird.f32 %v6617_v20 }
 0x12b   : > { %v6647_v39 = vpop.eup %5340  ;;  %v3360_v28 = vmul.f32 %v6612_v12, %v3359_v29  ;;  %v2413_v40 = vmul.f32 %v6639_v45, %v6598_v49  ;;  %5346 = vpow2.f32 %v4952_v31  ;;  %vm2418_vm3 = vweird.f32 %v6639_v45 }
 0x12c   : > { %v3373_v58 = vmul.f32 %v6647_v39, %v6604_v4  ;;  %5348 = vrcp.f32 %v6637_v41  ;;  %1320 = vmatmul.bf16.gmra.mxu2 %v4741_v43  ;;  %v5343_v54 = vpop.eup %5342  ;;  %v3396_v34 = vand.u32 2147483647, %v6635_v37  ;;  %vm6681_vm5 = vcmp.eq.f32.partialorder %v2436_v13, 8.507059e+37  ;;  %vm2419_vm8 = vmor %vm2417_vm12, %vm2418_vm3 }
 0x12d   : > { %v3361_v0 = vadd.f32 %v6612_v12, %v3360_v28  ;;  %v2414_v42 = vsub.f32 1.0, %v2413_v40  ;;  %1489 = vmatmul.bf16.gmra.mxu1 %v4489_v27  ;;  %v2428_v44 = vmul.f32 %v5343_v54, %v6617_v20  ;;  %v3398_v19 = vand.u32 2147483648, %v6635_v37 }
 0x12e   : > { %v6669_v16 = vpop.f32.mrf.mxu2  ;;  %v3374_v24 = vsub.f32 1.0, %v3373_v58  ;;  %vm3378_vm6 = vweird.f32 %v6647_v39  ;;  %v2439_v2 = vor.u32 1.1754944e-38, %v2438_v55  ;;  %vm3392_vm7 = vweird.f32 %v6635_v37  ;;  %v4492_v55 = vld [vmem:[%s5839_s18 + $0x100] sm:$0xf] }
 0x12f   : > { %v3365_v30 = vsel %vm3364_vm2, %v6612_v12, %v3361_v0  ;;  %v2415_v52 = vmul.f32 %v6639_v45, %v2414_v42  ;;  %v6692_v3 = vpop.f32.mrf.mxu3  ;;  %v2429_v9 = vsub.f32 1.0, %v2428_v44  ;;  %5350 = vrcp.f32 %v6665_v60  ;;  %v5102_v0 = vld [vmem:[%s5839_s18 + $0x104] sm:$0xf0] }
 0x130   : > { %v6686_v25 = vpop.f32.mrf.mxu0  ;;  %v3370_v8 = vsel %vm6623_vm11, %v3369_v38, %v3365_v30  ;;  %v3375_v61 = vmul.f32 %v6647_v39, %v3374_v24  ;;  %v6696_v7 = vpop.eup %5344  ;;  %vm6710_vm9 = vcmp.eq.f32.partialorder %v3396_v34, 8.507059e+37  ;;  %vm2447_vm10 = vweird.f32 %v6637_v41  ;;  %vm3379_vm11 = vmor %vm3377_vm14, %vm3378_vm6  ;;  %v4748_v24 = vld [vmem:[%s5839_s18 + $0x300] sm:$0xf]  ;;  %v5166_v34 = vld [vmem:[%s5839_s18 + $0x304] sm:$0xf0] }
 0x131   : > { %v6694_v5 = vpop.f32.mrf.mxu1  ;;  %4242 = vst.msk [vmem:[%s6022_s30 + $0x250] sm:$0xff] %vm4167_vm0, %v3370_v8  ;;  %v2416_v43 = vadd.f32 %v6639_v45, %v2415_v52  ;;  %1649 = vmatmul.bf16.gmra.mxu3 %v4745_v36  ;;  %v5347_v10 = vpop.eup %5346  ;;  %v3388_v14 = vmul.f32 %v6696_v7, %v6635_v37  ;;  %v2451_v48 = vand.u32 2147483647, %v6637_v41  ;;  %v2430_v6 = vmul.f32 %v5343_v54, %v2429_v9  ;;  %v5165_v9 = vld [vmem:[%s5839_s18 + $0x304] sm:$0xf] }
 0x132   : > { %v3376_v12 = vadd.f32 %v6647_v39, %v3375_v61  ;;  %v6716_v57 = vpop.eup %5348  ;;  %vm2433_vm12 = vweird.f32 %v5343_v54  ;;  %v3399_v38 = vor.u32 1.1754944e-38, %v3398_v19  ;;  %vm3393_vm13 = vweird.f32 %v6696_v7  ;;  %v5101_v61 = vld [vmem:[%s5839_s18 + $0x104] sm:$0xf] }
 0x133   : > { %v2420_v49 = vsel %vm2419_vm8, %v6639_v45, %v2416_v43  ;;  %v3389_v26 = vsub.f32 1.0, %v3388_v14  ;;  %v2443_v31 = vmul.f32 %v6716_v57, %v6637_v41  ;;  %v2431_v4 = vadd.f32 %v5343_v54, %v2430_v6  ;;  %vm2434_vm14 = vmor %vm2432_vm4, %vm2433_vm12 }
 0x134   : > { %v2425_v47 = vsel %vm6652_vm15, %v2424_v46, %v2420_v49  ;;  %v3380_v21 = vsel %vm3379_vm11, %v6647_v39, %v3376_v12  ;;  %v2453_v33 = vand.u32 2147483648, %v6637_v41  ;;  %vm2448_vm15 = vweird.f32 %v6716_v57 }
 0x135   : > { %4179 = vst.msk [vmem:[%s6022_s30 + $0x58] sm:$0xff] %vm4167_vm0, %v2425_v47  ;;  %v3385_v27 = vsel %vm6660_vm1, %v6643_v50, %v3380_v21  ;;  %v3390_v29 = vmul.f32 %v6696_v7, %v3389_v26  ;;  %v2444_v45 = vsub.f32 1.0, %v2443_v31  ;;  %v6741_v46 = vadd.f32 1.0, %v5347_v10  ;;  %v6745_v50 = vpop.eup %5350  ;;  %vm6767_vm1 = vmor %vm3392_vm7, %vm3393_vm13  ;;  %v4750_v10 = vld [vmem:[%s5839_s18 + $0x308] sm:$0xf0] }
 0x136   : > { %4243 = vst.msk [vmem:[%s6022_s30 + $0x258] sm:$0xff] %vm4167_vm0, %v3385_v27  ;;  %v6743_v53 = vpop.f32.mrf.mxu2  ;;  %v2435_v63 = vsel %vm2434_vm14, %v5343_v54, %v2431_v4  ;;  %v1282_v39 = vadd.f32 %v6477_v51, %v6575_v59  ;;  %v1124_v20 = vadd.f32 %v6477_v51, %v6586_v56  ;;  %v1284_v28 = vadd.f32 %v6477_v51, %v6610_v11  ;;  %vm2449_vm4 = vmor %vm2447_vm10, %vm2448_vm15  ;;  %v4500_v11 = vld [vmem:[%s5839_s18 + $0x110] sm:$0xf] }
 0x137   : > { %v2440_v35 = vsel %vm6681_vm5, %v2439_v2, %v2435_v63  ;;  %v3391_v13 = vadd.f32 %v6696_v7, %v3390_v29  ;;  %v2445_v58 = vmul.f32 %v6716_v57, %v2444_v45  ;;  %v3403_v59 = vmul.f32 %v6745_v50, %v6665_v60  ;;  %v6786_v30 = vpop.f32.mrf.mxu3  ;;  %v4494_v2 = vld [vmem:[%s5839_s18 + $0x108] sm:$0xf0] }
 0x138   : > { %v6753_v40 = vpop.f32.mrf.mxu0  ;;  %4180 = vst.msk [vmem:[%s6022_s30 + $0x60] sm:$0xff] %vm4167_vm0, %v2440_v35  ;;  %vm6771_vm2 = vcmp.eq.f32.partialorder %v2451_v48, 8.507059e+37  ;;  %vm3407_vm3 = vweird.f32 %v6665_v60  ;;  %v3413_v17 = vand.u32 2147483648, %v6665_v60  ;;  %5352 = vrcp.f32 %v6741_v46 }
 0x139   : > { %v3395_v37 = vsel %vm6767_vm1, %v6696_v7, %v3391_v13  ;;  %v2446_v42 = vadd.f32 %v6716_v57, %v2445_v58  ;;  %v2454_v36 = vor.u32 1.1754944e-38, %v2453_v33  ;;  %v3404_v54 = vsub.f32 1.0, %v3403_v59  ;;  %v6788_v52 = vpop.f32.mrf.mxu1 }
 0x13a   : > { %v3400_v44 = vsel %vm6710_vm9, %v3399_v38, %v3395_v37  ;;  %v3411_v1 = vand.u32 2147483647, %v6665_v60  ;;  %v1611_v19 = vadd.f32 %v6581_v62, %v1282_v39  ;;  %v1453_v8 = vadd.f32 %v6592_v23, %v1124_v20  ;;  %v5104_v37 = vld [vmem:[%s5839_s18 + $0x114] sm:$0xf0] }
 0x13b   : > { %4244 = vst.msk [vmem:[%s6022_s30 + $0x260] sm:$0xff] %vm4167_vm0, %v3400_v44  ;;  %v2450_v7 = vsel %vm2449_vm4, %v6716_v57, %v2446_v42  ;;  %v3405_v43 = vmul.f32 %v6745_v50, %v3404_v54  ;;  %vm3408_vm5 = vweird.f32 %v6745_v50  ;;  %v1613_v41 = vadd.f32 %v6619_v22, %v1284_v28  ;;  %v5168_v54 = vld [vmem:[%s5839_s18 + $0x314] sm:$0xf0]  ;;  %v5167_v44 = vld [vmem:[%s5839_s18 + $0x314] sm:$0xf] }
 0x13c   : > { %v2455_v12 = vsel %vm6771_vm2, %v2454_v36, %v2450_v7  ;;  %v3414_v62 = vor.u32 1.1754944e-38, %v3413_v17  ;;  %v5016_v14 = vmul.f32 -1.442695, %v1611_v19  ;;  %v4953_v23 = vmul.f32 -1.442695, %v1453_v8  ;;  %vm3409_vm6 = vmor %vm3407_vm3, %vm3408_vm5 }
 0x13d   : > { %4181 = vst.msk [vmem:[%s6022_s30 + $0x68] sm:$0xff] %vm4167_vm0, %v2455_v12  ;;  %v3406_v18 = vadd.f32 %v6745_v50, %v3405_v43  ;;  %v5017_v48 = vmul.f32 -1.442695, %v1613_v41  ;;  %v1127_v57 = vadd.f32 %v6477_v51, %v6628_v15  ;;  %v4493_v49 = vor.u32 %v5102_v0, %v4492_v55  ;;  %v4756_v36 = vld [vmem:[%s5839_s18 + $0x310] sm:$0xf] }
 0x13e   : > { %v5353_v6 = vpop.eup %5352  ;;  %5354 = vpow2.f32 %v5016_v14  ;;  %v4749_v22 = vor.u32 %v5166_v34, %v4748_v24  ;;  %v4497_v38 = vor.u32 %v5101_v61, %v4494_v2  ;;  %v4753_v47 = vor.u32 %v5165_v9, %v4750_v10  ;;  %v1291_v15 = vpop.f32.mrf.mxu2  ;;  %v5103_v34 = vld [vmem:[%s5839_s18 + $0x114] sm:$0xf]  ;;  %v4758_v8 = vld [vmem:[%s5839_s18 + $0x318] sm:$0xf0] }
 0x13f   : > { %v3410_v26 = vsel %vm3409_vm6, %v6745_v50, %v3406_v18  ;;  %vm3412_vm7 = vcmp.eq.f32.partialorder %v3411_v1, 8.507059e+37  ;;  %v2458_v31 = vmul.f32 %v5353_v6, %v6741_v46  ;;  %5356 = vpow2.f32 %v4953_v23  ;;  %1165 = vmatmul.bf16.gmra.mxu0 %v4493_v49  ;;  %v1620_v35 = vpop.f32.mrf.mxu3 }
 0x140   : > { %v6818_v21 = vpop.f32.mrf.mxu0  ;;  %v3415_v27 = vsel %vm3412_vm7, %v3414_v62, %v3410_v26  ;;  %5358 = vpow2.f32 %v5017_v48  ;;  %v1456_v60 = vadd.f32 %v6632_v32, %v1127_v57  ;;  %1325 = vmatmul.bf16.gmra.mxu2 %v4749_v22  ;;  %1494 = vmatmul.bf16.gmra.mxu1 %v4497_v38  ;;  %v1287_v4 = vadd.f32 %v6477_v51, %v6669_v16 }
 0x141   : > { %4245 = vst.msk [vmem:[%s6022_s30 + $0x268] sm:$0xff] %vm4167_vm0, %v3415_v27  ;;  %v2459_v33 = vsub.f32 1.0, %v2458_v31  ;;  %v2468_v29 = vand.u32 2147483648, %v6741_v46  ;;  %1654 = vmatmul.bf16.gmra.mxu3 %v4753_v47  ;;  %v1129_v45 = vadd.f32 %v6477_v51, %v6686_v25  ;;  %v1289_v50 = vadd.f32 %v6477_v51, %v6743_v53  ;;  %v6838_v25 = vpop.f32.mrf.mxu1 }
 0x142   : > { %vm2462_vm8 = vweird.f32 %v6741_v46  ;;  %v4954_v32 = vmul.f32 -1.442695, %v1456_v60  ;;  %v1616_v63 = vadd.f32 %v6692_v3, %v1287_v4  ;;  %v1132_v16 = vadd.f32 %v6477_v51, %v6753_v40 }
 0x143   : > { %v2460_v39 = vmul.f32 %v5353_v6, %v2459_v33  ;;  %vm2463_vm9 = vweird.f32 %v5353_v6  ;;  %v2466_v20 = vand.u32 2147483647, %v6741_v46  ;;  %v1458_v28 = vadd.f32 %v6694_v5, %v1129_v45 }
 0x144   : > { %v5355_v53 = vpop.eup %5354  ;;  %5360 = vpow2.f32 %v4954_v32  ;;  %v5018_v13 = vmul.f32 -1.442695, %v1616_v63  ;;  %v2469_v59 = vor.u32 1.1754944e-38, %v2468_v29  ;;  %v1618_v40 = vadd.f32 %v6786_v30, %v1289_v50  ;;  %vm2464_vm10 = vmor %vm2462_vm8, %vm2463_vm9  ;;  %v4502_v30 = vld [vmem:[%s5839_s18 + $0x118] sm:$0xf0] }
 0x145   : > { %v5357_v58 = vpop.eup %5356  ;;  %v2461_v3 = vadd.f32 %v5353_v6, %v2460_v39  ;;  %v6840_v56 = vadd.f32 1.0, %v5355_v53  ;;  %v4955_v55 = vmul.f32 -1.442695, %v1458_v28  ;;  %v1461_v0 = vadd.f32 %v6788_v52, %v1132_v16 }
 0x146   : > { %v5359_v17 = vpop.eup %5358  ;;  %v6847_v5 = vadd.f32 1.0, %v5357_v58  ;;  %5362 = vpow2.f32 %v5018_v13  ;;  %vm2467_vm11 = vcmp.eq.f32.partialorder %v2466_v20, 8.507059e+37  ;;  %v5019_v52 = vmul.f32 -1.442695, %v1618_v40  ;;  %v6866_v2 = vpop.f32.mrf.mxu2 }
 0x147   : > { %v2465_v42 = vsel %vm2464_vm10, %v5353_v6, %v2461_v3  ;;  %5364 = vrcp.f32 %v6840_v56  ;;  %v6862_v1 = vadd.f32 1.0, %v5359_v17  ;;  %v4501_v19 = vor.u32 %v5104_v37, %v4500_v11  ;;  %v6883_v38 = vpop.f32.mrf.mxu3 }
 0x148   : > { %v6854_v24 = vpop.f32.mrf.mxu0  ;;  %v2470_v46 = vsel %vm2467_vm11, %v2469_v59, %v2465_v42  ;;  %5366 = vrcp.f32 %v6847_v5  ;;  %v1292_v61 = vadd.f32 %v6477_v51, %v1291_v15  ;;  %v3426_v43 = vand.u32 2147483647, %v6840_v56 }
 0x149   : > { %4182 = vst.msk [vmem:[%s6022_s30 + $0x70] sm:$0xff] %vm4167_vm0, %v2470_v46  ;;  %5368 = vpow2.f32 %v4955_v55  ;;  %v4956_v41 = vmul.f32 -1.442695, %v1461_v0  ;;  %v4757_v9 = vor.u32 %v5168_v54, %v4756_v36  ;;  %v3428_v10 = vand.u32 2147483648, %v6840_v56  ;;  %v6885_v47 = vpop.f32.mrf.mxu1 }
 0x14a   : > { %v5361_v7 = vpop.eup %5360  ;;  %v2481_v12 = vand.u32 2147483647, %v6847_v5  ;;  %5370 = vrcp.f32 %v6862_v1  ;;  %v4505_v62 = vor.u32 %v5103_v34, %v4502_v30  ;;  %vm3422_vm12 = vweird.f32 %v6840_v56 }
 0x14b   : > { %v2483_v23 = vand.u32 2147483648, %v6847_v5  ;;  %v6874_v18 = vadd.f32 1.0, %v5361_v7  ;;  %v4761_v48 = vor.u32 %v5167_v44, %v4758_v8  ;;  %vm2477_vm13 = vweird.f32 %v6847_v5 }
 0x14c   : > { %v5363_v14 = vpop.eup %5362  ;;  %5372 = vpow2.f32 %v5019_v52  ;;  %v1621_v6 = vadd.f32 %v1620_v35, %v1292_v61  ;;  %v1134_v22 = vadd.f32 %v6477_v51, %v6818_v21  ;;  %vm6891_vm14 = vcmp.eq.f32.partialorder %v3426_v43, 8.507059e+37 }
 0x14d   : > { %v6876_v57 = vpop.eup %5364  ;;  %v6879_v49 = vadd.f32 1.0, %v5363_v14  ;;  %v3441_v27 = vand.u32 2147483647, %v6862_v1  ;;  %v3443_v60 = vand.u32 2147483648, %v6862_v1  ;;  %5374 = vpow2.f32 %v4956_v41 }
 0x14e   : > { %v6887_v26 = vpop.eup %5366  ;;  %v3418_v31 = vmul.f32 %v6876_v57, %v6840_v56  ;;  %v3429_v4 = vor.u32 1.1754944e-38, %v3428_v10  ;;  %vm6899_vm15 = vcmp.eq.f32.partialorder %v2481_v12, 8.507059e+37  ;;  %5376 = vrcp.f32 %v6874_v18  ;;  %v6923_v40 = vpop.f32.mrf.mxu2 }
 0x14f   : > { %v2473_v21 = vmul.f32 %v6887_v26, %v6847_v5  ;;  %1170 = vmatmul.bf16.gmra.mxu0 %v4501_v19  ;;  %v5369_v29 = vpop.eup %5368  ;;  %v2484_v50 = vor.u32 1.1754944e-38, %v2483_v23  ;;  %vm3437_vm1 = vweird.f32 %v6862_v1  ;;  %5378 = vrcp.f32 %v6879_v49  ;;  %v6950_v7 = vpop.f32.mrf.mxu3 }
 0x150   : > { %v3419_v45 = vsub.f32 1.0, %v3418_v31  ;;  %1330 = vmatmul.bf16.gmra.mxu2 %v4757_v9  ;;  %1499 = vmatmul.bf16.gmra.mxu1 %v4505_v62  ;;  %v5371_v32 = vpop.eup %5370  ;;  %vm3423_vm2 = vweird.f32 %v6876_v57  ;;  %v5020_v16 = vmul.f32 -1.442695, %v1621_v6  ;;  %v6908_v39 = vadd.f32 %v6838_v25, %v1134_v22  ;;  %v6910_v20 = vpop.f32.mrf.mxu0 }
 0x151   : > { %v2474_v63 = vsub.f32 1.0, %v2473_v21  ;;  %1659 = vmatmul.bf16.gmra.mxu3 %v4761_v48  ;;  %vm2478_vm3 = vweird.f32 %v6887_v26  ;;  %v3433_v35 = vmul.f32 %v5371_v32, %v6862_v1  ;;  %vm6915_vm4 = vcmp.eq.f32.partialorder %v3441_v27, 8.507059e+37  ;;  %vm3424_vm6 = vmor %vm3422_vm12, %vm3423_vm2  ;;  %v6952_v43 = vpop.f32.mrf.mxu1 }
 0x152   : > { %v3420_v28 = vmul.f32 %v6876_v57, %v3419_v45  ;;  %v3444_v13 = vor.u32 1.1754944e-38, %v3443_v60  ;;  %v5373_v58 = vpop.eup %5372  ;;  %vm2492_vm5 = vweird.f32 %v6874_v18  ;;  %v2496_v25 = vand.u32 2147483647, %v6874_v18  ;;  %vm2479_vm9 = vmor %vm2477_vm13, %vm2478_vm3 }
 0x153   : > { %v2475_v3 = vmul.f32 %v6887_v26, %v2474_v63  ;;  %v2498_v59 = vand.u32 2147483648, %v6874_v18  ;;  %v5375_v11 = vpop.eup %5374  ;;  %v3434_v55 = vsub.f32 1.0, %v3433_v35  ;;  %v3456_v0 = vand.u32 2147483647, %v6879_v49 }
 0x154   : > { %v3421_v17 = vadd.f32 %v6876_v57, %v3420_v28  ;;  %v6927_v37 = vadd.f32 1.0, %v5369_v29  ;;  %v5377_v42 = vpop.eup %5376  ;;  %vm3438_vm7 = vweird.f32 %v5371_v32  ;;  %vm3452_vm8 = vweird.f32 %v6879_v49 }
 0x155   : > { %v2476_v36 = vadd.f32 %v6887_v26, %v2475_v3  ;;  %v3458_v54 = vand.u32 2147483648, %v6879_v49  ;;  %5380 = vpow2.f32 %v5020_v16  ;;  %v5379_v46 = vpop.eup %5378  ;;  %v3435_v56 = vmul.f32 %v5371_v32, %v3434_v55  ;;  %vm3439_vm10 = vmor %vm3437_vm1, %vm3438_vm7 }
 0x156   : > { %v3425_v34 = vsel %vm3424_vm6, %v6876_v57, %v3421_v17  ;;  %v2488_v30 = vmul.f32 %v5377_v42, %v6874_v18  ;;  %v6942_v44 = vadd.f32 1.0, %v5373_v58  ;;  %v3448_v8 = vmul.f32 %v5379_v46, %v6879_v49  ;;  %v6987_v29 = vpop.f32.mrf.mxu2  ;;  %v4508_v58 = vld [vmem:[%s5839_s18 + $0x120] sm:$0xf]  ;;  %v5106_v17 = vld [vmem:[%s5839_s18 + $0x124] sm:$0xf0] }
 0x157   : > { %v3430_v52 = vsel %vm6891_vm14, %v3429_v4, %v3425_v34  ;;  %v2480_v19 = vsel %vm2479_vm9, %v6887_v26, %v2476_v36  ;;  %v6948_v61 = vadd.f32 1.0, %v5375_v11  ;;  %v3436_v41 = vadd.f32 %v5371_v32, %v3435_v56  ;;  %v7026_v55 = vpop.f32.mrf.mxu3  ;;  %v5170_v34 = vld [vmem:[%s5839_s18 + $0x324] sm:$0xf0] }
 0x158   : > { %4246 = vst.msk [vmem:[%s6022_s30 + $0x270] sm:$0xff] %vm4167_vm0, %v3430_v52  ;;  %v2485_v5 = vsel %vm6899_vm15, %v2484_v50, %v2480_v19  ;;  %v2489_v9 = vsub.f32 1.0, %v2488_v30  ;;  %5382 = vrcp.f32 %v6927_v37  ;;  %vm6964_vm11 = vcmp.eq.f32.partialorder %v2496_v25, 8.507059e+37  ;;  %v6976_v26 = vpop.f32.mrf.mxu0 }
 0x159   : > { %4183 = vst.msk [vmem:[%s6022_s30 + $0x78] sm:$0xff] %vm4167_vm0, %v2485_v5  ;;  %v2499_v12 = vor.u32 1.1754944e-38, %v2498_v59  ;;  %v3449_v62 = vsub.f32 1.0, %v3448_v8  ;;  %vm6968_vm12 = vcmp.eq.f32.partialorder %v3456_v0, 8.507059e+37  ;;  %v3440_v23 = vsel %vm3439_vm10, %v5371_v32, %v3436_v41  ;;  %v7028_v0 = vpop.f32.mrf.mxu1  ;;  %v5105_v8 = vld [vmem:[%s5839_s18 + $0x124] sm:$0xf] }
 0x15a   : > { %v2490_v48 = vmul.f32 %v5377_v42, %v2489_v9  ;;  %vm2493_vm13 = vweird.f32 %v5377_v42  ;;  %5384 = vrcp.f32 %v6942_v44  ;;  %v3445_v1 = vsel %vm6915_vm4, %v3444_v13, %v3440_v23  ;;  %v4510_v5 = vld [vmem:[%s5839_s18 + $0x128] sm:$0xf0] }
 0x15b   : > { %v5381_v57 = vpop.eup %5380  ;;  %v3450_v6 = vmul.f32 %v5379_v46, %v3449_v62  ;;  %vm3453_vm14 = vweird.f32 %v5379_v46  ;;  %v2511_v22 = vand.u32 2147483647, %v6927_v37  ;;  %4247 = vst.msk [vmem:[%s6022_s30 + $0x278] sm:$0xff] %vm4167_vm0, %v3445_v1  ;;  %v3459_v15 = vor.u32 1.1754944e-38, %v3458_v54  ;;  %vm2494_vm15 = vmor %vm2492_vm5, %vm2493_vm13 }
 0x15c   : > { %v2491_v31 = vadd.f32 %v5377_v42, %v2490_v48  ;;  %v2513_v27 = vand.u32 2147483648, %v6927_v37  ;;  %5386 = vrcp.f32 %v6948_v61  ;;  %v3471_v4 = vand.u32 2147483647, %v6942_v44  ;;  %vm3454_vm1 = vmor %vm3452_vm8, %vm3453_vm14 }
 0x15d   : > { %v3451_v60 = vadd.f32 %v5379_v46, %v3450_v6  ;;  %v3473_v21 = vand.u32 2147483648, %v6942_v44  ;;  %v4957_v33 = vmul.f32 -1.442695, %v6908_v39  ;;  %vm2507_vm2 = vweird.f32 %v6927_v37 }
 0x15e   : > { %v6989_v45 = vpop.eup %5382  ;;  %v2495_v50 = vsel %vm2494_vm15, %v5377_v42, %v2491_v31  ;;  %v2528_v18 = vand.u32 2147483648, %v6948_v61  ;;  %v6996_v32 = vadd.f32 1.0, %v5381_v57  ;;  %vm7002_vm3 = vcmp.eq.f32.partialorder %v2511_v22, 8.507059e+37 }
 0x15f   : > { %v2500_v63 = vsel %vm6964_vm11, %v2499_v12, %v2495_v50  ;;  %v3455_v16 = vsel %vm3454_vm1, %v5379_v46, %v3451_v60  ;;  %v2503_v39 = vmul.f32 %v6989_v45, %v6927_v37  ;;  %vm3467_vm4 = vweird.f32 %v6942_v44  ;;  %v4764_v46 = vld [vmem:[%s5839_s18 + $0x320] sm:$0xf]  ;;  %v7070_v37 = vpop.f32.mrf.mxu2 }
 0x160   : > { %v2526_v49 = vand.u32 2147483647, %v6948_v61  ;;  %v7008_v35 = vpop.eup %5384  ;;  %4184 = vst.msk [vmem:[%s6022_s30 + $0x80] sm:$0xff] %vm4167_vm0, %v2500_v63  ;;  %v3460_v53 = vsel %vm6968_vm12, %v3459_v15, %v3455_v16  ;;  %v2514_v13 = vor.u32 1.1754944e-38, %v2513_v27  ;;  %vm2522_vm5 = vweird.f32 %v6948_v61  ;;  %v7054_v23 = vpop.f32.mrf.mxu0  ;;  %v5169_v15 = vld [vmem:[%s5839_s18 + $0x324] sm:$0xf] }
 0x161   : > { %5388 = vrcp.f32 %v6996_v32  ;;  %4248 = vst.msk [vmem:[%s6022_s30 + $0x280] sm:$0xff] %vm4167_vm0, %v3460_v53  ;;  %v2504_v3 = vsub.f32 1.0, %v2503_v39  ;;  %v3463_v25 = vmul.f32 %v7008_v35, %v6942_v44  ;;  %vm7021_vm6 = vcmp.eq.f32.partialorder %v3471_v4, 8.507059e+37  ;;  %v4766_v27 = vld [vmem:[%s5839_s18 + $0x328] sm:$0xf0] }
 0x162   : > { %v3474_v11 = vor.u32 1.1754944e-38, %v3473_v21  ;;  %v7030_v42 = vpop.eup %5386  ;;  %vm2508_vm7 = vweird.f32 %v6989_v45  ;;  %v2529_v36 = vor.u32 1.1754944e-38, %v2528_v18  ;;  %5390 = vpow2.f32 %v4957_v33  ;;  %v7094_v16 = vld [vmem:[%s9449_s2] ss:$0 sm:$0xff] }
 0x163   : > { %v1294_v54 = vadd.f32 %v6477_v51, %v6866_v2  ;;  %v2505_v56 = vmul.f32 %v6989_v45, %v2504_v3  ;;  %v3464_v30 = vsub.f32 1.0, %v3463_v25  ;;  %vm3468_vm8 = vweird.f32 %v7008_v35  ;;  %vm2509_vm11 = vmor %vm2507_vm2, %vm2508_vm7 }
 0x164   : > { %v2518_v52 = vmul.f32 %v7030_v42, %v6948_v61  ;;  %vm7041_vm9 = vcmp.eq.f32.partialorder %v2526_v49, 8.507059e+37  ;;  %vm2523_vm10 = vweird.f32 %v7030_v42  ;;  %v3486_v2 = vand.u32 2147483647, %v6996_v32  ;;  %vm3469_vm12 = vmor %vm3467_vm4, %vm3468_vm8  ;;  %v7104_v61 = vpop.f32.mrf.mxu3 }
 0x165   : > { %v1623_v41 = vadd.f32 %v6883_v38, %v1294_v54  ;;  %v1137_v9 = vadd.f32 %v6477_v51, %v6854_v24  ;;  %v2506_v10 = vadd.f32 %v6989_v45, %v2505_v56  ;;  %v3465_v12 = vmul.f32 %v7008_v35, %v3464_v30  ;;  %vm2524_vm13 = vmor %vm2522_vm5, %vm2523_vm10  ;;  %v5108_v56 = vld [vmem:[%s5839_s18 + $0x134] sm:$0xf0]  ;;  %v4772_v30 = vld [vmem:[%s5839_s18 + $0x330] sm:$0xf] }
 0x166   : > { %v2519_v62 = vsub.f32 1.0, %v2518_v52  ;;  %v4509_v14 = vor.u32 %v5106_v17, %v4508_v58  ;;  %v4765_v24 = vor.u32 %v5170_v34, %v4764_v46  ;;  %v4513_v57 = vor.u32 %v5105_v8, %v4510_v5  ;;  %v5172_v52 = vld [vmem:[%s5839_s18 + $0x334] sm:$0xf0]  ;;  %v4518_v8 = vld [vmem:[%s5839_s18 + $0x138] sm:$0xf0] }
 0x167   : > { %v7056_v48 = vpop.eup %5388  ;;  %v5021_v38 = vmul.f32 -1.442695, %v1623_v41  ;;  %v1466_v51 = vadd.f32 %v6885_v47, %v1137_v9  ;;  %v2510_v1 = vsel %vm2509_vm11, %v6989_v45, %v2506_v10  ;;  %v3466_v6 = vadd.f32 %v7008_v35, %v3465_v12  ;;  %v7140_v5 = vpop.f32.mrf.mxu2  ;;  %v5171_v9 = vld [vmem:[%s5839_s18 + $0x334] sm:$0xf] }
 0x168   : > { %v2520_v22 = vmul.f32 %v7030_v42, %v2519_v62  ;;  %v3478_v31 = vmul.f32 %v7056_v48, %v6996_v32  ;;  %1175 = vmatmul.bf16.gmra.mxu0 %v4509_v14  ;;  %v5391_v60 = vpop.eup %5390  ;;  %v2515_v47 = vsel %vm7002_vm3, %v2514_v13, %v2510_v1  ;;  %v3488_v4 = vand.u32 2147483648, %v6996_v32  ;;  %1335 = vmatmul.bf16.gmra.mxu2 %v4765_v24 }
 0x169   : > { %5392 = vpow2.f32 %v5021_v38  ;;  %v4958_v21 = vmul.f32 -1.442695, %v1466_v51  ;;  %1504 = vmatmul.bf16.gmra.mxu1 %v4513_v57  ;;  %4185 = vst.msk [vmem:[%s6022_s30 + $0x88] sm:$0xff] %vm4167_vm0, %v2515_v47  ;;  %v3470_v33 = vsel %vm3469_vm12, %v7008_v35, %v3466_v6  ;;  %v7083_v18 = vadd.f32 1.0, %v5391_v60  ;;  %v7106_v35 = vpop.f32.mrf.mxu1 }
 0x16a   : > { %v2521_v45 = vadd.f32 %v7030_v42, %v2520_v22  ;;  %v3479_v50 = vsub.f32 1.0, %v3478_v31  ;;  %v3475_v44 = vsel %vm7021_vm6, %v3474_v11, %v3470_v33  ;;  %v4769_v63 = vor.u32 %v5169_v15, %v4766_v27 }
 0x16b   : > { %5394 = vpow2.f32 %v4958_v21  ;;  %v1297_v39 = vadd.f32 %v7094_v16, %v6923_v40  ;;  %4249 = vst.msk [vmem:[%s6022_s30 + $0x288] sm:$0xff] %vm4167_vm0, %v3475_v44  ;;  %vm3483_vm14 = vweird.f32 %v7056_v48  ;;  %vm3482_vm15 = vweird.f32 %v6996_v32 }
 0x16c   : > { %v2525_v28 = vsel %vm2524_vm13, %v7030_v42, %v2521_v45  ;;  %v3480_v49 = vmul.f32 %v7056_v48, %v3479_v50  ;;  %5396 = vrcp.f32 %v7083_v18  ;;  %1664 = vmatmul.bf16.gmra.mxu3 %v4769_v63  ;;  %v1139_v58 = vadd.f32 %v7094_v16, %v6910_v20  ;;  %vm3484_vm1 = vmor %vm3482_vm15, %vm3483_vm14  ;;  %v4516_v42 = vld [vmem:[%s5839_s18 + $0x130] sm:$0xf]  ;;  %v7155_v22 = vpop.f32.mrf.mxu3 }
 0x16d   : > { %v2530_v53 = vsel %vm7041_vm9, %v2529_v36, %v2525_v28  ;;  %v1626_v40 = vadd.f32 %v6950_v7, %v1297_v39  ;;  %v1299_v3 = vadd.f32 %v7094_v16, %v6987_v29  ;;  %v1142_v25 = vadd.f32 %v7094_v16, %v6976_v26  ;;  %v7128_v36 = vpop.f32.mrf.mxu0 }
 0x16e   : > { %4186 = vst.msk [vmem:[%s6022_s30 + $0x90] sm:$0xff] %vm4167_vm0, %v2530_v53  ;;  %v3481_v13 = vadd.f32 %v7056_v48, %v3480_v49  ;;  %vm3487_vm2 = vcmp.eq.f32.partialorder %v3486_v2, 8.507059e+37  ;;  %v3489_v7 = vor.u32 1.1754944e-38, %v3488_v4  ;;  %v2541_v32 = vand.u32 2147483647, %v7083_v18 }
 0x16f   : > { %v5393_v59 = vpop.eup %5392  ;;  %v5022_v11 = vmul.f32 -1.442695, %v1626_v40  ;;  %v1468_v29 = vadd.f32 %v6952_v43, %v1139_v58  ;;  %v1628_v26 = vadd.f32 %v7026_v55, %v1299_v3  ;;  %v1471_v34 = vadd.f32 %v7028_v0, %v1142_v25  ;;  %v5107_v55 = vld [vmem:[%s5839_s18 + $0x134] sm:$0xf] }
 0x170   : > { %v3485_v17 = vsel %vm3484_vm1, %v7056_v48, %v3481_v13  ;;  %v7123_v20 = vadd.f32 1.0, %v5393_v59  ;;  %v2543_v43 = vand.u32 2147483648, %v7083_v18  ;;  %vm2537_vm3 = vweird.f32 %v7083_v18  ;;  %v4774_v48 = vld [vmem:[%s5839_s18 + $0x338] sm:$0xf0]  ;;  %v7185_v59 = vpop.f32.mrf.mxu2 }
 0x171   : > { %v5395_v54 = vpop.eup %5394  ;;  %v3490_v46 = vsel %vm3487_vm2, %v3489_v7, %v3485_v17  ;;  %5398 = vpow2.f32 %v5022_v11  ;;  %v4959_v41 = vmul.f32 -1.442695, %v1468_v29  ;;  %vm7147_vm4 = vcmp.eq.f32.partialorder %v2541_v32, 8.507059e+37  ;;  %v7157_v31 = vpop.f32.mrf.mxu1  ;;  %v4524_v29 = vld [vmem:[%s5839_s18 + $0x140] sm:$0xf] }
 0x172   : > { %v5397_v19 = vpop.eup %5396  ;;  %4250 = vst.msk [vmem:[%s6022_s30 + $0x290] sm:$0xff] %vm4167_vm0, %v3490_v46  ;;  %5400 = vrcp.f32 %v7123_v20  ;;  %v7144_v0 = vadd.f32 1.0, %v5395_v54  ;;  %v5023_v12 = vmul.f32 -1.442695, %v1628_v26  ;;  %v4517_v62 = vor.u32 %v5108_v56, %v4516_v42 }
 0x173   : > { %v2533_v2 = vmul.f32 %v5397_v19, %v7083_v18  ;;  %v4773_v14 = vor.u32 %v5172_v52, %v4772_v30  ;;  %v3501_v51 = vand.u32 2147483647, %v7123_v20  ;;  %v4960_v24 = vmul.f32 -1.442695, %v1471_v34 }
 0x174   : > { %5402 = vrcp.f32 %v7144_v0  ;;  %v2544_v57 = vor.u32 1.1754944e-38, %v2543_v43  ;;  %v3503_v1 = vand.u32 2147483648, %v7123_v20  ;;  %v4521_v6 = vor.u32 %v5107_v55, %v4518_v8 }
 0x175   : > { %v2534_v38 = vsub.f32 1.0, %v2533_v2  ;;  %5404 = vpow2.f32 %v4959_v41  ;;  %vm2538_vm5 = vweird.f32 %v5397_v19  ;;  %v1302_v60 = vadd.f32 %v7094_v16, %v7070_v37  ;;  %v7178_v28 = vpop.f32.mrf.mxu0 }
 0x176   : > { %5406 = vpow2.f32 %v5023_v12  ;;  %vm3497_vm6 = vweird.f32 %v7123_v20  ;;  %v4777_v21 = vor.u32 %v5171_v9, %v4774_v48  ;;  %v1144_v33 = vadd.f32 %v7094_v16, %v7054_v23  ;;  %vm2539_vm8 = vmor %vm2537_vm3, %vm2538_vm5 }
 0x177   : > { %v5399_v15 = vpop.eup %5398  ;;  %v2535_v27 = vmul.f32 %v5397_v19, %v2534_v38  ;;  %vm7167_vm7 = vcmp.eq.f32.partialorder %v3501_v51, 8.507059e+37  ;;  %5408 = vpow2.f32 %v4960_v24  ;;  %v1631_v37 = vadd.f32 %v7104_v61, %v1302_v60  ;;  %v7205_v52 = vpop.f32.mrf.mxu3 }
 0x178   : > { %v5401_v47 = vpop.eup %5400  ;;  %v7162_v4 = vadd.f32 1.0, %v5399_v15  ;;  %1180 = vmatmul.bf16.gmra.mxu0 %v4517_v62  ;;  %1340 = vmatmul.bf16.gmra.mxu2 %v4773_v14  ;;  %v3504_v63 = vor.u32 1.1754944e-38, %v3503_v1  ;;  %v2556_v39 = vand.u32 2147483647, %v7144_v0  ;;  %v2558_v23 = vand.u32 2147483648, %v7144_v0 }
 0x179   : > { %v2536_v45 = vadd.f32 %v5397_v19, %v2535_v27  ;;  %v3493_v50 = vmul.f32 %v5401_v47, %v7123_v20  ;;  %1509 = vmatmul.bf16.gmra.mxu1 %v4521_v6  ;;  %v5024_v13 = vmul.f32 -1.442695, %v1631_v37  ;;  %v1473_v61 = vadd.f32 %v7106_v35, %v1144_v33 }
 0x17a   : > { %5410 = vrcp.f32 %v7162_v4  ;;  %v5403_v49 = vpop.eup %5402  ;;  %vm3498_vm9 = vweird.f32 %v5401_v47  ;;  %v3516_v25 = vand.u32 2147483647, %v7162_v4  ;;  %v3518_v11 = vand.u32 2147483648, %v7162_v4 }
 0x17b   : > { %v2540_v53 = vsel %vm2539_vm8, %v5397_v19, %v2536_v45  ;;  %v3494_v40 = vsub.f32 1.0, %v3493_v50  ;;  %v5405_v58 = vpop.eup %5404  ;;  %v2548_v3 = vmul.f32 %v5403_v49, %v7144_v0  ;;  %5412 = vpow2.f32 %v5024_v13  ;;  %vm3499_vm12 = vmor %vm3497_vm6, %vm3498_vm9  ;;  %v7207_v19 = vpop.f32.mrf.mxu1 }
 0x17c   : > { %v2545_v18 = vsel %vm7147_vm4, %v2544_v57, %v2540_v53  ;;  %v5407_v7 = vpop.eup %5406  ;;  %v7190_v17 = vadd.f32 1.0, %v5405_v58  ;;  %1669 = vmatmul.bf16.gmra.mxu3 %v4777_v21  ;;  %vm2552_vm10 = vweird.f32 %v7144_v0  ;;  %vm7193_vm11 = vcmp.eq.f32.partialorder %v2556_v39, 8.507059e+37 }
 0x17d   : > { %4187 = vst.msk [vmem:[%s6022_s30 + $0x98] sm:$0xff] %vm4167_vm0, %v2545_v18  ;;  %v3495_v32 = vmul.f32 %v5401_v47, %v3494_v40  ;;  %v2549_v35 = vsub.f32 1.0, %v2548_v3  ;;  %v7197_v26 = vadd.f32 1.0, %v5407_v7  ;;  %v5409_v42 = vpop.eup %5408  ;;  %v2559_v46 = vor.u32 1.1754944e-38, %v2558_v23 }
 0x17e   : > { %5414 = vrcp.f32 %v7190_v17  ;;  %v4961_v34 = vmul.f32 -1.442695, %v1473_v61  ;;  %vm2553_vm13 = vweird.f32 %v5403_v49  ;;  %vm3512_vm14 = vweird.f32 %v7162_v4 }
 0x17f   : > { %v3496_v54 = vadd.f32 %v5401_v47, %v3495_v32  ;;  %v2550_v30 = vmul.f32 %v5403_v49, %v2549_v35  ;;  %5416 = vrcp.f32 %v7197_v26  ;;  %vm7210_vm15 = vcmp.eq.f32.partialorder %v3516_v25, 8.507059e+37  ;;  %vm2554_vm1 = vmor %vm2552_vm10, %vm2553_vm13  ;;  %v7271_v61 = vpop.f32.mrf.mxu3 }
 0x180   : > { %v5411_v56 = vpop.eup %5410  ;;  %v3519_v20 = vor.u32 1.1754944e-38, %v3518_v11  ;;  %v2571_v9 = vand.u32 2147483647, %v7190_v17  ;;  %v1304_v10 = vadd.f32 %v7094_v16, %v7140_v5  ;;  %v2573_v14 = vand.u32 2147483648, %v7190_v17  ;;  %v7230_v5 = vpop.f32.mrf.mxu0 }
 0x181   : > { %v3500_v43 = vsel %vm3499_vm12, %v5401_v47, %v3496_v54  ;;  %v3508_v55 = vmul.f32 %v5411_v56, %v7162_v4  ;;  %v2551_v41 = vadd.f32 %v5403_v49, %v2550_v30  ;;  %v5413_v12 = vpop.eup %5412  ;;  %v7225_v48 = vadd.f32 1.0, %v5409_v42  ;;  %v7250_v47 = vpop.f32.mrf.mxu2  ;;  %v5110_v42 = vld [vmem:[%s5839_s18 + $0x144] sm:$0xf0]  ;;  %v4780_v30 = vld [vmem:[%s5839_s18 + $0x340] sm:$0xf] }
 0x182   : > { %v3505_v2 = vsel %vm7167_vm7, %v3504_v63, %v3500_v43  ;;  %5418 = vpow2.f32 %v4961_v34  ;;  %vm3513_vm2 = vweird.f32 %v5411_v56  ;;  %v3531_v51 = vand.u32 2147483647, %v7197_v26  ;;  %v5174_v43 = vld [vmem:[%s5839_s18 + $0x344] sm:$0xf0] }
 0x183   : > { %4251 = vst.msk [vmem:[%s6022_s30 + $0x298] sm:$0xff] %vm4167_vm0, %v3505_v2  ;;  %v3509_v62 = vsub.f32 1.0, %v3508_v55  ;;  %v2555_v38 = vsel %vm2554_vm1, %v5403_v49, %v2551_v41  ;;  %v7228_v24 = vadd.f32 1.0, %v5413_v12  ;;  %v3533_v6 = vand.u32 2147483648, %v7197_v26  ;;  %vm3514_vm6 = vmor %vm3512_vm14, %vm3513_vm2  ;;  %v4526_v2 = vld [vmem:[%s5839_s18 + $0x148] sm:$0xf0] }
 0x184   : > { %v7232_v57 = vpop.eup %5414  ;;  %v2560_v0 = vsel %vm7193_vm11, %v2559_v46, %v2555_v38  ;;  %5420 = vrcp.f32 %v7225_v48  ;;  %vm2567_vm3 = vweird.f32 %v7190_v17  ;;  %vm7245_vm4 = vcmp.eq.f32.partialorder %v2571_v9, 8.507059e+37 }
 0x185   : > { %v3510_v1 = vmul.f32 %v5411_v56, %v3509_v62  ;;  %v7238_v15 = vpop.eup %5416  ;;  %4188 = vst.msk [vmem:[%s6022_s30 + $0xa0] sm:$0xff] %vm4167_vm0, %v2560_v0  ;;  %v2563_v27 = vmul.f32 %v7232_v57, %v7190_v17  ;;  %vm3527_vm5 = vweird.f32 %v7197_v26  ;;  %v2574_v33 = vor.u32 1.1754944e-38, %v2573_v14  ;;  %v5173_v62 = vld [vmem:[%s5839_s18 + $0x344] sm:$0xf]  ;;  %v4782_v14 = vld [vmem:[%s5839_s18 + $0x348] sm:$0xf0] }
 0x186   : > { %v3523_v45 = vmul.f32 %v7238_v15, %v7197_v26  ;;  %v1633_v50 = vadd.f32 %v7155_v22, %v1304_v10  ;;  %vm7258_vm7 = vcmp.eq.f32.partialorder %v3531_v51, 8.507059e+37  ;;  %v2586_v63 = vand.u32 2147483647, %v7225_v48 }
 0x187   : > { %v3511_v21 = vadd.f32 %v5411_v56, %v3510_v1  ;;  %v2564_v44 = vsub.f32 1.0, %v2563_v27  ;;  %5422 = vrcp.f32 %v7228_v24  ;;  %v3534_v53 = vor.u32 1.1754944e-38, %v3533_v6 }
 0x188   : > { %v5419_v39 = vpop.eup %5418  ;;  %v3524_v49 = vsub.f32 1.0, %v3523_v45  ;;  %v2588_v22 = vand.u32 2147483648, %v7225_v48  ;;  %vm2568_vm8 = vweird.f32 %v7232_v57  ;;  %vm3528_vm9 = vweird.f32 %v7238_v15  ;;  %v7319_v41 = vpop.f32.mrf.mxu0 }
 0x189   : > { %v3515_v23 = vsel %vm3514_vm6, %v5411_v56, %v3511_v21  ;;  %v2565_v40 = vmul.f32 %v7232_v57, %v2564_v44  ;;  %v7269_v13 = vadd.f32 1.0, %v5419_v39  ;;  %v3546_v25 = vand.u32 2147483647, %v7228_v24  ;;  %vm7296_vm12 = vmor %vm2567_vm3, %vm2568_vm8 }
 0x18a   : > { %v3520_v4 = vsel %vm7210_vm15, %v3519_v20, %v3515_v23  ;;  %v7273_v58 = vpop.f32.mrf.mxu1  ;;  %v7275_v18 = vpop.eup %5420  ;;  %v3525_v3 = vmul.f32 %v7238_v15, %v3524_v49  ;;  %v5025_v7 = vmul.f32 -1.442695, %v1633_v50  ;;  %vm2582_vm10 = vweird.f32 %v7225_v48  ;;  %vm3529_vm14 = vmor %vm3527_vm5, %vm3528_vm9 }
 0x18b   : > { %4252 = vst.msk [vmem:[%s6022_s30 + $0x2a0] sm:$0xff] %vm4167_vm0, %v3520_v4  ;;  %v2566_v32 = vadd.f32 %v7232_v57, %v2565_v40  ;;  %v2578_v11 = vmul.f32 %v7275_v18, %v7225_v48  ;;  %vm7286_vm11 = vcmp.eq.f32.partialorder %v2586_v63, 8.507059e+37  ;;  %v2589_v34 = vor.u32 1.1754944e-38, %v2588_v22 }
 0x18c   : > { %v3526_v46 = vadd.f32 %v7238_v15, %v3525_v3  ;;  %vm3542_vm13 = vweird.f32 %v7228_v24  ;;  %5424 = vrcp.f32 %v7269_v13  ;;  %v1147_v56 = vadd.f32 %v7094_v16, %v7128_v36  ;;  %v5109_v36 = vld [vmem:[%s5839_s18 + $0x144] sm:$0xf] }
 0x18d   : > { %v7307_v17 = vpop.eup %5422  ;;  %v2570_v55 = vsel %vm7296_vm12, %v7232_v57, %v2566_v32  ;;  %v2579_v8 = vsub.f32 1.0, %v2578_v11  ;;  %v3548_v20 = vand.u32 2147483648, %v7228_v24  ;;  %5426 = vpow2.f32 %v5025_v7 }
 0x18e   : > { %v2575_v9 = vsel %vm7245_vm4, %v2574_v33, %v2570_v55  ;;  %v3530_v10 = vsel %vm3529_vm14, %v7238_v15, %v3526_v46  ;;  %v3538_v12 = vmul.f32 %v7307_v17, %v7228_v24  ;;  %vm7326_vm15 = vcmp.eq.f32.partialorder %v3546_v25, 8.507059e+37  ;;  %v4532_v46 = vld [vmem:[%s5839_s18 + $0x150] sm:$0xf]  ;;  %v5176_v55 = vld [vmem:[%s5839_s18 + $0x354] sm:$0xf0] }
 0x18f   : > { %4189 = vst.msk [vmem:[%s6022_s30 + $0xa8] sm:$0xff] %vm4167_vm0, %v2575_v9  ;;  %v3535_v38 = vsel %vm7258_vm7, %v3534_v53, %v3530_v10  ;;  %v2580_v51 = vmul.f32 %v7275_v18, %v2579_v8  ;;  %vm2583_vm1 = vweird.f32 %v7275_v18  ;;  %vm3543_vm2 = vweird.f32 %v7307_v17  ;;  %v7339_v57 = vpop.f32.mrf.mxu2  ;;  %v5111_v8 = vld [vmem:[%s5839_s18 + $0x154] sm:$0xf] }
 0x190   : > { %4253 = vst.msk [vmem:[%s6022_s30 + $0x2a8] sm:$0xff] %vm4167_vm0, %v3535_v38  ;;  %v3539_v0 = vsub.f32 1.0, %v3538_v12  ;;  %v1476_v1 = vadd.f32 %v7157_v31, %v1147_v56  ;;  %v4525_v6 = vor.u32 %v5110_v42, %v4524_v29  ;;  %v4781_v15 = vor.u32 %v5174_v43, %v4780_v30  ;;  %vm7353_vm3 = vmor %vm2582_vm10, %vm2583_vm1  ;;  %v4788_v56 = vld [vmem:[%s5839_s18 + $0x350] sm:$0xf]  ;;  %v5175_v9 = vld [vmem:[%s5839_s18 + $0x354] sm:$0xf] }
 0x191   : > { %v2581_v27 = vadd.f32 %v7275_v18, %v2580_v51  ;;  %v4529_v60 = vor.u32 %v5109_v36, %v4526_v2  ;;  %v4785_v21 = vor.u32 %v5173_v62, %v4782_v14  ;;  %v1307_v33 = vadd.f32 %v7094_v16, %v7185_v59  ;;  %vm3544_vm4 = vmor %vm3542_vm13, %vm3543_vm2  ;;  %v4534_v2 = vld [vmem:[%s5839_s18 + $0x158] sm:$0xf0] }
 0x192   : > { %v7347_v45 = vpop.f32.mrf.mxu1  ;;  %v7349_v50 = vpop.eup %5424  ;;  %v3540_v31 = vmul.f32 %v7307_v17, %v3539_v0  ;;  %v4962_v37 = vmul.f32 -1.442695, %v1476_v1  ;;  %1185 = vmatmul.bf16.gmra.mxu0 %v4525_v6  ;;  %1345 = vmatmul.bf16.gmra.mxu2 %v4781_v15  ;;  %v1149_v63 = vadd.f32 %v7094_v16, %v7178_v28  ;;  %v1309_v59 = vadd.f32 %v7094_v16, %v7250_v47  ;;  %v4790_v14 = vld [vmem:[%s5839_s18 + $0x358] sm:$0xf0] }
 0x193   : > { %v5427_v39 = vpop.eup %5426  ;;  %v2585_v48 = vsel %vm7353_vm3, %v7275_v18, %v2581_v27  ;;  %v3549_v23 = vor.u32 1.1754944e-38, %v3548_v20  ;;  %v2593_v49 = vmul.f32 %v7349_v50, %v7269_v13  ;;  %1514 = vmatmul.bf16.gmra.mxu1 %v4529_v60  ;;  %1674 = vmatmul.bf16.gmra.mxu3 %v4785_v21  ;;  %v1636_v53 = vadd.f32 %v7205_v52, %v1307_v33 }
 0x194   : > { %v7368_v22 = vpop.f32.mrf.mxu3  ;;  %v2590_v28 = vsel %vm7286_vm11, %v2589_v34, %v2585_v48  ;;  %v3541_v47 = vadd.f32 %v7307_v17, %v3540_v31  ;;  %v7373_v4 = vadd.f32 1.0, %v5427_v39  ;;  %5428 = vpow2.f32 %v4962_v37  ;;  %v5112_v34 = vld [vmem:[%s5839_s18 + $0x154] sm:$0xf0] }
 0x195   : > { %4190 = vst.msk [vmem:[%s6022_s30 + $0xb0] sm:$0xff] %vm4167_vm0, %v2590_v28  ;;  %v2594_v40 = vsub.f32 1.0, %v2593_v49  ;;  %v5026_v52 = vmul.f32 -1.442695, %v1636_v53  ;;  %v1478_v18 = vadd.f32 %v7207_v19, %v1149_v63  ;;  %v1638_v3 = vadd.f32 %v7271_v61, %v1309_v59 }
 0x196   : > { %v3545_v25 = vsel %vm3544_vm4, %v7307_v17, %v3541_v47  ;;  %v2601_v7 = vand.u32 2147483647, %v7269_v13  ;;  %v2603_v32 = vand.u32 2147483648, %v7269_v13  ;;  %5430 = vrcp.f32 %v7373_v4  ;;  %v7391_v61 = vpop.f32.mrf.mxu0 }
 0x197   : > { %v3550_v24 = vsel %vm7326_vm15, %v3549_v23, %v3545_v25  ;;  %v2595_v11 = vmul.f32 %v7349_v50, %v2594_v40  ;;  %vm2598_vm5 = vweird.f32 %v7349_v50  ;;  %5432 = vpow2.f32 %v5026_v52  ;;  %v1313_v19 = vpop.f32.mrf.mxu2 }
 0x198   : > { %4254 = vst.msk [vmem:[%s6022_s30 + $0x2b0] sm:$0xff] %vm4167_vm0, %v3550_v24  ;;  %v4963_v35 = vmul.f32 -1.442695, %v1478_v18  ;;  %v5027_v29 = vmul.f32 -1.442695, %v1638_v3  ;;  %v1152_v42 = vadd.f32 %v7094_v16, %v7230_v5  ;;  %vm2597_vm6 = vweird.f32 %v7269_v13 }
 0x199   : > { %v2596_v54 = vadd.f32 %v7349_v50, %v2595_v11  ;;  %vm7406_vm7 = vmor %vm2597_vm6, %vm2598_vm5  ;;  %vm2602_vm8 = vcmp.eq.f32.partialorder %v2601_v7, 8.507059e+37  ;;  %v2604_v5 = vor.u32 1.1754944e-38, %v2603_v32  ;;  %vm3557_vm9 = vweird.f32 %v7373_v4 }
 0x19a   : > { %v7402_v30 = vpop.f32.mrf.mxu1  ;;  %v5429_v43 = vpop.eup %5428  ;;  %5434 = vpow2.f32 %v4963_v35  ;;  %v1481_v13 = vadd.f32 %v7273_v58, %v1152_v42  ;;  %v3561_v62 = vand.u32 2147483647, %v7373_v4  ;;  %v1312_v38 = vadd.f32 %v7094_v16, %v7339_v57 }
 0x19b   : > { %v2600_v20 = vsel %vm7406_vm7, %v7349_v50, %v2596_v54  ;;  %v7417_v36 = vadd.f32 1.0, %v5429_v43  ;;  %5436 = vpow2.f32 %v5027_v29  ;;  %v3563_v1 = vand.u32 2147483648, %v7373_v4 }
 0x19c   : > { %v1642_v10 = vpop.f32.mrf.mxu3  ;;  %v5431_v12 = vpop.eup %5430  ;;  %v2605_v26 = vsel %vm2602_vm8, %v2604_v5, %v2600_v20  ;;  %v4964_v58 = vmul.f32 -1.442695, %v1481_v13  ;;  %v1154_v6 = vadd.f32 %v7094_v16, %v7319_v41  ;;  %v4533_v27 = vor.u32 %v5112_v34, %v4532_v46 }
 0x19d   : > { %v5433_v51 = vpop.eup %5432  ;;  %4191 = vst.msk [vmem:[%s6022_s30 + $0xb8] sm:$0xff] %vm4167_vm0, %v2605_v26  ;;  %v3553_v0 = vmul.f32 %v5431_v12, %v7373_v4  ;;  %5438 = vrcp.f32 %v7417_v36  ;;  %v4789_v60 = vor.u32 %v5176_v55, %v4788_v56  ;;  %v4537_v21 = vor.u32 %v5111_v8, %v4534_v2 }
 0x19e   : > { %v7432_v15 = vadd.f32 1.0, %v5433_v51  ;;  %5440 = vpow2.f32 %v4964_v58  ;;  %v4793_v57 = vor.u32 %v5175_v9, %v4790_v14  ;;  %v1314_v50 = vadd.f32 %v7094_v16, %v1313_v19  ;;  %v7444_v49 = vpop.f32.mrf.mxu0 }
 0x19f   : > { %v3554_v33 = vsub.f32 1.0, %v3553_v0  ;;  %v7435_v44 = vpop.f32.mrf.mxu2  ;;  %v2616_v37 = vand.u32 2147483647, %v7417_v36  ;;  %v2618_v63 = vand.u32 2147483648, %v7417_v36  ;;  %v1641_v41 = vadd.f32 %v7368_v22, %v1312_v38  ;;  %v4540_v0 = vld [vmem:[%s5839_s18 + $0x160] sm:$0xf] }
 0x1a0   : > { %v5435_v31 = vpop.eup %5434  ;;  %5442 = vrcp.f32 %v7432_v15  ;;  %vm3558_vm10 = vweird.f32 %v5431_v12  ;;  %v1483_v23 = vadd.f32 %v7347_v45, %v1154_v6  ;;  %vm7446_vm11 = vcmp.eq.f32.partialorder %v3561_v62, 8.507059e+37 }
 0x1a1   : > { %v5437_v59 = vpop.eup %5436  ;;  %v3555_v39 = vmul.f32 %v5431_v12, %v3554_v33  ;;  %v7441_v48 = vadd.f32 1.0, %v5435_v31  ;;  %v3564_v28 = vor.u32 1.1754944e-38, %v3563_v1  ;;  %vm2612_vm12 = vweird.f32 %v7417_v36  ;;  %vm3559_vm13 = vmor %vm3557_vm9, %vm3558_vm10  ;;  %v5114_v1 = vld [vmem:[%s5839_s18 + $0x164] sm:$0xf0] }
 0x1a2   : > { %v7451_v47 = vadd.f32 1.0, %v5437_v59  ;;  %1190 = vmatmul.bf16.gmra.mxu0 %v4533_v27  ;;  %1350 = vmatmul.bf16.gmra.mxu2 %v4789_v60  ;;  %v7453_v22 = vpop.f32.mrf.mxu1  ;;  %v3576_v45 = vand.u32 2147483647, %v7432_v15  ;;  %v1643_v18 = vadd.f32 %v1642_v10, %v1314_v50  ;;  %vm7466_vm14 = vcmp.eq.f32.partialorder %v2616_v37, 8.507059e+37  ;;  %v5178_v50 = vld [vmem:[%s5839_s18 + $0x364] sm:$0xf0] }
 0x1a3   : > { %v7455_v40 = vpop.eup %5438  ;;  %v3556_v52 = vadd.f32 %v5431_v12, %v3555_v39  ;;  %5444 = vrcp.f32 %v7441_v48  ;;  %1519 = vmatmul.bf16.gmra.mxu1 %v4537_v21  ;;  %1679 = vmatmul.bf16.gmra.mxu3 %v4793_v57  ;;  %v2619_v32 = vor.u32 1.1754944e-38, %v2618_v63  ;;  %v5028_v24 = vmul.f32 -1.442695, %v1641_v41  ;;  %v4796_v57 = vld [vmem:[%s5839_s18 + $0x360] sm:$0xf] }
 0x1a4   : > { %v7459_v3 = vpop.f32.mrf.mxu3  ;;  %v2608_v25 = vmul.f32 %v7455_v40, %v7417_v36  ;;  %v5441_v11 = vpop.eup %5440  ;;  %vm3572_vm15 = vweird.f32 %v7432_v15  ;;  %v3578_v35 = vand.u32 2147483648, %v7432_v15  ;;  %5446 = vrcp.f32 %v7451_v47 }
 0x1a5   : > { %v3560_v19 = vsel %vm3559_vm13, %v5431_v12, %v3556_v52  ;;  %v4965_v4 = vmul.f32 -1.442695, %v1483_v23  ;;  %v2631_v46 = vand.u32 2147483647, %v7441_v48  ;;  %v7478_v34 = vadd.f32 %v7094_v16, %v7391_v61 }
 0x1a6   : > { %v5443_v29 = vpop.eup %5442  ;;  %v3565_v42 = vsel %vm7446_vm11, %v3564_v28, %v3560_v19  ;;  %v2609_v54 = vsub.f32 1.0, %v2608_v25  ;;  %vm2613_vm1 = vweird.f32 %v7455_v40  ;;  %vm7484_vm2 = vcmp.eq.f32.partialorder %v3576_v45, 8.507059e+37  ;;  %v7522_v27 = vpop.f32.mrf.mxu0 }
 0x1a7   : > { %4255 = vst.msk [vmem:[%s6022_s30 + $0x2b8] sm:$0xff] %vm4167_vm0, %v3565_v42  ;;  %v3568_v56 = vmul.f32 %v5443_v29, %v7432_v15  ;;  %v2633_v17 = vand.u32 2147483648, %v7441_v48  ;;  %v7489_v5 = vpop.f32.mrf.mxu2  ;;  %v3591_v55 = vand.u32 2147483647, %v7451_v47  ;;  %v7493_v61 = vadd.f32 1.0, %v5441_v11  ;;  %vm7513_vm6 = vmor %vm2612_vm12, %vm2613_vm1 }
 0x1a8   : > { %v2610_v13 = vmul.f32 %v7455_v40, %v2609_v54  ;;  %5448 = vpow2.f32 %v5028_v24  ;;  %v3579_v2 = vor.u32 1.1754944e-38, %v3578_v35  ;;  %vm2627_vm3 = vweird.f32 %v7441_v48  ;;  %v5113_v42 = vld [vmem:[%s5839_s18 + $0x164] sm:$0xf]  ;;  %v4542_v54 = vld [vmem:[%s5839_s18 + $0x168] sm:$0xf0] }
 0x1a9   : > { %v7495_v8 = vpop.eup %5444  ;;  %v3569_v20 = vsub.f32 1.0, %v3568_v56  ;;  %5450 = vpow2.f32 %v4965_v4  ;;  %vm7501_vm4 = vcmp.eq.f32.partialorder %v2631_v46, 8.507059e+37  ;;  %vm3587_vm5 = vweird.f32 %v7451_v47 }
 0x1aa   : > { %v2611_v9 = vadd.f32 %v7455_v40, %v2610_v13  ;;  %v2623_v10 = vmul.f32 %v7495_v8, %v7441_v48  ;;  %5452 = vrcp.f32 %v7493_v61  ;;  %v5029_v26 = vmul.f32 -1.442695, %v1643_v18  ;;  %v7507_v62 = vpop.eup %5446  ;;  %v7535_v31 = vpop.f32.mrf.mxu1 }
 0x1ab   : > { %v3570_v14 = vmul.f32 %v5443_v29, %v3569_v20  ;;  %vm3573_vm7 = vweird.f32 %v5443_v29  ;;  %v2634_v38 = vor.u32 1.1754944e-38, %v2633_v17  ;;  %v3593_v51 = vand.u32 2147483648, %v7451_v47 }
 0x1ac   : > { %v7520_v6 = vpop.f32.mrf.mxu3  ;;  %v2615_v36 = vsel %vm7513_vm6, %v7455_v40, %v2611_v9  ;;  %v2624_v60 = vsub.f32 1.0, %v2623_v10  ;;  %v3583_v21 = vmul.f32 %v7507_v62, %v7451_v47  ;;  %vm7529_vm8 = vcmp.eq.f32.partialorder %v3591_v55, 8.507059e+37  ;;  %vm3574_vm10 = vmor %vm3572_vm15, %vm3573_vm7 }
 0x1ad   : > { %v2620_v37 = vsel %vm7466_vm14, %v2619_v32, %v2615_v36  ;;  %v3571_v63 = vadd.f32 %v5443_v29, %v3570_v14  ;;  %vm2628_vm9 = vweird.f32 %v7495_v8  ;;  %v2646_v41 = vand.u32 2147483647, %v7493_v61 }
 0x1ae   : > { %v5449_v59 = vpop.eup %5448  ;;  %4192 = vst.msk [vmem:[%s6022_s30 + $0xc0] sm:$0xff] %vm4167_vm0, %v2620_v37  ;;  %v2625_v39 = vmul.f32 %v7495_v8, %v2624_v60  ;;  %v3584_v23 = vsub.f32 1.0, %v3583_v21  ;;  %vm3588_vm11 = vweird.f32 %v7507_v62  ;;  %5454 = vpow2.f32 %v5029_v26  ;;  %vm2629_vm12 = vmor %vm2627_vm3, %vm2628_vm9  ;;  %v7604_v12 = vpop.f32.mrf.mxu0  ;;  %v4548_v37 = vld [vmem:[%s5839_s18 + $0x170] sm:$0xf] }
 0x1af   : > { %v5451_v53 = vpop.eup %5450  ;;  %v3575_v28 = vsel %vm3574_vm10, %v5443_v29, %v3571_v63  ;;  %v7548_v40 = vadd.f32 1.0, %v5449_v59  ;;  %v4541_v52 = vor.u32 %v5114_v1, %v4540_v0  ;;  %v4797_v45 = vor.u32 %v5178_v50, %v4796_v57  ;;  %v7568_v19 = vpop.f32.mrf.mxu2  ;;  %vm3589_vm14 = vmor %vm3587_vm5, %vm3588_vm11 }
 0x1b0   : > { %v7550_v18 = vpop.eup %5452  ;;  %v3580_v25 = vsel %vm7484_vm2, %v3579_v2, %v3575_v28  ;;  %v2626_v15 = vadd.f32 %v7495_v8, %v2625_v39  ;;  %v3585_v7 = vmul.f32 %v7507_v62, %v3584_v23  ;;  %v7556_v32 = vadd.f32 1.0, %v5451_v53  ;;  %v5116_v53 = vld [vmem:[%s5839_s18 + $0x174] sm:$0xf0]  ;;  %v4804_v28 = vld [vmem:[%s5839_s18 + $0x370] sm:$0xf] }
 0x1b1   : > { %4256 = vst.msk [vmem:[%s6022_s30 + $0x2c0] sm:$0xff] %vm4167_vm0, %v3580_v25  ;;  %v3594_v24 = vor.u32 1.1754944e-38, %v3593_v51  ;;  %v2638_v11 = vmul.f32 %v7550_v18, %v7493_v61  ;;  %vm2642_vm13 = vweird.f32 %v7493_v61  ;;  %5456 = vrcp.f32 %v7548_v40 }
 0x1b2   : > { %v2630_v35 = vsel %vm2629_vm12, %v7495_v8, %v2626_v15  ;;  %v3586_v4 = vadd.f32 %v7507_v62, %v3585_v7  ;;  %v2648_v48 = vand.u32 2147483648, %v7493_v61  ;;  %v1486_v29 = vadd.f32 %v7402_v30, %v7478_v34  ;;  %1195 = vmatmul.bf16.gmra.mxu0 %v4541_v52  ;;  %1355 = vmatmul.bf16.gmra.mxu2 %v4797_v45  ;;  %v5177_v30 = vld [vmem:[%s5839_s18 + $0x364] sm:$0xf]  ;;  %v4798_v34 = vld [vmem:[%s5839_s18 + $0x368] sm:$0xf0] }
 0x1b3   : > { %v2635_v46 = vsel %vm7501_vm4, %v2634_v38, %v2630_v35  ;;  %v2639_v56 = vsub.f32 1.0, %v2638_v11  ;;  %vm7583_vm15 = vcmp.eq.f32.partialorder %v2646_v41, 8.507059e+37  ;;  %5458 = vrcp.f32 %v7556_v32  ;;  %v7609_v38 = vpop.f32.mrf.mxu1  ;;  %v5180_v45 = vld [vmem:[%s5839_s18 + $0x374] sm:$0xf0] }
 0x1b4   : > { %v7590_v17 = vpop.f32.mrf.mxu3  ;;  %v5455_v13 = vpop.eup %5454  ;;  %4193 = vst.msk [vmem:[%s6022_s30 + $0xc8] sm:$0xff] %vm4167_vm0, %v2635_v46  ;;  %v3590_v55 = vsel %vm3589_vm14, %v7507_v62, %v3586_v4  ;;  %vm2643_vm1 = vweird.f32 %v7550_v18  ;;  %v3606_v47 = vand.u32 2147483647, %v7548_v40  ;;  %v3608_v8 = vand.u32 2147483648, %v7548_v40 }
 0x1b5   : > { %v3595_v20 = vsel %vm7529_vm8, %v3594_v24, %v3590_v55  ;;  %v2640_v2 = vmul.f32 %v7550_v18, %v2639_v56  ;;  %v2661_v9 = vand.u32 2147483647, %v7556_v32  ;;  %v7602_v10 = vadd.f32 1.0, %v5455_v13  ;;  %vm2644_vm3 = vmor %vm2642_vm13, %vm2643_vm1  ;;  %v5115_v56 = vld [vmem:[%s5839_s18 + $0x174] sm:$0xf] }
 0x1b6   : > { %4257 = vst.msk [vmem:[%s6022_s30 + $0x2c8] sm:$0xff] %vm4167_vm0, %v3595_v20  ;;  %v2663_v26 = vand.u32 2147483648, %v7556_v32  ;;  %v4966_v62 = vmul.f32 -1.442695, %v1486_v29  ;;  %v4545_v58 = vor.u32 %v5113_v42, %v4542_v54  ;;  %v4801_v14 = vor.u32 %v5177_v30, %v4798_v34 }
 0x1b7   : > { %v7611_v51 = vpop.eup %5456  ;;  %v2641_v0 = vadd.f32 %v7550_v18, %v2640_v2  ;;  %v2649_v1 = vor.u32 1.1754944e-38, %v2648_v48  ;;  %vm3602_vm2 = vweird.f32 %v7548_v40  ;;  %5460 = vrcp.f32 %v7602_v10  ;;  %v4806_v2 = vld [vmem:[%s5839_s18 + $0x378] sm:$0xf0] }
 0x1b8   : > { %v3598_v36 = vmul.f32 %v7611_v51, %v7548_v40  ;;  %vm7622_vm4 = vcmp.eq.f32.partialorder %v3606_v47, 8.507059e+37  ;;  %v3609_v21 = vor.u32 1.1754944e-38, %v3608_v8  ;;  %vm2657_vm5 = vweird.f32 %v7556_v32  ;;  %1524 = vmatmul.bf16.gmra.mxu1 %v4545_v58  ;;  %1684 = vmatmul.bf16.gmra.mxu3 %v4801_v14  ;;  %v4550_v40 = vld [vmem:[%s5839_s18 + $0x178] sm:$0xf0]  ;;  %v5179_v47 = vld [vmem:[%s5839_s18 + $0x374] sm:$0xf] }
 0x1b9   : > { %v7627_v33 = vpop.eup %5458  ;;  %v2645_v61 = vsel %vm2644_vm3, %v7550_v18, %v2641_v0  ;;  %5462 = vpow2.f32 %v4966_v62  ;;  %v1317_v57 = vadd.f32 %v7094_v16, %v7435_v44  ;;  %v1159_v50 = vadd.f32 %v7094_v16, %v7444_v49  ;;  %v7652_v18 = vpop.f32.mrf.mxu2 }
 0x1ba   : > { %v2650_v63 = vsel %vm7583_vm15, %v2649_v1, %v2645_v61  ;;  %v3599_v41 = vsub.f32 1.0, %v3598_v36  ;;  %v2653_v59 = vmul.f32 %v7627_v33, %v7556_v32  ;;  %vm7639_vm6 = vcmp.eq.f32.partialorder %v2661_v9, 8.507059e+37 }
 0x1bb   : > { %v2664_v23 = vor.u32 1.1754944e-38, %v2663_v26  ;;  %4194 = vst.msk [vmem:[%s6022_s30 + $0xd0] sm:$0xff] %vm4167_vm0, %v2650_v63  ;;  %vm3603_vm7 = vweird.f32 %v7611_v51  ;;  %v3621_v44 = vand.u32 2147483647, %v7602_v10  ;;  %v1646_v49 = vadd.f32 %v7459_v3, %v1317_v57 }
 0x1bc   : > { %v1488_v52 = vadd.f32 %v7453_v22, %v1159_v50  ;;  %v3600_v25 = vmul.f32 %v7611_v51, %v3599_v41  ;;  %v2654_v15 = vsub.f32 1.0, %v2653_v59  ;;  %v1319_v7 = vadd.f32 %v7094_v16, %v7489_v5  ;;  %v7660_v22 = vpop.f32.mrf.mxu3  ;;  %vm3604_vm9 = vmor %vm3602_vm2, %vm3603_vm7  ;;  %v7673_v43 = vpop.f32.mrf.mxu0 }
 0x1bd   : > { %v1162_v24 = vadd.f32 %v7094_v16, %v7522_v27  ;;  %v5461_v11 = vpop.eup %5460  ;;  %vm2658_vm8 = vweird.f32 %v7627_v33  ;;  %v5030_v35 = vmul.f32 -1.442695, %v1646_v49  ;;  %v4549_v4 = vor.u32 %v5116_v53, %v4548_v37  ;;  %v7681_v8 = vpop.f32.mrf.mxu1  ;;  %v4556_v53 = vld [vmem:[%s5839_s18 + $0x180] sm:$0xf] }
 0x1be   : > { %v4967_v3 = vmul.f32 -1.442695, %v1488_v52  ;;  %v3601_v48 = vadd.f32 %v7611_v51, %v3600_v25  ;;  %v2655_v29 = vmul.f32 %v7627_v33, %v2654_v15  ;;  %v3613_v5 = vmul.f32 %v5461_v11, %v7602_v10  ;;  %vm2659_vm10 = vmor %vm2657_vm5, %vm2658_vm8 }
 0x1bf   : > { %v4805_v42 = vor.u32 %v5180_v45, %v4804_v28  ;;  %v5463_v54 = vpop.eup %5462  ;;  %v3623_v16 = vand.u32 2147483648, %v7602_v10  ;;  %5464 = vpow2.f32 %v5030_v35  ;;  %v1648_v27 = vadd.f32 %v7520_v6, %v1319_v7  ;;  %v5118_v28 = vld [vmem:[%s5839_s18 + $0x184] sm:$0xf0] }
 0x1c0   : > { %v1491_v46 = vadd.f32 %v7535_v31, %v1162_v24  ;;  %v3605_v30 = vsel %vm3604_vm9, %v7611_v51, %v3601_v48  ;;  %v2656_v34 = vadd.f32 %v7627_v33, %v2655_v29  ;;  %v3614_v13 = vsub.f32 1.0, %v3613_v5  ;;  %v7702_v51 = vld [vmem:[%s9449_s2] ss:$0 sm:$0xff] }
 0x1c1   : > { %v7677_v55 = vadd.f32 1.0, %v5463_v54  ;;  %v3610_v6 = vsel %vm7622_vm4, %v3609_v21, %v3605_v30  ;;  %5466 = vpow2.f32 %v4967_v3  ;;  %v5031_v31 = vmul.f32 -1.442695, %v1648_v27 }
 0x1c2   : > { %v4968_v20 = vmul.f32 -1.442695, %v1491_v46  ;;  %4258 = vst.msk [vmem:[%s6022_s30 + $0x2d0] sm:$0xff] %vm4167_vm0, %v3610_v6  ;;  %v2660_v9 = vsel %vm2659_vm10, %v7627_v33, %v2656_v34  ;;  %v3615_v26 = vmul.f32 %v5461_v11, %v3614_v13  ;;  %vm3618_vm11 = vweird.f32 %v5461_v11  ;;  %1200 = vmatmul.bf16.gmra.mxu0 %v4549_v4  ;;  %1360 = vmatmul.bf16.gmra.mxu2 %v4805_v42  ;;  %v4812_v6 = vld [vmem:[%s5839_s18 + $0x380] sm:$0xf] }
 0x1c3   : > { %5468 = vrcp.f32 %v7677_v55  ;;  %v2665_v62 = vsel %vm7639_vm6, %v2664_v23, %v2660_v9  ;;  %vm3617_vm12 = vweird.f32 %v7602_v10  ;;  %v4553_v32 = vor.u32 %v5115_v56, %v4550_v40  ;;  %v7710_v21 = vpop.f32.mrf.mxu2 }
 0x1c4   : > { %5470 = vpow2.f32 %v5031_v31  ;;  %4195 = vst.msk [vmem:[%s6022_s30 + $0xd8] sm:$0xff] %vm4167_vm0, %v2665_v62  ;;  %v3616_v58 = vadd.f32 %v5461_v11, %v3615_v26  ;;  %v4809_v14 = vor.u32 %v5179_v47, %v4806_v2  ;;  %v1322_v0 = vadd.f32 %v7702_v51, %v7568_v19  ;;  %vm3619_vm13 = vmor %vm3617_vm12, %vm3618_vm11  ;;  %v7716_v63 = vpop.f32.mrf.mxu3  ;;  %v5182_v31 = vld [vmem:[%s5839_s18 + $0x384] sm:$0xf0] }
 0x1c5   : > { %5472 = vpow2.f32 %v4968_v20  ;;  %v5465_v1 = vpop.eup %5464  ;;  %vm3622_vm14 = vcmp.eq.f32.partialorder %v3621_v44, 8.507059e+37  ;;  %v3624_v10 = vor.u32 1.1754944e-38, %v3623_v16  ;;  %v2676_v36 = vand.u32 2147483647, %v7677_v55  ;;  %v7730_v44 = vpop.f32.mrf.mxu0 }
 0x1c6   : > { %v1164_v60 = vadd.f32 %v7702_v51, %v7604_v12  ;;  %v3620_v33 = vsel %vm3619_vm13, %v5461_v11, %v3616_v58  ;;  %v2678_v61 = vand.u32 2147483648, %v7677_v55  ;;  %v7713_v57 = vadd.f32 1.0, %v5465_v1  ;;  %v7738_v15 = vpop.f32.mrf.mxu1  ;;  %v5117_v58 = vld [vmem:[%s5839_s18 + $0x184] sm:$0xf] }
 0x1c7   : > { %v1651_v19 = vadd.f32 %v7590_v17, %v1322_v0  ;;  %v5467_v50 = vpop.eup %5466  ;;  %v3625_v37 = vsel %vm3622_vm14, %v3624_v10, %v3620_v33  ;;  %v1324_v12 = vadd.f32 %v7702_v51, %v7652_v18  ;;  %vm2672_vm15 = vweird.f32 %v7677_v55  ;;  %v5120_v10 = vld [vmem:[%s5839_s18 + $0x194] sm:$0xf0] }
 0x1c8   : > { %4259 = vst.msk [vmem:[%s6022_s30 + $0x2d8] sm:$0xff] %vm4167_vm0, %v3625_v37  ;;  %5474 = vrcp.f32 %v7713_v57  ;;  %1529 = vmatmul.bf16.gmra.mxu1 %v4553_v32  ;;  %1689 = vmatmul.bf16.gmra.mxu3 %v4809_v14  ;;  %v7725_v17 = vadd.f32 1.0, %v5467_v50  ;;  %v1493_v23 = vadd.f32 %v7609_v38, %v1164_v60  ;;  %vm7732_vm1 = vcmp.eq.f32.partialorder %v2676_v36, 8.507059e+37  ;;  %v4558_v14 = vld [vmem:[%s5839_s18 + $0x188] sm:$0xf0] }
 0x1c9   : > { %v5469_v41 = vpop.eup %5468  ;;  %v2679_v45 = vor.u32 1.1754944e-38, %v2678_v61  ;;  %v5032_v25 = vmul.f32 -1.442695, %v1651_v19  ;;  %v3636_v24 = vand.u32 2147483647, %v7713_v57  ;;  %v1167_v38 = vadd.f32 %v7702_v51, %v7673_v43 }
 0x1ca   : > { %v5471_v59 = vpop.eup %5470  ;;  %v2668_v39 = vmul.f32 %v5469_v41, %v7677_v55  ;;  %5476 = vrcp.f32 %v7725_v17  ;;  %v3638_v11 = vand.u32 2147483648, %v7713_v57  ;;  %v1653_v35 = vadd.f32 %v7660_v22, %v1324_v12  ;;  %v5181_v36 = vld [vmem:[%s5839_s18 + $0x384] sm:$0xf]  ;;  %v4814_v60 = vld [vmem:[%s5839_s18 + $0x388] sm:$0xf0] }
 0x1cb   : > { %v5473_v49 = vpop.eup %5472  ;;  %v7736_v18 = vadd.f32 1.0, %v5471_v59  ;;  %v4557_v3 = vor.u32 %v5118_v28, %v4556_v53  ;;  %vm2673_vm2 = vweird.f32 %v5469_v41  ;;  %v4969_v29 = vmul.f32 -1.442695, %v1493_v23  ;;  %v7761_v56 = vpop.f32.mrf.mxu2 }
 0x1cc   : > { %v2669_v7 = vsub.f32 1.0, %v2668_v39  ;;  %v7747_v48 = vadd.f32 1.0, %v5473_v49  ;;  %vm3632_vm3 = vweird.f32 %v7713_v57  ;;  %v2691_v42 = vand.u32 2147483647, %v7725_v17  ;;  %vm7765_vm5 = vmor %vm2672_vm15, %vm2673_vm2  ;;  %v7779_v20 = vpop.f32.mrf.mxu3 }
 0x1cd   : > { %5478 = vrcp.f32 %v7736_v18  ;;  %v2693_v54 = vand.u32 2147483648, %v7725_v17  ;;  %vm7756_vm4 = vcmp.eq.f32.partialorder %v3636_v24, 8.507059e+37  ;;  %v3651_v46 = vand.u32 2147483647, %v7736_v18  ;;  %v7807_v33 = vpop.f32.mrf.mxu0 }
 0x1ce   : > { %v2670_v4 = vmul.f32 %v5469_v41, %v2669_v7  ;;  %v7749_v5 = vpop.eup %5474  ;;  %5480 = vpow2.f32 %v5032_v25  ;;  %v3639_v30 = vor.u32 1.1754944e-38, %v3638_v11  ;;  %vm2687_vm6 = vweird.f32 %v7725_v17 }
 0x1cf   : > { %v3628_v22 = vmul.f32 %v7749_v5, %v7713_v57  ;;  %5482 = vrcp.f32 %v7747_v48  ;;  %v5033_v34 = vmul.f32 -1.442695, %v1653_v35  ;;  %vm3647_vm7 = vweird.f32 %v7736_v18 }
 0x1d0   : > { %v2671_v16 = vadd.f32 %v5469_v41, %v2670_v4  ;;  %v7771_v13 = vpop.eup %5476  ;;  %5484 = vpow2.f32 %v4969_v29  ;;  %v1496_v55 = vadd.f32 %v7681_v8, %v1167_v38  ;;  %vm7787_vm8 = vcmp.eq.f32.partialorder %v2691_v42, 8.507059e+37 }
 0x1d1   : > { %v3629_v47 = vsub.f32 1.0, %v3628_v22  ;;  %v2683_v26 = vmul.f32 %v7771_v13, %v7725_v17  ;;  %v2694_v32 = vor.u32 1.1754944e-38, %v2693_v54  ;;  %v3653_v8 = vand.u32 2147483648, %v7736_v18 }
 0x1d2   : > { %v2675_v40 = vsel %vm7765_vm5, %v5469_v41, %v2671_v16  ;;  %1205 = vmatmul.bf16.gmra.mxu0 %v4557_v3  ;;  %vm3633_vm9 = vweird.f32 %v7749_v5  ;;  %vm2688_vm10 = vweird.f32 %v7771_v13  ;;  %vm7801_vm11 = vcmp.eq.f32.partialorder %v3651_v46, 8.507059e+37  ;;  %v7809_v41 = vpop.f32.mrf.mxu1 }
 0x1d3   : > { %v7781_v2 = vpop.eup %5478  ;;  %v2680_v9 = vsel %vm7732_vm1, %v2679_v45, %v2675_v40  ;;  %v3630_v0 = vmul.f32 %v7749_v5, %v3629_v47  ;;  %v2684_v19 = vsub.f32 1.0, %v2683_v26  ;;  %5486 = vpow2.f32 %v5033_v34  ;;  %vm3634_vm12 = vmor %vm3632_vm3, %vm3633_vm9  ;;  %v7838_v4 = vpop.f32.mrf.mxu2 }
 0x1d4   : > { %4196 = vst.msk [vmem:[%s6022_s30 + $0xe0] sm:$0xff] %vm4167_vm0, %v2680_v9  ;;  %v3643_v1 = vmul.f32 %v7781_v2, %v7736_v18  ;;  %v5481_v61 = vpop.eup %5480  ;;  %v4970_v50 = vmul.f32 -1.442695, %v1496_v55  ;;  %v4813_v37 = vor.u32 %v5182_v31, %v4812_v6  ;;  %v4561_v23 = vor.u32 %v5117_v58, %v4558_v14  ;;  %vm2689_vm14 = vmor %vm2687_vm6, %vm2688_vm10  ;;  %v7852_v46 = vpop.f32.mrf.mxu3 }
 0x1d5   : > { %v3631_v12 = vadd.f32 %v7749_v5, %v3630_v0  ;;  %v7812_v39 = vadd.f32 1.0, %v5481_v61  ;;  %v5483_v53 = vpop.eup %5482  ;;  %v2685_v28 = vmul.f32 %v7771_v13, %v2684_v19  ;;  %v4817_v49 = vor.u32 %v5181_v36, %v4814_v60  ;;  %v7866_v40 = vpop.f32.mrf.mxu0  ;;  %v4820_v36 = vld [vmem:[%s5839_s18 + $0x390] sm:$0xf]  ;;  %v5184_v61 = vld [vmem:[%s5839_s18 + $0x394] sm:$0xf0] }
 0x1d6   : > { %v3644_v59 = vsub.f32 1.0, %v3643_v1  ;;  %5488 = vpow2.f32 %v4970_v50  ;;  %1365 = vmatmul.bf16.gmra.mxu2 %v4813_v37  ;;  %v1327_v52 = vadd.f32 %v7702_v51, %v7710_v21  ;;  %v5485_v45 = vpop.eup %5484  ;;  %vm3648_vm13 = vweird.f32 %v7781_v2  ;;  %v4564_v1 = vld [vmem:[%s5839_s18 + $0x190] sm:$0xf]  ;;  %v5119_v19 = vld [vmem:[%s5839_s18 + $0x194] sm:$0xf] }
 0x1d7   : > { %v3635_v25 = vsel %vm3634_vm12, %v7749_v5, %v3631_v12  ;;  %v2698_v24 = vmul.f32 %v5483_v53, %v7747_v48  ;;  %v2686_v38 = vadd.f32 %v7771_v13, %v2685_v28  ;;  %v3654_v11 = vor.u32 1.1754944e-38, %v3653_v8  ;;  %vm3649_vm1 = vmor %vm3647_vm7, %vm3648_vm13 }
 0x1d8   : > { %v3645_v7 = vmul.f32 %v7781_v2, %v3644_v59  ;;  %v3640_v57 = vsel %vm7756_vm4, %v3639_v30, %v3635_v25  ;;  %5490 = vrcp.f32 %v7812_v39  ;;  %1534 = vmatmul.bf16.gmra.mxu1 %v4561_v23  ;;  %1694 = vmatmul.bf16.gmra.mxu3 %v4817_v49  ;;  %vm2702_vm15 = vweird.f32 %v7747_v48  ;;  %v4566_v23 = vld [vmem:[%s5839_s18 + $0x198] sm:$0xf0] }
 0x1d9   : > { %4260 = vst.msk [vmem:[%s6022_s30 + $0x2e0] sm:$0xff] %vm4167_vm0, %v3640_v57  ;;  %v2699_v35 = vsub.f32 1.0, %v2698_v24  ;;  %v2706_v3 = vand.u32 2147483647, %v7747_v48  ;;  %v5487_v29 = vpop.eup %5486  ;;  %v2690_v5 = vsel %vm2689_vm14, %v7771_v13, %v2686_v38  ;;  %v2708_v17 = vand.u32 2147483648, %v7747_v48 }
 0x1da   : > { %v3646_v21 = vadd.f32 %v7781_v2, %v3645_v7  ;;  %v7846_v42 = vadd.f32 1.0, %v5485_v45  ;;  %v1656_v54 = vadd.f32 %v7716_v63, %v1327_v52  ;;  %v2695_v16 = vsel %vm7787_vm8, %v2694_v32, %v2690_v5  ;;  %v5183_v5 = vld [vmem:[%s5839_s18 + $0x394] sm:$0xf] }
 0x1db   : > { %v2700_v27 = vmul.f32 %v5483_v53, %v2699_v35  ;;  %vm2703_vm2 = vweird.f32 %v5483_v53  ;;  %4197 = vst.msk [vmem:[%s6022_s30 + $0xe8] sm:$0xff] %vm4167_vm0, %v2695_v16  ;;  %v1169_v63 = vadd.f32 %v7702_v51, %v7730_v44  ;;  %vm2707_vm3 = vcmp.eq.f32.partialorder %v2706_v3, 8.507059e+37 }
 0x1dc   : > { %v3650_v22 = vsel %vm3649_vm1, %v7781_v2, %v3646_v21  ;;  %v5489_v43 = vpop.eup %5488  ;;  %5492 = vrcp.f32 %v7846_v42  ;;  %v3666_v34 = vand.u32 2147483647, %v7812_v39  ;;  %v7864_v13 = vadd.f32 1.0, %v5487_v29  ;;  %vm2704_vm4 = vmor %vm2702_vm15, %vm2703_vm2  ;;  %v7875_v2 = vpop.f32.mrf.mxu1 }
 0x1dd   : > { %v3655_v18 = vsel %vm7801_vm11, %v3654_v11, %v3650_v22  ;;  %v2701_v30 = vadd.f32 %v5483_v53, %v2700_v27  ;;  %v2709_v55 = vor.u32 1.1754944e-38, %v2708_v17  ;;  %v3668_v6 = vand.u32 2147483648, %v7812_v39  ;;  %v7921_v57 = vpop.f32.mrf.mxu3  ;;  %v4822_v17 = vld [vmem:[%s5839_s18 + $0x398] sm:$0xf0] }
 0x1de   : > { %4261 = vst.msk [vmem:[%s6022_s30 + $0x2e8] sm:$0xff] %vm4167_vm0, %v3655_v18  ;;  %v7868_v47 = vpop.eup %5490  ;;  %v7873_v44 = vadd.f32 1.0, %v5489_v43  ;;  %v5034_v31 = vmul.f32 -1.442695, %v1656_v54  ;;  %v2721_v62 = vand.u32 2147483647, %v7846_v42  ;;  %vm3662_vm5 = vweird.f32 %v7812_v39 }
 0x1df   : > { %v2705_v9 = vsel %vm2704_vm4, %v5483_v53, %v2701_v30  ;;  %v3658_v26 = vmul.f32 %v7868_v47, %v7812_v39  ;;  %v2723_v48 = vand.u32 2147483648, %v7846_v42  ;;  %5494 = vrcp.f32 %v7864_v13  ;;  %v7911_v53 = vpop.f32.mrf.mxu2 }
 0x1e0   : > { %v2710_v32 = vsel %vm2707_vm3, %v2709_v55, %v2705_v9  ;;  %v1498_v8 = vadd.f32 %v7738_v15, %v1169_v63  ;;  %vm7886_vm6 = vcmp.eq.f32.partialorder %v3666_v34, 8.507059e+37  ;;  %5496 = vrcp.f32 %v7873_v44 }
 0x1e1   : > { %4198 = vst.msk [vmem:[%s6022_s30 + $0xf0] sm:$0xff] %vm4167_vm0, %v2710_v32  ;;  %v3659_v58 = vsub.f32 1.0, %v3658_v26  ;;  %v1329_v0 = vadd.f32 %v7702_v51, %v7761_v56  ;;  %vm3663_vm7 = vweird.f32 %v7868_v47  ;;  %v3669_v15 = vor.u32 1.1754944e-38, %v3668_v6 }
 0x1e2   : > { %v7896_v60 = vpop.eup %5492  ;;  %vm2717_vm8 = vweird.f32 %v7846_v42  ;;  %5498 = vpow2.f32 %v5034_v31  ;;  %vm7905_vm9 = vcmp.eq.f32.partialorder %v2721_v62, 8.507059e+37  ;;  %v2724_v12 = vor.u32 1.1754944e-38, %v2723_v48  ;;  %vm3664_vm12 = vmor %vm3662_vm5, %vm3663_vm7 }
 0x1e3   : > { %v3660_v50 = vmul.f32 %v7868_v47, %v3659_v58  ;;  %v2713_v37 = vmul.f32 %v7896_v60, %v7846_v42  ;;  %v3681_v59 = vand.u32 2147483647, %v7864_v13  ;;  %v3683_v28 = vand.u32 2147483648, %v7864_v13 }
 0x1e4   : > { %vm2732_vm10 = vweird.f32 %v7873_v44  ;;  %v2736_v49 = vand.u32 2147483647, %v7873_v44  ;;  %v4971_v52 = vmul.f32 -1.442695, %v1498_v8  ;;  %vm3677_vm11 = vweird.f32 %v7864_v13 }
 0x1e5   : > { %v3661_v45 = vadd.f32 %v7868_v47, %v3660_v50  ;;  %v2714_v25 = vsub.f32 1.0, %v2713_v37  ;;  %v1658_v7 = vadd.f32 %v7779_v20, %v1329_v0  ;;  %v1172_v24 = vadd.f32 %v7702_v51, %v7807_v33  ;;  %v7923_v38 = vpop.eup %5494  ;;  %v7938_v39 = vpop.f32.mrf.mxu0  ;;  %v4572_v50 = vld [vmem:[%s5839_s18 + $0x1a0] sm:$0xf] }
 0x1e6   : > { %5500 = vpow2.f32 %v4971_v52  ;;  %v4565_v11 = vor.u32 %v5120_v10, %v4564_v1  ;;  %v4821_v21 = vor.u32 %v5184_v61, %v4820_v36  ;;  %v4569_v35 = vor.u32 %v5119_v19, %v4566_v23  ;;  %v7929_v3 = vpop.eup %5496  ;;  %v7945_v18 = vpop.f32.mrf.mxu1  ;;  %v5122_v23 = vld [vmem:[%s5839_s18 + $0x1a4] sm:$0xf0]  ;;  %v4828_v52 = vld [vmem:[%s5839_s18 + $0x3a0] sm:$0xf] }
 0x1e7   : > { %v3665_v20 = vsel %vm3664_vm12, %v7868_v47, %v3661_v45  ;;  %v2715_v33 = vmul.f32 %v7896_v60, %v2714_v25  ;;  %vm2718_vm13 = vweird.f32 %v7896_v60  ;;  %v3673_v29 = vmul.f32 %v7923_v38, %v7864_v13  ;;  %v5186_v45 = vld [vmem:[%s5839_s18 + $0x3a4] sm:$0xf0] }
 0x1e8   : > { %v5499_v54 = vpop.eup %5498  ;;  %v3670_v16 = vsel %vm7886_vm6, %v3669_v15, %v3665_v20  ;;  %v2728_v22 = vmul.f32 %v7929_v3, %v7873_v44  ;;  %v2738_v27 = vand.u32 2147483648, %v7873_v44  ;;  %v5035_v43 = vmul.f32 -1.442695, %v1658_v7  ;;  %1210 = vmatmul.bf16.gmra.mxu0 %v4565_v11  ;;  %1370 = vmatmul.bf16.gmra.mxu2 %v4821_v21  ;;  %vm2719_vm14 = vmor %vm2717_vm8, %vm2718_vm13  ;;  %v4574_v11 = vld [vmem:[%s5839_s18 + $0x1a8] sm:$0xf0] }
 0x1e9   : > { %4262 = vst.msk [vmem:[%s6022_s30 + $0x2f0] sm:$0xff] %vm4167_vm0, %v3670_v16  ;;  %v2716_v63 = vadd.f32 %v7896_v60, %v2715_v33  ;;  %v3674_v30 = vsub.f32 1.0, %v3673_v29  ;;  %v7950_v34 = vadd.f32 1.0, %v5499_v54  ;;  %v1501_v47 = vadd.f32 %v7809_v41, %v1172_v24  ;;  %1539 = vmatmul.bf16.gmra.mxu1 %v4569_v35  ;;  %v4830_v54 = vld [vmem:[%s5839_s18 + $0x3a8] sm:$0xf0] }
 0x1ea   : > { %v2729_v55 = vsub.f32 1.0, %v2728_v22  ;;  %5502 = vpow2.f32 %v5035_v43  ;;  %v4825_v6 = vor.u32 %v5183_v5, %v4822_v17  ;;  %v1332_v31 = vadd.f32 %v7702_v51, %v7838_v4 }
 0x1eb   : > { %v2720_v9 = vsel %vm2719_vm14, %v7896_v60, %v2716_v63  ;;  %v3675_v26 = vmul.f32 %v7923_v38, %v3674_v30  ;;  %vm3678_vm15 = vweird.f32 %v7923_v38  ;;  %5504 = vrcp.f32 %v7950_v34  ;;  %v7977_v14 = vpop.f32.mrf.mxu2 }
 0x1ec   : > { %v5501_v41 = vpop.eup %5500  ;;  %v2725_v42 = vsel %vm7905_vm9, %v2724_v12, %v2720_v9  ;;  %vm7965_vm1 = vcmp.eq.f32.partialorder %v3681_v59, 8.507059e+37  ;;  %v2730_v48 = vmul.f32 %v7929_v3, %v2729_v55  ;;  %vm2733_vm2 = vweird.f32 %v7929_v3  ;;  %1699 = vmatmul.bf16.gmra.mxu3 %v4825_v6  ;;  %vm3679_vm3 = vmor %vm3677_vm11, %vm3678_vm15 }
 0x1ed   : > { %4199 = vst.msk [vmem:[%s6022_s30 + $0xf8] sm:$0xff] %vm4167_vm0, %v2725_v42  ;;  %v3676_v4 = vadd.f32 %v7923_v38, %v3675_v26  ;;  %v7974_v32 = vadd.f32 1.0, %v5501_v41  ;;  %v4972_v8 = vmul.f32 -1.442695, %v1501_v47  ;;  %v1661_v58 = vadd.f32 %v7852_v46, %v1332_v31  ;;  %vm2734_vm4 = vmor %vm2732_vm10, %vm2733_vm2 }
 0x1ee   : > { %v3684_v0 = vor.u32 1.1754944e-38, %v3683_v28  ;;  %v2731_v1 = vadd.f32 %v7929_v3, %v2730_v48  ;;  %v2739_v10 = vor.u32 1.1754944e-38, %v2738_v27  ;;  %v1174_v36 = vadd.f32 %v7702_v51, %v7866_v40  ;;  %v8003_v28 = vpop.f32.mrf.mxu0  ;;  %v8011_v25 = vpop.f32.mrf.mxu1 }
 0x1ef   : > { %v3680_v60 = vsel %vm3679_vm3, %v7923_v38, %v3676_v4  ;;  %v3696_v46 = vand.u32 2147483647, %v7950_v34  ;;  %v3698_v13 = vand.u32 2147483648, %v7950_v34  ;;  %5506 = vrcp.f32 %v7974_v32  ;;  %v7990_v15 = vpop.f32.mrf.mxu3  ;;  %v5121_v38 = vld [vmem:[%s5839_s18 + $0x1a4] sm:$0xf] }
 0x1f0   : > { %v5503_v61 = vpop.eup %5502  ;;  %v3685_v40 = vsel %vm7965_vm1, %v3684_v0, %v3680_v60  ;;  %v2735_v19 = vsel %vm2734_vm4, %v7929_v3, %v2731_v1  ;;  %vm2737_vm5 = vcmp.eq.f32.partialorder %v2736_v49, 8.507059e+37  ;;  %5508 = vpow2.f32 %v4972_v8  ;;  %v5185_v3 = vld [vmem:[%s5839_s18 + $0x3a4] sm:$0xf] }
 0x1f1   : > { %v5505_v37 = vpop.eup %5504  ;;  %4263 = vst.msk [vmem:[%s6022_s30 + $0x2f8] sm:$0xff] %vm4167_vm0, %v3685_v40  ;;  %v2740_v56 = vsel %vm2737_vm5, %v2739_v10, %v2735_v19  ;;  %v8000_v12 = vadd.f32 1.0, %v5503_v61  ;;  %v5036_v59 = vmul.f32 -1.442695, %v1661_v58  ;;  %v1503_v49 = vadd.f32 %v7875_v2, %v1174_v36 }
 0x1f2   : > { %4200 = vst.msk [vmem:[%s6022_s30 + $0x100] sm:$0xff] %vm4167_vm0, %v2740_v56  ;;  %v3688_v44 = vmul.f32 %v5505_v37, %v7950_v34  ;;  %vm3692_vm6 = vweird.f32 %v7950_v34  ;;  %vm8014_vm7 = vcmp.eq.f32.partialorder %v3696_v46, 8.507059e+37  ;;  %v3699_v24 = vor.u32 1.1754944e-38, %v3698_v13 }
 0x1f3   : > { %5510 = vrcp.f32 %v8000_v12  ;;  %v4973_v35 = vmul.f32 -1.442695, %v1503_v49  ;;  %v1334_v2 = vadd.f32 %v7702_v51, %v7911_v53  ;;  %v2751_v33 = vand.u32 2147483647, %v7974_v32  ;;  %v8034_v47 = vpop.f32.mrf.mxu2 }
 0x1f4   : > { %v3689_v21 = vsub.f32 1.0, %v3688_v44  ;;  %5512 = vpow2.f32 %v5036_v59  ;;  %v2753_v29 = vand.u32 2147483648, %v7974_v32  ;;  %v1177_v5 = vadd.f32 %v7702_v51, %v7938_v39 }
 0x1f5   : > { %v5507_v20 = vpop.eup %5506  ;;  %v4573_v17 = vor.u32 %v5122_v23, %v4572_v50  ;;  %vm3693_vm8 = vweird.f32 %v5505_v37  ;;  %5514 = vpow2.f32 %v4973_v35  ;;  %v1663_v53 = vadd.f32 %v7921_v57, %v1334_v2 }
 0x1f6   : > { %v5509_v16 = vpop.eup %5508  ;;  %v3690_v22 = vmul.f32 %v5505_v37, %v3689_v21  ;;  %v2743_v27 = vmul.f32 %v5507_v20, %v7974_v32  ;;  %v1506_v63 = vadd.f32 %v7945_v18, %v1177_v5  ;;  %v4829_v30 = vor.u32 %v5186_v45, %v4828_v52  ;;  %vm3694_vm9 = vmor %vm3692_vm6, %vm3693_vm8  ;;  %v8054_v0 = vpop.f32.mrf.mxu0 }
 0x1f7   : > { %v8030_v43 = vadd.f32 1.0, %v5509_v16  ;;  %v4577_v39 = vor.u32 %v5121_v38, %v4574_v11  ;;  %v4833_v31 = vor.u32 %v5185_v3, %v4830_v54  ;;  %v8036_v9 = vpop.f32.mrf.mxu3  ;;  %vm2747_vm10 = vweird.f32 %v7974_v32  ;;  %v8058_v13 = vpop.f32.mrf.mxu1 }
 0x1f8   : > { %v3691_v55 = vadd.f32 %v5505_v37, %v3690_v22  ;;  %v2744_v6 = vsub.f32 1.0, %v2743_v27  ;;  %1215 = vmatmul.bf16.gmra.mxu0 %v4573_v17  ;;  %vm8042_vm11 = vcmp.eq.f32.partialorder %v2751_v33, 8.507059e+37  ;;  %v2754_v18 = vor.u32 1.1754944e-38, %v2753_v29  ;;  %1375 = vmatmul.bf16.gmra.mxu2 %v4829_v30 }
 0x1f9   : > { %v5511_v26 = vpop.eup %5510  ;;  %5516 = vrcp.f32 %v8030_v43  ;;  %vm2748_vm12 = vweird.f32 %v5507_v20  ;;  %1544 = vmatmul.bf16.gmra.mxu1 %v4577_v39  ;;  %v3711_v4 = vand.u32 2147483647, %v8000_v12  ;;  %v3713_v8 = vand.u32 2147483648, %v8000_v12 }
 0x1fa   : > { %v5513_v41 = vpop.eup %5512  ;;  %v3695_v42 = vsel %vm3694_vm9, %v5505_v37, %v3691_v55  ;;  %v2745_v62 = vmul.f32 %v5507_v20, %v2744_v6  ;;  %v3703_v48 = vmul.f32 %v5511_v26, %v8000_v12  ;;  %v5037_v60 = vmul.f32 -1.442695, %v1663_v53  ;;  %vm2749_vm13 = vmor %vm2747_vm10, %vm2748_vm12 }
 0x1fb   : > { %v3700_v34 = vsel %vm8014_vm7, %v3699_v24, %v3695_v42  ;;  %v8052_v58 = vadd.f32 1.0, %v5513_v41  ;;  %v5515_v1 = vpop.eup %5514  ;;  %v4974_v46 = vmul.f32 -1.442695, %v1506_v63  ;;  %vm3708_vm14 = vweird.f32 %v5511_v26  ;;  %v8087_v7 = vpop.f32.mrf.mxu2 }
 0x1fc   : > { %4264 = vst.msk [vmem:[%s6022_s30 + $0x300] sm:$0xff] %vm4167_vm0, %v3700_v34  ;;  %v2746_v10 = vadd.f32 %v5507_v20, %v2745_v62  ;;  %v3704_v36 = vsub.f32 1.0, %v3703_v48  ;;  %1704 = vmatmul.bf16.gmra.mxu3 %v4833_v31  ;;  %v2766_v61 = vand.u32 2147483647, %v8030_v43  ;;  %v2768_v40 = vand.u32 2147483648, %v8030_v43 }
 0x1fd   : > { %5518 = vrcp.f32 %v8052_v58  ;;  %v8066_v37 = vadd.f32 1.0, %v5515_v1  ;;  %vm3707_vm15 = vweird.f32 %v8000_v12  ;;  %vm8071_vm1 = vcmp.eq.f32.partialorder %v3711_v4, 8.507059e+37  ;;  %v5124_v62 = vld [vmem:[%s5839_s18 + $0x1b4] sm:$0xf0] }
 0x1fe   : > { %v2750_v19 = vsel %vm2749_vm13, %v5507_v20, %v2746_v10  ;;  %v3705_v50 = vmul.f32 %v5511_v26, %v3704_v36  ;;  %5520 = vpow2.f32 %v5037_v60  ;;  %v3714_v44 = vor.u32 1.1754944e-38, %v3713_v8  ;;  %vm3709_vm2 = vmor %vm3707_vm15, %vm3708_vm14  ;;  %v8112_v27 = vpop.f32.mrf.mxu0  ;;  %v4836_v8 = vld [vmem:[%s5839_s18 + $0x3b0] sm:$0xf]  ;;  %v5123_v60 = vld [vmem:[%s5839_s18 + $0x1b4] sm:$0xf] }
 0x1ff   : > { %v5517_v56 = vpop.eup %5516  ;;  %v2755_v59 = vsel %vm8042_vm11, %v2754_v18, %v2750_v19  ;;  %5522 = vpow2.f32 %v4974_v46  ;;  %vm2762_vm3 = vweird.f32 %v8030_v43  ;;  %vm8081_vm4 = vcmp.eq.f32.partialorder %v2766_v61, 8.507059e+37  ;;  %v8092_v21 = vpop.f32.mrf.mxu3  ;;  %v4582_v46 = vld [vmem:[%s5839_s18 + $0x1b8] sm:$0xf0] }
 0x200   : > { %4201 = vst.msk [vmem:[%s6022_s30 + $0x108] sm:$0xff] %vm4167_vm0, %v2755_v59  ;;  %v3706_v23 = vadd.f32 %v5511_v26, %v3705_v50  ;;  %v2758_v49 = vmul.f32 %v5517_v56, %v8030_v43  ;;  %5524 = vrcp.f32 %v8066_v37  ;;  %v2769_v52 = vor.u32 1.1754944e-38, %v2768_v40  ;;  %v5187_v50 = vld [vmem:[%s5839_s18 + $0x3b4] sm:$0xf] }
 0x201   : > { %v1337_v45 = vadd.f32 %v7702_v51, %v7977_v14  ;;  %vm3722_vm5 = vweird.f32 %v8052_v58  ;;  %v1179_v11 = vadd.f32 %v7702_v51, %v8003_v28  ;;  %v3726_v3 = vand.u32 2147483647, %v8052_v58 }
 0x202   : > { %v3710_v24 = vsel %vm3709_vm2, %v5511_v26, %v3706_v23  ;;  %v2759_v38 = vsub.f32 1.0, %v2758_v49  ;;  %v1339_v20 = vadd.f32 %v7702_v51, %v8034_v47  ;;  %vm2763_vm6 = vweird.f32 %v5517_v56 }
 0x203   : > { %v8094_v35 = vpop.eup %5518  ;;  %v3715_v2 = vsel %vm8071_vm1, %v3714_v44, %v3710_v24  ;;  %v1666_v14 = vadd.f32 %v7990_v15, %v1337_v45  ;;  %v1508_v5 = vadd.f32 %v8011_v25, %v1179_v11  ;;  %v3728_v54 = vand.u32 2147483648, %v8052_v58  ;;  %v8117_v25 = vpop.f32.mrf.mxu1  ;;  %vm2764_vm8 = vmor %vm2762_vm3, %vm2763_vm6 }
 0x204   : > { %v5521_v33 = vpop.eup %5520  ;;  %4265 = vst.msk [vmem:[%s6022_s30 + $0x308] sm:$0xff] %vm4167_vm0, %v3715_v2  ;;  %v2760_v29 = vmul.f32 %v5517_v56, %v2759_v38  ;;  %v3718_v28 = vmul.f32 %v8094_v35, %v8052_v58  ;;  %v2781_v16 = vand.u32 2147483647, %v8066_v37  ;;  %v2783_v15 = vand.u32 2147483648, %v8066_v37  ;;  %v8157_v61 = vpop.f32.mrf.mxu2 }
 0x205   : > { %v5523_v17 = vpop.eup %5522  ;;  %v8110_v22 = vadd.f32 1.0, %v5521_v33  ;;  %vm3723_vm7 = vweird.f32 %v8094_v35  ;;  %v5038_v6 = vmul.f32 -1.442695, %v1666_v14  ;;  %v1668_v39 = vadd.f32 %v8036_v9, %v1339_v20  ;;  %v4580_v9 = vld [vmem:[%s5839_s18 + $0x1b0] sm:$0xf] }
 0x206   : > { %v5525_v53 = vpop.eup %5524  ;;  %v2761_v63 = vadd.f32 %v5517_v56, %v2760_v29  ;;  %v3719_v30 = vsub.f32 1.0, %v3718_v28  ;;  %v8115_v47 = vadd.f32 1.0, %v5523_v17  ;;  %v4975_v57 = vmul.f32 -1.442695, %v1508_v5  ;;  %vm8151_vm12 = vmor %vm3722_vm5, %vm3723_vm7 }
 0x207   : > { %v2773_v55 = vmul.f32 %v5525_v53, %v8066_v37  ;;  %5526 = vrcp.f32 %v8110_v22  ;;  %v1182_v18 = vadd.f32 %v7702_v51, %v8054_v0  ;;  %vm8130_vm9 = vcmp.eq.f32.partialorder %v3726_v3, 8.507059e+37  ;;  %v5188_v0 = vld [vmem:[%s5839_s18 + $0x3b4] sm:$0xf0]  ;;  %v8165_v59 = vpop.f32.mrf.mxu3 }
 0x208   : > { %v2765_v31 = vsel %vm2764_vm8, %v5517_v56, %v2761_v63  ;;  %v3720_v26 = vmul.f32 %v8094_v35, %v3719_v30  ;;  %5528 = vrcp.f32 %v8115_v47  ;;  %v3729_v34 = vor.u32 1.1754944e-38, %v3728_v54  ;;  %v4838_v56 = vld [vmem:[%s5839_s18 + $0x3b8] sm:$0xf0] }
 0x209   : > { %v2770_v43 = vsel %vm8081_vm4, %v2769_v52, %v2765_v31  ;;  %v2774_v42 = vsub.f32 1.0, %v2773_v55  ;;  %vm2777_vm10 = vweird.f32 %v8066_v37  ;;  %vm8141_vm11 = vcmp.eq.f32.partialorder %v2781_v16, 8.507059e+37 }
 0x20a   : > { %4202 = vst.msk [vmem:[%s6022_s30 + $0x110] sm:$0xff] %vm4167_vm0, %v2770_v43  ;;  %v3721_v48 = vadd.f32 %v8094_v35, %v3720_v26  ;;  %vm2778_vm13 = vweird.f32 %v5525_v53  ;;  %5530 = vpow2.f32 %v5038_v6  ;;  %v5039_v36 = vmul.f32 -1.442695, %v1668_v39 }
 0x20b   : > { %v2775_v10 = vmul.f32 %v5525_v53, %v2774_v42  ;;  %v2784_v19 = vor.u32 1.1754944e-38, %v2783_v15  ;;  %5532 = vpow2.f32 %v4975_v57  ;;  %v1511_v58 = vadd.f32 %v8058_v13, %v1182_v18  ;;  %vm2779_vm14 = vmor %vm2777_vm10, %vm2778_vm13 }
 0x20c   : > { %v3725_v40 = vsel %vm8151_vm12, %v8094_v35, %v3721_v48  ;;  %v3741_v49 = vand.u32 2147483647, %v8110_v22  ;;  %v3743_v12 = vand.u32 2147483648, %v8110_v22  ;;  %5534 = vpow2.f32 %v5039_v36 }
 0x20d   : > { %v5527_v32 = vpop.eup %5526  ;;  %v3730_v23 = vsel %vm8130_vm9, %v3729_v34, %v3725_v40  ;;  %v2776_v44 = vadd.f32 %v5525_v53, %v2775_v10  ;;  %v4976_v52 = vmul.f32 -1.442695, %v1511_v58  ;;  %v4581_v45 = vor.u32 %v5124_v62, %v4580_v9  ;;  %v4588_v40 = vld [vmem:[%s5839_s18 + $0x1c0] sm:$0xf] }
 0x20e   : > { %4266 = vst.msk [vmem:[%s6022_s30 + $0x310] sm:$0xff] %vm4167_vm0, %v3730_v23  ;;  %v3733_v13 = vmul.f32 %v5527_v32, %v8110_v22  ;;  %v5529_v24 = vpop.eup %5528  ;;  %v4837_v11 = vor.u32 %v5188_v0, %v4836_v8  ;;  %v4585_v35 = vor.u32 %v5123_v60, %v4582_v46  ;;  %v4841_v2 = vor.u32 %v5187_v50, %v4838_v56  ;;  %v4844_v50 = vld [vmem:[%s5839_s18 + $0x3c0] sm:$0xf] }
 0x20f   : > { %v2780_v38 = vsel %vm2779_vm14, %v5525_v53, %v2776_v44  ;;  %v1186_v3 = vpop.f32.mrf.mxu0  ;;  %vm3737_vm15 = vweird.f32 %v8110_v22  ;;  %v2788_v37 = vmul.f32 %v5529_v24, %v8115_v47  ;;  %1220 = vmatmul.bf16.gmra.mxu0 %v4581_v45  ;;  %vm2792_vm1 = vweird.f32 %v8115_v47  ;;  %v5189_v53 = vld [vmem:[%s5839_s18 + $0x3c4] sm:$0xf] }
 0x210   : > { %v2785_v14 = vsel %vm8141_vm11, %v2784_v19, %v2780_v38  ;;  %v3734_v20 = vsub.f32 1.0, %v3733_v13  ;;  %v8181_v33 = vpop.f32.mrf.mxu1  ;;  %v5531_v29 = vpop.eup %5530  ;;  %v2796_v28 = vand.u32 2147483647, %v8115_v47  ;;  %v2798_v5 = vand.u32 2147483648, %v8115_v47  ;;  %1380 = vmatmul.bf16.gmra.mxu2 %v4837_v11  ;;  %1549 = vmatmul.bf16.gmra.mxu1 %v4585_v35  ;;  %v5126_v19 = vld [vmem:[%s5839_s18 + $0x1c4] sm:$0xf0] }
 0x211   : > { %4203 = vst.msk [vmem:[%s6022_s30 + $0x118] sm:$0xff] %vm4167_vm0, %v2785_v14  ;;  %5536 = vpow2.f32 %v4976_v52  ;;  %v5533_v17 = vpop.eup %5532  ;;  %vm3738_vm2 = vweird.f32 %v5527_v32  ;;  %v2789_v16 = vsub.f32 1.0, %v2788_v37  ;;  %v8188_v15 = vadd.f32 1.0, %v5531_v29  ;;  %1709 = vmatmul.bf16.gmra.mxu3 %v4841_v2  ;;  %v4590_v38 = vld [vmem:[%s5839_s18 + $0x1c8] sm:$0xf0] }
 0x212   : > { %v3735_v54 = vmul.f32 %v5527_v32, %v3734_v20  ;;  %vm8190_vm3 = vcmp.eq.f32.partialorder %v3741_v49, 8.507059e+37  ;;  %v3744_v63 = vor.u32 1.1754944e-38, %v3743_v12  ;;  %vm2793_vm4 = vweird.f32 %v5529_v24  ;;  %v5535_v55 = vpop.eup %5534  ;;  %vm3739_vm5 = vmor %vm3737_vm15, %vm3738_vm2  ;;  %v5125_v12 = vld [vmem:[%s5839_s18 + $0x1c4] sm:$0xf] }
 0x213   : > { %v8194_v30 = vadd.f32 1.0, %v5533_v17  ;;  %v2790_v39 = vmul.f32 %v5529_v24, %v2789_v16  ;;  %5538 = vrcp.f32 %v8188_v15  ;;  %v1342_v31 = vadd.f32 %v7702_v51, %v8087_v7  ;;  %vm2794_vm7 = vmor %vm2792_vm1, %vm2793_vm4 }
 0x214   : > { %v3736_v6 = vadd.f32 %v5527_v32, %v3735_v54  ;;  %vm8201_vm6 = vcmp.eq.f32.partialorder %v2796_v28, 8.507059e+37  ;;  %v2799_v57 = vor.u32 1.1754944e-38, %v2798_v5  ;;  %v1184_v18 = vadd.f32 %v7702_v51, %v8112_v27 }
 0x215   : > { %5540 = vrcp.f32 %v8194_v30  ;;  %v8208_v43 = vpop.f32.mrf.mxu2  ;;  %v2791_v42 = vadd.f32 %v5529_v24, %v2790_v39  ;;  %v3758_v7 = vand.u32 2147483648, %v8188_v15  ;;  %v1344_v22 = vadd.f32 %v7702_v51, %v8157_v61 }
 0x216   : > { %v3740_v41 = vsel %vm3739_vm5, %v5527_v32, %v3736_v6  ;;  %v8213_v9 = vpop.f32.mrf.mxu3  ;;  %v3756_v27 = vand.u32 2147483647, %v8188_v15  ;;  %v2813_v34 = vand.u32 2147483648, %v8194_v30  ;;  %v8222_v4 = vadd.f32 1.0, %v5535_v55 }
 0x217   : > { %v5537_v62 = vpop.eup %5536  ;;  %v3745_v48 = vsel %vm8190_vm3, %v3744_v63, %v3740_v41  ;;  %v8224_v8 = vpop.f32.mrf.mxu0  ;;  %v2795_v0 = vsel %vm2794_vm7, %v5529_v24, %v2791_v42  ;;  %v2811_v1 = vand.u32 2147483647, %v8194_v30  ;;  %v1671_v47 = vadd.f32 %v8092_v21, %v1342_v31  ;;  %v4846_v63 = vld [vmem:[%s5839_s18 + $0x3c8] sm:$0xf0] }
 0x218   : > { %4267 = vst.msk [vmem:[%s6022_s30 + $0x318] sm:$0xff] %vm4167_vm0, %v3745_v48  ;;  %v8229_v10 = vadd.f32 1.0, %v5537_v62  ;;  %v8232_v36 = vpop.f32.mrf.mxu1  ;;  %v2800_v60 = vsel %vm8201_vm6, %v2799_v57, %v2795_v0  ;;  %5542 = vrcp.f32 %v8222_v4  ;;  %v1513_v46 = vadd.f32 %v8117_v25, %v1184_v18  ;;  %v5190_v25 = vld [vmem:[%s5839_s18 + $0x3c4] sm:$0xf0] }
 0x219   : > { %v1187_v61 = vadd.f32 %v7702_v51, %v1186_v3  ;;  %v8241_v58 = vpop.eup %5538  ;;  %4204 = vst.msk [vmem:[%s6022_s30 + $0x120] sm:$0xff] %vm4167_vm0, %v2800_v60  ;;  %vm3752_vm8 = vweird.f32 %v8188_v15  ;;  %v8246_v21 = vor.u32 1.1754944e-38, %v3758_v7  ;;  %vm2807_vm9 = vweird.f32 %v8194_v30 }
 0x21a   : > { %5544 = vrcp.f32 %v8229_v10  ;;  %v3748_v51 = vmul.f32 %v8241_v58, %v8188_v15  ;;  %vm8256_vm10 = vcmp.eq.f32.partialorder %v3756_v27, 8.507059e+37  ;;  %v2814_v23 = vor.u32 1.1754944e-38, %v2813_v34  ;;  %v8314_v15 = vld [vmem:[%s9449_s2] ss:$0 sm:$0xff] }
 0x21b   : > { %v8252_v56 = vpop.eup %5540  ;;  %v3771_v44 = vand.u32 2147483647, %v8222_v4  ;;  %v3773_v49 = vand.u32 2147483648, %v8222_v4  ;;  %vm3753_vm11 = vweird.f32 %v8241_v58  ;;  %vm8266_vm12 = vcmp.eq.f32.partialorder %v2811_v1, 8.507059e+37 }
 0x21c   : > { %v2803_v13 = vmul.f32 %v8252_v56, %v8194_v30  ;;  %v2826_v45 = vand.u32 2147483647, %v8229_v10  ;;  %v2828_v24 = vand.u32 2147483648, %v8229_v10  ;;  %v3749_v11 = vsub.f32 1.0, %v3748_v51  ;;  %vm3754_vm3 = vmor %vm3752_vm8, %vm3753_vm11 }
 0x21d   : > { %vm2808_vm13 = vweird.f32 %v8252_v56  ;;  %vm2822_vm14 = vweird.f32 %v8229_v10  ;;  %v5040_v35 = vmul.f32 -1.442695, %v1671_v47  ;;  %v4977_v2 = vmul.f32 -1.442695, %v1513_v46  ;;  %v8275_v3 = vpop.f32.mrf.mxu2 }
 0x21e   : > { %v2804_v14 = vsub.f32 1.0, %v2803_v13  ;;  %vm3767_vm15 = vweird.f32 %v8222_v4  ;;  %v1673_v20 = vadd.f32 %v8165_v59, %v1344_v22  ;;  %v1516_v37 = vadd.f32 %v8181_v33, %v1187_v61  ;;  %v8280_v28 = vpop.f32.mrf.mxu3  ;;  %v8282_v5 = vpop.eup %5542  ;;  %vm2809_vm4 = vmor %vm2807_vm9, %vm2808_vm13 }
 0x21f   : > { %v4589_v29 = vor.u32 %v5126_v19, %v4588_v40  ;;  %v3750_v17 = vmul.f32 %v8241_v58, %v3749_v11  ;;  %5546 = vpow2.f32 %v5040_v35  ;;  %v4845_v54 = vor.u32 %v5190_v25, %v4844_v50  ;;  %v8287_v55 = vpop.f32.mrf.mxu0 }
 0x220   : > { %v4593_v16 = vor.u32 %v5125_v12, %v4590_v38  ;;  %v8289_v6 = vpop.eup %5544  ;;  %v2805_v59 = vmul.f32 %v8252_v56, %v2804_v14  ;;  %v3763_v33 = vmul.f32 %v8282_v5, %v8222_v4  ;;  %vm3768_vm1 = vweird.f32 %v8282_v5  ;;  %v8299_v57 = vpop.f32.mrf.mxu1 }
 0x221   : > { %5548 = vpow2.f32 %v4977_v2  ;;  %1225 = vmatmul.bf16.gmra.mxu0 %v4589_v29  ;;  %v3751_v39 = vadd.f32 %v8241_v58, %v3750_v17  ;;  %v2818_v31 = vmul.f32 %v8289_v6, %v8229_v10  ;;  %vm2823_vm2 = vweird.f32 %v8289_v6  ;;  %1385 = vmatmul.bf16.gmra.mxu2 %v4845_v54  ;;  %vm3769_vm6 = vmor %vm3767_vm15, %vm3768_vm1  ;;  %v5128_v17 = vld [vmem:[%s5839_s18 + $0x1d4] sm:$0xf0]  ;;  %v4852_v54 = vld [vmem:[%s5839_s18 + $0x3d0] sm:$0xf] }
 0x222   : > { %v5041_v26 = vmul.f32 -1.442695, %v1673_v20  ;;  %1554 = vmatmul.bf16.gmra.mxu1 %v4593_v16  ;;  %v2806_v18 = vadd.f32 %v8252_v56, %v2805_v59  ;;  %v3764_v41 = vsub.f32 1.0, %v3763_v33  ;;  %v4978_v42 = vmul.f32 -1.442695, %v1516_v37  ;;  %vm2824_vm8 = vmor %vm2822_vm14, %vm2823_vm2 }
 0x223   : > { %v4849_v7 = vor.u32 %v5189_v53, %v4846_v63  ;;  %v3755_v22 = vsel %vm3754_vm3, %v8241_v58, %v3751_v39  ;;  %v2819_v62 = vsub.f32 1.0, %v2818_v31  ;;  %v1347_v48 = vadd.f32 %v8314_v15, %v8208_v43  ;;  %v4596_v20 = vld [vmem:[%s5839_s18 + $0x1d0] sm:$0xf]  ;;  %v5192_v16 = vld [vmem:[%s5839_s18 + $0x3d4] sm:$0xf0] }
 0x224   : > { %5550 = vpow2.f32 %v5041_v26  ;;  %v3760_v27 = vsel %vm8256_vm10, %v8246_v21, %v3755_v22  ;;  %v2810_v34 = vsel %vm2809_vm4, %v8252_v56, %v2806_v18  ;;  %v3765_v30 = vmul.f32 %v8282_v5, %v3764_v41  ;;  %v5127_v33 = vld [vmem:[%s5839_s18 + $0x1d4] sm:$0xf]  ;;  %v4598_v39 = vld [vmem:[%s5839_s18 + $0x1d8] sm:$0xf0] }
 0x225   : > { %5552 = vpow2.f32 %v4978_v42  ;;  %1714 = vmatmul.bf16.gmra.mxu3 %v4849_v7  ;;  %v5547_v0 = vpop.eup %5546  ;;  %4268 = vst.msk [vmem:[%s6022_s30 + $0x320] sm:$0xff] %vm4167_vm0, %v3760_v27  ;;  %v2815_v1 = vsel %vm8266_vm12, %v2814_v23, %v2810_v34  ;;  %v2820_v47 = vmul.f32 %v8289_v6, %v2819_v62  ;;  %v1676_v43 = vadd.f32 %v8213_v9, %v1347_v48  ;;  %v8331_v46 = vpop.f32.mrf.mxu2 }
 0x226   : > { %v1189_v60 = vadd.f32 %v8314_v15, %v8224_v8  ;;  %4205 = vst.msk [vmem:[%s6022_s30 + $0x128] sm:$0xff] %vm4167_vm0, %v2815_v1  ;;  %v3766_v40 = vadd.f32 %v8282_v5, %v3765_v30  ;;  %vm8338_vm5 = vcmp.eq.f32.partialorder %v3771_v44, 8.507059e+37  ;;  %v3774_v58 = vor.u32 1.1754944e-38, %v3773_v49  ;;  %v8361_v56 = vpop.f32.mrf.mxu3 }
 0x227   : > { %v5549_v61 = vpop.eup %5548  ;;  %v8344_v9 = vadd.f32 1.0, %v5547_v0  ;;  %v2821_v8 = vadd.f32 %v8289_v6, %v2820_v47  ;;  %vm8353_vm7 = vcmp.eq.f32.partialorder %v2826_v45, 8.507059e+37  ;;  %v2829_v50 = vor.u32 1.1754944e-38, %v2828_v24  ;;  %v8363_v51 = vpop.f32.mrf.mxu0 }
 0x228   : > { %v8359_v25 = vadd.f32 1.0, %v5549_v61  ;;  %v3770_v4 = vsel %vm3769_vm6, %v8282_v5, %v3766_v40  ;;  %v5042_v32 = vmul.f32 -1.442695, %v1676_v43  ;;  %v1349_v23 = vadd.f32 %v8314_v15, %v8275_v3  ;;  %v8391_v35 = vpop.f32.mrf.mxu1 }
 0x229   : > { %5554 = vrcp.f32 %v8344_v9  ;;  %v3775_v49 = vsel %vm8338_vm5, %v3774_v58, %v3770_v4  ;;  %v2825_v12 = vsel %vm2824_vm8, %v8289_v6, %v2821_v8  ;;  %v1518_v13 = vadd.f32 %v8232_v36, %v1189_v60  ;;  %v4604_v8 = vld [vmem:[%s5839_s18 + $0x1e0] sm:$0xf] }
 0x22a   : > { %v5551_v44 = vpop.eup %5550  ;;  %5556 = vrcp.f32 %v8359_v25  ;;  %4269 = vst.msk [vmem:[%s6022_s30 + $0x328] sm:$0xff] %vm4167_vm0, %v3775_v49  ;;  %v2830_v10 = vsel %vm8353_vm7, %v2829_v50, %v2825_v12  ;;  %v3786_v45 = vand.u32 2147483647, %v8344_v9  ;;  %v3788_v24 = vand.u32 2147483648, %v8344_v9 }
 0x22b   : > { %v5553_v52 = vpop.eup %5552  ;;  %4206 = vst.msk [vmem:[%s6022_s30 + $0x130] sm:$0xff] %vm4167_vm0, %v2830_v10  ;;  %v2843_v38 = vand.u32 2147483648, %v8359_v25  ;;  %v8387_v11 = vadd.f32 1.0, %v5551_v44  ;;  %v2841_v2 = vand.u32 2147483647, %v8359_v25  ;;  %5558 = vpow2.f32 %v5042_v32 }
 0x22c   : > { %v8389_v36 = vadd.f32 1.0, %v5553_v52  ;;  %v4979_v3 = vmul.f32 -1.442695, %v1518_v13  ;;  %v1678_v14 = vadd.f32 %v8280_v28, %v1349_v23  ;;  %vm3782_vm9 = vweird.f32 %v8344_v9  ;;  %v4854_v10 = vld [vmem:[%s5839_s18 + $0x3d8] sm:$0xf0] }
 0x22d   : > { %5560 = vrcp.f32 %v8387_v11  ;;  %v8397_v37 = vpop.f32.mrf.mxu2  ;;  %v1192_v5 = vadd.f32 %v8314_v15, %v8287_v55  ;;  %vm8412_vm10 = vcmp.eq.f32.partialorder %v3786_v45, 8.507059e+37  ;;  %v3789_v6 = vor.u32 1.1754944e-38, %v3788_v24 }
 0x22e   : > { %5562 = vrcp.f32 %v8389_v36  ;;  %vm2837_vm11 = vweird.f32 %v8359_v25  ;;  %v2844_v59 = vor.u32 1.1754944e-38, %v2843_v38  ;;  %vm8423_vm12 = vcmp.eq.f32.partialorder %v2841_v2, 8.507059e+37  ;;  %v8432_v62 = vpop.f32.mrf.mxu3 }
 0x22f   : > { %v8399_v29 = vpop.eup %5554  ;;  %v8419_v31 = vpop.f32.mrf.mxu0  ;;  %v3801_v18 = vand.u32 2147483647, %v8387_v11  ;;  %v3803_v41 = vand.u32 2147483648, %v8387_v11  ;;  %v2856_v42 = vand.u32 2147483647, %v8389_v36  ;;  %vm2852_vm14 = vweird.f32 %v8389_v36 }
 0x230   : > { %v8408_v53 = vpop.eup %5556  ;;  %v3778_v28 = vmul.f32 %v8399_v29, %v8344_v9  ;;  %vm3783_vm13 = vweird.f32 %v8399_v29  ;;  %5564 = vpow2.f32 %v4979_v3  ;;  %v5043_v22 = vmul.f32 -1.442695, %v1678_v14  ;;  %v5191_v9 = vld [vmem:[%s5839_s18 + $0x3d4] sm:$0xf] }
 0x231   : > { %v2833_v55 = vmul.f32 %v8408_v53, %v8359_v25  ;;  %v5559_v48 = vpop.eup %5558  ;;  %vm3797_vm15 = vweird.f32 %v8387_v11  ;;  %v1521_v34 = vadd.f32 %v8299_v57, %v1192_v5  ;;  %v4597_v30 = vor.u32 %v5128_v17, %v4596_v20  ;;  %vm3784_vm3 = vmor %vm3782_vm9, %vm3783_vm13 }
 0x232   : > { %v3779_v7 = vsub.f32 1.0, %v3778_v28  ;;  %v4853_v0 = vor.u32 %v5192_v16, %v4852_v54  ;;  %v8439_v43 = vadd.f32 1.0, %v5559_v48  ;;  %5566 = vpow2.f32 %v5043_v22 }
 0x233   : > { %v2834_v27 = vsub.f32 1.0, %v2833_v55  ;;  %v8436_v1 = vpop.eup %5560  ;;  %v4601_v60 = vor.u32 %v5127_v33, %v4598_v39  ;;  %vm2838_vm1 = vweird.f32 %v8408_v53  ;;  %v4980_v57 = vmul.f32 -1.442695, %v1521_v34  ;;  %1230 = vmatmul.bf16.gmra.mxu0 %v4597_v30 }
 0x234   : > { %v3780_v47 = vmul.f32 %v8399_v29, %v3779_v7  ;;  %v8441_v61 = vpop.eup %5562  ;;  %v3793_v19 = vmul.f32 %v8436_v1, %v8387_v11  ;;  %1390 = vmatmul.bf16.gmra.mxu2 %v4853_v0  ;;  %vm8448_vm2 = vcmp.eq.f32.partialorder %v3801_v18, 8.507059e+37  ;;  %5568 = vrcp.f32 %v8439_v43  ;;  %vm2839_vm4 = vmor %vm2837_vm11, %vm2838_vm1 }
 0x235   : > { %v2835_v40 = vmul.f32 %v8408_v53, %v2834_v27  ;;  %v2848_v21 = vmul.f32 %v8441_v61, %v8389_v36  ;;  %1559 = vmatmul.bf16.gmra.mxu1 %v4601_v60  ;;  %v8455_v50 = vpop.f32.mrf.mxu1  ;;  %v3804_v23 = vor.u32 1.1754944e-38, %v3803_v41  ;;  %v2858_v44 = vand.u32 2147483648, %v8389_v36  ;;  %v8474_v45 = vpop.f32.mrf.mxu2 }
 0x236   : > { %v3781_v58 = vadd.f32 %v8399_v29, %v3780_v47  ;;  %v3794_v32 = vsub.f32 1.0, %v3793_v19  ;;  %v5565_v49 = vpop.eup %5564  ;;  %vm8468_vm5 = vcmp.eq.f32.partialorder %v2856_v42, 8.507059e+37  ;;  %5570 = vpow2.f32 %v4980_v57 }
 0x237   : > { %v2836_v4 = vadd.f32 %v8408_v53, %v2835_v40  ;;  %v2849_v13 = vsub.f32 1.0, %v2848_v21  ;;  %vm3798_vm6 = vweird.f32 %v8436_v1  ;;  %vm2853_vm7 = vweird.f32 %v8441_v61  ;;  %v5130_v21 = vld [vmem:[%s5839_s18 + $0x1e4] sm:$0xf0] }
 0x238   : > { %v3785_v12 = vsel %vm3784_vm3, %v8399_v29, %v3781_v58  ;;  %v3795_v2 = vmul.f32 %v8436_v1, %v3794_v32  ;;  %v5567_v25 = vpop.eup %5566  ;;  %v8487_v20 = vadd.f32 1.0, %v5565_v49  ;;  %v8489_v29 = vpop.f32.mrf.mxu0  ;;  %v3816_v17 = vand.u32 2147483647, %v8439_v43  ;;  %vm3799_vm8 = vmor %vm3797_vm15, %vm3798_vm6 }
 0x239   : > { %v3790_v24 = vsel %vm8412_vm10, %v3789_v6, %v3785_v12  ;;  %v2840_v38 = vsel %vm2839_vm4, %v8408_v53, %v2836_v4  ;;  %v2850_v14 = vmul.f32 %v8441_v61, %v2849_v13  ;;  %v8495_v54 = vadd.f32 1.0, %v5567_v25  ;;  %vm2854_vm9 = vmor %vm2852_vm14, %vm2853_vm7  ;;  %v4860_v4 = vld [vmem:[%s5839_s18 + $0x3e0] sm:$0xf]  ;;  %v5194_v12 = vld [vmem:[%s5839_s18 + $0x3e4] sm:$0xf0] }
 0x23a   : > { %4270 = vst.msk [vmem:[%s6022_s30 + $0x330] sm:$0xff] %vm4167_vm0, %v3790_v24  ;;  %v2845_v3 = vsel %vm8423_vm12, %v2844_v59, %v2840_v38  ;;  %v3796_v5 = vadd.f32 %v8436_v1, %v3795_v2  ;;  %v4857_v16 = vor.u32 %v5191_v9, %v4854_v10  ;;  %v8497_v53 = vpop.eup %5568  ;;  %v2859_v63 = vor.u32 1.1754944e-38, %v2858_v44  ;;  %v5129_v13 = vld [vmem:[%s5839_s18 + $0x1e4] sm:$0xf]  ;;  %v4606_v38 = vld [vmem:[%s5839_s18 + $0x1e8] sm:$0xf0] }
 0x23b   : > { %4207 = vst.msk [vmem:[%s6022_s30 + $0x138] sm:$0xff] %vm4167_vm0, %v2845_v3  ;;  %v2851_v28 = vadd.f32 %v8441_v61, %v2850_v14  ;;  %5572 = vrcp.f32 %v8487_v20  ;;  %v1352_v6 = vadd.f32 %v8314_v15, %v8331_v46  ;;  %v8505_v59 = vpop.f32.mrf.mxu3  ;;  %v3808_v11 = vmul.f32 %v8497_v53, %v8439_v43  ;;  %v5193_v3 = vld [vmem:[%s5839_s18 + $0x3e4] sm:$0xf]  ;;  %v4862_v14 = vld [vmem:[%s5839_s18 + $0x3e8] sm:$0xf0] }
 0x23c   : > { %v3800_v33 = vsel %vm3799_vm8, %v8436_v1, %v3796_v5  ;;  %vm3812_vm10 = vweird.f32 %v8439_v43  ;;  %v3818_v39 = vand.u32 2147483648, %v8439_v43  ;;  %1719 = vmatmul.bf16.gmra.mxu3 %v4857_v16  ;;  %v5571_v55 = vpop.eup %5570  ;;  %v2873_v18 = vand.u32 2147483648, %v8487_v20 }
 0x23d   : > { %v3805_v46 = vsel %vm8448_vm2, %v3804_v23, %v3800_v33  ;;  %v2855_v26 = vsel %vm2854_vm9, %v8441_v61, %v2851_v28  ;;  %5574 = vrcp.f32 %v8495_v54  ;;  %v3809_v41 = vsub.f32 1.0, %v3808_v11  ;;  %v8530_v22 = vpop.f32.mrf.mxu1 }
 0x23e   : > { %4271 = vst.msk [vmem:[%s6022_s30 + $0x338] sm:$0xff] %vm4167_vm0, %v3805_v46  ;;  %v2860_v36 = vsel %vm8468_vm5, %v2859_v63, %v2855_v26  ;;  %vm8525_vm11 = vcmp.eq.f32.partialorder %v3816_v17, 8.507059e+37  ;;  %v2871_v7 = vand.u32 2147483647, %v8487_v20  ;;  %vm3813_vm12 = vweird.f32 %v8497_v53 }
 0x23f   : > { %4208 = vst.msk [vmem:[%s6022_s30 + $0x140] sm:$0xff] %vm4167_vm0, %v2860_v36  ;;  %v3833_v48 = vand.u32 2147483648, %v8495_v54  ;;  %v8536_v27 = vadd.f32 1.0, %v5571_v55  ;;  %v1681_v34 = vadd.f32 %v8361_v56, %v1352_v6  ;;  %v3810_v30 = vmul.f32 %v8497_v53, %v3809_v41  ;;  %v8551_v56 = vpop.f32.mrf.mxu2  ;;  %vm8574_vm1 = vmor %vm3812_vm10, %vm3813_vm12 }
 0x240   : > { %v3831_v0 = vand.u32 2147483647, %v8495_v54  ;;  %v1194_v1 = vadd.f32 %v8314_v15, %v8363_v51  ;;  %v1354_v47 = vadd.f32 %v8314_v15, %v8397_v37  ;;  %v3819_v61 = vor.u32 1.1754944e-38, %v3818_v39  ;;  %v8585_v43 = vpop.f32.mrf.mxu0 }
 0x241   : > { %v8545_v60 = vpop.eup %5572  ;;  %vm2867_vm13 = vweird.f32 %v8487_v20  ;;  %v8548_v40 = vor.u32 1.1754944e-38, %v2873_v18  ;;  %5576 = vrcp.f32 %v8536_v27  ;;  %v3811_v19 = vadd.f32 %v8497_v53, %v3810_v30 }
 0x242   : > { %v2863_v51 = vmul.f32 %v8545_v60, %v8487_v20  ;;  %vm8556_vm14 = vcmp.eq.f32.partialorder %v2871_v7, 8.507059e+37  ;;  %vm3827_vm15 = vweird.f32 %v8495_v54  ;;  %v8561_v57 = vor.u32 1.1754944e-38, %v3833_v48 }
 0x243   : > { %v1197_v58 = vadd.f32 %v8314_v15, %v8419_v31  ;;  %v8568_v32 = vpop.eup %5574  ;;  %vm2868_vm2 = vweird.f32 %v8545_v60  ;;  %v5044_v44 = vmul.f32 -1.442695, %v1681_v34  ;;  %v1523_v49 = vadd.f32 %v8391_v35, %v1194_v1  ;;  %v8583_v52 = vpop.f32.mrf.mxu3 }
 0x244   : > { %v1683_v31 = vadd.f32 %v8432_v62, %v1354_v47  ;;  %v3815_v9 = vsel %vm8574_vm1, %v8497_v53, %v3811_v19  ;;  %v2864_v10 = vsub.f32 1.0, %v2863_v51  ;;  %v3823_v24 = vmul.f32 %v8568_v32, %v8495_v54  ;;  %vm2869_vm7 = vmor %vm2867_vm13, %vm2868_vm2 }
 0x245   : > { %vm8592_vm3 = vcmp.eq.f32.partialorder %v3831_v0, 8.507059e+37  ;;  %vm2882_vm4 = vweird.f32 %v8536_v27  ;;  %v2886_v62 = vand.u32 2147483647, %v8536_v27  ;;  %v3820_v2 = vsel %vm8525_vm11, %v3819_v61, %v3815_v9  ;;  %v8612_v26 = vpop.f32.mrf.mxu1 }
 0x246   : > { %vm3828_vm5 = vweird.f32 %v8568_v32  ;;  %v2888_v25 = vand.u32 2147483648, %v8536_v27  ;;  %5578 = vpow2.f32 %v5044_v44  ;;  %4272 = vst.msk [vmem:[%s6022_s30 + $0x340] sm:$0xff] %vm4167_vm0, %v3820_v2  ;;  %v2865_v5 = vmul.f32 %v8545_v60, %v2864_v10  ;;  %v5132_v2 = vld [vmem:[%s5839_s18 + $0x1f4] sm:$0xf0] }
 0x247   : > { %v3824_v17 = vsub.f32 1.0, %v3823_v24  ;;  %v4981_v16 = vmul.f32 -1.442695, %v1523_v49  ;;  %v5045_v53 = vmul.f32 -1.442695, %v1683_v31  ;;  %v5577_v28 = vpop.eup %5576  ;;  %v1526_v63 = vadd.f32 %v8455_v50, %v1197_v58  ;;  %vm3829_vm8 = vmor %vm3827_vm15, %vm3828_vm5  ;;  %v8632_v30 = vpop.f32.mrf.mxu2 }
 0x248   : > { %v4605_v6 = vor.u32 %v5130_v21, %v4604_v8  ;;  %v4861_v33 = vor.u32 %v5194_v12, %v4860_v4  ;;  %v4609_v11 = vor.u32 %v5129_v13, %v4606_v38  ;;  %v2866_v39 = vadd.f32 %v8545_v60, %v2865_v5 }
 0x249   : > { %v3825_v55 = vmul.f32 %v8568_v32, %v3824_v17  ;;  %v2878_v46 = vmul.f32 %v5577_v28, %v8536_v27  ;;  %vm2883_vm6 = vweird.f32 %v5577_v28  ;;  %5580 = vpow2.f32 %v4981_v16 }
 0x24a   : > { %v4982_v18 = vmul.f32 -1.442695, %v1526_v63  ;;  %1235 = vmatmul.bf16.gmra.mxu0 %v4605_v6  ;;  %1395 = vmatmul.bf16.gmra.mxu2 %v4861_v33  ;;  %v4865_v50 = vor.u32 %v5193_v3, %v4862_v14  ;;  %v1357_v36 = vadd.f32 %v8314_v15, %v8474_v45  ;;  %v2870_v41 = vsel %vm2869_vm7, %v8545_v60, %v2866_v39  ;;  %vm2884_vm10 = vmor %vm2882_vm4, %vm2883_vm6 }
 0x24b   : > { %v3826_v42 = vadd.f32 %v8568_v32, %v3825_v55  ;;  %v2879_v7 = vsub.f32 1.0, %v2878_v46  ;;  %5582 = vpow2.f32 %v5045_v53  ;;  %1564 = vmatmul.bf16.gmra.mxu1 %v4609_v11  ;;  %v2875_v20 = vsel %vm8556_vm14, %v8548_v40, %v2870_v41  ;;  %v8634_v0 = vpop.f32.mrf.mxu3  ;;  %v8647_v40 = vpop.f32.mrf.mxu0 }
 0x24c   : > { %v5579_v48 = vpop.eup %5578  ;;  %5584 = vpow2.f32 %v4982_v18  ;;  %v1686_v45 = vadd.f32 %v8505_v59, %v1357_v36  ;;  %v1199_v34 = vadd.f32 %v8314_v15, %v8489_v29  ;;  %4209 = vst.msk [vmem:[%s6022_s30 + $0x148] sm:$0xff] %vm4167_vm0, %v2875_v20  ;;  %1724 = vmatmul.bf16.gmra.mxu3 %v4865_v50  ;;  %v1359_v54 = vadd.f32 %v8314_v15, %v8551_v56 }
 0x24d   : > { %v3830_v1 = vsel %vm3829_vm8, %v8568_v32, %v3826_v42  ;;  %v2880_v47 = vmul.f32 %v5577_v28, %v2879_v7  ;;  %v8639_v60 = vadd.f32 1.0, %v5579_v48  ;;  %vm2887_vm9 = vcmp.eq.f32.partialorder %v2886_v62, 8.507059e+37  ;;  %v8667_v49 = vpop.f32.mrf.mxu1 }
 0x24e   : > { %v3835_v59 = vsel %vm8592_vm3, %v8561_v57, %v3830_v1  ;;  %v5046_v29 = vmul.f32 -1.442695, %v1686_v45  ;;  %v1528_v61 = vadd.f32 %v8530_v22, %v1199_v34  ;;  %v2889_v56 = vor.u32 1.1754944e-38, %v2888_v25 }
 0x24f   : > { %4273 = vst.msk [vmem:[%s6022_s30 + $0x348] sm:$0xff] %vm4167_vm0, %v3835_v59  ;;  %v2881_v19 = vadd.f32 %v5577_v28, %v2880_v47  ;;  %5586 = vrcp.f32 %v8639_v60  ;;  %v5581_v51 = vpop.eup %5580  ;;  %v1202_v22 = vadd.f32 %v8314_v15, %v8585_v43  ;;  %v3846_v8 = vand.u32 2147483647, %v8639_v60  ;;  %v8670_v31 = vpop.f32.mrf.mxu2  ;;  %v4612_v43 = vld [vmem:[%s5839_s18 + $0x1f0] sm:$0xf] }
 0x250   : > { %5588 = vpow2.f32 %v5046_v29  ;;  %v4983_v37 = vmul.f32 -1.442695, %v1528_v61  ;;  %v8658_v21 = vadd.f32 1.0, %v5581_v51  ;;  %v1688_v4 = vadd.f32 %v8583_v52, %v1359_v54 }
 0x251   : > { %v5583_v57 = vpop.eup %5582  ;;  %v2885_v58 = vsel %vm2884_vm10, %v5577_v28, %v2881_v19  ;;  %v3848_v27 = vand.u32 2147483648, %v8639_v60  ;;  %vm3842_vm11 = vweird.f32 %v8639_v60  ;;  %vm8677_vm12 = vcmp.eq.f32.partialorder %v3846_v8, 8.507059e+37 }
 0x252   : > { %v5585_v32 = vpop.eup %5584  ;;  %v2890_v23 = vsel %vm2887_vm9, %v2889_v56, %v2885_v58  ;;  %v8662_v44 = vadd.f32 1.0, %v5583_v57  ;;  %5590 = vpow2.f32 %v4983_v37  ;;  %v5047_v52 = vmul.f32 -1.442695, %v1688_v4 }
 0x253   : > { %4210 = vst.msk [vmem:[%s6022_s30 + $0x150] sm:$0xff] %vm4167_vm0, %v2890_v23  ;;  %5592 = vrcp.f32 %v8658_v21  ;;  %v8673_v13 = vadd.f32 1.0, %v5585_v32  ;;  %v3849_v35 = vor.u32 1.1754944e-38, %v3848_v27  ;;  %v2901_v62 = vand.u32 2147483647, %v8658_v21  ;;  %v8684_v25 = vpop.f32.mrf.mxu3  ;;  %v8690_v17 = vpop.f32.mrf.mxu0 }
 0x254   : > { %5594 = vrcp.f32 %v8662_v44  ;;  %v1531_v38 = vadd.f32 %v8612_v26, %v1202_v22  ;;  %v2903_v3 = vand.u32 2147483648, %v8658_v21  ;;  %v3861_v14 = vand.u32 2147483647, %v8662_v44 }
 0x255   : > { %v5587_v12 = vpop.eup %5586  ;;  %v3863_v5 = vand.u32 2147483648, %v8662_v44  ;;  %5596 = vrcp.f32 %v8673_v13  ;;  %vm2897_vm13 = vweird.f32 %v8658_v21  ;;  %vm3857_vm15 = vweird.f32 %v8662_v44  ;;  %v8727_v59 = vpop.f32.mrf.mxu1 }
 0x256   : > { %v5589_v9 = vpop.eup %5588  ;;  %v3838_v10 = vmul.f32 %v5587_v12, %v8639_v60  ;;  %5598 = vpow2.f32 %v5047_v52  ;;  %vm3843_vm14 = vweird.f32 %v5587_v12  ;;  %v2918_v6 = vand.u32 2147483648, %v8673_v13 }
 0x257   : > { %v8693_v28 = vadd.f32 1.0, %v5589_v9  ;;  %v4613_v11 = vor.u32 %v5132_v2, %v4612_v43  ;;  %vm8705_vm1 = vcmp.eq.f32.partialorder %v2901_v62, 8.507059e+37  ;;  %v2916_v18 = vand.u32 2147483647, %v8673_v13  ;;  %vm3844_vm4 = vmor %vm3842_vm11, %vm3843_vm14  ;;  %v5196_v43 = vld [vmem:[%s5839_s18 + $0x3f4] sm:$0xf0] }
 0x258   : > { %v5591_v16 = vpop.eup %5590  ;;  %v3839_v53 = vsub.f32 1.0, %v3838_v10  ;;  %v2904_v50 = vor.u32 1.1754944e-38, %v2903_v3  ;;  %vm8713_vm2 = vcmp.eq.f32.partialorder %v3861_v14, 8.507059e+37  ;;  %v3864_v42 = vor.u32 1.1754944e-38, %v3863_v5  ;;  %v5131_v62 = vld [vmem:[%s5839_s18 + $0x1f4] sm:$0xf] }
 0x259   : > { %v8695_v63 = vpop.eup %5592  ;;  %v8699_v33 = vadd.f32 1.0, %v5591_v16  ;;  %5600 = vrcp.f32 %v8693_v28  ;;  %vm2912_vm3 = vweird.f32 %v8673_v13  ;;  %v8719_v20 = vpop.f32.mrf.mxu2  ;;  %v2919_v1 = vor.u32 1.1754944e-38, %v2918_v6  ;;  %v4870_v16 = vld [vmem:[%s5839_s18 + $0x3f8] sm:$0xf0] }
 0x25a   : > { %v8701_v39 = vpop.eup %5594  ;;  %v3840_v55 = vmul.f32 %v5587_v12, %v3839_v53  ;;  %v2893_v46 = vmul.f32 %v8695_v63, %v8658_v21  ;;  %1240 = vmatmul.bf16.gmra.mxu0 %v4613_v11  ;;  %v3876_v47 = vand.u32 2147483647, %v8693_v28  ;;  %v4984_v54 = vmul.f32 -1.442695, %v1531_v38  ;;  %v4868_v21 = vld [vmem:[%s5839_s18 + $0x3f0] sm:$0xf] }
 0x25b   : > { %v3853_v36 = vmul.f32 %v8701_v39, %v8662_v44  ;;  %5602 = vrcp.f32 %v8699_v33  ;;  %v8721_v45 = vpop.eup %5596  ;;  %vm2898_vm5 = vweird.f32 %v8695_v63  ;;  %vm8733_vm6 = vcmp.eq.f32.partialorder %v2916_v18, 8.507059e+37  ;;  %v8750_v32 = vpop.f32.mrf.mxu3  ;;  %v4614_v38 = vld [vmem:[%s5839_s18 + $0x1f8] sm:$0xf0]  ;;  %v5195_v44 = vld [vmem:[%s5839_s18 + $0x3f4] sm:$0xf] }
 0x25c   : > { %v3841_v7 = vadd.f32 %v5587_v12, %v3840_v55  ;;  %v2894_v48 = vsub.f32 1.0, %v2893_v46  ;;  %v5599_v29 = vpop.eup %5598  ;;  %v2908_v51 = vmul.f32 %v8721_v45, %v8673_v13  ;;  %vm3858_vm7 = vweird.f32 %v8701_v39  ;;  %vm8754_vm9 = vmor %vm2897_vm13, %vm2898_vm5  ;;  %v8768_v9 = vpop.f32.mrf.mxu0 }
 0x25d   : > { %v3854_v34 = vsub.f32 1.0, %v3853_v36  ;;  %vm3872_vm8 = vweird.f32 %v8693_v28  ;;  %v3878_v8 = vand.u32 2147483648, %v8693_v28  ;;  %v8748_v4 = vadd.f32 1.0, %v5599_v29 }
 0x25e   : > { %v3845_v61 = vsel %vm3844_vm4, %v5587_v12, %v3841_v7  ;;  %v2895_v19 = vmul.f32 %v8695_v63, %v2894_v48  ;;  %v2909_v58 = vsub.f32 1.0, %v2908_v51  ;;  %vm8761_vm10 = vcmp.eq.f32.partialorder %v3876_v47, 8.507059e+37 }
 0x25f   : > { %v3850_v56 = vsel %vm8677_vm12, %v3849_v35, %v3845_v61  ;;  %v3855_v37 = vmul.f32 %v8701_v39, %v3854_v34  ;;  %v8742_v22 = vpop.eup %5600  ;;  %vm2927_vm11 = vweird.f32 %v8699_v33  ;;  %5604 = vpow2.f32 %v4984_v54  ;;  %vm3859_vm12 = vmor %vm3857_vm15, %vm3858_vm7  ;;  %v1537_v34 = vpop.f32.mrf.mxu1 }
 0x260   : > { %4274 = vst.msk [vmem:[%s6022_s30 + $0x350] sm:$0xff] %vm4167_vm0, %v3850_v56  ;;  %v2896_v57 = vadd.f32 %v8695_v63, %v2895_v19  ;;  %v3868_v12 = vmul.f32 %v8742_v22, %v8693_v28  ;;  %v2910_v35 = vmul.f32 %v8721_v45, %v2909_v58  ;;  %vm2913_vm13 = vweird.f32 %v8721_v45 }
 0x261   : > { %v3856_v27 = vadd.f32 %v8701_v39, %v3855_v37  ;;  %v8770_v10 = vpop.eup %5602  ;;  %5606 = vrcp.f32 %v8748_v4  ;;  %v3879_v6 = vor.u32 1.1754944e-38, %v3878_v8  ;;  %v2931_v11 = vand.u32 2147483647, %v8699_v33  ;;  %v1368_v55 = vpop.f32.mrf.mxu2  ;;  %vm2914_vm14 = vmor %vm2912_vm3, %vm2913_vm13 }
 0x262   : > { %v2900_v24 = vsel %vm8754_vm9, %v8695_v63, %v2896_v57  ;;  %v3869_v14 = vsub.f32 1.0, %v3868_v12  ;;  %v2923_v5 = vmul.f32 %v8770_v10, %v8699_v33  ;;  %v2911_v63 = vadd.f32 %v8721_v45, %v2910_v35 }
 0x263   : > { %v2905_v2 = vsel %vm8705_vm1, %v2904_v50, %v2900_v24  ;;  %v3860_v3 = vsel %vm3859_vm12, %v8701_v39, %v3856_v27  ;;  %vm3873_vm15 = vweird.f32 %v8742_v22  ;;  %v2933_v26 = vand.u32 2147483648, %v8699_v33 }
 0x264   : > { %4211 = vst.msk [vmem:[%s6022_s30 + $0x158] sm:$0xff] %vm4167_vm0, %v2905_v2  ;;  %v3865_v53 = vsel %vm8713_vm2, %v3864_v42, %v3860_v3  ;;  %v3870_v39 = vmul.f32 %v8742_v22, %v3869_v14  ;;  %v2924_v46 = vsub.f32 1.0, %v2923_v5  ;;  %v2915_v18 = vsel %vm2914_vm14, %v8721_v45, %v2911_v63  ;;  %vm3874_vm2 = vmor %vm3872_vm8, %vm3873_vm15 }
 0x265   : > { %4275 = vst.msk [vmem:[%s6022_s30 + $0x358] sm:$0xff] %vm4167_vm0, %v3865_v53  ;;  %v4869_v50 = vor.u32 %v5196_v43, %v4868_v21  ;;  %v4617_v36 = vor.u32 %v5131_v62, %v4614_v38  ;;  %v4873_v41 = vor.u32 %v5195_v44, %v4870_v16  ;;  %v5605_v42 = vpop.eup %5604  ;;  %v2920_v7 = vsel %vm8733_vm6, %v2919_v1, %v2915_v18  ;;  %v1211_v57 = vpop.f32.mrf.mxu0 }
 0x266   : > { %v3871_v13 = vadd.f32 %v8742_v22, %v3870_v39  ;;  %v2925_v48 = vmul.f32 %v8770_v10, %v2924_v46  ;;  %vm2928_vm1 = vweird.f32 %v8770_v10  ;;  %4212 = vst.msk [vmem:[%s6022_s30 + $0x160] sm:$0xff] %vm4167_vm0, %v2920_v7  ;;  %v3893_v45 = vand.u32 2147483648, %v8748_v4 }
 0x267   : > { %v5607_v47 = vpop.eup %5606  ;;  %v8819_v54 = vadd.f32 1.0, %v5605_v42  ;;  %1400 = vmatmul.bf16.gmra.mxu2 %v4869_v50  ;;  %1569 = vmatmul.bf16.gmra.mxu1 %v4617_v36  ;;  %v1362_v1 = vadd.f32 %v8314_v15, %v8632_v30  ;;  %v1204_v29 = vadd.f32 %v8314_v15, %v8647_v40  ;;  %vm2932_vm3 = vcmp.eq.f32.partialorder %v2931_v11, 8.507059e+37  ;;  %vm2929_vm4 = vmor %vm2927_vm11, %vm2928_vm1  ;;  %v1697_v40 = vpop.f32.mrf.mxu3 }
 0x268   : > { %v3875_v61 = vsel %vm3874_vm2, %v8742_v22, %v3871_v13  ;;  %v2926_v19 = vadd.f32 %v8770_v10, %v2925_v48  ;;  %v3883_v28 = vmul.f32 %v5607_v47, %v8748_v4  ;;  %1729 = vmatmul.bf16.gmra.mxu3 %v4873_v41  ;;  %v2934_v30 = vor.u32 1.1754944e-38, %v2933_v26  ;;  %v1540_v3 = vpop.f32.mrf.mxu1 }
 0x269   : > { %v3880_v51 = vsel %vm8761_vm10, %v3879_v6, %v3875_v61  ;;  %vm3887_vm5 = vweird.f32 %v8748_v4  ;;  %5608 = vrcp.f32 %v8819_v54  ;;  %v3891_v37 = vand.u32 2147483647, %v8748_v4 }
 0x26a   : > { %4276 = vst.msk [vmem:[%s6022_s30 + $0x360] sm:$0xff] %vm4167_vm0, %v3880_v51  ;;  %v2930_v60 = vsel %vm2929_vm4, %v8770_v10, %v2926_v19  ;;  %v3884_v56 = vsub.f32 1.0, %v3883_v28  ;;  %v1691_v22 = vadd.f32 %v8634_v0, %v1362_v1  ;;  %v3894_v33 = vor.u32 1.1754944e-38, %v3893_v45 }
 0x26b   : > { %v2935_v58 = vsel %vm2932_vm3, %v2934_v30, %v2930_v60  ;;  %v1533_v8 = vadd.f32 %v8667_v49, %v1204_v29  ;;  %v1364_v23 = vadd.f32 %v8314_v15, %v8670_v31  ;;  %vm3888_vm6 = vweird.f32 %v5607_v47  ;;  %v1371_v10 = vpop.f32.mrf.mxu2 }
 0x26c   : > { %4213 = vst.msk [vmem:[%s6022_s30 + $0x168] sm:$0xff] %vm4167_vm0, %v2935_v58  ;;  %v3885_v27 = vmul.f32 %v5607_v47, %v3884_v56  ;;  %v5048_v12 = vmul.f32 -1.442695, %v1691_v22  ;;  %v1207_v52 = vadd.f32 %v8314_v15, %v8690_v17  ;;  %v1367_v0 = vadd.f32 %v8314_v15, %v8719_v20  ;;  %vm3889_vm7 = vmor %vm3887_vm5, %vm3888_vm6 }
 0x26d   : > { %v4985_v21 = vmul.f32 -1.442695, %v1533_v8  ;;  %v1693_v43 = vadd.f32 %v8684_v25, %v1364_v23  ;;  %v1209_v49 = vadd.f32 %v8314_v15, %v8768_v9  ;;  %v1369_v35 = vadd.f32 %v8314_v15, %v1368_v55  ;;  %v1213_v39 = vpop.f32.mrf.mxu0 }
 0x26e   : > { %v3886_v24 = vadd.f32 %v5607_v47, %v3885_v27  ;;  %5610 = vpow2.f32 %v5048_v12  ;;  %v1536_v31 = vadd.f32 %v8727_v59, %v1207_v52  ;;  %v1696_v17 = vadd.f32 %v8750_v32, %v1367_v0 }
 0x26f   : > { %v5609_v62 = vpop.eup %5608  ;;  %5612 = vpow2.f32 %v4985_v21  ;;  %v5049_v25 = vmul.f32 -1.442695, %v1693_v43  ;;  %v1538_v20 = vadd.f32 %v1537_v34, %v1209_v49  ;;  %vm3892_vm8 = vcmp.eq.f32.partialorder %v3891_v37, 8.507059e+37  ;;  %v1700_v63 = vpop.f32.mrf.mxu3 }
 0x270   : > { %v3890_v38 = vsel %vm3889_vm7, %v5607_v47, %v3886_v24  ;;  %v2938_v9 = vmul.f32 %v5609_v62, %v8819_v54  ;;  %v4986_v2 = vmul.f32 -1.442695, %v1536_v31  ;;  %v5050_v59 = vmul.f32 -1.442695, %v1696_v17  ;;  %v1542_v30 = vpop.f32.mrf.mxu1 }
 0x271   : > { %v3895_v14 = vsel %vm3892_vm8, %v3894_v33, %v3890_v38  ;;  %5614 = vpow2.f32 %v5049_v25  ;;  %v4987_v5 = vmul.f32 -1.442695, %v1538_v20  ;;  %v1698_v4 = vadd.f32 %v1697_v40, %v1369_v35 }
 0x272   : > { %4277 = vst.msk [vmem:[%s6022_s30 + $0x368] sm:$0xff] %vm4167_vm0, %v3895_v14  ;;  %v2939_v44 = vsub.f32 1.0, %v2938_v9  ;;  %5616 = vpow2.f32 %v4986_v2  ;;  %v1212_v16 = vadd.f32 %v8314_v15, %v1211_v57  ;;  %vm2942_vm9 = vweird.f32 %v8819_v54 }
 0x273   : > { %v2946_v32 = vand.u32 2147483647, %v8819_v54  ;;  %v2948_v53 = vand.u32 2147483648, %v8819_v54  ;;  %5618 = vpow2.f32 %v5050_v59  ;;  %vm2943_vm10 = vweird.f32 %v5609_v62  ;;  %v1373_v48 = vpop.f32.mrf.mxu2 }
 0x274   : > { %v5611_v6 = vpop.eup %5610  ;;  %v2940_v11 = vmul.f32 %v5609_v62, %v2939_v44  ;;  %5620 = vpow2.f32 %v4987_v5  ;;  %v1541_v55 = vadd.f32 %v1540_v3, %v1212_v16  ;;  %v5051_v18 = vmul.f32 -1.442695, %v1698_v4  ;;  %vm2944_vm11 = vmor %vm2942_vm9, %vm2943_vm10 }
 0x275   : > { %v5613_v46 = vpop.eup %5612  ;;  %v8865_v26 = vadd.f32 1.0, %v5611_v6  ;;  %v2949_v42 = vor.u32 1.1754944e-38, %v2948_v53  ;;  %v1372_v13 = vadd.f32 %v8314_v15, %v1371_v10  ;;  %vm2947_vm12 = vcmp.eq.f32.partialorder %v2946_v32, 8.507059e+37  ;;  %v8906_v21 = vpop.f32.mrf.mxu0 }
 0x276   : > { %v2941_v50 = vadd.f32 %v5609_v62, %v2940_v11  ;;  %v8867_v36 = vadd.f32 1.0, %v5613_v46  ;;  %v4988_v7 = vmul.f32 -1.442695, %v1541_v55  ;;  %v1214_v45 = vadd.f32 %v8314_v15, %v1213_v39 }
 0x277   : > { %v5615_v41 = vpop.eup %5614  ;;  %5622 = vrcp.f32 %v8865_v26  ;;  %v3906_v61 = vand.u32 2147483647, %v8865_v26  ;;  %v3908_v19 = vand.u32 2147483648, %v8865_v26  ;;  %v1701_v56 = vadd.f32 %v1700_v63, %v1372_v13  ;;  %v8898_v8 = vpop.f32.mrf.mxu3 }
 0x278   : > { %v5617_v34 = vpop.eup %5616  ;;  %v2945_v47 = vsel %vm2944_vm11, %v5609_v62, %v2941_v50  ;;  %5624 = vrcp.f32 %v8867_v36  ;;  %v8879_v28 = vadd.f32 1.0, %v5615_v41  ;;  %v2961_v40 = vand.u32 2147483647, %v8867_v36  ;;  %v8935_v55 = vpop.f32.mrf.mxu1 }
 0x279   : > { %v5619_v1 = vpop.eup %5618  ;;  %v2950_v29 = vsel %vm2947_vm12, %v2949_v42, %v2945_v47  ;;  %5626 = vpow2.f32 %v5051_v18  ;;  %v8881_v51 = vadd.f32 1.0, %v5617_v34  ;;  %v2963_v60 = vand.u32 2147483648, %v8867_v36 }
 0x27a   : > { %v5621_v54 = vpop.eup %5620  ;;  %4214 = vst.msk [vmem:[%s6022_s30 + $0x170] sm:$0xff] %vm4167_vm0, %v2950_v29  ;;  %5628 = vpow2.f32 %v4988_v7  ;;  %v8886_v37 = vadd.f32 1.0, %v5619_v1  ;;  %v8888_v22 = vadd.f32 %v1542_v30, %v1214_v45  ;;  %v8891_v57 = vadd.f32 %v8314_v15, %v1373_v48 }
 0x27b   : > { %5630 = vrcp.f32 %v8879_v28  ;;  %vm3902_vm13 = vweird.f32 %v8865_v26  ;;  %vm2957_vm14 = vweird.f32 %v8867_v36  ;;  %v8896_v33 = vadd.f32 1.0, %v5621_v54  ;;  %v8920_v38 = vpop.f32.mrf.mxu2 }
 0x27c   : > { %5632 = vrcp.f32 %v8881_v51  ;;  %vm8901_vm15 = vcmp.eq.f32.partialorder %v3906_v61, 8.507059e+37  ;;  %v3909_v15 = vor.u32 1.1754944e-38, %v3908_v19  ;;  %v3923_v52 = vand.u32 2147483648, %v8879_v28 }
 0x27d   : > { %v5623_v58 = vpop.eup %5622  ;;  %vm8909_vm1 = vcmp.eq.f32.partialorder %v2961_v40, 8.507059e+37  ;;  %v2964_v10 = vor.u32 1.1754944e-38, %v2963_v60  ;;  %v3921_v24 = vand.u32 2147483647, %v8879_v28  ;;  %v2978_v31 = vand.u32 2147483648, %v8881_v51  ;;  %v8963_v61 = vpop.f32.mrf.mxu0 }
 0x27e   : > { %v5625_v23 = vpop.eup %5624  ;;  %v3898_v27 = vmul.f32 %v5623_v58, %v8865_v26  ;;  %v2976_v62 = vand.u32 2147483647, %v8881_v51  ;;  %5634 = vrcp.f32 %v8886_v37  ;;  %v5052_v25 = vmul.f32 -1.442695, %v1701_v56 }
 0x27f   : > { %v5627_v43 = vpop.eup %5626  ;;  %v2953_v0 = vmul.f32 %v5625_v23, %v8867_v36  ;;  %vm3917_vm2 = vweird.f32 %v8879_v28  ;;  %vm2972_vm3 = vweird.f32 %v8881_v51  ;;  %5636 = vrcp.f32 %v8896_v33  ;;  %v8956_v36 = vpop.f32.mrf.mxu3 }
 0x280   : > { %v3899_v35 = vsub.f32 1.0, %v3898_v27  ;;  %v5629_v17 = vpop.eup %5628  ;;  %vm3903_vm4 = vweird.f32 %v5623_v58  ;;  %vm2958_vm5 = vweird.f32 %v5625_v23  ;;  %v3924_v3 = vor.u32 1.1754944e-38, %v3923_v52 }
 0x281   : > { %v2954_v20 = vsub.f32 1.0, %v2953_v0  ;;  %v5631_v9 = vpop.eup %5630  ;;  %vm8923_vm6 = vcmp.eq.f32.partialorder %v3921_v24, 8.507059e+37  ;;  %v2979_v4 = vor.u32 1.1754944e-38, %v2978_v31  ;;  %v3936_v16 = vand.u32 2147483647, %v8886_v37  ;;  %vm3904_vm8 = vmor %vm3902_vm13, %vm3903_vm4 }
 0x282   : > { %v3900_v2 = vmul.f32 %v5623_v58, %v3899_v35  ;;  %v5633_v14 = vpop.eup %5632  ;;  %v3913_v5 = vmul.f32 %v5631_v9, %v8879_v28  ;;  %vm8929_vm7 = vcmp.eq.f32.partialorder %v2976_v62, 8.507059e+37  ;;  %v3938_v6 = vand.u32 2147483648, %v8886_v37  ;;  %vm2959_vm11 = vmor %vm2957_vm14, %vm2958_vm5 }
 0x283   : > { %v2955_v59 = vmul.f32 %v5625_v23, %v2954_v20  ;;  %v2968_v53 = vmul.f32 %v5633_v14, %v8881_v51  ;;  %v2991_v11 = vand.u32 2147483647, %v8896_v33  ;;  %vm3918_vm9 = vweird.f32 %v5631_v9 }
 0x284   : > { %v3901_v32 = vadd.f32 %v5623_v58, %v3900_v2  ;;  %v3914_v46 = vsub.f32 1.0, %v3913_v5  ;;  %vm3932_vm10 = vweird.f32 %v8886_v37  ;;  %v8941_v18 = vadd.f32 1.0, %v5627_v43  ;;  %v5635_v50 = vpop.eup %5634  ;;  %v9009_v5 = vld [vmem:[%s9449_s2] ss:$0 sm:$0xff] }
 0x285   : > { %v2956_v39 = vadd.f32 %v5625_v23, %v2955_v59  ;;  %v2969_v42 = vsub.f32 1.0, %v2968_v53  ;;  %vm2987_vm12 = vweird.f32 %v8896_v33  ;;  %v8947_v26 = vadd.f32 1.0, %v5629_v17  ;;  %v5637_v7 = vpop.eup %5636 }
 0x286   : > { %v3905_v41 = vsel %vm3904_vm8, %v5623_v58, %v3901_v32  ;;  %5638 = vpow2.f32 %v5052_v25  ;;  %v3915_v34 = vmul.f32 %v5631_v9, %v3914_v46  ;;  %v3928_v47 = vmul.f32 %v5635_v50, %v8886_v37  ;;  %v1547_v25 = vpop.f32.mrf.mxu1 }
 0x287   : > { %v3910_v13 = vsel %vm8901_vm15, %v3909_v15, %v3905_v41  ;;  %v2960_v48 = vsel %vm2959_vm11, %v5625_v23, %v2956_v39  ;;  %vm8952_vm13 = vcmp.eq.f32.partialorder %v3936_v16, 8.507059e+37  ;;  %v2970_v29 = vmul.f32 %v5633_v14, %v2969_v42  ;;  %vm3919_vm15 = vmor %vm3917_vm2, %vm3918_vm9  ;;  %v8979_v15 = vpop.f32.mrf.mxu2 }
 0x288   : > { %4278 = vst.msk [vmem:[%s6022_s30 + $0x370] sm:$0xff] %vm4167_vm0, %v3910_v13  ;;  %v2965_v1 = vsel %vm8909_vm1, %v2964_v10, %v2960_v48  ;;  %vm2973_vm14 = vweird.f32 %v5633_v14  ;;  %v2983_v54 = vmul.f32 %v5637_v7, %v8896_v33  ;;  %v3916_v19 = vadd.f32 %v5631_v9, %v3915_v34 }
 0x289   : > { %4215 = vst.msk [vmem:[%s6022_s30 + $0x178] sm:$0xff] %vm4167_vm0, %v2965_v1  ;;  %v3929_v30 = vsub.f32 1.0, %v3928_v47  ;;  %v2993_v40 = vand.u32 2147483648, %v8896_v33  ;;  %5640 = vrcp.f32 %v8941_v18  ;;  %v2971_v60 = vadd.f32 %v5633_v14, %v2970_v29  ;;  %vm2974_vm4 = vmor %vm2972_vm3, %vm2973_vm14 }
 0x28a   : > { %v3939_v56 = vor.u32 1.1754944e-38, %v3938_v6  ;;  %v2984_v58 = vsub.f32 1.0, %v2983_v54  ;;  %vm8972_vm1 = vcmp.eq.f32.partialorder %v2991_v11, 8.507059e+37  ;;  %v3920_v27 = vsel %vm3919_vm15, %v5631_v9, %v3916_v19 }
 0x28b   : > { %v3930_v12 = vmul.f32 %v5635_v50, %v3929_v30  ;;  %vm3933_vm5 = vweird.f32 %v5635_v50  ;;  %5642 = vrcp.f32 %v8947_v26  ;;  %v3925_v52 = vsel %vm8923_vm6, %v3924_v3, %v3920_v27 }
 0x28c   : > { %v5639_v28 = vpop.eup %5638  ;;  %v2975_v43 = vsel %vm2974_vm4, %v5633_v14, %v2971_v60  ;;  %v2985_v0 = vmul.f32 %v5637_v7, %v2984_v58  ;;  %vm2988_vm2 = vweird.f32 %v5637_v7  ;;  %4279 = vst.msk [vmem:[%s6022_s30 + $0x378] sm:$0xff] %vm4167_vm0, %v3925_v52  ;;  %v2994_v10 = vor.u32 1.1754944e-38, %v2993_v40  ;;  %vm3934_vm3 = vmor %vm3932_vm10, %vm3933_vm5  ;;  %v1221_v53 = vpop.f32.mrf.mxu0 }
 0x28d   : > { %v2980_v51 = vsel %vm8929_vm7, %v2979_v4, %v2975_v43  ;;  %v3931_v49 = vadd.f32 %v5635_v50, %v3930_v12  ;;  %v3951_v24 = vand.u32 2147483647, %v8941_v18  ;;  %vm3947_vm6 = vweird.f32 %v8941_v18  ;;  %vm2989_vm7 = vmor %vm2987_vm12, %vm2988_vm2  ;;  %v1707_v4 = vpop.f32.mrf.mxu3 }
 0x28e   : > { %4216 = vst.msk [vmem:[%s6022_s30 + $0x180] sm:$0xff] %vm4167_vm0, %v2980_v51  ;;  %v2986_v31 = vadd.f32 %v5637_v7, %v2985_v0  ;;  %v3953_v35 = vand.u32 2147483648, %v8941_v18  ;;  %v8994_v62 = vadd.f32 1.0, %v5639_v28  ;;  %v3006_v9 = vand.u32 2147483647, %v8947_v26  ;;  %v1550_v30 = vpop.f32.mrf.mxu1 }
 0x28f   : > { %v5641_v17 = vpop.eup %5640  ;;  %v3935_v20 = vsel %vm3934_vm3, %v5635_v50, %v3931_v49  ;;  %v4989_v37 = vmul.f32 -1.442695, %v8888_v22  ;;  %v1703_v2 = vadd.f32 %v8898_v8, %v8891_v57  ;;  %v1217_v33 = vadd.f32 %v9009_v5, %v8906_v21 }
 0x290   : > { %v3940_v3 = vsel %vm8952_vm13, %v3939_v56, %v3935_v20  ;;  %v2990_v14 = vsel %vm2989_vm7, %v5637_v7, %v2986_v31  ;;  %v3943_v59 = vmul.f32 %v5641_v17, %v8941_v18  ;;  %vm9017_vm8 = vcmp.eq.f32.partialorder %v3951_v24, 8.507059e+37 }
 0x291   : > { %v5643_v44 = vpop.eup %5642  ;;  %4280 = vst.msk [vmem:[%s6022_s30 + $0x380] sm:$0xff] %vm4167_vm0, %v3940_v3  ;;  %v2995_v22 = vsel %vm8972_vm1, %v2994_v10, %v2990_v14  ;;  %v3008_v8 = vand.u32 2147483648, %v8947_v26  ;;  %5644 = vrcp.f32 %v8994_v62  ;;  %v3954_v32 = vor.u32 1.1754944e-38, %v3953_v35 }
 0x292   : > { %4217 = vst.msk [vmem:[%s6022_s30 + $0x188] sm:$0xff] %vm4167_vm0, %v2995_v22  ;;  %v3944_v16 = vsub.f32 1.0, %v3943_v59  ;;  %v2998_v21 = vmul.f32 %v5643_v44, %v8947_v26  ;;  %vm3002_vm9 = vweird.f32 %v8947_v26  ;;  %vm3948_vm10 = vweird.f32 %v5641_v17 }
 0x293   : > { %vm9027_vm11 = vcmp.eq.f32.partialorder %v3006_v9, 8.507059e+37  ;;  %5646 = vpow2.f32 %v4989_v37  ;;  %v5053_v6 = vmul.f32 -1.442695, %v1703_v2  ;;  %v1546_v46 = vadd.f32 %v8935_v55, %v1217_v33  ;;  %v1381_v7 = vpop.f32.mrf.mxu2  ;;  %vm3949_vm13 = vmor %vm3947_vm6, %vm3948_vm10 }
 0x294   : > { %v3945_v11 = vmul.f32 %v5641_v17, %v3944_v16  ;;  %v2999_v39 = vsub.f32 1.0, %v2998_v21  ;;  %v1377_v50 = vadd.f32 %v9009_v5, %v8920_v38  ;;  %vm3003_vm12 = vweird.f32 %v5643_v44  ;;  %v1223_v49 = vpop.f32.mrf.mxu0 }
 0x295   : > { %v3009_v41 = vor.u32 1.1754944e-38, %v3008_v8  ;;  %5648 = vpow2.f32 %v5053_v6  ;;  %v1219_v42 = vadd.f32 %v9009_v5, %v8963_v61  ;;  %v4990_v34 = vmul.f32 -1.442695, %v1546_v46  ;;  %vm3004_vm14 = vmor %vm3002_vm9, %vm3003_vm12  ;;  %v1710_v43 = vpop.f32.mrf.mxu3 }
 0x296   : > { %v3946_v13 = vadd.f32 %v5641_v17, %v3945_v11  ;;  %v3000_v48 = vmul.f32 %v5643_v44, %v2999_v39  ;;  %v1706_v47 = vadd.f32 %v8956_v36, %v1377_v50  ;;  %v3966_v38 = vand.u32 2147483647, %v8994_v62  ;;  %v1552_v22 = vpop.f32.mrf.mxu1 }
 0x297   : > { %v5645_v45 = vpop.eup %5644  ;;  %v1548_v55 = vadd.f32 %v1547_v25, %v1219_v42  ;;  %v1379_v1 = vadd.f32 %v9009_v5, %v8979_v15  ;;  %v1222_v29 = vadd.f32 %v9009_v5, %v1221_v53  ;;  %v1382_v36 = vadd.f32 %v9009_v5, %v1381_v7 }
 0x298   : > { %v3950_v54 = vsel %vm3949_vm13, %v5641_v17, %v3946_v13  ;;  %v3001_v61 = vadd.f32 %v5643_v44, %v3000_v48  ;;  %v3958_v19 = vmul.f32 %v5645_v45, %v8994_v62  ;;  %5650 = vpow2.f32 %v4990_v34 }
 0x299   : > { %v5647_v40 = vpop.eup %5646  ;;  %v3955_v18 = vsel %vm9017_vm8, %v3954_v32, %v3950_v54  ;;  %v5054_v60 = vmul.f32 -1.442695, %v1706_v47  ;;  %v4991_v56 = vmul.f32 -1.442695, %v1548_v55  ;;  %v1708_v12 = vadd.f32 %v1707_v4, %v1379_v1 }
 0x29a   : > { %4281 = vst.msk [vmem:[%s6022_s30 + $0x388] sm:$0xff] %vm4167_vm0, %v3955_v18  ;;  %v3005_v58 = vsel %vm3004_vm14, %v5643_v44, %v3001_v61  ;;  %v3959_v23 = vsub.f32 1.0, %v3958_v19  ;;  %v9053_v27 = vadd.f32 1.0, %v5647_v40  ;;  %v3968_v52 = vand.u32 2147483648, %v8994_v62 }
 0x29b   : > { %v5649_v15 = vpop.eup %5648  ;;  %v3010_v28 = vsel %vm9027_vm11, %v3009_v41, %v3005_v58  ;;  %5652 = vpow2.f32 %v5054_v60  ;;  %v1551_v26 = vadd.f32 %v1550_v30, %v1222_v29  ;;  %vm3963_vm15 = vweird.f32 %v5645_v45  ;;  %v9066_v9 = vpop.f32.mrf.mxu2 }
 0x29c   : > { %4218 = vst.msk [vmem:[%s6022_s30 + $0x190] sm:$0xff] %vm4167_vm0, %v3010_v28  ;;  %v3960_v0 = vmul.f32 %v5645_v45, %v3959_v23  ;;  %5654 = vrcp.f32 %v9053_v27  ;;  %v1711_v51 = vadd.f32 %v1710_v43, %v1382_v36  ;;  %v9061_v10 = vadd.f32 1.0, %v5649_v15 }
 0x29d   : > { %5656 = vpow2.f32 %v4991_v56  ;;  %v5055_v24 = vmul.f32 -1.442695, %v1708_v12  ;;  %vm3962_vm1 = vweird.f32 %v8994_v62  ;;  %v3969_v25 = vor.u32 1.1754944e-38, %v3968_v52  ;;  %v9090_v46 = vpop.f32.mrf.mxu3 }
 0x29e   : > { %v3961_v31 = vadd.f32 %v5645_v45, %v3960_v0  ;;  %v5651_v35 = vpop.eup %5650  ;;  %vm3964_vm4 = vmor %vm3962_vm1, %vm3963_vm15  ;;  %v3021_v17 = vand.u32 2147483647, %v9053_v27  ;;  %5658 = vrcp.f32 %v9061_v10  ;;  %v4992_v20 = vmul.f32 -1.442695, %v1551_v26  ;;  %v9098_v7 = vpop.f32.mrf.mxu0 }
 0x29f   : > { %vm3967_vm5 = vcmp.eq.f32.partialorder %v3966_v38, 8.507059e+37  ;;  %v9068_v2 = vadd.f32 1.0, %v5651_v35  ;;  %v5056_v3 = vmul.f32 -1.442695, %v1711_v51  ;;  %5660 = vpow2.f32 %v5055_v24  ;;  %v9128_v0 = vpop.f32.mrf.mxu1 }
 0x2a0   : > { %v3965_v37 = vsel %vm3964_vm4, %v5645_v45, %v3961_v31  ;;  %vm3017_vm2 = vweird.f32 %v9053_v27  ;;  %v3023_v33 = vand.u32 2147483648, %v9053_v27  ;;  %v3981_v44 = vand.u32 2147483647, %v9061_v10 }
 0x2a1   : > { %v5653_v14 = vpop.eup %5652  ;;  %v3970_v59 = vsel %vm3967_vm5, %v3969_v25, %v3965_v37  ;;  %5662 = vrcp.f32 %v9068_v2  ;;  %vm9077_vm3 = vcmp.eq.f32.partialorder %v3021_v17, 8.507059e+37  ;;  %v3983_v32 = vand.u32 2147483648, %v9061_v10 }
 0x2a2   : > { %v5655_v62 = vpop.eup %5654  ;;  %4282 = vst.msk [vmem:[%s6022_s30 + $0x390] sm:$0xff] %vm4167_vm0, %v3970_v59  ;;  %v9081_v16 = vadd.f32 1.0, %v5653_v14  ;;  %5664 = vpow2.f32 %v4992_v20  ;;  %v1224_v53 = vadd.f32 %v9009_v5, %v1223_v49  ;;  %v3036_v11 = vand.u32 2147483647, %v9068_v2 }
 0x2a3   : > { %v5657_v57 = vpop.eup %5656  ;;  %v3013_v8 = vmul.f32 %v5655_v62, %v9053_v27  ;;  %5666 = vpow2.f32 %v5056_v3  ;;  %v3038_v39 = vand.u32 2147483648, %v9068_v2  ;;  %v3024_v50 = vor.u32 1.1754944e-38, %v3023_v33 }
 0x2a4   : > { %v9084_v21 = vadd.f32 1.0, %v5657_v57  ;;  %v5659_v63 = vpop.eup %5658  ;;  %5668 = vrcp.f32 %v9081_v16  ;;  %vm3977_vm6 = vweird.f32 %v9061_v10  ;;  %vm9094_vm7 = vcmp.eq.f32.partialorder %v3981_v44, 8.507059e+37  ;;  %v9109_v36 = vpop.f32.mrf.mxu2 }
 0x2a5   : > { %v3014_v6 = vsub.f32 1.0, %v3013_v8  ;;  %v3973_v41 = vmul.f32 %v5659_v63, %v9061_v10  ;;  %v5661_v13 = vpop.eup %5660  ;;  %vm3018_vm8 = vweird.f32 %v5655_v62  ;;  %v3998_v34 = vand.u32 2147483648, %v9081_v16 }
 0x2a6   : > { %5670 = vrcp.f32 %v9084_v21  ;;  %v3984_v38 = vor.u32 1.1754944e-38, %v3983_v32  ;;  %vm3032_vm9 = vweird.f32 %v9068_v2  ;;  %v3996_v55 = vand.u32 2147483647, %v9081_v16  ;;  %vm3019_vm11 = vmor %vm3017_vm2, %vm3018_vm8  ;;  %v1228_v44 = vpop.f32.mrf.mxu0 }
 0x2a7   : > { %v3015_v48 = vmul.f32 %v5655_v62, %v3014_v6  ;;  %v5663_v47 = vpop.eup %5662  ;;  %v3974_v45 = vsub.f32 1.0, %v3973_v41  ;;  %vm9105_vm10 = vcmp.eq.f32.partialorder %v3036_v11, 8.507059e+37  ;;  %v3039_v19 = vor.u32 1.1754944e-38, %v3038_v39 }
 0x2a8   : > { %v5665_v1 = vpop.eup %5664  ;;  %v3028_v54 = vmul.f32 %v5663_v47, %v9068_v2  ;;  %v1553_v30 = vadd.f32 %v1552_v22, %v1224_v53  ;;  %vm3978_vm12 = vweird.f32 %v5659_v63  ;;  %v3051_v60 = vand.u32 2147483647, %v9084_v21  ;;  %v1715_v14 = vpop.f32.mrf.mxu3 }
 0x2a9   : > { %v3016_v29 = vadd.f32 %v5655_v62, %v3015_v48  ;;  %v5667_v40 = vpop.eup %5666  ;;  %v3975_v18 = vmul.f32 %v5659_v63, %v3974_v45  ;;  %v9115_v56 = vadd.f32 1.0, %v5661_v13  ;;  %vm3992_vm13 = vweird.f32 %v9081_v16  ;;  %vm3979_vm1 = vmor %vm3977_vm6, %vm3978_vm12 }
 0x2aa   : > { %v5669_v58 = vpop.eup %5668  ;;  %v3029_v12 = vsub.f32 1.0, %v3028_v54  ;;  %v3999_v15 = vor.u32 1.1754944e-38, %v3998_v34  ;;  %vm9121_vm14 = vcmp.eq.f32.partialorder %v3996_v55, 8.507059e+37  ;;  %vm3047_vm15 = vweird.f32 %v9084_v21 }
 0x2ab   : > { %v3020_v23 = vsel %vm3019_vm11, %v5655_v62, %v3016_v29  ;;  %v3976_v52 = vadd.f32 %v5659_v63, %v3975_v18  ;;  %v3988_v27 = vmul.f32 %v5669_v58, %v9081_v16  ;;  %v9126_v43 = vadd.f32 1.0, %v5665_v1  ;;  %v1557_v1 = vpop.f32.mrf.mxu1 }
 0x2ac   : > { %v3025_v28 = vsel %vm9077_vm3, %v3024_v50, %v3020_v23  ;;  %v5671_v51 = vpop.eup %5670  ;;  %v3030_v49 = vmul.f32 %v5663_v47, %v3029_v12  ;;  %vm3033_vm4 = vweird.f32 %v5663_v47  ;;  %v3053_v24 = vand.u32 2147483648, %v9084_v21  ;;  %v1388_v11 = vpop.f32.mrf.mxu2 }
 0x2ad   : > { %4219 = vst.msk [vmem:[%s6022_s30 + $0x198] sm:$0xff] %vm4167_vm0, %v3025_v28  ;;  %5672 = vrcp.f32 %v9115_v56  ;;  %v3980_v31 = vsel %vm3979_vm1, %v5659_v63, %v3976_v52  ;;  %v3989_v35 = vsub.f32 1.0, %v3988_v27  ;;  %v3043_v25 = vmul.f32 %v5671_v51, %v9084_v21  ;;  %vm3034_vm3 = vmor %vm3032_vm9, %vm3033_vm4 }
 0x2ae   : > { %vm9138_vm5 = vcmp.eq.f32.partialorder %v3051_v60, 8.507059e+37  ;;  %v9142_v20 = vadd.f32 1.0, %v5667_v40  ;;  %v3985_v10 = vsel %vm9094_vm7, %v3984_v38, %v3980_v31  ;;  %v3031_v37 = vadd.f32 %v5663_v47, %v3030_v49 }
 0x2af   : > { %vm3993_vm2 = vweird.f32 %v5669_v58  ;;  %v4013_v3 = vand.u32 2147483648, %v9115_v56  ;;  %4283 = vst.msk [vmem:[%s6022_s30 + $0x398] sm:$0xff] %vm4167_vm0, %v3985_v10  ;;  %v3990_v59 = vmul.f32 %v5669_v58, %v3989_v35  ;;  %v3044_v62 = vsub.f32 1.0, %v3043_v25 }
 0x2b0   : > { %v4011_v33 = vand.u32 2147483647, %v9115_v56  ;;  %5674 = vrcp.f32 %v9126_v43  ;;  %v3035_v22 = vsel %vm3034_vm3, %v5663_v47, %v3031_v37  ;;  %vm3048_vm6 = vweird.f32 %v5671_v51  ;;  %vm3994_vm7 = vmor %vm3992_vm13, %vm3993_vm2  ;;  %v1231_v52 = vpop.f32.mrf.mxu0 }
 0x2b1   : > { %v3054_v57 = vor.u32 1.1754944e-38, %v3053_v24  ;;  %v4993_v8 = vmul.f32 -1.442695, %v1553_v30  ;;  %v3040_v4 = vsel %vm9105_vm10, %v3039_v19, %v3035_v22  ;;  %v3991_v32 = vadd.f32 %v5669_v58, %v3990_v59  ;;  %vm3049_vm11 = vmor %vm3047_vm15, %vm3048_vm6 }
 0x2b2   : > { %v3045_v53 = vmul.f32 %v5671_v51, %v3044_v62  ;;  %5676 = vrcp.f32 %v9142_v20  ;;  %4220 = vst.msk [vmem:[%s6022_s30 + $0x1a0] sm:$0xff] %vm4167_vm0, %v3040_v4  ;;  %vm4007_vm8 = vweird.f32 %v9115_v56  ;;  %v4014_v63 = vor.u32 1.1754944e-38, %v4013_v3 }
 0x2b3   : > { %v5673_v2 = vpop.eup %5672  ;;  %vm3062_vm9 = vweird.f32 %v9126_v43  ;;  %v3066_v6 = vand.u32 2147483647, %v9126_v43  ;;  %v3995_v39 = vsel %vm3994_vm7, %v5669_v58, %v3991_v32  ;;  %vm9165_vm10 = vcmp.eq.f32.partialorder %v4011_v33, 8.507059e+37  ;;  %v1717_v58 = vpop.f32.mrf.mxu3 }
 0x2b4   : > { %v3046_v50 = vadd.f32 %v5671_v51, %v3045_v53  ;;  %v4003_v41 = vmul.f32 %v5673_v2, %v9115_v56  ;;  %v3068_v16 = vand.u32 2147483648, %v9126_v43  ;;  %v4000_v13 = vsel %vm9121_vm14, %v3999_v15, %v3995_v39  ;;  %v1560_v33 = vpop.f32.mrf.mxu1 }
 0x2b5   : > { %vm4008_vm12 = vweird.f32 %v5673_v2  ;;  %v4026_v48 = vand.u32 2147483647, %v9142_v20  ;;  %5678 = vpow2.f32 %v4993_v8  ;;  %4284 = vst.msk [vmem:[%s6022_s30 + $0x3a0] sm:$0xff] %vm4167_vm0, %v4000_v13  ;;  %v1384_v38 = vadd.f32 %v9009_v5, %v9066_v9 }
 0x2b6   : > { %v5675_v34 = vpop.eup %5674  ;;  %v3050_v47 = vsel %vm3049_vm11, %v5671_v51, %v3046_v50  ;;  %v4004_v45 = vsub.f32 1.0, %v4003_v41  ;;  %v1227_v55 = vadd.f32 %v9009_v5, %v9098_v7  ;;  %v4028_v54 = vand.u32 2147483648, %v9142_v20  ;;  %vm4009_vm15 = vmor %vm4007_vm8, %vm4008_vm12 }
 0x2b7   : > { %v3055_v21 = vsel %vm9138_vm5, %v3054_v57, %v3050_v47  ;;  %v3058_v29 = vmul.f32 %v5675_v34, %v9126_v43  ;;  %vm3063_vm13 = vweird.f32 %v5675_v34  ;;  %v1713_v30 = vadd.f32 %v9090_v46, %v1384_v38  ;;  %v1391_v17 = vpop.f32.mrf.mxu2 }
 0x2b8   : > { %v5677_v61 = vpop.eup %5676  ;;  %4221 = vst.msk [vmem:[%s6022_s30 + $0x1a8] sm:$0xff] %vm4167_vm0, %v3055_v21  ;;  %v4005_v19 = vmul.f32 %v5673_v2, %v4004_v45  ;;  %v1556_v9 = vadd.f32 %v9128_v0, %v1227_v55  ;;  %v1387_v7 = vadd.f32 %v9009_v5, %v9109_v36  ;;  %v1229_v60 = vadd.f32 %v9009_v5, %v1228_v44  ;;  %vm3064_vm1 = vmor %vm3062_vm9, %vm3063_vm13 }
 0x2b9   : > { %v3059_v40 = vsub.f32 1.0, %v3058_v29  ;;  %v4018_v18 = vmul.f32 %v5677_v61, %v9142_v20  ;;  %vm4023_vm14 = vweird.f32 %v5677_v61  ;;  %v5057_v12 = vmul.f32 -1.442695, %v1713_v30 }
 0x2ba   : > { %v4006_v23 = vadd.f32 %v5673_v2, %v4005_v19  ;;  %v4994_v15 = vmul.f32 -1.442695, %v1556_v9  ;;  %v1716_v28 = vadd.f32 %v1715_v14, %v1387_v7  ;;  %v1558_v26 = vadd.f32 %v1557_v1, %v1229_v60 }
 0x2bb   : > { %v5679_v27 = vpop.eup %5678  ;;  %v3060_v46 = vmul.f32 %v5675_v34, %v3059_v40  ;;  %v4019_v36 = vsub.f32 1.0, %v4018_v18  ;;  %v1389_v0 = vadd.f32 %v9009_v5, %v1388_v11  ;;  %5680 = vpow2.f32 %v5057_v12 }
 0x2bc   : > { %v4010_v51 = vsel %vm4009_vm15, %v5673_v2, %v4006_v23  ;;  %v9198_v49 = vadd.f32 1.0, %v5679_v27  ;;  %v5058_v24 = vmul.f32 -1.442695, %v1716_v28  ;;  %5682 = vpow2.f32 %v4994_v15  ;;  %v1562_v9 = vpop.f32.mrf.mxu1 }
 0x2bd   : > { %v4015_v31 = vsel %vm9165_vm10, %v4014_v63, %v4010_v51  ;;  %v3061_v35 = vadd.f32 %v5675_v34, %v3060_v46  ;;  %v4020_v25 = vmul.f32 %v5677_v61, %v4019_v36  ;;  %vm3067_vm4 = vcmp.eq.f32.partialorder %v3066_v6, 8.507059e+37  ;;  %v1233_v6 = vpop.f32.mrf.mxu0 }
 0x2be   : > { %4285 = vst.msk [vmem:[%s6022_s30 + $0x3a8] sm:$0xff] %vm4167_vm0, %v4015_v31  ;;  %v3069_v56 = vor.u32 1.1754944e-38, %v3068_v16  ;;  %vm4022_vm5 = vweird.f32 %v9142_v20  ;;  %5684 = vrcp.f32 %v9198_v49  ;;  %v4995_v3 = vmul.f32 -1.442695, %v1558_v26 }
 0x2bf   : > { %v3065_v10 = vsel %vm3064_vm1, %v5675_v34, %v3061_v35  ;;  %v4021_v37 = vadd.f32 %v5677_v61, %v4020_v25  ;;  %5686 = vpow2.f32 %v5058_v24  ;;  %vm4024_vm2 = vmor %vm4022_vm5, %vm4023_vm14  ;;  %v4029_v59 = vor.u32 1.1754944e-38, %v4028_v54  ;;  %v1720_v53 = vpop.f32.mrf.mxu3  ;;  %v1393_v45 = vpop.f32.mrf.mxu2 }
 0x2c0   : > { %v3070_v14 = vsel %vm3067_vm4, %v3069_v56, %v3065_v10  ;;  %v1718_v62 = vadd.f32 %v1717_v58, %v1389_v0  ;;  %vm4027_vm3 = vcmp.eq.f32.partialorder %v4026_v48, 8.507059e+37  ;;  %5688 = vpow2.f32 %v4995_v3 }
 0x2c1   : > { %4222 = vst.msk [vmem:[%s6022_s30 + $0x1b0] sm:$0xff] %vm4167_vm0, %v3070_v14  ;;  %v4025_v43 = vsel %vm4024_vm2, %v5677_v61, %v4021_v37  ;;  %v5681_v44 = vpop.eup %5680  ;;  %v3081_v22 = vand.u32 2147483647, %v9198_v49  ;;  %v1232_v32 = vadd.f32 %v9009_v5, %v1231_v52  ;;  %vm3077_vm6 = vweird.f32 %v9198_v49 }
 0x2c2   : > { %v4030_v20 = vsel %vm4027_vm3, %v4029_v59, %v4025_v43  ;;  %v5059_v57 = vmul.f32 -1.442695, %v1718_v62  ;;  %v5683_v8 = vpop.eup %5682  ;;  %v9215_v4 = vadd.f32 1.0, %v5681_v44  ;;  %v3083_v41 = vand.u32 2147483648, %v9198_v49 }
 0x2c3   : > { %4286 = vst.msk [vmem:[%s6022_s30 + $0x3b0] sm:$0xff] %vm4167_vm0, %v4030_v20  ;;  %v9218_v63 = vadd.f32 1.0, %v5683_v8  ;;  %vm9223_vm7 = vcmp.eq.f32.partialorder %v3081_v22, 8.507059e+37  ;;  %v1392_v42 = vadd.f32 %v9009_v5, %v1391_v17  ;;  %v1561_v34 = vadd.f32 %v1560_v33, %v1232_v32 }
 0x2c4   : > { %v5685_v2 = vpop.eup %5684  ;;  %5690 = vpow2.f32 %v5059_v57  ;;  %v1234_v47 = vadd.f32 %v9009_v5, %v1233_v6  ;;  %v4041_v38 = vand.u32 2147483647, %v9215_v4  ;;  %v4043_v55 = vand.u32 2147483648, %v9215_v4 }
 0x2c5   : > { %v5687_v11 = vpop.eup %5686  ;;  %v3073_v39 = vmul.f32 %v5685_v2, %v9198_v49  ;;  %5692 = vrcp.f32 %v9215_v4  ;;  %vm3078_vm8 = vweird.f32 %v5685_v2  ;;  %v3096_v29 = vand.u32 2147483647, %v9218_v63 }
 0x2c6   : > { %5694 = vrcp.f32 %v9218_v63  ;;  %v5689_v16 = vpop.eup %5688  ;;  %v9230_v48 = vadd.f32 1.0, %v5687_v11  ;;  %v3098_v54 = vand.u32 2147483648, %v9218_v63  ;;  %v3084_v19 = vor.u32 1.1754944e-38, %v3083_v41  ;;  %vm3079_vm10 = vmor %vm3077_vm6, %vm3078_vm8 }
 0x2c7   : > { %v3074_v13 = vsub.f32 1.0, %v3073_v39  ;;  %v9235_v1 = vadd.f32 1.0, %v5689_v16  ;;  %v1721_v30 = vadd.f32 %v1720_v53, %v1392_v42  ;;  %v1394_v7 = vadd.f32 %v9009_v5, %v1393_v45  ;;  %v1722_v0 = vpop.f32.mrf.mxu3  ;;  %v1236_v14 = vpop.f32.mrf.mxu0 }
 0x2c8   : > { %5696 = vrcp.f32 %v9230_v48  ;;  %vm4037_vm9 = vweird.f32 %v9215_v4  ;;  %v4996_v60 = vmul.f32 -1.442695, %v1561_v34  ;;  %v1563_v58 = vadd.f32 %v1562_v9, %v1234_v47  ;;  %v1565_v11 = vpop.f32.mrf.mxu1 }
 0x2c9   : > { %v3075_v21 = vmul.f32 %v5685_v2, %v3074_v13  ;;  %5698 = vrcp.f32 %v9235_v1  ;;  %vm9247_vm11 = vcmp.eq.f32.partialorder %v4041_v38, 8.507059e+37  ;;  %v4044_v28 = vor.u32 1.1754944e-38, %v4043_v55 }
 0x2ca   : > { %v5691_v61 = vpop.eup %5690  ;;  %vm3092_vm12 = vweird.f32 %v9218_v63  ;;  %vm9253_vm13 = vcmp.eq.f32.partialorder %v3096_v29, 8.507059e+37  ;;  %v3099_v36 = vor.u32 1.1754944e-38, %v3098_v54  ;;  %v4056_v26 = vand.u32 2147483647, %v9230_v48 }
 0x2cb   : > { %v5693_v40 = vpop.eup %5692  ;;  %v3076_v18 = vadd.f32 %v5685_v2, %v3075_v21  ;;  %vm4052_vm14 = vweird.f32 %v9230_v48  ;;  %v4058_v24 = vand.u32 2147483648, %v9230_v48  ;;  %v9262_v31 = vadd.f32 1.0, %v5691_v61 }
 0x2cc   : > { %v5695_v23 = vpop.eup %5694  ;;  %v4033_v12 = vmul.f32 %v5693_v40, %v9215_v4  ;;  %vm3107_vm15 = vweird.f32 %v9235_v1  ;;  %v3111_v17 = vand.u32 2147483647, %v9235_v1  ;;  %5700 = vpow2.f32 %v4996_v60 }
 0x2cd   : > { %v3080_v52 = vsel %vm3079_vm10, %v5685_v2, %v3076_v18  ;;  %v3088_v27 = vmul.f32 %v5695_v23, %v9218_v63  ;;  %v5060_v56 = vmul.f32 -1.442695, %v1721_v30  ;;  %vm4038_vm1 = vweird.f32 %v5693_v40  ;;  %v1396_v43 = vpop.f32.mrf.mxu2 }
 0x2ce   : > { %v3085_v51 = vsel %vm9223_vm7, %v3084_v19, %v3080_v52  ;;  %v4034_v49 = vsub.f32 1.0, %v4033_v12  ;;  %v5697_v35 = vpop.eup %5696  ;;  %5702 = vrcp.f32 %v9262_v31  ;;  %vm3093_vm4 = vweird.f32 %v5695_v23  ;;  %vm4039_vm2 = vmor %vm4037_vm9, %vm4038_vm1 }
 0x2cf   : > { %4223 = vst.msk [vmem:[%s6022_s30 + $0x1b8] sm:$0xff] %vm4167_vm0, %v3085_v51  ;;  %v3089_v25 = vsub.f32 1.0, %v3088_v27  ;;  %v5699_v10 = vpop.eup %5698  ;;  %v4048_v3 = vmul.f32 %v5697_v35, %v9230_v48  ;;  %v4997_v33 = vmul.f32 -1.442695, %v1563_v58  ;;  %vm9271_vm5 = vcmp.eq.f32.partialorder %v4056_v26, 8.507059e+37  ;;  %vm3094_vm3 = vmor %vm3092_vm12, %vm3093_vm4  ;;  %v1725_v21 = vpop.f32.mrf.mxu3 }
 0x2d0   : > { %v4035_v37 = vmul.f32 %v5693_v40, %v4034_v49  ;;  %v3103_v62 = vmul.f32 %v5699_v10, %v9235_v1  ;;  %v3113_v57 = vand.u32 2147483648, %v9235_v1  ;;  %5704 = vpow2.f32 %v5060_v56  ;;  %v1238_v18 = vpop.f32.mrf.mxu0  ;;  %v1567_v49 = vpop.f32.mrf.mxu1 }
 0x2d1   : > { %v3090_v59 = vmul.f32 %v5695_v23, %v3089_v25  ;;  %v4049_v20 = vsub.f32 1.0, %v4048_v3  ;;  %v1723_v53 = vadd.f32 %v1722_v0, %v1394_v7  ;;  %vm4053_vm6 = vweird.f32 %v5697_v35 }
 0x2d2   : > { %v4036_v44 = vadd.f32 %v5693_v40, %v4035_v37  ;;  %v3104_v32 = vsub.f32 1.0, %v3103_v62  ;;  %vm3108_vm7 = vweird.f32 %v5699_v10  ;;  %v5701_v39 = vpop.eup %5700  ;;  %5706 = vpow2.f32 %v4997_v33  ;;  %vm4054_vm8 = vmor %vm4052_vm14, %vm4053_vm6 }
 0x2d3   : > { %v3091_v8 = vadd.f32 %v5695_v23, %v3090_v59  ;;  %v4050_v6 = vmul.f32 %v5697_v35, %v4049_v20  ;;  %v9286_v13 = vadd.f32 1.0, %v5701_v39  ;;  %v5061_v34 = vmul.f32 -1.442695, %v1723_v53  ;;  %vm3109_vm9 = vmor %vm3107_vm15, %vm3108_vm7 }
 0x2d4   : > { %v4040_v2 = vsel %vm4039_vm2, %v5693_v40, %v4036_v44  ;;  %v3105_v41 = vmul.f32 %v5699_v10, %v3104_v32  ;;  %v5703_v42 = vpop.eup %5702  ;;  %v4059_v47 = vor.u32 1.1754944e-38, %v4058_v24  ;;  %v1237_v55 = vadd.f32 %v9009_v5, %v1236_v14 }
 0x2d5   : > { %v4045_v50 = vsel %vm9247_vm11, %v4044_v28, %v4040_v2  ;;  %v3095_v4 = vsel %vm3094_vm3, %v5695_v23, %v3091_v8  ;;  %v4051_v63 = vadd.f32 %v5697_v35, %v4050_v6  ;;  %v4063_v38 = vmul.f32 %v5703_v42, %v9262_v31  ;;  %v1398_v15 = vpop.f32.mrf.mxu2 }
 0x2d6   : > { %4287 = vst.msk [vmem:[%s6022_s30 + $0x3b8] sm:$0xff] %vm4167_vm0, %v4045_v50  ;;  %v3100_v16 = vsel %vm9253_vm13, %v3099_v36, %v3095_v4  ;;  %v3106_v45 = vadd.f32 %v5699_v10, %v3105_v41  ;;  %vm3112_vm10 = vcmp.eq.f32.partialorder %v3111_v17, 8.507059e+37  ;;  %v3114_v54 = vor.u32 1.1754944e-38, %v3113_v57  ;;  %v5705_v48 = vpop.eup %5704 }
 0x2d7   : > { %4224 = vst.msk [vmem:[%s6022_s30 + $0x1c0] sm:$0xff] %vm4167_vm0, %v3100_v16  ;;  %v4055_v29 = vsel %vm4054_vm8, %v5697_v35, %v4051_v63  ;;  %5708 = vrcp.f32 %v9286_v13  ;;  %v4064_v30 = vsub.f32 1.0, %v4063_v38  ;;  %v4071_v9 = vand.u32 2147483647, %v9262_v31  ;;  %v1727_v14 = vpop.f32.mrf.mxu3 }
 0x2d8   : > { %v4060_v61 = vsel %vm9271_vm5, %v4059_v47, %v4055_v29  ;;  %v3110_v19 = vsel %vm3109_vm9, %v5699_v10, %v3106_v45  ;;  %v4073_v40 = vand.u32 2147483648, %v9262_v31  ;;  %v9305_v1 = vadd.f32 1.0, %v5705_v48  ;;  %v5707_v60 = vpop.eup %5706  ;;  %v1241_v32 = vpop.f32.mrf.mxu0 }
 0x2d9   : > { %4288 = vst.msk [vmem:[%s6022_s30 + $0x3c0] sm:$0xff] %vm4167_vm0, %v4060_v61  ;;  %v3115_v7 = vsel %vm3112_vm10, %v3114_v54, %v3110_v19  ;;  %5710 = vpow2.f32 %v5061_v34  ;;  %v4065_v58 = vmul.f32 %v5703_v42, %v4064_v30  ;;  %vm4068_vm11 = vweird.f32 %v5703_v42 }
 0x2da   : > { %4225 = vst.msk [vmem:[%s6022_s30 + $0x1c8] sm:$0xff] %vm4167_vm0, %v3115_v7  ;;  %v1566_v23 = vadd.f32 %v1565_v11, %v1237_v55  ;;  %v1397_v12 = vadd.f32 %v9009_v5, %v1396_v43  ;;  %vm4067_vm12 = vweird.f32 %v9262_v31  ;;  %5712 = vrcp.f32 %v9305_v1 }
 0x2db   : > { %v4066_v28 = vadd.f32 %v5703_v42, %v4065_v58  ;;  %v9312_v52 = vadd.f32 1.0, %v5707_v60  ;;  %vm4069_vm13 = vmor %vm4067_vm12, %vm4068_vm11  ;;  %v4074_v26 = vor.u32 1.1754944e-38, %v4073_v40  ;;  %v3126_v0 = vand.u32 2147483647, %v9286_v13 }
 0x2dc   : > { %v4998_v27 = vmul.f32 -1.442695, %v1566_v23  ;;  %v1726_v46 = vadd.f32 %v1725_v21, %v1397_v12  ;;  %v1239_v51 = vadd.f32 %v9009_v5, %v1238_v18  ;;  %v1399_v24 = vadd.f32 %v9009_v5, %v1398_v15 }
 0x2dd   : > { %v5709_v36 = vpop.eup %5708  ;;  %v4070_v35 = vsel %vm4069_vm13, %v5703_v42, %v4066_v28  ;;  %vm4072_vm14 = vcmp.eq.f32.partialorder %v4071_v9, 8.507059e+37  ;;  %5714 = vrcp.f32 %v9312_v52  ;;  %vm3122_vm15 = vweird.f32 %v9286_v13 }
 0x2de   : > { %v3118_v31 = vmul.f32 %v5709_v36, %v9286_v13  ;;  %v4075_v17 = vsel %vm4072_vm14, %v4074_v26, %v4070_v35  ;;  %v3128_v56 = vand.u32 2147483648, %v9286_v13  ;;  %5716 = vpow2.f32 %v4998_v27 }
 0x2df   : > { %v5711_v25 = vpop.eup %5710  ;;  %4289 = vst.msk [vmem:[%s6022_s30 + $0x3c8] sm:$0xff] %vm4167_vm0, %v4075_v17  ;;  %v5062_v3 = vmul.f32 -1.442695, %v1726_v46  ;;  %vm9325_vm1 = vcmp.eq.f32.partialorder %v3126_v0, 8.507059e+37  ;;  %v4086_v33 = vand.u32 2147483647, %v9305_v1  ;;  %v1568_v43 = vadd.f32 %v1567_v49, %v1239_v51 }
 0x2e0   : > { %v3119_v10 = vsub.f32 1.0, %v3118_v31  ;;  %v9323_v37 = vadd.f32 1.0, %v5711_v25  ;;  %v5713_v59 = vpop.eup %5712  ;;  %v1728_v44 = vadd.f32 %v1727_v14, %v1399_v24  ;;  %vm3123_vm4 = vweird.f32 %v5709_v36  ;;  %v1243_v0 = vpop.f32.mrf.mxu0 }
 0x2e1   : > { %v4078_v22 = vmul.f32 %v5713_v59, %v9305_v1  ;;  %v3129_v57 = vor.u32 1.1754944e-38, %v3128_v56  ;;  %vm4082_vm5 = vweird.f32 %v9305_v1  ;;  %v4088_v8 = vand.u32 2147483648, %v9305_v1  ;;  %vm3124_vm2 = vmor %vm3122_vm15, %vm3123_vm4 }
 0x2e2   : > { %v3120_v20 = vmul.f32 %v5709_v36, %v3119_v10  ;;  %5718 = vrcp.f32 %v9323_v37  ;;  %v4999_v11 = vmul.f32 -1.442695, %v1568_v43  ;;  %v5063_v39 = vmul.f32 -1.442695, %v1728_v44 }
 0x2e3   : > { %5720 = vpow2.f32 %v5062_v3  ;;  %v5715_v53 = vpop.eup %5714  ;;  %v4079_v6 = vsub.f32 1.0, %v4078_v22  ;;  %vm4083_vm3 = vweird.f32 %v5713_v59  ;;  %vm9336_vm6 = vcmp.eq.f32.partialorder %v4086_v33, 8.507059e+37 }
 0x2e4   : > { %v3121_v2 = vadd.f32 %v5709_v36, %v3120_v20  ;;  %v3133_v4 = vmul.f32 %v5715_v53, %v9312_v52  ;;  %v3141_v41 = vand.u32 2147483647, %v9312_v52  ;;  %v5717_v42 = vpop.eup %5716  ;;  %5722 = vpow2.f32 %v4999_v11  ;;  %v1570_v38 = vpop.f32.mrf.mxu1  ;;  %vm4084_vm7 = vmor %vm4082_vm5, %vm4083_vm3 }
 0x2e5   : > { %v4080_v63 = vmul.f32 %v5713_v59, %v4079_v6  ;;  %v1242_v34 = vadd.f32 %v9009_v5, %v1241_v32  ;;  %v9345_v45 = vadd.f32 1.0, %v5717_v42  ;;  %5724 = vpow2.f32 %v5063_v39 }
 0x2e6   : > { %v3125_v16 = vsel %vm3124_vm2, %v5709_v36, %v3121_v2  ;;  %v3134_v47 = vsub.f32 1.0, %v3133_v4  ;;  %v4089_v29 = vor.u32 1.1754944e-38, %v4088_v8  ;;  %v3143_v54 = vand.u32 2147483648, %v9312_v52 }
 0x2e7   : > { %v3130_v13 = vsel %vm9325_vm1, %v3129_v57, %v3125_v16  ;;  %v4081_v21 = vadd.f32 %v5713_v59, %v4080_v63  ;;  %v1571_v48 = vadd.f32 %v1570_v38, %v1242_v34  ;;  %vm3138_vm8 = vweird.f32 %v5715_v53  ;;  %v5755_v63 = vld [vmem:[%s9449_s2] ss:$0 sm:$0xff] }
 0x2e8   : > { %v5719_v55 = vpop.eup %5718  ;;  %4226 = vst.msk [vmem:[%s6022_s30 + $0x1d0] sm:$0xff] %vm4167_vm0, %v3130_v13  ;;  %v3135_v19 = vmul.f32 %v5715_v53, %v3134_v47  ;;  %5726 = vrcp.f32 %v9345_v45  ;;  %vm3137_vm9 = vweird.f32 %v9312_v52  ;;  %vm9356_vm10 = vcmp.eq.f32.partialorder %v3141_v41, 8.507059e+37 }
 0x2e9   : > { %v5721_v61 = vpop.eup %5720  ;;  %v4093_v30 = vmul.f32 %v5719_v55, %v9323_v37  ;;  %v4085_v9 = vsel %vm4084_vm7, %v5713_v59, %v4081_v21  ;;  %v4101_v40 = vand.u32 2147483647, %v9323_v37  ;;  %vm3139_vm11 = vmor %vm3137_vm9, %vm3138_vm8  ;;  %v3144_v15 = vor.u32 1.1754944e-38, %v3143_v54 }
 0x2ea   : > { %v1401_v18 = vpop.f32.mrf.mxu2  ;;  %v4090_v1 = vsel %vm9336_vm6, %v4089_v29, %v4085_v9  ;;  %v3136_v60 = vadd.f32 %v5715_v53, %v3135_v19  ;;  %v9363_v23 = vadd.f32 1.0, %v5721_v61  ;;  %v5723_v12 = vpop.eup %5722  ;;  %vm4098_vm12 = vweird.f32 %v5719_v55 }
 0x2eb   : > { %v4094_v58 = vsub.f32 1.0, %v4093_v30  ;;  %4290 = vst.msk [vmem:[%s6022_s30 + $0x3d0] sm:$0xff] %vm4167_vm0, %v4090_v1  ;;  %v4103_v28 = vand.u32 2147483648, %v9323_v37  ;;  %v5000_v52 = vmul.f32 -1.442695, %v1571_v48  ;;  %v5725_v27 = vpop.eup %5724  ;;  %v1402_v26 = vadd.f32 %v9009_v5, %v1401_v18  ;;  %v1730_v10 = vpop.f32.mrf.mxu3 }
 0x2ec   : > { %v3140_v46 = vsel %vm3139_vm11, %v5715_v53, %v3136_v60  ;;  %5728 = vrcp.f32 %v9363_v23  ;;  %vm4097_vm13 = vweird.f32 %v9323_v37  ;;  %v9373_v49 = vadd.f32 1.0, %v5723_v12  ;;  %v1572_v57 = vpop.f32.mrf.mxu1 }
 0x2ed   : > { %v4095_v36 = vmul.f32 %v5719_v55, %v4094_v58  ;;  %v3145_v51 = vsel %vm9356_vm10, %v3144_v15, %v3140_v46  ;;  %vm4102_vm14 = vcmp.eq.f32.partialorder %v4101_v40, 8.507059e+37  ;;  %v9377_v31 = vadd.f32 1.0, %v5725_v27  ;;  %vm4099_vm15 = vmor %vm4097_vm13, %vm4098_vm12 }
 0x2ee   : > { %v5727_v24 = vpop.eup %5726  ;;  %4227 = vst.msk [vmem:[%s6022_s30 + $0x1d8] sm:$0xff] %vm4167_vm0, %v3145_v51  ;;  %5730 = vpow2.f32 %v5000_v52  ;;  %v4104_v25 = vor.u32 1.1754944e-38, %v4103_v28  ;;  %v3156_v56 = vand.u32 2147483647, %v9345_v45  ;;  %v1244_v37 = vadd.f32 %v9009_v5, %v1243_v0 }
 0x2ef   : > { %v4096_v35 = vadd.f32 %v5719_v55, %v4095_v36  ;;  %v3148_v17 = vmul.f32 %v5727_v24, %v9345_v45  ;;  %v3158_v14 = vand.u32 2147483648, %v9345_v45  ;;  %5732 = vrcp.f32 %v9373_v49 }
 0x2f0   : > { %v1731_v59 = vadd.f32 %v1730_v10, %v1402_v26  ;;  %5734 = vrcp.f32 %v9377_v31  ;;  %vm3152_vm1 = vweird.f32 %v9345_v45  ;;  %v4116_v44 = vand.u32 2147483647, %v9363_v23 }
 0x2f1   : > { %v4100_v3 = vsel %vm4099_vm15, %v5719_v55, %v4096_v35  ;;  %v3149_v33 = vsub.f32 1.0, %v3148_v17  ;;  %vm3153_vm4 = vweird.f32 %v5727_v24  ;;  %vm9390_vm5 = vcmp.eq.f32.partialorder %v3156_v56, 8.507059e+37 }
 0x2f2   : > { %v4105_v62 = vsel %vm4102_vm14, %v4104_v25, %v4100_v3  ;;  %v5729_v43 = vpop.eup %5728  ;;  %v1403_v8 = vpop.f32.mrf.mxu2  ;;  %v3159_v53 = vor.u32 1.1754944e-38, %v3158_v14  ;;  %v4118_v2 = vand.u32 2147483648, %v9363_v23  ;;  %v5064_v6 = vmul.f32 -1.442695, %v1731_v59  ;;  %vm3154_vm3 = vmor %vm3152_vm1, %vm3153_vm4 }
 0x2f3   : > { %4291 = vst.msk [vmem:[%s6022_s30 + $0x3d8] sm:$0xff] %vm4167_vm0, %v4105_v62  ;;  %v3150_v20 = vmul.f32 %v5727_v24, %v3149_v33  ;;  %v4108_v22 = vmul.f32 %v5729_v43, %v9363_v23  ;;  %v1573_v11 = vadd.f32 %v1572_v57, %v1244_v37  ;;  %vm4112_vm2 = vweird.f32 %v9363_v23  ;;  %v1732_v30 = vpop.f32.mrf.mxu3 }
 0x2f4   : > { %v5731_v32 = vpop.eup %5730  ;;  %vm9402_vm6 = vcmp.eq.f32.partialorder %v4116_v44, 8.507059e+37  ;;  %5736 = vpow2.f32 %v5064_v6  ;;  %v1404_v34 = vadd.f32 %v5755_v63, %v1403_v8  ;;  %vm4113_vm7 = vweird.f32 %v5729_v43 }
 0x2f5   : > { %v3151_v39 = vadd.f32 %v5727_v24, %v3150_v20  ;;  %v4109_v50 = vsub.f32 1.0, %v4108_v22  ;;  %v9397_v4 = vadd.f32 1.0, %v5731_v32  ;;  %v5733_v41 = vpop.eup %5732  ;;  %v5001_v16 = vmul.f32 -1.442695, %v1573_v11  ;;  %vm4114_vm8 = vmor %vm4112_vm2, %vm4113_vm7 }
 0x2f6   : > { %v5735_v13 = vpop.eup %5734  ;;  %v3163_v55 = vmul.f32 %v5733_v41, %v9373_v49  ;;  %v4119_v21 = vor.u32 1.1754944e-38, %v4118_v2  ;;  %v3171_v61 = vand.u32 2147483647, %v9373_v49  ;;  %v3173_v19 = vand.u32 2147483648, %v9373_v49 }
 0x2f7   : > { %v3155_v47 = vsel %vm3154_vm3, %v5727_v24, %v3151_v39  ;;  %v4110_v38 = vmul.f32 %v5729_v43, %v4109_v50  ;;  %v4123_v29 = vmul.f32 %v5735_v13, %v9377_v31  ;;  %5738 = vrcp.f32 %v9397_v4 }
 0x2f8   : > { %v3160_v45 = vsel %vm9390_vm5, %v3159_v53, %v3155_v47  ;;  %v3164_v48 = vsub.f32 1.0, %v3163_v55  ;;  %v4131_v7 = vand.u32 2147483647, %v9377_v31  ;;  %5740 = vpow2.f32 %v5001_v16 }
 0x2f9   : > { %4228 = vst.msk [vmem:[%s6022_s30 + $0x1e0] sm:$0xff] %vm4167_vm0, %v3160_v45  ;;  %v4111_v54 = vadd.f32 %v5729_v43, %v4110_v38  ;;  %v4124_v9 = vsub.f32 1.0, %v4123_v29  ;;  %v1733_v40 = vadd.f32 %v1732_v30, %v1404_v34  ;;  %vm3168_vm9 = vweird.f32 %v5733_v41 }
 0x2fa   : > { %v3165_v1 = vmul.f32 %v5733_v41, %v3164_v48  ;;  %v4133_v60 = vand.u32 2147483648, %v9377_v31  ;;  %v5737_v58 = vpop.eup %5736  ;;  %vm4128_vm10 = vweird.f32 %v5735_v13  ;;  %vm3167_vm11 = vweird.f32 %v9373_v49 }
 0x2fb   : > { %v4115_v18 = vsel %vm4114_vm8, %v5729_v43, %v4111_v54  ;;  %v4125_v15 = vmul.f32 %v5735_v13, %v4124_v9  ;;  %v5065_v28 = vmul.f32 -1.442695, %v1733_v40  ;;  %vm3172_vm12 = vcmp.eq.f32.partialorder %v3171_v61, 8.507059e+37  ;;  %vm3169_vm13 = vmor %vm3167_vm11, %vm3168_vm9 }
 0x2fc   : > { %v4120_v12 = vsel %vm9402_vm6, %v4119_v21, %v4115_v18  ;;  %v3166_v23 = vadd.f32 %v5733_v41, %v3165_v1  ;;  %v2245_v52 = vadd.f32 1.0, %v5737_v58  ;;  %v3174_v46 = vor.u32 1.1754944e-38, %v3173_v19 }
 0x2fd   : > { %4292 = vst.msk [vmem:[%s6022_s30 + $0x3e0] sm:$0xff] %vm4167_vm0, %v4120_v12  ;;  %v5739_v27 = vpop.eup %5738  ;;  %v4126_v36 = vadd.f32 %v5735_v13, %v4125_v15  ;;  %vm4127_vm14 = vweird.f32 %v9377_v31  ;;  %5742 = vpow2.f32 %v5065_v28  ;;  %v4134_v0 = vor.u32 1.1754944e-38, %v4133_v60 }
 0x2fe   : > { %v3170_v26 = vsel %vm3169_vm13, %v5733_v41, %v3166_v23  ;;  %vm4129_vm15 = vmor %vm4127_vm14, %vm4128_vm10  ;;  %v3178_v51 = vmul.f32 %v5739_v27, %v9397_v4  ;;  %5744 = vrcp.f32 %v2245_v52  ;;  %v5741_v24 = vpop.eup %5740  ;;  %vm4132_vm1 = vcmp.eq.f32.partialorder %v4131_v7, 8.507059e+37 }
 0x2ff   : > { %v3175_v35 = vsel %vm3172_vm12, %v3174_v46, %v3170_v26  ;;  %v4130_v49 = vsel %vm4129_vm15, %v5735_v13, %v4126_v36  ;;  %v2182_v56 = vadd.f32 1.0, %v5741_v24  ;;  %vm3182_vm4 = vweird.f32 %v9397_v4 }
 0x300   : > { %4229 = vst.msk [vmem:[%s6022_s30 + $0x1e8] sm:$0xff] %vm4167_vm0, %v3175_v35  ;;  %v4135_v25 = vsel %vm4132_vm1, %v4134_v0, %v4130_v49  ;;  %v3179_v17 = vsub.f32 1.0, %v3178_v51  ;;  %v3188_v31 = vand.u32 2147483648, %v9397_v4  ;;  %vm3183_vm5 = vweird.f32 %v5739_v27 }
 0x301   : > { %4293 = vst.msk [vmem:[%s6022_s30 + $0x3e8] sm:$0xff] %vm4167_vm0, %v4135_v25  ;;  %v3186_v37 = vand.u32 2147483647, %v9397_v4  ;;  %5746 = vrcp.f32 %v2182_v56  ;;  %vm3184_vm2 = vmor %vm3182_vm4, %vm3183_vm5  ;;  %v4146_v57 = vand.u32 2147483647, %v2245_v52  ;;  %v4148_v8 = vand.u32 2147483648, %v2245_v52 }
 0x302   : > { %v3180_v10 = vmul.f32 %v5739_v27, %v3179_v17  ;;  %v3189_v33 = vor.u32 1.1754944e-38, %v3188_v31  ;;  %vm4142_vm7 = vweird.f32 %v2245_v52  ;;  %v3201_v50 = vand.u32 2147483647, %v2182_v56 }
 0x303   : > { %v5743_v3 = vpop.eup %5742  ;;  %vm3187_vm3 = vcmp.eq.f32.partialorder %v3186_v37, 8.507059e+37  ;;  %vm4147_vm9 = vcmp.eq.f32.partialorder %v4146_v57, 8.507059e+37  ;;  %v4149_v39 = vor.u32 1.1754944e-38, %v4148_v8  ;;  %v3203_v4 = vand.u32 2147483648, %v2182_v56 }
 0x304   : > { %v5745_v14 = vpop.eup %5744  ;;  %v3181_v59 = vadd.f32 %v5739_v27, %v3180_v10  ;;  %v2246_v62 = vadd.f32 1.0, %v5743_v3  ;;  %vm3197_vm11 = vweird.f32 %v2182_v56  ;;  %vm3202_vm13 = vcmp.eq.f32.partialorder %v3201_v50, 8.507059e+37 }
 0x305   : > { %v4138_v43 = vmul.f32 %v5745_v14, %v2245_v52  ;;  %vm4143_vm6 = vweird.f32 %v5745_v14  ;;  %v3204_v47 = vor.u32 1.1754944e-38, %v3203_v4 }
 0x306   : > { %v3185_v44 = vsel %vm3184_vm2, %v5739_v27, %v3181_v59  ;;  %5748 = vrcp.f32 %v2246_v62  ;;  %vm4144_vm8 = vmor %vm4142_vm7, %vm4143_vm6  ;;  %v4163_v38 = vand.u32 2147483648, %v2246_v62  ;;  %v4161_v21 = vand.u32 2147483647, %v2246_v62 }
 0x307   : > { %v3190_v20 = vsel %vm3187_vm3, %v3189_v33, %v3185_v44  ;;  %v4139_v5 = vsub.f32 1.0, %v4138_v43  ;;  %v5747_v22 = vpop.eup %5746  ;;  %vm4157_vm15 = vweird.f32 %v2246_v62 }
 0x308   : > { %4230 = vst.msk [vmem:[%s6022_s30 + $0x1f0] sm:$0xff] %vm4167_vm0, %v3190_v20  ;;  %v3193_v53 = vmul.f32 %v5747_v22, %v2182_v56  ;;  %vm3198_vm10 = vweird.f32 %v5747_v22  ;;  %v4164_v48 = vor.u32 1.1754944e-38, %v4163_v38  ;;  %vm4162_vm4 = vcmp.eq.f32.partialorder %v4161_v21, 8.507059e+37 }
 0x309   : > { %v4140_v32 = vmul.f32 %v5745_v14, %v4139_v5  ;;  %vm3199_vm12 = vmor %vm3197_vm11, %vm3198_vm10 }
 0x30a   : > { %v3194_v6 = vsub.f32 1.0, %v3193_v53 }
 0x30b   : > { %v4141_v2 = vadd.f32 %v5745_v14, %v4140_v32 }
 0x30c   : > { %v5749_v11 = vpop.eup %5748  ;;  %v3195_v42 = vmul.f32 %v5747_v22, %v3194_v6 }
 0x30d   : > { %v4145_v41 = vsel %vm4144_vm8, %v5745_v14, %v4141_v2  ;;  %v4153_v16 = vmul.f32 %v5749_v11, %v2246_v62  ;;  %vm4158_vm14 = vweird.f32 %v5749_v11 }
 0x30e   : > { %v4150_v63 = vsel %vm4147_vm9, %v4149_v39, %v4145_v41  ;;  %v3196_v34 = vadd.f32 %v5747_v22, %v3195_v42  ;;  %vm4159_vm1 = vmor %vm4157_vm15, %vm4158_vm14 }
 0x30f   : > { %4294 = vst.msk [vmem:[%s6022_s30 + $0x3f0] sm:$0xff] %vm4167_vm0, %v4150_v63  ;;  %v4154_v13 = vsub.f32 1.0, %v4153_v16 }
 0x310   : > { %v3200_v55 = vsel %vm3199_vm12, %v5747_v22, %v3196_v34 }
 0x311   : > { %v4155_v45 = vmul.f32 %v5749_v11, %v4154_v13  ;;  %v3205_v29 = vsel %vm3202_vm13, %v3204_v47, %v3200_v55 }
 0x312   : > { %4231 = vst.msk [vmem:[%s6022_s30 + $0x1f8] sm:$0xff] %vm4167_vm0, %v3205_v29 }
 0x313   : > { %v4156_v54 = vadd.f32 %v5749_v11, %v4155_v45 }
 0x315   : > { %v4160_v61 = vsel %vm4159_vm1, %v5749_v11, %v4156_v54 }
 0x316   : > { %v4165_v19 = vsel %vm4162_vm4, %v4164_v48, %v4160_v61 }
 0x317   : > { %4295 = vst.msk [vmem:[%s6022_s30 + $0x3f8] sm:$0xff] %vm4167_vm0, %v4165_v19 }
 0x318 PF: > { %s13_s12 = sadd.s32 1, %s5762_s12  }
 0x319   : > { %p10_p4 = scmp.ge.s32.totalorder %s13_s12, 4  }
 0x31b   :  { %12 = sbr.rel (!%p10_p4) target bundleno = 1 (0x1), region = 62 }

</bundles_post_ra>
